<compile_context>
chip_gen: v7x
topology: tpu7x:2x2x1
jax: 0.10.0
libtpu: 0.0.40
codegen_flags: <defaults>
</compile_context>

<pallas_src>
import jax
import jax.numpy as jnp
from jax.experimental import pallas as pl
from jax.experimental.pallas import tpu as pltpu


def _round_up(n, m):
    return ((n + m - 1) // m) * m


def _vmem_limit_bytes():
    # v5e/v6e: 128 MiB VMEM per TensorCore, v7x: 64 MiB.  Never request more
    # than ~3/4 of physical capacity (96 MiB was illegal on v7x).
    cap = 64 << 20
    try:
        cap = int(getattr(pltpu.get_tpu_info(), "vmem_capacity_bytes", cap))
    except Exception:
        pass
    return min((cap * 3) // 4, 96 << 20)


def multivae_kernel(x_ref, w1_ref, b1_ref, w2_ref, b2_ref, w3_ref, b3_ref,
                    w4_ref, b4_ref,
                    enc_ref, recon_ref,
                    acc_ref, ssq_ref, d_ref):
    """Grid = (batch_tiles, 2 * item_tiles); see module docstring for phases."""
    j = pl.program_id(1)
    nt = pl.num_programs(1) // 2          # number of item tiles
    lat_pad = w3_ref.shape[0]             # padded latent width (z columns)

    # ---- reset per-batch-tile accumulators ----
    @pl.when(j == 0)
    def _init():
        acc_ref[...] = jnp.zeros_like(acc_ref)
        ssq_ref[...] = jnp.zeros_like(ssq_ref)

    # ---- phase 0: encoder K-reduction over item tiles ----
    @pl.when(j < nt)
    def _encode_accumulate():
        x = x_ref[...]                                         # (bb, ti) f32
        ssq_ref[...] += jnp.sum(x * x, axis=1, keepdims=True)  # row ||x||^2
        acc_ref[...] += jnp.dot(x.astype(jnp.bfloat16), w1_ref[...],
                                preferred_element_type=jnp.float32)

    # ---- end of phase 0: finish encoder, compute decoder hidden ----
    @pl.when(j == nt - 1)
    def _finish_encoder():
        # F.normalize(x, p=2, dim=1, eps=1e-12): the per-row scale commutes with
        # x @ w1, so apply it post-accumulation (rsqrt -> EUP slot, ~free).
        inv_norm = jax.lax.rsqrt(jnp.maximum(ssq_ref[...], 1e-24))
        h = jnp.tanh(acc_ref[...] * inv_norm + b1_ref[...])
        # Dropout(p=0.5) is identity in eval mode.
        enc = jnp.dot(h.astype(jnp.bfloat16), w2_ref[...],
                      preferred_element_type=jnp.float32) + b2_ref[...]
        enc_ref[...] = enc                         # packed [mu | pad | log_var | pad]
        z = enc[:, :lat_pad]                       # reparametrize (eval): z = mu
        d = jnp.tanh(jnp.dot(z.astype(jnp.bfloat16), w3_ref[...],
                             preferred_element_type=jnp.float32) + b3_ref[...])
        d_ref[...] = d.astype(jnp.bfloat16)

    # ---- phase 1: decoder output N-tiles over items ----
    @pl.when(j >= nt)
    def _decode_tile():
        recon_ref[...] = (
            jnp.dot(d_ref[...], w4_ref[...], preferred_element_type=jnp.float32)
            + b4_ref[...])


def prepare_params(params, *, item_pad, hidden_pad, latent_pad,
                   weight_dtype=jnp.bfloat16):
    """Pad / fuse / cast the natural (in, out)-layout params for the kernel."""
    item_cnt, hidden = params["w1"].shape
    latent = params["w3"].shape[0]
    f32 = jnp.float32

    def pad2(a, rows, cols):
        r, c = a.shape
        return jnp.pad(a.astype(f32), ((0, rows - r), (0, cols - c)))

    w1 = pad2(params["w1"], item_pad, hidden_pad).astype(weight_dtype)
    b1 = pad2(params["b1"], 1, hidden_pad)

    # Fused encoder head: columns laid out as [mu | 0-pad | log_var | 0-pad] so
    # the kernel emits one lane-dense output and z = enc[:, :latent_pad].
    w2 = params["w2"].astype(f32)
    b2 = params["b2"].astype(f32)
    w2f = jnp.zeros((hidden_pad, 2 * latent_pad), f32)
    w2f = w2f.at[:hidden, :latent].set(w2[:, :latent])
    w2f = w2f.at[:hidden, latent_pad:latent_pad + latent].set(w2[:, latent:])
    b2f = jnp.zeros((1, 2 * latent_pad), f32)
    b2f = b2f.at[:, :latent].set(b2[:, :latent])
    b2f = b2f.at[:, latent_pad:latent_pad + latent].set(b2[:, latent:])

    w3 = pad2(params["w3"], latent_pad, hidden_pad).astype(weight_dtype)
    b3 = pad2(params["b3"], 1, hidden_pad)
    w4 = pad2(params["w4"], hidden_pad, item_pad).astype(weight_dtype)
    b4 = pad2(params["b4"], 1, item_pad)

    return dict(w1=w1, b1=b1, w2=w2f.astype(weight_dtype), b2=b2f,
                w3=w3, b3=b3, w4=w4, b4=b4)


def multivae_forward(x, params, *, block_b=256, item_tile=512):
    """MultiVAE eval-mode forward on a (B, item_cnt) batch.

    params: natural layout dict (w1,b1,w2,b2,w3,b3,w4,b4) with weights stored
    (in_features, out_features) and biases (1, out_features).
    Returns (recon, mu, log_var) with unpadded shapes.
    """
    assert block_b % 8 == 0 and item_tile % 128 == 0
    B, item_cnt = x.shape
    hidden = params["w1"].shape[1]
    latent = params["w3"].shape[0]

    b_pad = _round_up(B, block_b)
    item_pad = _round_up(item_cnt, item_tile)
    hidden_pad = _round_up(hidden, 128)       # 2000 -> 2048
    latent_pad = _round_up(latent, 128)       # 150  -> 256
    nb = b_pad // block_b
    nt = item_pad // item_tile

    p = prepare_params(params, item_pad=item_pad, hidden_pad=hidden_pad,
                       latent_pad=latent_pad)
    x_pad = jnp.pad(x.astype(jnp.float32),
                    ((0, b_pad - B), (0, item_pad - item_cnt)))

    last_k = nt - 1
    # Phase 0 streams x / w1; during phase 1 their indices are parked (no DMA).
    x_map = lambda i, j: (i, jnp.minimum(j, last_k))
    w1_map = lambda i, j: (jnp.minimum(j, last_k), 0)
    # w4 / b4 / recon are parked during phase 0 and streamed during phase 1.
    w4_map = lambda i, j: (0, jnp.maximum(j - nt, 0))
    recon_map = lambda i, j: (i, jnp.maximum(j - nt, 0))
    const_map = lambda i, j: (0, 0)
    enc_map = lambda i, j: (i, 0)

    # NOTE: w2/w3/biases are constant across the grid; they are small (~3 MiB
    # at default tiles) so default double-buffering is acceptable everywhere.
    in_specs = [
        pl.BlockSpec((block_b, item_tile), x_map),
        pl.BlockSpec((item_tile, hidden_pad), w1_map),
        pl.BlockSpec((1, hidden_pad), const_map),
        pl.BlockSpec((hidden_pad, 2 * latent_pad), const_map),
        pl.BlockSpec((1, 2 * latent_pad), const_map),
        pl.BlockSpec((latent_pad, hidden_pad), const_map),
        pl.BlockSpec((1, hidden_pad), const_map),
        pl.BlockSpec((hidden_pad, item_tile), w4_map),
        pl.BlockSpec((1, item_tile), w4_map),
    ]
    out_specs = (
        pl.BlockSpec((block_b, 2 * latent_pad), enc_map),   # packed mu||log_var
        pl.BlockSpec((block_b, item_tile), recon_map),
    )
    out_shapes = (
        jax.ShapeDtypeStruct((b_pad, 2 * latent_pad), jnp.float32),
        jax.ShapeDtypeStruct((b_pad, item_pad), jnp.float32),
    )
    scratch_shapes = [
        pltpu.VMEM((block_b, hidden_pad), jnp.float32),     # x @ w1 accumulator
        pltpu.VMEM((block_b, 1), jnp.float32),              # sum(x**2) accumulator
        pltpu.VMEM((block_b, hidden_pad), jnp.bfloat16),    # decoder hidden d
    ]

    wbytes = sum(int(p[k].size) * p[k].dtype.itemsize
                 for k in ("w1", "b1", "w2", "b2", "w3", "b3", "w4", "b4"))
    io_bytes = 4 * (x_pad.size + b_pad * item_pad + b_pad * 2 * latent_pad)
    flops = 2 * b_pad * (2 * item_pad * hidden_pad
                         + 2 * hidden_pad * latent_pad
                         + latent_pad * hidden_pad)
    cost = pl.CostEstimate(flops=int(flops),
                           transcendentals=int(2 * b_pad * hidden_pad),
                           bytes_accessed=int(nb * wbytes + io_bytes))

    enc, recon = pl.pallas_call(
        multivae_kernel,
        out_shape=out_shapes,
        grid=(nb, 2 * nt),
        in_specs=in_specs,
        out_specs=out_specs,
        scratch_shapes=scratch_shapes,
        compiler_params=pltpu.CompilerParams(
            dimension_semantics=("parallel", "arbitrary"),
            vmem_limit_bytes=_vmem_limit_bytes(),
        ),
        cost_estimate=cost,
    )(x_pad, p["w1"], p["b1"], p["w2"], p["b2"], p["w3"], p["b3"],
      p["w4"], p["b4"])

    mu = enc[:B, :latent]
    log_var = enc[:B, latent_pad:latent_pad + latent]
    return recon[:B, :item_cnt], mu, log_var


def init_params(key, item_cnt, hidden=2000, enc_out=300):
    """PyTorch nn.Linear-style init; weights stored (in_features, out_features)."""
    assert enc_out % 2 == 0
    latent = enc_out // 2

    def linear(k, fan_in, fan_out):
        kw, kb = jax.random.split(k)
        bound = 1.0 / jnp.sqrt(jnp.float32(fan_in))
        w = jax.random.uniform(kw, (fan_in, fan_out), jnp.float32, -bound, bound)
        b = jax.random.uniform(kb, (1, fan_out), jnp.float32, -bound, bound)
        return w, b

    k1, k2, k3, k4 = jax.random.split(key, 4)
    w1, b1 = linear(k1, item_cnt, hidden)   # encoder_layers[0]
    w2, b2 = linear(k2, hidden, enc_out)    # encoder_layers[1] (mu || log_var)
    w3, b3 = linear(k3, latent, hidden)     # decoder_layers[0]
    w4, b4 = linear(k4, hidden, item_cnt)   # decoder_layers[1]
    return dict(w1=w1, b1=b1, w2=w2, b2=b2, w3=w3, b3=b3, w4=w4, b4=b4)


def reference_forward(x, params):
    """Pure-JAX reference of the same eval-mode forward (bf16 weights, f32 acc)."""
    bf16 = jnp.bfloat16
    latent = params["w3"].shape[0]

    def dense(a, w, b):
        return jnp.dot(a.astype(bf16), w.astype(bf16),
                       preferred_element_type=jnp.float32) + b

    inv_norm = jax.lax.rsqrt(
        jnp.maximum(jnp.sum(x * x, axis=1, keepdims=True), 1e-24))
    xn = x * inv_norm                                    # F.normalize(x, dim=1)
    h = jnp.tanh(dense(xn, params["w1"], params["b1"]))  # dropout = identity (eval)
    enc = dense(h, params["w2"], params["b2"])
    mu, log_var = enc[:, :latent], enc[:, latent:]
    z = mu                                               # reparametrize (eval)
    d = jnp.tanh(dense(z, params["w3"], params["b3"]))
    recon = dense(d, params["w4"], params["b4"])
    return recon, mu, log_var


if __name__ == "__main__":
    BATCH = 8
    ITEM_CNT = 256      # small stand-in for dataset.item_cnt
    HIDDEN = 2000       # encoder_dim[1] from the module
    ENC_OUT = 300       # encoder_dim[2]  (mu / log_var are 150 each)

    key = jax.random.PRNGKey(0)
    k_x, k_p = jax.random.split(key)

    # Synthetic "user-item matrix" rows (sparse-ish binary interactions).
    x = (jax.random.uniform(k_x, (BATCH, ITEM_CNT), jnp.float32) > 0.8).astype(
        jnp.float32)
    params = init_params(k_p, ITEM_CNT, HIDDEN, ENC_OUT)

    # Small tiles for the tiny demo shapes; real workloads use the defaults
    # (block_b=256, item_tile=512).  item_tile=128 -> 2 item tiles, which
    # exercises the streamed w1/w4 phases and the batch padding (8 -> 64).
    recon, mu, log_var = multivae_forward(x, params, block_b=64, item_tile=128)
    jax.block_until_ready((recon, mu, log_var))

    r_ref, m_ref, lv_ref = reference_forward(x, params)
    assert recon.shape == (BATCH, ITEM_CNT)
    assert mu.shape == (BATCH, ENC_OUT // 2)
    assert log_var.shape == (BATCH, ENC_OUT // 2)
    assert jnp.allclose(recon, r_ref, atol=2e-3, rtol=2e-2), \
        float(jnp.max(jnp.abs(recon - r_ref)))
    assert jnp.allclose(mu, m_ref, atol=2e-3, rtol=2e-2), \
        float(jnp.max(jnp.abs(mu - m_ref)))
    assert jnp.allclose(log_var, lv_ref, atol=2e-3, rtol=2e-2), \
        float(jnp.max(jnp.abs(log_var - lv_ref)))

    print("KERNEL_OK")
</pallas_src>

<mosaic_0001>
module attributes {stable_mosaic.version = 11 : i64} {
  func.func @multivae_kernel(%arg0: i32, %arg1: i32, %arg2: memref<64x128xf32, #tpu.memory_space<vmem>>, %arg3: memref<128x2048xbf16, #tpu.memory_space<vmem>>, %arg4: memref<1x2048xf32, #tpu.memory_space<vmem>>, %arg5: memref<2048x512xbf16, #tpu.memory_space<vmem>>, %arg6: memref<1x512xf32, #tpu.memory_space<vmem>>, %arg7: memref<256x2048xbf16, #tpu.memory_space<vmem>>, %arg8: memref<1x2048xf32, #tpu.memory_space<vmem>>, %arg9: memref<2048x128xbf16, #tpu.memory_space<vmem>>, %arg10: memref<1x128xf32, #tpu.memory_space<vmem>>, %arg11: memref<64x512xf32, #tpu.memory_space<vmem>>, %arg12: memref<64x128xf32, #tpu.memory_space<vmem>>, %arg13: memref<64x2048xf32, #tpu.memory_space<vmem>>, %arg14: memref<64x1xf32, #tpu.memory_space<vmem>>, %arg15: memref<64x2048xbf16, #tpu.memory_space<vmem>>) attributes {dimension_semantics = [#tpu.dimension_semantics<parallel>, #tpu.dimension_semantics<arbitrary>], iteration_bounds = array<i64: 1, 4>, scalar_prefetch = 0 : i64, scratch_operands = 3 : i64, tpu.core_type = #tpu.core_type<tc>, window_params = [{transform_indices = @transform_0, window_bounds = array<i64: 64, 128>}, {transform_indices = @transform_1, window_bounds = array<i64: 128, 2048>}, {pipeline_mode = #tpu.pipeline_mode<synchronous>, transform_indices = @transform_2, window_bounds = array<i64: 1, 2048>}, {pipeline_mode = #tpu.pipeline_mode<synchronous>, transform_indices = @transform_3, window_bounds = array<i64: 2048, 512>}, {pipeline_mode = #tpu.pipeline_mode<synchronous>, transform_indices = @transform_4, window_bounds = array<i64: 1, 512>}, {pipeline_mode = #tpu.pipeline_mode<synchronous>, transform_indices = @transform_5, window_bounds = array<i64: 256, 2048>}, {pipeline_mode = #tpu.pipeline_mode<synchronous>, transform_indices = @transform_6, window_bounds = array<i64: 1, 2048>}, {transform_indices = @transform_7, window_bounds = array<i64: 2048, 128>}, {transform_indices = @transform_8, window_bounds = array<i64: 1, 128>}, {transform_indices = @transform_9, window_bounds = array<i64: 64, 512>}, {transform_indices = @transform_10, window_bounds = array<i64: 64, 128>}]} {
    %c0_i32 = arith.constant 0 : i32
    %0 = arith.cmpi eq, %arg1, %c0_i32 : i32
    %1 = arith.extui %0 : i1 to i32
    %c0_i32_0 = arith.constant 0 : i32
    %2 = arith.cmpi ne, %1, %c0_i32_0 : i32
    scf.if %2 {
      %cst = arith.constant 0.000000e+00 : f32
      %12 = vector.broadcast %cst : f32 to vector<64x2048xf32>
      %c0 = arith.constant 0 : index
      %c0_5 = arith.constant 0 : index
      %13 = vector.load %arg13[%c0, %c0_5] : memref<64x2048xf32, #tpu.memory_space<vmem>>, vector<64x2048xf32>
      tpu.vector_store %arg13[%c0, %c0_5], %12 {strides = array<i32>} : memref<64x2048xf32, #tpu.memory_space<vmem>>, vector<64x2048xf32>,
      %cst_6 = arith.constant 0.000000e+00 : f32
      %14 = vector.broadcast %cst_6 : f32 to vector<64x1xf32>
      %c0_7 = arith.constant 0 : index
      %c0_8 = arith.constant 0 : index
      %15 = vector.load %arg14[%c0_7, %c0_8] : memref<64x1xf32, #tpu.memory_space<vmem>>, vector<64x1xf32>
      tpu.vector_store %arg14[%c0_7, %c0_8], %14 {strides = array<i32>} : memref<64x1xf32, #tpu.memory_space<vmem>>, vector<64x1xf32>,
    } else {
    }
    %c2_i32 = arith.constant 2 : i32
    %3 = arith.cmpi slt, %arg1, %c2_i32 : i32
    %4 = arith.extui %3 : i1 to i32
    %c0_i32_1 = arith.constant 0 : i32
    %5 = arith.cmpi ne, %4, %c0_i32_1 : i32
    scf.if %5 {
      %c0 = arith.constant 0 : index
      %c0_5 = arith.constant 0 : index
      %12 = vector.load %arg2[%c0, %c0_5] : memref<64x128xf32, #tpu.memory_space<vmem>>, vector<64x128xf32>
      %c0_6 = arith.constant 0 : index
      %c0_7 = arith.constant 0 : index
      %13 = vector.load %arg14[%c0_6, %c0_7] : memref<64x1xf32, #tpu.memory_space<vmem>>, vector<64x1xf32>
      %14 = arith.mulf %12, %12 : vector<64x128xf32>
      %cst = arith.constant dense<0.000000e+00> : vector<64xf32>
      %15 = vector.multi_reduction <add>, %14, %cst [1] : vector<64x128xf32> to vector<64xf32>
      %16 = vector.shape_cast %15 : vector<64xf32> to vector<64x1xf32>
      %17 = arith.addf %13, %16 : vector<64x1xf32>
      %c0_8 = arith.constant 0 : index
      %c0_9 = arith.constant 0 : index
      %18 = vector.load %arg14[%c0_8, %c0_9] : memref<64x1xf32, #tpu.memory_space<vmem>>, vector<64x1xf32>
      tpu.vector_store %arg14[%c0_8, %c0_9], %17 {strides = array<i32>} : memref<64x1xf32, #tpu.memory_space<vmem>>, vector<64x1xf32>,
      %c0_10 = arith.constant 0 : index
      %c0_11 = arith.constant 0 : index
      %19 = vector.load %arg13[%c0_10, %c0_11] : memref<64x2048xf32, #tpu.memory_space<vmem>>, vector<64x2048xf32>
      %20 = arith.truncf %12 : vector<64x128xf32> to vector<64x128xbf16>
      %c0_12 = arith.constant 0 : index
      %c0_13 = arith.constant 0 : index
      %21 = vector.load %arg3[%c0_12, %c0_13] : memref<128x2048xbf16, #tpu.memory_space<vmem>>, vector<128x2048xbf16>
      %cst_14 = arith.constant dense<0.000000e+00> : vector<64x2048xf32>
      %22 = tpu.matmul %20, %21, %cst_14 {dimension_numbers = #tpu.dot_dimension_numbers<[1], [0], [0], [1], [0, 0, 1, 1], [], []>} : vector<64x128xbf16>, vector<128x2048xbf16>, vector<64x2048xf32> -> vector<64x2048xf32>
      %23 = arith.addf %19, %22 : vector<64x2048xf32>
      %c0_15 = arith.constant 0 : index
      %c0_16 = arith.constant 0 : index
      %24 = vector.load %arg13[%c0_15, %c0_16] : memref<64x2048xf32, #tpu.memory_space<vmem>>, vector<64x2048xf32>
      tpu.vector_store %arg13[%c0_15, %c0_16], %23 {strides = array<i32>} : memref<64x2048xf32, #tpu.memory_space<vmem>>, vector<64x2048xf32>,
    } else {
    }
    %c1_i32 = arith.constant 1 : i32
    %6 = arith.cmpi eq, %arg1, %c1_i32 : i32
    %7 = arith.extui %6 : i1 to i32
    %c0_i32_2 = arith.constant 0 : i32
    %8 = arith.cmpi ne, %7, %c0_i32_2 : i32
    scf.if %8 {
      %c0 = arith.constant 0 : index
      %c0_5 = arith.constant 0 : index
      %12 = vector.load %arg14[%c0, %c0_5] : memref<64x1xf32, #tpu.memory_space<vmem>>, vector<64x1xf32>
      %cst = arith.constant 1.000000e-24 : f32
      %13 = vector.broadcast %cst : f32 to vector<64x1xf32>
      %14 = arith.maximumf %12, %13 : vector<64x1xf32>
      %15 = math.rsqrt %14 : vector<64x1xf32>
      %c0_6 = arith.constant 0 : index
      %c0_7 = arith.constant 0 : index
      %16 = vector.load %arg13[%c0_6, %c0_7] : memref<64x2048xf32, #tpu.memory_space<vmem>>, vector<64x2048xf32>
      %17 = vector.broadcast %15 : vector<64x1xf32> to vector<64x2048xf32>
      %18 = arith.mulf %16, %17 : vector<64x2048xf32>
      %c0_8 = arith.constant 0 : index
      %c0_9 = arith.constant 0 : index
      %19 = vector.load %arg4[%c0_8, %c0_9] : memref<1x2048xf32, #tpu.memory_space<vmem>>, vector<1x2048xf32>
      %20 = vector.broadcast %19 : vector<1x2048xf32> to vector<64x2048xf32>
      %21 = arith.addf %18, %20 : vector<64x2048xf32>
      %22 = math.tanh %21 : vector<64x2048xf32>
      %23 = arith.truncf %22 : vector<64x2048xf32> to vector<64x2048xbf16>
      %c0_10 = arith.constant 0 : index
      %c0_11 = arith.constant 0 : index
      %24 = vector.load %arg5[%c0_10, %c0_11] : memref<2048x512xbf16, #tpu.memory_space<vmem>>, vector<2048x512xbf16>
      %cst_12 = arith.constant dense<0.000000e+00> : vector<64x512xf32>
      %25 = tpu.matmul %23, %24, %cst_12 {dimension_numbers = #tpu.dot_dimension_numbers<[1], [0], [0], [1], [0, 0, 1, 1], [], []>} : vector<64x2048xbf16>, vector<2048x512xbf16>, vector<64x512xf32> -> vector<64x512xf32>
      %c0_13 = arith.constant 0 : index
      %c0_14 = arith.constant 0 : index
      %26 = vector.load %arg6[%c0_13, %c0_14] : memref<1x512xf32, #tpu.memory_space<vmem>>, vector<1x512xf32>
      %27 = vector.broadcast %26 : vector<1x512xf32> to vector<64x512xf32>
      %28 = arith.addf %25, %27 : vector<64x512xf32>
      %c0_15 = arith.constant 0 : index
      %c0_16 = arith.constant 0 : index
      %29 = vector.load %arg11[%c0_15, %c0_16] : memref<64x512xf32, #tpu.memory_space<vmem>>, vector<64x512xf32>
      tpu.vector_store %arg11[%c0_15, %c0_16], %28 {strides = array<i32>} : memref<64x512xf32, #tpu.memory_space<vmem>>, vector<64x512xf32>,
      %30 = vector.extract_strided_slice %28 {offsets = [0, 0], sizes = [64, 256], strides = [1, 1]} : vector<64x512xf32> to vector<64x256xf32>
      %31 = arith.truncf %30 : vector<64x256xf32> to vector<64x256xbf16>
      %c0_17 = arith.constant 0 : index
      %c0_18 = arith.constant 0 : index
      %32 = vector.load %arg7[%c0_17, %c0_18] : memref<256x2048xbf16, #tpu.memory_space<vmem>>, vector<256x2048xbf16>
      %cst_19 = arith.constant dense<0.000000e+00> : vector<64x2048xf32>
      %33 = tpu.matmul %31, %32, %cst_19 {dimension_numbers = #tpu.dot_dimension_numbers<[1], [0], [0], [1], [0, 0, 1, 1], [], []>} : vector<64x256xbf16>, vector<256x2048xbf16>, vector<64x2048xf32> -> vector<64x2048xf32>
      %c0_20 = arith.constant 0 : index
      %c0_21 = arith.constant 0 : index
      %34 = vector.load %arg8[%c0_20, %c0_21] : memref<1x2048xf32, #tpu.memory_space<vmem>>, vector<1x2048xf32>
      %35 = vector.broadcast %34 : vector<1x2048xf32> to vector<64x2048xf32>
      %36 = arith.addf %33, %35 : vector<64x2048xf32>
      %37 = math.tanh %36 : vector<64x2048xf32>
      %38 = arith.truncf %37 : vector<64x2048xf32> to vector<64x2048xbf16>
      %c0_22 = arith.constant 0 : index
      %c0_23 = arith.constant 0 : index
      %39 = vector.load %arg15[%c0_22, %c0_23] : memref<64x2048xbf16, #tpu.memory_space<vmem>>, vector<64x2048xbf16>
      tpu.vector_store %arg15[%c0_22, %c0_23], %38 {strides = array<i32>} : memref<64x2048xbf16, #tpu.memory_space<vmem>>, vector<64x2048xbf16>,
    } else {
    }
    %c2_i32_3 = arith.constant 2 : i32
    %9 = arith.cmpi sge, %arg1, %c2_i32_3 : i32
    %10 = arith.extui %9 : i1 to i32
    %c0_i32_4 = arith.constant 0 : i32
    %11 = arith.cmpi ne, %10, %c0_i32_4 : i32
    scf.if %11 {
      %c0 = arith.constant 0 : index
      %c0_5 = arith.constant 0 : index
      %12 = vector.load %arg15[%c0, %c0_5] : memref<64x2048xbf16, #tpu.memory_space<vmem>>, vector<64x2048xbf16>
      %c0_6 = arith.constant 0 : index
      %c0_7 = arith.constant 0 : index
      %13 = vector.load %arg9[%c0_6, %c0_7] : memref<2048x128xbf16, #tpu.memory_space<vmem>>, vector<2048x128xbf16>
      %cst = arith.constant dense<0.000000e+00> : vector<64x128xf32>
      %14 = tpu.matmul %12, %13, %cst {dimension_numbers = #tpu.dot_dimension_numbers<[1], [0], [0], [1], [0, 0, 1, 1], [], []>} : vector<64x2048xbf16>, vector<2048x128xbf16>, vector<64x128xf32> -> vector<64x128xf32>
      %c0_8 = arith.constant 0 : index
      %c0_9 = arith.constant 0 : index
      %15 = vector.load %arg10[%c0_8, %c0_9] : memref<1x128xf32, #tpu.memory_space<vmem>>, vector<1x128xf32>
      %16 = vector.broadcast %15 : vector<1x128xf32> to vector<64x128xf32>
      %17 = arith.addf %14, %16 : vector<64x128xf32>
      %c0_10 = arith.constant 0 : index
      %c0_11 = arith.constant 0 : index
      %18 = vector.load %arg12[%c0_10, %c0_11] : memref<64x128xf32, #tpu.memory_space<vmem>>, vector<64x128xf32>
      tpu.vector_store %arg12[%c0_10, %c0_11], %17 {strides = array<i32>} : memref<64x128xf32, #tpu.memory_space<vmem>>, vector<64x128xf32>,
    } else {
    }
    return
  }
  func.func @transform_0(%arg0: i32, %arg1: i32) -> (i32, i32) {
    %c1_i32 = arith.constant 1 : i32
    %0 = arith.minsi %arg1, %c1_i32 : i32
    %c0_i32 = arith.constant 0 : i32
    return %arg0, %0 : i32, i32
  }
  func.func @transform_1(%arg0: i32, %arg1: i32) -> (i32, i32) {
    %c1_i32 = arith.constant 1 : i32
    %0 = arith.minsi %arg1, %c1_i32 : i32
    %c0_i32 = arith.constant 0 : i32
    %c0_i32_0 = arith.constant 0 : i32
    return %0, %c0_i32 : i32, i32
  }
  func.func @transform_2(%arg0: i32, %arg1: i32) -> (i32, i32) {
    %c0_i32 = arith.constant 0 : i32
    %c0_i32_0 = arith.constant 0 : i32
    %c0_i32_1 = arith.constant 0 : i32
    return %c0_i32, %c0_i32_0 : i32, i32
  }
  func.func @transform_3(%arg0: i32, %arg1: i32) -> (i32, i32) {
    %c0_i32 = arith.constant 0 : i32
    %c0_i32_0 = arith.constant 0 : i32
    %c0_i32_1 = arith.constant 0 : i32
    return %c0_i32, %c0_i32_0 : i32, i32
  }
  func.func @transform_4(%arg0: i32, %arg1: i32) -> (i32, i32) {
    %c0_i32 = arith.constant 0 : i32
    %c0_i32_0 = arith.constant 0 : i32
    %c0_i32_1 = arith.constant 0 : i32
    return %c0_i32, %c0_i32_0 : i32, i32
  }
  func.func @transform_5(%arg0: i32, %arg1: i32) -> (i32, i32) {
    %c0_i32 = arith.constant 0 : i32
    %c0_i32_0 = arith.constant 0 : i32
    %c0_i32_1 = arith.constant 0 : i32
    return %c0_i32, %c0_i32_0 : i32, i32
  }
  func.func @transform_6(%arg0: i32, %arg1: i32) -> (i32, i32) {
    %c0_i32 = arith.constant 0 : i32
    %c0_i32_0 = arith.constant 0 : i32
    %c0_i32_1 = arith.constant 0 : i32
    return %c0_i32, %c0_i32_0 : i32, i32
  }
  func.func @transform_7(%arg0: i32, %arg1: i32) -> (i32, i32) {
    %c2_i32 = arith.constant 2 : i32
    %0 = arith.subi %arg1, %c2_i32 : i32
    %c0_i32 = arith.constant 0 : i32
    %1 = arith.maxsi %0, %c0_i32 : i32
    %c0_i32_0 = arith.constant 0 : i32
    %c0_i32_1 = arith.constant 0 : i32
    return %c0_i32_0, %1 : i32, i32
  }
  func.func @transform_8(%arg0: i32, %arg1: i32) -> (i32, i32) {
    %c2_i32 = arith.constant 2 : i32
    %0 = arith.subi %arg1, %c2_i32 : i32
    %c0_i32 = arith.constant 0 : i32
    %1 = arith.maxsi %0, %c0_i32 : i32
    %c0_i32_0 = arith.constant 0 : i32
    %c0_i32_1 = arith.constant 0 : i32
    return %c0_i32_0, %1 : i32, i32
  }
  func.func @transform_9(%arg0: i32, %arg1: i32) -> (i32, i32) {
    %c0_i32 = arith.constant 0 : i32
    %c0_i32_0 = arith.constant 0 : i32
    return %arg0, %c0_i32 : i32, i32
  }
  func.func @transform_10(%arg0: i32, %arg1: i32) -> (i32, i32) {
    %c2_i32 = arith.constant 2 : i32
    %0 = arith.subi %arg1, %c2_i32 : i32
    %c0_i32 = arith.constant 0 : i32
    %1 = arith.maxsi %0, %c0_i32 : i32
    %c0_i32_0 = arith.constant 0 : i32
    return %arg0, %1 : i32, i32
  }
}

</mosaic_0001>

<bundles_post_ra>
// kernel: tpu_custom_call.1
= control target key start
LH: loop header
LB: loop body
LE: loop exit
PB: predicated region body
PF: predicated region fallthrough
CT: control target
= control target key end

     0   :  { %s17540_s0 = inlined_call_operand.hbm [shape: f32[64,256], index: 0, kind: input, shape index: {}]   ;;  %s17541_s1 = inlined_call_operand.hbm [shape: bf16[256,2048], index: 1, kind: input, shape index: {}]   ;;  %s17542_s2 = inlined_call_operand.hbm [shape: f32[1,2048], index: 2, kind: input, shape index: {}]   ;;  %s17543_s3 = inlined_call_operand.hbm [shape: bf16[2048,512], index: 3, kind: input, shape index: {}]   ;;  %s17544_s4 = inlined_call_operand.hbm [shape: f32[1,512], index: 4, kind: input, shape index: {}]   ;;  %s17545_s5 = inlined_call_operand.hbm [shape: bf16[256,2048], index: 5, kind: input, shape index: {}]   ;;  %s17546_s6 = inlined_call_operand.hbm [shape: f32[1,2048], index: 6, kind: input, shape index: {}]   ;;  %s17547_s7 = inlined_call_operand.hbm [shape: bf16[2048,256], index: 7, kind: input, shape index: {}]   ;;  %s17548_s8 = inlined_call_operand.hbm [shape: f32[1,256], index: 8, kind: input, shape index: {}]   ;;  %s17549_s9 = inlined_call_operand.hbm [shape: f32[64,512], index: 9, kind: output, shape index: {0}]   ;;  %s17550_s10 = inlined_call_operand.hbm [shape: f32[64,256], index: 10, kind: output, shape index: {1}]  }
   0x1   :  { %17583 = sst [smem:[#allocation41_spill]] %s17540_s0 }
   0x2   :  { %17584 = sst [smem:[#allocation42_spill]] %s17542_s2 }
   0x3   :  { %17585 = sst [smem:[#allocation43_spill]] %s17543_s3 }
   0x4   :  { %17586 = sst [smem:[#allocation44_spill]] %s17544_s4 }
   0x5   :  { %17587 = sst [smem:[#allocation45_spill]] %s17545_s5 }
   0x6   :  { %17588 = sst [smem:[#allocation46_spill]] %s17546_s6 }
   0x7   :  { %17589 = sst [smem:[#allocation47_spill]] %s17547_s7 }
   0x8   :  { %17590 = sst [smem:[#allocation48_spill]] %s17548_s8 }
   0x9   :  { %17591 = sst [smem:[#allocation49_spill]] %s17549_s9 }
   0xa   :  { %17592 = sst [smem:[#allocation50_spill]] %s17550_s10 }
   0xb   :  { %16 = vsyncpa [#allocation6], 0 }
   0xc   :  { %18 = vsyncpa [#allocation6 + $0x1], 0 }
   0xd   :  { %19 = vsyncpa [#allocation9], 0 }
   0xe   :  { %21 = vsyncpa [#allocation9 + $0x1], 0 }
   0xf   :  { %22 = vsyncpa [#allocation12], 0 }
  0x10   :  { %23 = vsyncpa [#allocation15], 0 }
  0x11   :  { %24 = vsyncpa [#allocation18], 0 }
  0x12   :  { %26 = vsyncpa [#allocation18 + $0x1], 0 }
  0x13   :  { %27 = vsyncpa [#allocation7], 0 }
  0x14   :  { %28 = vsyncpa [#allocation22], 0 }
  0x15   :  { %30 = vsyncpa [#allocation22 + $0x1], 0  ;;  %s15687_s13 = smov 0   ;;  %s15689_s14 = smov 0  }
  0x16   :  { %s15691_s15 = smov 0   ;;  %s15693_s16 = smov 0  }
  0x17   :  { %s15695_s17 = smov 0   ;;  %s15697_s18 = smov 0  }
  0x18   :  { %s15699_s19 = smov 0   ;;  %s15701_s20 = smov 0  }
  0x19   :  { %s15703_s21 = smov 0  }
  0x1a LB: > { %17593 = sst [smem:[#allocation31_spill]] %s15572_s13  ;;  %s15733_s22 = sadd.s32 4294967295, %s15604_s21   ;;  %s15604_s21 = sphi %s15703_s21, %s36_s21   ;;  %s15600_s20 = sphi %s15701_s20, %s17669_s20   ;;  %s15596_s19 = sphi %s15699_s19, %s17668_s19   ;;  %s15592_s18 = sphi %s15697_s18, %s17674_s18   ;;  %s15588_s17 = sphi %s15695_s17, %s17673_s17   ;;  %s15584_s16 = sphi %s15693_s16, %s17672_s16   ;;  %s15580_s15 = sphi %s15691_s15, %s17671_s15   ;;  %s15576_s14 = sphi %s15689_s14, %s17670_s14   ;;  %s15572_s13 = sphi %s15687_s13, %s17666_s13  }
  0x1b   : > { %17594 = sst [smem:[#allocation32_spill]] %s15576_s14  ;;  %p11944_p0 = scmp.ge.s32.totalorder %s15604_s21, 1 }
  0x1c   : > { %17595 = sst [smem:[#allocation33_spill]] %s15596_s19  ;;  %p17553_p1 = scmp.eq.s32.totalorder %s15733_s22, 0 }
  0x1d   : > { %17596 = sst [smem:[#allocation34_spill]] %s15600_s20  ;;  %p344_p2 = scmp.lt.s32.totalorder %s15604_s21, 5 }
  0x1e   : > { %s15606_s24 = smov [#allocation10]   ;;  %s15607_s26 = smov [#allocation11]  }
  0x1f   : > { %p15738_p3 = pnand %p11944_p0, %p344_p2  ;;  %s357_s25 = sshll.u32 %s15606_s24, 4  ;;  %s358_s25 = int_to_ptr.vmem [resolvable:$true] %s357_s25 }
  0x20   : > { %s367_s27 = sshll.u32 %s15607_s26, 4  ;;  %s15608_s29 = smov [#allocation14]   ;;  %s15750_s27 = int_to_ptr.vmem [resolvable:$true] %s367_s27 }
  0x21   : > { %s17597_s23 = scalar_select %p15738_p3, 1, 0 }
  0x22   : > { %p13620_p4 = pneg %p15738_p3  ;;  %s15752_s30 = sshll.u32 %s15608_s29, 4  ;;  %s392_s30 = int_to_ptr.vmem [resolvable:$true] %s15752_s30 }
  0x23   : > { %17598 = sst [smem:[#allocation35_spill]] %s17597_s23  ;;  %s17600_s2 = sld [smem:[#allocation42_spill]] }
  0x24   : > { %p15746_p5 = pnand %p13620_p4, %p17553_p1 }
  0x26   : > { %s17599_s28 = scalar_select %p15746_p5, 1, 0 }
  0x27   : > { %p15762_p7 = pneg %p15746_p5 }
  0x29   : > { %s15188_s24 = scalar_lea.hbm %s17600_s2, 256 }
  0x2a   : > { %p15189_p6 = scmp.ne.s32.totalorder %s17600_s2, %s15188_s24  ;;  %p15195_p10 = scmp.lt.u32.totalorder %s15188_s24, %s17600_s2 }
  0x2c   : > { %p15191_p8 = pnand %p15762_p7, %p15189_p6 }
  0x2e   : > { %p15192_p9 = pneg %p15191_p8 }
  0x30   : > { %p15197_p11 = pnand %p15195_p10, %p15192_p9 }
  0x32   : > { %15200 = shalt.err (!%p15197_p11)
}
  0x33   : > { %s15201_s11 = scalar_lea.vmem %s358_s25, 256  ;;  %p15209_p2 = scmp.lt.s32.totalorder %s358_s25, %s358_s25 }
  0x34   : > { %p15202_p12 = scmp.ne.s32.totalorder %s358_s25, %s15201_s11  ;;  %p15210_p4 = scmp.lt.s32.totalorder %s15201_s11, %s15201_s11 }
  0x36   : > { %p15204_p13 = pnand %p15202_p12, %p15762_p7  ;;  %p15211_p1 = por %p15210_p4, %p15209_p2 }
  0x38   : > { %p15205_p0 = pneg %p15204_p13 }
  0x3a   : > { %p15212_p3 = pnand %p15211_p1, %p15205_p0 }
  0x3c   : > { %15215 = shalt.err (!%p15212_p3)
}
  0x3d   : > { %13623 = dma.hbm_to_vmem [thread:$0]  (!%p15746_p5), %s17600_s2, 256, %s358_s25, [#allocation9]  }
  0x3e   : > { %s17602_s3 = sld [smem:[#allocation43_spill]] }
  0x44   : > { %s15216_s24 = scalar_lea.hbm %s17602_s3, 65536 }
  0x45   : > { %p15217_p6 = scmp.ne.s32.totalorder %s17602_s3, %s15216_s24  ;;  %p15223_p1 = scmp.lt.u32.totalorder %s15216_s24, %s17602_s3 }
  0x47   : > { %p15219_p8 = pnand %p15217_p6, %p15762_p7 }
  0x49   : > { %p15220_p9 = pneg %p15219_p8 }
  0x4b   : > { %p15225_p3 = pnand %p15223_p1, %p15220_p9 }
  0x4d   : > { %15228 = shalt.err (!%p15225_p3)
}
  0x4e   : > { %s15229_s25 = scalar_lea.vmem %s15750_s27, 65536  ;;  %p15237_p13 = scmp.lt.s32.totalorder %s15750_s27, %s15750_s27 }
  0x4f   : > { %p15230_p10 = scmp.ne.s32.totalorder %s15750_s27, %s15229_s25  ;;  %p15238_p0 = scmp.lt.s32.totalorder %s15229_s25, %s15229_s25 }
  0x51   : > { %p15232_p11 = pnand %p15230_p10, %p15762_p7  ;;  %p15239_p2 = por %p15238_p0, %p15237_p13 }
  0x53   : > { %p15233_p12 = pneg %p15232_p11 }
  0x55   : > { %p15240_p4 = pnand %p15239_p2, %p15233_p12 }
  0x57   : > { %15243 = shalt.err (!%p15240_p4)
}
  0x58   : > { %s17559_s23 = smov 256   ;;  %s15610_s8 = smov 16  }
  0x59   : > { %13626 = dma.hbm_to_vmem [thread:$0]  (!%p15746_p5), %s17602_s3, 65536, %s15750_s27, [#allocation12], %s17559_s23, %s17559_s23, %s15610_s8  }
  0x5a   : > { %s17603_s5 = sld [smem:[#allocation45_spill]] }
  0x60   : > { %s15244_s24 = scalar_lea.hbm %s17603_s5, 32768 }
  0x61   : > { %p15245_p6 = scmp.ne.s32.totalorder %s17603_s5, %s15244_s24  ;;  %p15251_p1 = scmp.lt.u32.totalorder %s15244_s24, %s17603_s5 }
  0x63   : > { %p15247_p8 = pnand %p15245_p6, %p15762_p7 }
  0x65   : > { %p15248_p9 = pneg %p15247_p8 }
  0x67   : > { %p15253_p3 = pnand %p15251_p1, %p15248_p9 }
  0x69   : > { %15256 = shalt.err (!%p15253_p3)
}
  0x6a   : > { %s15257_s9 = scalar_lea.vmem %s392_s30, 32768  ;;  %p15265_p13 = scmp.lt.s32.totalorder %s392_s30, %s392_s30 }
  0x6b   : > { %p15258_p10 = scmp.ne.s32.totalorder %s392_s30, %s15257_s9  ;;  %p15266_p0 = scmp.lt.s32.totalorder %s15257_s9, %s15257_s9 }
  0x6d   : > { %p15260_p11 = pnand %p15258_p10, %p15762_p7  ;;  %p15267_p2 = por %p15266_p0, %p15265_p13 }
  0x6f   : > { %p15261_p12 = pneg %p15260_p11 }
  0x71   : > { %p15268_p4 = pnand %p15267_p2, %p15261_p12 }
  0x73   : > { %15271 = shalt.err (!%p15268_p4)
}
  0x74   : > { %s17558_s27 = smov 1024   ;;  %s17560_s2 = smov 64  }
  0x75   : > { %13632 = dma.hbm_to_vmem [thread:$0]  (!%p15746_p5), %s17603_s5, 32768, %s392_s30, [#allocation15], %s17558_s27, %s17558_s27, %s17560_s2  }
  0x76   : > { %s11937_s19 = sadd.s32 4294967294, %s15604_s21   ;;  %s45_s12 = sadd.s32 1, %s15600_s20 }
  0x77   : > { %p17557_p6 = scmp.eq.s32.totalorder %s15604_s21, 0  ;;  %p46_p8 = scmp.ge.s32.totalorder %s45_s12, 4 }
  0x78   : > { %s11938_s24 = sadd.s32 4294967294, %s15600_s20  ;;  %s228_s29 = sadd.s32 1, %s15580_s15 }
  0x79   : > { %p220_p9 = scmp.gt.s32.totalorder %s11938_s24, 0  ;;  %s17676_s12 = smov (%p46_p8, %s45_s12), 0 }
  0x7a   : > { %17604 = sst [smem:[#allocation36_spill]] %s17676_s12  ;;  %s11939_s11 = sadd.s32 4294967294, %s17676_s12 }
  0x7b   : > { %s17678_s24 = smov (!%p220_p9, %s11938_s24), 0  ;;  %p235_p1 = scmp.ne.s32.totalorder %s15580_s15, %s15576_s14 }
  0x7c   : > { %p223_p3 = scmp.gt.s32.totalorder %s11939_s11, 0  ;;  %p241_p10 = scmp.ne.s32.totalorder %s15576_s14, %s15572_s13 }
  0x7d   : > { %p15841_p11 = por %p235_p1, %p17557_p6  ;;  %p17568_p12 = scmp.eq.s32.totalorder %s15733_s22, 3 }
  0x7e   : > { %s17680_s11 = smov (!%p223_p3, %s11939_s11), 0  ;;  %p17606_p13 = scmp.eq.s32.totalorder %s15733_s22, 0 }
  0x7f   : > { %p15854_p2 = por %p17568_p12, %p235_p1  ;;  %s225_s8 = ssub.s32 %s17678_s24, %s17680_s11 }
  0x80   : > { %p15848_p0 = por %p241_p10, %p17606_p13  ;;  %p337_p4 = scmp.eq.s32.totalorder %s11937_s19, 3 }
  0x81   : > { %s17609_s9 = scalar_select %p15854_p2, 1, 0 }
  0x82   : > { %s17607_s25 = scalar_select %p15848_p0, 1, 0 }
  0x83   : > { %17610 = sst [smem:[#allocation38_spill]] %s17609_s9  ;;  %p226_p8 = scmp.eq.s32.totalorder %s225_s8, 0 }
  0x84   : > { %17608 = sst [smem:[#allocation37_spill]] %s17607_s25  ;;  %p17569_p9 = scmp.lt.s32.totalorder %s15604_s21, 4 }
  0x85   : > { %p15860_p6 = por %p337_p4, %p241_p10  ;;  %s17574_s23 = sand.u32 1, %s15604_s21  }
  0x86   : > { %s15865_s27 = scalar_select %p226_p8, %s15580_s15, %s228_s29  }
  0x87   : > { %s17611_s10 = scalar_select %p15860_p6, 1, 0 }
  0x88   : > { %17613 = sst [smem:[#allocation40_spill]] %s15865_s27  ;;  %s17567_s2 = sand.u32 1, %s15580_s15  }
  0x89   : > { %17612 = sst [smem:[#allocation39_spill]] %s17611_s10  ;;  %s11957_s3 = sshll.u32 %s17567_s2, 10 }
  0x8a   : > { %s11959_s5 = sshll.u32 %s17678_s24, 6  ;;  %s17614_s7 = sld [smem:[#allocation47_spill]] }
  0x8b   : > { %s469_s19 = scalar_lea.vmem [#allocation17], %s11957_s3  ;;  %p15883_p1 = pnand %p17569_p9, %p15841_p11 }
  0x8c   : > { %s478_s11 = sshll.u32 %s469_s19, 4  ;;  %s15613_s8 = smov [#allocation13]   ;;  %s15877_s11 = int_to_ptr.vmem [resolvable:$true] %s478_s11 }
  0x8d   : > { %s17615_s29 = scalar_select %p15883_p1, 1, 0 }
  0x8e   : > { %s15887_s13 = sshll.u32 %s15613_s8, 4  ;;  %p17577_p10 = pneg %p15883_p1  ;;  %s382_s13 = int_to_ptr.vmem [resolvable:$true] %s15887_s13 }
  0x90   : > { %s15875_s9 = scalar_lea.hbm %s17614_s7, %s11959_s5  ;;  %s15891_s5 = scalar_lea.sflag [#allocation18], %s17574_s23 }
  0x91   : > { %s15272_s25 = scalar_lea.hbm %s15875_s9, 16384  ;;  %s15277_s19 = scalar_lea.hbm %s17614_s7, 32768 }
  0x92   : > { %p15273_p3 = scmp.ne.s32.totalorder %s15875_s9, %s15272_s25  ;;  %p15278_p11 = scmp.lt.u32.totalorder %s15875_s9, %s17614_s7 }
  0x93   : > { %p15279_p8 = scmp.lt.u32.totalorder %s15277_s19, %s15272_s25  ;;  %p15281_p9 = scmp.lt.u32.totalorder %s15272_s25, %s15875_s9 }
  0x94   : > { %p15275_p13 = pnand %p17577_p10, %p15273_p3 }
  0x95   : > { %p15280_p12 = por %p15279_p8, %p15278_p11 }
  0x96   : > { %p15276_p4 = pneg %p15275_p13 }
  0x97   : > { %p15282_p6 = por %p15281_p9, %p15280_p12 }
  0x99   : > { %p15283_p2 = pnand %p15282_p6, %p15276_p4 }
  0x9b   : > { %15286 = shalt.err (!%p15283_p2)
}
  0x9c   : > { %s15287_s8 = scalar_lea.vmem %s15877_s11, 16384  ;;  %s15614_s3 = smov [#allocation17]  }
  0x9d   : > { %p15288_p3 = scmp.ne.s32.totalorder %s15877_s11, %s15287_s8  ;;  %s15292_s30 = sshll.u32 %s15614_s3, 4  ;;  %s15293_s30 = int_to_ptr.vmem [resolvable:$false] %s15292_s30 }
  0x9e   : > { %s15294_s27 = scalar_lea.vmem %s15293_s30, 32768  ;;  %p15295_p5 = scmp.lt.s32.totalorder %s15877_s11, %s15293_s30 }
  0x9f   : > { %p15290_p13 = pnand %p15288_p3, %p17577_p10  ;;  %p15296_p11 = scmp.lt.s32.totalorder %s15294_s27, %s15287_s8 }
  0xa1   : > { %p15291_p0 = pneg %p15290_p13  ;;  %p15297_p8 = por %p15296_p11, %p15295_p5 }
  0xa3   : > { %p15298_p12 = pnand %p15297_p8, %p15291_p0 }
  0xa5   : > { %15301 = shalt.err (!%p15298_p12)
}
  0xa6   : > { %s15615_s2 = smov 128   ;;  %s15616_s25 = smov 4  }
  0xa7   : > { %s17616_s19 = smov 64   ;;  %s17617_s4 = sld [smem:[#allocation44_spill]] }
  0xa8   : > { %13645 = dma.hbm_to_vmem [thread:$0]  (!%p15883_p1), %s15875_s9, 16384, %s15877_s11, %s15891_s5, %s15615_s2, %s17616_s19, %s15616_s25  }
  0xad   : > { %s15302_s8 = scalar_lea.hbm %s17617_s4, 64 }
  0xae   : > { %p15303_p5 = scmp.ne.s32.totalorder %s17617_s4, %s15302_s8  ;;  %p15309_p2 = scmp.lt.u32.totalorder %s15302_s8, %s17617_s4 }
  0xb0   : > { %p15305_p6 = pnand %p15303_p5, %p15762_p7 }
  0xb2   : > { %p15306_p0 = pneg %p15305_p6 }
  0xb4   : > { %p15311_p9 = pnand %p15309_p2, %p15306_p0 }
  0xb6   : > { %15314 = shalt.err (!%p15311_p9)
}
  0xb7   : > { %s15315_s14 = scalar_lea.vmem %s382_s13, 64  ;;  %p15323_p11 = scmp.lt.s32.totalorder %s382_s13, %s382_s13 }
  0xb8   : > { %p15316_p4 = scmp.ne.s32.totalorder %s382_s13, %s15315_s14  ;;  %p15324_p8 = scmp.lt.s32.totalorder %s15315_s14, %s15315_s14 }
  0xba   : > { %p15318_p3 = pnand %p15316_p4, %p15762_p7  ;;  %p15325_p12 = por %p15324_p8, %p15323_p11 }
  0xbc   : > { %p15319_p13 = pneg %p15318_p3 }
  0xbe   : > { %p15326_p10 = pnand %p15325_p12, %p15319_p13 }
  0xc0   : > { %15329 = shalt.err (!%p15326_p10)
}
  0xc1   : > { %p17618_p5 = scmp.ne.s32.totalorder %s17599_s28, 0  ;;  %s15617_s7 = smov [#allocation16]  }
  0xc2   : > { %s405_s10 = sshll.u32 %s15617_s7, 4  ;;  %s17619_s6 = sld [smem:[#allocation46_spill]]  ;;  %s406_s10 = int_to_ptr.vmem [resolvable:$true] %s405_s10 }
  0xc3   : > { %13629 = dma.hbm_to_vmem [thread:$0]  (!%p17618_p5), %s17617_s4, 64, %s382_s13, [#allocation12]  }
  0xc8   : > { %s15330_s3 = scalar_lea.hbm %s17619_s6, 256 }
  0xc9   : > { %p15331_p6 = scmp.ne.s32.totalorder %s17619_s6, %s15330_s3  ;;  %p15337_p2 = scmp.lt.u32.totalorder %s15330_s3, %s17619_s6 }
  0xcb   : > { %p15333_p10 = pnand %p15331_p6, %p15762_p7 }
  0xcd   : > { %p15334_p0 = pneg %p15333_p10 }
  0xcf   : > { %p15339_p9 = pnand %p15337_p2, %p15334_p0 }
  0xd1   : > { %15342 = shalt.err (!%p15339_p9)
}
  0xd2   : > { %s15343_s13 = scalar_lea.vmem %s406_s10, 256  ;;  %p15351_p11 = scmp.lt.s32.totalorder %s406_s10, %s406_s10 }
  0xd3   : > { %p15344_p4 = scmp.ne.s32.totalorder %s406_s10, %s15343_s13  ;;  %p15352_p8 = scmp.lt.s32.totalorder %s15343_s13, %s15343_s13 }
  0xd5   : > { %p15346_p3 = pnand %p15344_p4, %p15762_p7  ;;  %p15353_p12 = por %p15352_p8, %p15351_p11 }
  0xd7   : > { %p15347_p13 = pneg %p15346_p3 }
  0xd9   : > { %p15354_p1 = pnand %p15353_p12, %p15347_p13 }
  0xdb   : > { %15357 = shalt.err (!%p15354_p1)
}
  0xdc   : > { %13635 = dma.hbm_to_vmem [thread:$0]  (!%p17618_p5), %s17619_s6, 256, %s406_s10, [#allocation15]  }
  0xdd   : > { %p52_p7 = scmp.lt.s32.totalorder %s15600_s20, 1  ;;  %p54_p1 = scmp.lt.s32.totalorder %s17676_s12, 1 }
  0xde   : > { %s61_s28 = sadd.s32 1, %s15592_s18  ;;  %p68_p6 = scmp.ne.s32.totalorder %s15592_s18, %s15588_s17 }
  0xdf   : > { %s15964_s26 = scalar_select %p52_p7, %s15600_s20, 1 }
  0xe0   : > { %s55_s7 = scalar_select %p54_p1, %s17676_s12, 1 }
  0xe1   : > { %p17620_p10 = scmp.eq.s32.totalorder %s15604_s21, 0  ;;  %p74_p2 = scmp.ne.s32.totalorder %s15588_s17, %s15584_s16 }
  0xe2   : > { %s57_s25 = ssub.s32 %s15964_s26, %s55_s7  ;;  %s15977_s3 = sand.u32 1, %s15592_s18  }
  0xe3   : > { %p15969_p0 = por %p17620_p10, %p68_p6  ;;  %p59_p5 = scmp.eq.s32.totalorder %s57_s25, 0 }
  0xe4   : > { %p17622_p9 = scmp.eq.s32.totalorder %s15733_s22, 0  ;;  %s11951_s8 = sshll.u32 %s15977_s3, 6 }
  0xe5   : > { %s15987_s30 = scalar_select %p59_p5, %s15592_s18, %s61_s28  }
  0xe6   : > { %p15981_p4 = por %p17622_p9, %p74_p2  ;;  %s11952_s14 = sshll.u32 %s15964_s26, 7 }
  0xe7   : > { %s17624_s0 = sld [smem:[#allocation41_spill]]  ;;  %s420_s23 = scalar_lea.vmem [#allocation5], %s11951_s8 }
  0xe8   : > { %s17623_s10 = scalar_select %p15981_p4, 1, 0 }
  0xe9   : > { %s431_s9 = sshll.u32 %s420_s23, 4  ;;  %p17625_p3 = scmp.lt.s32.totalorder %s15604_s21, 4  ;;  %s15995_s9 = int_to_ptr.vmem [resolvable:$true] %s431_s9 }
  0xea   : > { %s417_s25 = scalar_lea.sflag [#allocation6], %s15977_s3 }
  0xeb   : > { %p16001_p13 = pnand %p17625_p3, %p15969_p0 }
  0xed   : > { %s15993_s16 = scalar_lea.hbm %s17624_s0, %s11952_s14  ;;  %p15360_p8 = pneg %p16001_p13 }
  0xee   : > { %s15358_s14 = scalar_lea.hbm %s15993_s16, 1024  ;;  %s15363_s11 = scalar_lea.hbm %s17624_s0, 2048 }
  0xef   : > { %p15359_p11 = scmp.ne.s32.totalorder %s15993_s16, %s15358_s14  ;;  %p15364_p1 = scmp.lt.u32.totalorder %s15993_s16, %s17624_s0 }
  0xf0   : > { %p15365_p6 = scmp.lt.u32.totalorder %s15363_s11, %s15358_s14  ;;  %p15367_p0 = scmp.lt.u32.totalorder %s15358_s14, %s15993_s16 }
  0xf1   : > { %p15361_p12 = pnand %p15360_p8, %p15359_p11 }
  0xf2   : > { %p15366_p10 = por %p15365_p6, %p15364_p1 }
  0xf3   : > { %p15362_p7 = pneg %p15361_p12 }
  0xf4   : > { %p15368_p2 = por %p15367_p0, %p15366_p10 }
  0xf6   : > { %p15369_p5 = pnand %p15368_p2, %p15362_p7 }
  0xf8   : > { %15372 = shalt.err (!%p15369_p5)
}
  0xf9   : > { %s15373_s28 = scalar_lea.vmem %s15995_s9, 1024  ;;  %s15618_s8 = smov [#allocation5]  }
  0xfa   : > { %p15374_p9 = scmp.ne.s32.totalorder %s15995_s9, %s15373_s28  ;;  %s15378_s27 = sshll.u32 %s15618_s8, 4  ;;  %s15379_s27 = int_to_ptr.vmem [resolvable:$false] %s15378_s27 }
  0xfb   : > { %s15380_s13 = scalar_lea.vmem %s15379_s27, 2048  ;;  %p15381_p12 = scmp.lt.s32.totalorder %s15995_s9, %s15379_s27 }
  0xfc   : > { %p15376_p3 = pnand %p15374_p9, %p15360_p8  ;;  %p15382_p1 = scmp.lt.s32.totalorder %s15380_s13, %s15373_s28 }
  0xfe   : > { %p15377_p11 = pneg %p15376_p3  ;;  %p15383_p6 = por %p15382_p1, %p15381_p12 }
 0x100   : > { %p15384_p10 = pnand %p15383_p6, %p15377_p11 }
 0x102   : > { %15387 = shalt.err (!%p15384_p10)
}
 0x103   : > { %s15619_s14 = smov 8   ;;  %s17627_s11 = smov 256  }
 0x104   : > { %13639 = dma.hbm_to_vmem [thread:$0]  (!%p16001_p13), %s15993_s16, 1024, %s15995_s9, %s417_s25, %s17627_s11, %s15615_s2, %s15619_s14  }
 0x105   : > { %s13009_s23 = sshll.u32 %s15964_s26, 14  ;;  %s17628_s13 = sshll.u32 %s15977_s3, 10 }
 0x106   : > { %s16040_s27 = scalar_lea.hbm %s17541_s1, %s13009_s23  ;;  %s445_s0 = scalar_lea.vmem [#allocation8], %s17628_s13 }
 0x107   : > { %s455_s4 = sshll.u32 %s445_s0, 4  ;;  %s17629_s6 = sand.u32 1, %s15604_s21   ;;  %s16044_s4 = int_to_ptr.vmem [resolvable:$true] %s455_s4 }
 0x108   : > { %s16048_s12 = scalar_lea.sflag [#allocation9], %s17629_s6  ;;  %s15388_s20 = scalar_lea.hbm %s16040_s27, 16384 }
 0x109   : > { %p15389_p7 = scmp.ne.s32.totalorder %s16040_s27, %s15388_s20  ;;  %s15393_s3 = scalar_lea.hbm %s17541_s1, 32768 }
 0x10a   : > { %p15394_p5 = scmp.lt.u32.totalorder %s16040_s27, %s17541_s1  ;;  %p15395_p9 = scmp.lt.u32.totalorder %s15393_s3, %s15388_s20 }
 0x10b   : > { %p15391_p0 = pnand %p15389_p7, %p15360_p8  ;;  %p15397_p11 = scmp.lt.u32.totalorder %s15388_s20, %s16040_s27 }
 0x10c   : > { %p15396_p3 = por %p15395_p9, %p15394_p5 }
 0x10d   : > { %p15392_p2 = pneg %p15391_p0 }
 0x10e   : > { %p15398_p12 = por %p15397_p11, %p15396_p3 }
 0x110   : > { %p15399_p1 = pnand %p15398_p12, %p15392_p2 }
 0x112   : > { %15402 = shalt.err (!%p15399_p1)
}
 0x113   : > { %s15403_s0 = scalar_lea.vmem %s16044_s4, 16384  ;;  %s15620_s6 = smov [#allocation8]  }
 0x114   : > { %p15404_p6 = scmp.ne.s32.totalorder %s16044_s4, %s15403_s0  ;;  %s15408_s25 = sshll.u32 %s15620_s6, 4  ;;  %s15409_s25 = int_to_ptr.vmem [resolvable:$false] %s15408_s25 }
 0x115   : > { %s15410_s14 = scalar_lea.vmem %s15409_s25, 32768  ;;  %p15411_p0 = scmp.lt.s32.totalorder %s16044_s4, %s15409_s25 }
 0x116   : > { %p15406_p10 = pnand %p15404_p6, %p15360_p8  ;;  %p15412_p5 = scmp.lt.s32.totalorder %s15410_s14, %s15403_s0 }
 0x118   : > { %p15407_p7 = pneg %p15406_p10  ;;  %p15413_p9 = por %p15412_p5, %p15411_p0 }
 0x11a   : > { %p15414_p3 = pnand %p15413_p9, %p15407_p7 }
 0x11c   : > { %15417 = shalt.err (!%p15414_p3)
}
 0x11d   : > { %s17630_s20 = smov 1024   ;;  %s11961_s11 = sshll.u32 %s17678_s24, 4 }
 0x11e   : > { %13642 = dma.hbm_to_vmem [thread:$0]  (!%p16001_p13), %s16040_s27, 16384, %s16044_s4, %s16048_s12, %s17630_s20, %s17630_s20, %s17616_s19  }
 0x11f   : > { %s17631_s23 = sand.u32 1, %s15580_s15   ;;  %s17632_s26 = sld [smem:[#allocation48_spill]] }
 0x120   : > { %s491_s8 = scalar_lea.vmem [#allocation19], %s17631_s23  ;;  %p17633_p2 = scmp.ne.s32.totalorder %s17615_s29, 0 }
 0x121   : > { %s501_s28 = sshll.u32 %s491_s8, 4  ;;  %s502_s28 = int_to_ptr.vmem [resolvable:$true] %s501_s28 }
 0x122   : > { %p17634_p11 = pneg %p17633_p2 }
 0x125   : > { %s499_s3 = scalar_lea.hbm %s17632_s26, %s11961_s11  ;;  %s15423_s0 = scalar_lea.hbm %s17632_s26, 32 }
 0x126   : > { %s15418_s7 = scalar_lea.hbm %s499_s3, 16  ;;  %p15424_p13 = scmp.lt.u32.totalorder %s499_s3, %s17632_s26 }
 0x127   : > { %p15419_p8 = scmp.ne.s32.totalorder %s499_s3, %s15418_s7  ;;  %p15425_p6 = scmp.lt.u32.totalorder %s15423_s0, %s15418_s7 }
 0x128   : > { %p15427_p7 = scmp.lt.u32.totalorder %s15418_s7, %s499_s3 }
 0x129   : > { %p15421_p12 = pnand %p15419_p8, %p17634_p11  ;;  %p15426_p10 = por %p15425_p6, %p15424_p13 }
 0x12b   : > { %p15422_p1 = pneg %p15421_p12  ;;  %p15428_p0 = por %p15427_p7, %p15426_p10 }
 0x12d   : > { %p15429_p5 = pnand %p15428_p0, %p15422_p1 }
 0x12f   : > { %15432 = shalt.err (!%p15429_p5)
}
 0x130   : > { %s15433_s24 = scalar_lea.vmem %s502_s28, 16  ;;  %p17635_p3 = pmov %p17634_p11 }
 0x131   : > { %p15434_p9 = scmp.ne.s32.totalorder %s502_s28, %s15433_s24  ;;  %s15621_s19 = smov [#allocation19]  }
 0x132   : > { %s15438_s27 = sshll.u32 %s15621_s19, 4  ;;  %s15439_s27 = int_to_ptr.vmem [resolvable:$false] %s15438_s27 }
 0x133   : > { %p15436_p8 = pnand %p15434_p9, %p17635_p3  ;;  %s15440_s6 = scalar_lea.vmem %s15439_s27, 32 }
 0x134   : > { %p15441_p12 = scmp.lt.s32.totalorder %s502_s28, %s15439_s27  ;;  %p15442_p4 = scmp.lt.s32.totalorder %s15440_s6, %s15433_s24 }
 0x135   : > { %p15437_p11 = pneg %p15436_p8 }
 0x136   : > { %p15443_p6 = por %p15442_p4, %p15441_p12 }
 0x138   : > { %p15444_p13 = pnand %p15443_p6, %p15437_p11 }
 0x13a   : > { %15447 = shalt.err (!%p15444_p13)
}
 0x13b   : > { %13648 = dma.hbm_to_vmem [thread:$0]  (!%p17633_p2), %s499_s3, 16, %s502_s28, %s15891_s5  }
 0x13c   : > { %s17636_s25 = sld [smem:[#allocation35_spill]] }
 0x142   : > { %p17637_p1 = scmp.ne.s32.totalorder %s17636_s25, 0 }
 0x143   : > { %s512_s14 = sand.u32 (!%p17637_p1), 1, %s15588_s17   ;;  %p17638_p10 = scmp.ne.s32.totalorder (!%p17637_p1), %s17623_s10, 0 }
 0x144   : > { %510 = sbr.rel (%p17637_p1) target bundleno = 2562 (0xa02), region = 56  ;;  %s11963_s20 = sshll.u32 (!%p17637_p1), %s512_s14, 6 }
 0x145   : > { %s513_s11 = scalar_lea.sflag (!%p17637_p1), [#allocation6], %s512_s14  ;;  %s16101_s23 = scalar_lea.vmem (!%p17637_p1), [#allocation5], %s11963_s20 }
 0x14b   : > { %15539 = dma.done.wait (%p17638_p10), %s513_s11, 1024  }
 0x14c   : > { %15541 = vsyncadd (%p17638_p10), %s513_s11, 4294966272  ;;  %s521_s29 = sand.u32 1, %s15733_s22   ;;  %s11964_s8 = sshll.u32 %s512_s14, 10 }
 0x14d   : > { %s522_s5 = scalar_lea.sflag [#allocation9], %s521_s29  ;;  %s16108_s28 = scalar_lea.vmem [#allocation8], %s11964_s8 }
 0x14e   : > { %15543 = dma.done.wait (%p17638_p10), %s522_s5, 16384  }
 0x14f   : > { %15545 = vsyncadd (%p17638_p10), %s522_s5, 4294950912  ;;  %p17639_p4 = scmp.eq.s32.totalorder %s15733_s22, 0 }
 0x151   : > { %15547 = dma.done.wait (%p17639_p4), [#allocation9], 256   ;;  %p17640_p2 = pmov %p17639_p4 }
 0x153   : > { %15549 = vsyncadd (%p17640_p2), [#allocation9], 4294967040  ;;  %p17641_p7 = pmov %p17640_p2 }
 0x154   : > { %p17642_p0 = pmov %p17640_p2 }
 0x155   : > { %15551 = dma.done.wait (%p17641_p7), [#allocation12], 65600  }
 0x156   : > { %15553 = vsyncadd (%p17642_p0), [#allocation12], 4294901696  ;;  %p17643_p5 = pmov %p17642_p0 }
 0x157   : > { %p17644_p9 = pmov %p17642_p0 }
 0x158   : > { %15555 = dma.done.wait (%p17643_p5), [#allocation15], 33024  }
 0x159   : > { %15557 = vsyncadd (%p17644_p9), [#allocation15], 4294934272  ;;  %s17645_s10 = sld [smem:[#allocation32_spill]]  ;;  %s17646_s13 = sld [smem:[#allocation37_spill]] }
 0x15a   : > { %s551_s7 = scalar_lea.sflag [#allocation18], %s521_s29 }
 0x15f   : > { %s16127_s2 = sand.u32 1, %s17645_s10   ;;  %p17647_p3 = scmp.ne.s32.totalorder %s17646_s13, 0 }
 0x160   : > { %s11970_s3 = sshll.u32 %s16127_s2, 10 }
 0x161   : > { %s16130_s16 = scalar_lea.vmem [#allocation17], %s11970_s3 }
 0x162   : > { %15559 = dma.done.wait (%p17647_p3), %s551_s7, 16400  }
 0x163   : > { %15561 = vsyncadd (%p17647_p3), %s551_s7, 4294950896  ;;  %s11971_s9 = sshll.u32 %s16127_s2, 6  ;;  %s562_s0 = scalar_lea.vmem [#allocation19], %s16127_s2 }
 0x164   : > { %s16138_s4 = scalar_lea.vmem [#allocation21], %s11971_s9  ;;  %s17648_s12 = sld [smem:[#allocation33_spill]] }
 0x16a   : > { %p11972_p8 = scmp.ne.s32.totalorder %s17648_s12, 0 }
 0x16b   : > { %vm763_vm0 = vcmask (!%p11972_p8), 7168   ;;  %v15622_v0 = vmov (!%p11972_p8), 0.0  }
 0x16c   : > { %634 = sbr.rel (%p11972_p8) target bundleno = 432 (0x1b0), region = 96  ;;  %635 = vst [vmem:[#allocation2] sm:$0xff] (!%p11972_p8), %v15622_v0  ;;  %636 = vst [vmem:[#allocation2 + $0x8] sm:$0xff] (!%p11972_p8), %v15622_v0 }
 0x16d   : > { %637 = vst [vmem:[#allocation2 + $0x10] sm:$0xff] (!%p11972_p8), %v15622_v0  ;;  %638 = vst [vmem:[#allocation2 + $0x18] sm:$0xff] (!%p11972_p8), %v15622_v0 }
 0x16e   : > { %639 = vst [vmem:[#allocation2 + $0x20] sm:$0xff] (!%p11972_p8), %v15622_v0  ;;  %640 = vst [vmem:[#allocation2 + $0x28] sm:$0xff] (!%p11972_p8), %v15622_v0 }
 0x16f   : > { %641 = vst [vmem:[#allocation2 + $0x30] sm:$0xff] (!%p11972_p8), %v15622_v0  ;;  %642 = vst [vmem:[#allocation2 + $0x38] sm:$0xff] (!%p11972_p8), %v15622_v0 }
 0x170   : > { %643 = vst [vmem:[#allocation2 + $0x40] sm:$0xff] (!%p11972_p8), %v15622_v0  ;;  %644 = vst [vmem:[#allocation2 + $0x48] sm:$0xff] (!%p11972_p8), %v15622_v0 }
 0x171   : > { %645 = vst [vmem:[#allocation2 + $0x50] sm:$0xff] (!%p11972_p8), %v15622_v0  ;;  %646 = vst [vmem:[#allocation2 + $0x58] sm:$0xff] (!%p11972_p8), %v15622_v0 }
 0x172   : > { %647 = vst [vmem:[#allocation2 + $0x60] sm:$0xff] (!%p11972_p8), %v15622_v0  ;;  %648 = vst [vmem:[#allocation2 + $0x68] sm:$0xff] (!%p11972_p8), %v15622_v0 }
 0x173   : > { %649 = vst [vmem:[#allocation2 + $0x70] sm:$0xff] %v15622_v0  ;;  %650 = vst [vmem:[#allocation2 + $0x78] sm:$0xff] %v15622_v0 }
 0x174   : > { %651 = vst [vmem:[#allocation2 + $0x80] sm:$0xff] %v15622_v0  ;;  %652 = vst [vmem:[#allocation2 + $0x88] sm:$0xff] %v15622_v0 }
 0x175   : > { %653 = vst [vmem:[#allocation2 + $0x90] sm:$0xff] %v15622_v0  ;;  %654 = vst [vmem:[#allocation2 + $0x98] sm:$0xff] %v15622_v0 }
 0x176   : > { %655 = vst [vmem:[#allocation2 + $0xa0] sm:$0xff] %v15622_v0  ;;  %656 = vst [vmem:[#allocation2 + $0xa8] sm:$0xff] %v15622_v0 }
 0x177   : > { %657 = vst [vmem:[#allocation2 + $0xb0] sm:$0xff] %v15622_v0  ;;  %658 = vst [vmem:[#allocation2 + $0xb8] sm:$0xff] %v15622_v0 }
 0x178   : > { %659 = vst [vmem:[#allocation2 + $0xc0] sm:$0xff] %v15622_v0  ;;  %660 = vst [vmem:[#allocation2 + $0xc8] sm:$0xff] %v15622_v0 }
 0x179   : > { %661 = vst [vmem:[#allocation2 + $0xd0] sm:$0xff] %v15622_v0  ;;  %662 = vst [vmem:[#allocation2 + $0xd8] sm:$0xff] %v15622_v0 }
 0x17a   : > { %663 = vst [vmem:[#allocation2 + $0xe0] sm:$0xff] %v15622_v0  ;;  %664 = vst [vmem:[#allocation2 + $0xe8] sm:$0xff] %v15622_v0 }
 0x17b   : > { %665 = vst [vmem:[#allocation2 + $0xf0] sm:$0xff] %v15622_v0  ;;  %666 = vst [vmem:[#allocation2 + $0xf8] sm:$0xff] %v15622_v0 }
 0x17c   : > { %667 = vst [vmem:[#allocation2 + $0x100] sm:$0xff] %v15622_v0  ;;  %668 = vst [vmem:[#allocation2 + $0x108] sm:$0xff] %v15622_v0 }
 0x17d   : > { %669 = vst [vmem:[#allocation2 + $0x110] sm:$0xff] %v15622_v0  ;;  %670 = vst [vmem:[#allocation2 + $0x118] sm:$0xff] %v15622_v0 }
 0x17e   : > { %671 = vst [vmem:[#allocation2 + $0x120] sm:$0xff] %v15622_v0  ;;  %672 = vst [vmem:[#allocation2 + $0x128] sm:$0xff] %v15622_v0 }
 0x17f   : > { %673 = vst [vmem:[#allocation2 + $0x130] sm:$0xff] %v15622_v0  ;;  %674 = vst [vmem:[#allocation2 + $0x138] sm:$0xff] %v15622_v0 }
 0x180   : > { %675 = vst [vmem:[#allocation2 + $0x140] sm:$0xff] %v15622_v0  ;;  %676 = vst [vmem:[#allocation2 + $0x148] sm:$0xff] %v15622_v0 }
 0x181   : > { %677 = vst [vmem:[#allocation2 + $0x150] sm:$0xff] %v15622_v0  ;;  %678 = vst [vmem:[#allocation2 + $0x158] sm:$0xff] %v15622_v0 }
 0x182   : > { %679 = vst [vmem:[#allocation2 + $0x160] sm:$0xff] %v15622_v0  ;;  %680 = vst [vmem:[#allocation2 + $0x168] sm:$0xff] %v15622_v0 }
 0x183   : > { %681 = vst [vmem:[#allocation2 + $0x170] sm:$0xff] %v15622_v0  ;;  %682 = vst [vmem:[#allocation2 + $0x178] sm:$0xff] %v15622_v0 }
 0x184   : > { %683 = vst [vmem:[#allocation2 + $0x180] sm:$0xff] %v15622_v0  ;;  %684 = vst [vmem:[#allocation2 + $0x188] sm:$0xff] %v15622_v0 }
 0x185   : > { %685 = vst [vmem:[#allocation2 + $0x190] sm:$0xff] %v15622_v0  ;;  %686 = vst [vmem:[#allocation2 + $0x198] sm:$0xff] %v15622_v0 }
 0x186   : > { %687 = vst [vmem:[#allocation2 + $0x1a0] sm:$0xff] %v15622_v0  ;;  %688 = vst [vmem:[#allocation2 + $0x1a8] sm:$0xff] %v15622_v0 }
 0x187   : > { %689 = vst [vmem:[#allocation2 + $0x1b0] sm:$0xff] %v15622_v0  ;;  %690 = vst [vmem:[#allocation2 + $0x1b8] sm:$0xff] %v15622_v0 }
 0x188   : > { %691 = vst [vmem:[#allocation2 + $0x1c0] sm:$0xff] %v15622_v0  ;;  %692 = vst [vmem:[#allocation2 + $0x1c8] sm:$0xff] %v15622_v0 }
 0x189   : > { %693 = vst [vmem:[#allocation2 + $0x1d0] sm:$0xff] %v15622_v0  ;;  %694 = vst [vmem:[#allocation2 + $0x1d8] sm:$0xff] %v15622_v0 }
 0x18a   : > { %695 = vst [vmem:[#allocation2 + $0x1e0] sm:$0xff] %v15622_v0  ;;  %696 = vst [vmem:[#allocation2 + $0x1e8] sm:$0xff] %v15622_v0 }
 0x18b   : > { %697 = vst [vmem:[#allocation2 + $0x1f0] sm:$0xff] %v15622_v0  ;;  %698 = vst [vmem:[#allocation2 + $0x1f8] sm:$0xff] %v15622_v0 }
 0x18c   : > { %699 = vst [vmem:[#allocation2 + $0x200] sm:$0xff] %v15622_v0  ;;  %700 = vst [vmem:[#allocation2 + $0x208] sm:$0xff] %v15622_v0 }
 0x18d   : > { %701 = vst [vmem:[#allocation2 + $0x210] sm:$0xff] %v15622_v0  ;;  %702 = vst [vmem:[#allocation2 + $0x218] sm:$0xff] %v15622_v0 }
 0x18e   : > { %703 = vst [vmem:[#allocation2 + $0x220] sm:$0xff] %v15622_v0  ;;  %704 = vst [vmem:[#allocation2 + $0x228] sm:$0xff] %v15622_v0 }
 0x18f   : > { %705 = vst [vmem:[#allocation2 + $0x230] sm:$0xff] %v15622_v0  ;;  %706 = vst [vmem:[#allocation2 + $0x238] sm:$0xff] %v15622_v0 }
 0x190   : > { %707 = vst [vmem:[#allocation2 + $0x240] sm:$0xff] %v15622_v0  ;;  %708 = vst [vmem:[#allocation2 + $0x248] sm:$0xff] %v15622_v0 }
 0x191   : > { %709 = vst [vmem:[#allocation2 + $0x250] sm:$0xff] %v15622_v0  ;;  %710 = vst [vmem:[#allocation2 + $0x258] sm:$0xff] %v15622_v0 }
 0x192   : > { %711 = vst [vmem:[#allocation2 + $0x260] sm:$0xff] %v15622_v0  ;;  %712 = vst [vmem:[#allocation2 + $0x268] sm:$0xff] %v15622_v0 }
 0x193   : > { %713 = vst [vmem:[#allocation2 + $0x270] sm:$0xff] %v15622_v0  ;;  %714 = vst [vmem:[#allocation2 + $0x278] sm:$0xff] %v15622_v0 }
 0x194   : > { %715 = vst [vmem:[#allocation2 + $0x280] sm:$0xff] %v15622_v0  ;;  %716 = vst [vmem:[#allocation2 + $0x288] sm:$0xff] %v15622_v0 }
 0x195   : > { %717 = vst [vmem:[#allocation2 + $0x290] sm:$0xff] %v15622_v0  ;;  %718 = vst [vmem:[#allocation2 + $0x298] sm:$0xff] %v15622_v0 }
 0x196   : > { %719 = vst [vmem:[#allocation2 + $0x2a0] sm:$0xff] %v15622_v0  ;;  %720 = vst [vmem:[#allocation2 + $0x2a8] sm:$0xff] %v15622_v0 }
 0x197   : > { %721 = vst [vmem:[#allocation2 + $0x2b0] sm:$0xff] %v15622_v0  ;;  %722 = vst [vmem:[#allocation2 + $0x2b8] sm:$0xff] %v15622_v0 }
 0x198   : > { %723 = vst [vmem:[#allocation2 + $0x2c0] sm:$0xff] %v15622_v0  ;;  %724 = vst [vmem:[#allocation2 + $0x2c8] sm:$0xff] %v15622_v0 }
 0x199   : > { %725 = vst [vmem:[#allocation2 + $0x2d0] sm:$0xff] %v15622_v0  ;;  %726 = vst [vmem:[#allocation2 + $0x2d8] sm:$0xff] %v15622_v0 }
 0x19a   : > { %727 = vst [vmem:[#allocation2 + $0x2e0] sm:$0xff] %v15622_v0  ;;  %728 = vst [vmem:[#allocation2 + $0x2e8] sm:$0xff] %v15622_v0 }
 0x19b   : > { %729 = vst [vmem:[#allocation2 + $0x2f0] sm:$0xff] %v15622_v0  ;;  %730 = vst [vmem:[#allocation2 + $0x2f8] sm:$0xff] %v15622_v0 }
 0x19c   : > { %731 = vst [vmem:[#allocation2 + $0x300] sm:$0xff] %v15622_v0  ;;  %732 = vst [vmem:[#allocation2 + $0x308] sm:$0xff] %v15622_v0 }
 0x19d   : > { %733 = vst [vmem:[#allocation2 + $0x310] sm:$0xff] %v15622_v0  ;;  %734 = vst [vmem:[#allocation2 + $0x318] sm:$0xff] %v15622_v0 }
 0x19e   : > { %735 = vst [vmem:[#allocation2 + $0x320] sm:$0xff] %v15622_v0  ;;  %736 = vst [vmem:[#allocation2 + $0x328] sm:$0xff] %v15622_v0 }
 0x19f   : > { %737 = vst [vmem:[#allocation2 + $0x330] sm:$0xff] %v15622_v0  ;;  %738 = vst [vmem:[#allocation2 + $0x338] sm:$0xff] %v15622_v0 }
 0x1a0   : > { %739 = vst [vmem:[#allocation2 + $0x340] sm:$0xff] %v15622_v0  ;;  %740 = vst [vmem:[#allocation2 + $0x348] sm:$0xff] %v15622_v0 }
 0x1a1   : > { %741 = vst [vmem:[#allocation2 + $0x350] sm:$0xff] %v15622_v0  ;;  %742 = vst [vmem:[#allocation2 + $0x358] sm:$0xff] %v15622_v0 }
 0x1a2   : > { %743 = vst [vmem:[#allocation2 + $0x360] sm:$0xff] %v15622_v0  ;;  %744 = vst [vmem:[#allocation2 + $0x368] sm:$0xff] %v15622_v0 }
 0x1a3   : > { %745 = vst [vmem:[#allocation2 + $0x370] sm:$0xff] %v15622_v0  ;;  %746 = vst [vmem:[#allocation2 + $0x378] sm:$0xff] %v15622_v0 }
 0x1a4   : > { %747 = vst [vmem:[#allocation2 + $0x380] sm:$0xff] %v15622_v0  ;;  %748 = vst [vmem:[#allocation2 + $0x388] sm:$0xff] %v15622_v0 }
 0x1a5   : > { %749 = vst [vmem:[#allocation2 + $0x390] sm:$0xff] %v15622_v0  ;;  %750 = vst [vmem:[#allocation2 + $0x398] sm:$0xff] %v15622_v0 }
 0x1a6   : > { %751 = vst [vmem:[#allocation2 + $0x3a0] sm:$0xff] %v15622_v0  ;;  %752 = vst [vmem:[#allocation2 + $0x3a8] sm:$0xff] %v15622_v0 }
 0x1a7   : > { %753 = vst [vmem:[#allocation2 + $0x3b0] sm:$0xff] %v15622_v0  ;;  %754 = vst [vmem:[#allocation2 + $0x3b8] sm:$0xff] %v15622_v0 }
 0x1a8   : > { %755 = vst [vmem:[#allocation2 + $0x3c0] sm:$0xff] %v15622_v0  ;;  %756 = vst [vmem:[#allocation2 + $0x3c8] sm:$0xff] %v15622_v0 }
 0x1a9   : > { %757 = vst [vmem:[#allocation2 + $0x3d0] sm:$0xff] %v15622_v0  ;;  %758 = vst [vmem:[#allocation2 + $0x3d8] sm:$0xff] %v15622_v0 }
 0x1aa   : > { %759 = vst [vmem:[#allocation2 + $0x3e0] sm:$0xff] %v15622_v0  ;;  %760 = vst [vmem:[#allocation2 + $0x3e8] sm:$0xff] %v15622_v0 }
 0x1ab   : > { %761 = vst [vmem:[#allocation2 + $0x3f0] sm:$0xff] %v15622_v0  ;;  %762 = vst [vmem:[#allocation2 + $0x3f8] sm:$0xff] %v15622_v0 }
 0x1ac   : > { %764 = vst.msk [vmem:[#allocation3] sm:$0xff] %vm763_vm0, %v15622_v0  ;;  %765 = vst.msk [vmem:[#allocation3 + $0x8] sm:$0xff] %vm763_vm0, %v15622_v0 }
 0x1ad   : > { %766 = vst.msk [vmem:[#allocation3 + $0x10] sm:$0xff] %vm763_vm0, %v15622_v0  ;;  %767 = vst.msk [vmem:[#allocation3 + $0x18] sm:$0xff] %vm763_vm0, %v15622_v0 }
 0x1ae   : > { %768 = vst.msk [vmem:[#allocation3 + $0x20] sm:$0xff] %vm763_vm0, %v15622_v0  ;;  %769 = vst.msk [vmem:[#allocation3 + $0x28] sm:$0xff] %vm763_vm0, %v15622_v0 }
 0x1af   : > { %770 = vst.msk [vmem:[#allocation3 + $0x30] sm:$0xff] %vm763_vm0, %v15622_v0  ;;  %771 = vst.msk [vmem:[#allocation3 + $0x38] sm:$0xff] %vm763_vm0, %v15622_v0 }
 0x1b0 PF: > { %s17649_s24 = sld [smem:[#allocation33_spill]] }
 0x1b6   : > { %p11973_p11 = scmp.ge.s32.totalorder %s17649_s24, 2 }
 0x1b7   : > { %v965_v1 = vld [vmem:[%s16108_s28] sm:$0xff] (!%p11973_p11)  ;;  %v966_v3 = vld [vmem:[%s16108_s28 + $0x8] sm:$0xff] (!%p11973_p11)  ;;  %v15623_v9 = vmov (!%p11973_p11), 0   ;;  %v967_v0 = vld [vmem:[%s16108_s28 + $0x10] sm:$0xff] (!%p11973_p11)  ;;  %vm824_vm1 = vcmask (!%p11973_p11), 7168  }
 0x1b8   : > { %775 = sbr.rel (%p11973_p11) target bundleno = 813 (0x32d), region = 100  ;;  %v973_v2 = vld [vmem:[%s16108_s28 + $0x40] sm:$0xff] (!%p11973_p11)  ;;  %v974_v5 = vld [vmem:[%s16108_s28 + $0x48] sm:$0xff] (!%p11973_p11)  ;;  %1765 = vmatprep.mubr.bf16.mxu0 (!%p11973_p11), %v15623_v9  ;;  %1838 = vmatprep.mubr.bf16.mxu1 (!%p11973_p11), %v15623_v9 }
 0x1b9   : > { %v11975_v4 = vcombine.high (!%p11973_p11), %v965_v1, %v973_v2  ;;  %v11974_v6 = vcombine.low (!%p11973_p11), %v965_v1, %v973_v2  ;;  %v981_v7 = vld [vmem:[%s16108_s28 + $0x80] sm:$0xff] (!%p11973_p11)  ;;  %v11977_v10 = vcombine.high (!%p11973_p11), %v966_v3, %v974_v5  ;;  %v11976_v11 = vcombine.low (!%p11973_p11), %v966_v3, %v974_v5  ;;  %v982_v13 = vld [vmem:[%s16108_s28 + $0x88] sm:$0xff] (!%p11973_p11)  ;;  %v975_v1 = vld [vmem:[%s16108_s28 + $0x50] sm:$0xff] (!%p11973_p11) }
 0x1ba   : > { %v989_v8 = vld [vmem:[%s16108_s28 + $0xc0] sm:$0xff] (!%p11973_p11)  ;;  %v990_v14 = vld [vmem:[%s16108_s28 + $0xc8] sm:$0xff] (!%p11973_p11)  ;;  %v968_v2 = vld [vmem:[%s16108_s28 + $0x18] sm:$0xff] (!%p11973_p11) }
 0x1bb   : > { %v11991_v12 = vcombine.high (!%p11973_p11), %v981_v7, %v989_v8  ;;  %v997_v15 = vld [vmem:[%s16108_s28 + $0x100] sm:$0xff] (!%p11973_p11)  ;;  %1733 = vmatprep.subr.bf16.mxu0 (!%p11973_p11), %v11975_v4  ;;  %v11993_v16 = vcombine.high (!%p11973_p11), %v982_v13, %v990_v14  ;;  %v998_v18 = vld [vmem:[%s16108_s28 + $0x108] sm:$0xff] (!%p11973_p11)  ;;  %1806 = vmatprep.subr.bf16.mxu1 (!%p11973_p11), %v11977_v10  ;;  %v11990_v20 = vcombine.low (!%p11973_p11), %v981_v7, %v989_v8  ;;  %v976_v3 = vld [vmem:[%s16108_s28 + $0x58] sm:$0xff] (!%p11973_p11) }
 0x1bc   : > { %v1005_v17 = vld [vmem:[%s16108_s28 + $0x140] sm:$0xff] (!%p11973_p11)  ;;  %v1006_v19 = vld [vmem:[%s16108_s28 + $0x148] sm:$0xff] (!%p11973_p11)  ;;  %1734 = vmatpush1.bf16.msra.mxu0 (!%p11973_p11), %v11974_v6  ;;  %1807 = vmatpush1.bf16.msra.mxu1 (!%p11973_p11), %v11976_v11  ;;  %v11992_v21 = vcombine.low (!%p11973_p11), %v982_v13, %v990_v14  ;;  %v778_v7 = vld [vmem:[%s16101_s23 + $0x10] sm:$0xff] (!%p11973_p11)  ;;  %v11979_v10 = vcombine.high (!%p11973_p11), %v967_v0, %v975_v1 }
 0x1bd   : > { %1735 = vmatprep.subr.bf16.mxu0 (!%p11973_p11), %v11991_v12  ;;  %v12007_v22 = vcombine.high (!%p11973_p11), %v997_v15, %v1005_v17  ;;  %1808 = vmatprep.subr.bf16.mxu1 (!%p11973_p11), %v11993_v16  ;;  %v12009_v23 = vcombine.high (!%p11973_p11), %v998_v18, %v1006_v19  ;;  %v1013_v24 = vld [vmem:[%s16108_s28 + $0x180] sm:$0xff] (!%p11973_p11)  ;;  %v1014_v26 = vld [vmem:[%s16108_s28 + $0x188] sm:$0xff] (!%p11973_p11)  ;;  %v12006_v28 = vcombine.low (!%p11973_p11), %v997_v15, %v1005_v17  ;;  %v983_v13 = vld [vmem:[%s16108_s28 + $0x90] sm:$0xff] (!%p11973_p11) }
 0x1be   : > { %v1021_v25 = vld [vmem:[%s16108_s28 + $0x1c0] sm:$0xff] (!%p11973_p11)  ;;  %v1022_v27 = vld [vmem:[%s16108_s28 + $0x1c8] sm:$0xff] (!%p11973_p11)  ;;  %v12008_v29 = vcombine.low (!%p11973_p11), %v998_v18, %v1006_v19  ;;  %v794_v11 = vmul.f32 (!%p11973_p11), %v778_v7, %v778_v7  ;;  %v11981_v12 = vcombine.high (!%p11973_p11), %v968_v2, %v976_v3  ;;  %v991_v14 = vld [vmem:[%s16108_s28 + $0xd0] sm:$0xff] (!%p11973_p11)  ;;  %v11978_v19 = vcombine.low (!%p11973_p11), %v967_v0, %v975_v1 }
 0x1bf   : > { %v12023_v30 = vcombine.high %v1013_v24, %v1021_v25  ;;  %v12025_v31 = vcombine.high %v1014_v26, %v1022_v27  ;;  %v1029_v32 = vld [vmem:[%s16108_s28 + $0x200] sm:$0xff]  ;;  %v1030_v34 = vld [vmem:[%s16108_s28 + $0x208] sm:$0xff]  ;;  %v12022_v36 = vcombine.low %v1013_v24, %v1021_v25  ;;  %v12024_v37 = vcombine.low %v1014_v26, %v1022_v27  ;;  %v984_v16 = vld [vmem:[%s16108_s28 + $0x98] sm:$0xff] }
 0x1c0   : > { %1736 = vmatpush1.bf16.msra.mxu0 %v11990_v20  ;;  %1809 = vmatpush1.bf16.msra.mxu1 %v11992_v21  ;;  %v1037_v33 = vld [vmem:[%s16108_s28 + $0x240] sm:$0xff]  ;;  %v1038_v35 = vld [vmem:[%s16108_s28 + $0x248] sm:$0xff]  ;;  %v992_v17 = vld [vmem:[%s16108_s28 + $0xd8] sm:$0xff]  ;;  %v11980_v20 = vcombine.low %v968_v2, %v976_v3  ;;  %v11995_v21 = vcombine.high %v983_v13, %v991_v14 }
 0x1c1   : > { %1737 = vmatprep.subr.bf16.mxu0 %v12007_v22  ;;  %1810 = vmatprep.subr.bf16.mxu1 %v12009_v23  ;;  %v12039_v38 = vcombine.high %v1029_v32, %v1037_v33  ;;  %v12041_v39 = vcombine.high %v1030_v34, %v1038_v35  ;;  %v1045_v40 = vld [vmem:[%s16108_s28 + $0x280] sm:$0xff]  ;;  %v1046_v42 = vld [vmem:[%s16108_s28 + $0x288] sm:$0xff]  ;;  %v12038_v44 = vcombine.low %v1029_v32, %v1037_v33  ;;  %v779_v23 = vld [vmem:[%s16101_s23 + $0x18] sm:$0xff] }
 0x1c2   : > { %v1053_v41 = vld [vmem:[%s16108_s28 + $0x2c0] sm:$0xff]  ;;  %v1054_v43 = vld [vmem:[%s16108_s28 + $0x2c8] sm:$0xff]  ;;  %v12040_v45 = vcombine.low %v1030_v34, %v1038_v35  ;;  %804 = vadd.xlane.f32.xlu1 %v794_v11  ;;  %v11997_v22 = vcombine.high %v984_v16, %v992_v17  ;;  %v999_v24 = vld [vmem:[%s16108_s28 + $0x110] sm:$0xff]  ;;  %v16344_v35 = vpack.c.bf16 %v779_v23, %v778_v7 }
 0x1c3   : > { %v12055_v46 = vcombine.high %v1045_v40, %v1053_v41  ;;  %v12057_v47 = vcombine.high %v1046_v42, %v1054_v43  ;;  %v1061_v48 = vld [vmem:[%s16108_s28 + $0x300] sm:$0xff]  ;;  %v1062_v50 = vld [vmem:[%s16108_s28 + $0x308] sm:$0xff]  ;;  %v12054_v52 = vcombine.low %v1045_v40, %v1053_v41  ;;  %v12056_v53 = vcombine.low %v1046_v42, %v1054_v43  ;;  %v1007_v25 = vld [vmem:[%s16108_s28 + $0x150] sm:$0xff] }
 0x1c4   : > { %1738 = vmatpush1.bf16.msra.mxu0 %v12006_v28  ;;  %1811 = vmatpush1.bf16.msra.mxu1 %v12008_v29  ;;  %v1069_v49 = vld [vmem:[%s16108_s28 + $0x340] sm:$0xff]  ;;  %v1070_v51 = vld [vmem:[%s16108_s28 + $0x348] sm:$0xff]  ;;  %v1000_v26 = vld [vmem:[%s16108_s28 + $0x118] sm:$0xff]  ;;  %v795_v28 = vmul.f32 %v779_v23, %v779_v23  ;;  %v11994_v29 = vcombine.low %v983_v13, %v991_v14 }
 0x1c5   : > { %1739 = vmatprep.subr.bf16.mxu0 %v12023_v30  ;;  %1812 = vmatprep.subr.bf16.mxu1 %v12025_v31  ;;  %v12071_v54 = vcombine.high %v1061_v48, %v1069_v49  ;;  %v12073_v55 = vcombine.high %v1062_v50, %v1070_v51  ;;  %v1077_v56 = vld [vmem:[%s16108_s28 + $0x380] sm:$0xff]  ;;  %v1078_v58 = vld [vmem:[%s16108_s28 + $0x388] sm:$0xff]  ;;  %v12070_v60 = vcombine.low %v1061_v48, %v1069_v49  ;;  %v1008_v27 = vld [vmem:[%s16108_s28 + $0x158] sm:$0xff] }
 0x1c6   : > { %v1085_v57 = vld [vmem:[%s16108_s28 + $0x3c0] sm:$0xff]  ;;  %v1086_v59 = vld [vmem:[%s16108_s28 + $0x3c8] sm:$0xff]  ;;  %v12072_v61 = vcombine.low %v1062_v50, %v1070_v51  ;;  %v11996_v30 = vcombine.low %v984_v16, %v992_v17  ;;  %v12011_v31 = vcombine.high %v999_v24, %v1007_v25  ;;  %v12013_v32 = vcombine.high %v1000_v26, %v1008_v27  ;;  %v1015_v33 = vld [vmem:[%s16108_s28 + $0x190] sm:$0xff]  ;;  %806 = vadd.xlane.f32.xlu1 %v795_v28 }
 0x1c7   : > { %v12087_v62 = vcombine.high %v1077_v56, %v1085_v57  ;;  %v12089_v63 = vcombine.high %v1078_v58, %v1086_v59  ;;  %v12086_v4 = vcombine.low %v1077_v56, %v1085_v57  ;;  %v776_v5 = vld [vmem:[%s16101_s23] sm:$0xff]  ;;  %v777_v6 = vld [vmem:[%s16101_s23 + $0x8] sm:$0xff]  ;;  %v12088_v8 = vcombine.low %v1078_v58, %v1086_v59  ;;  %v1023_v34 = vld [vmem:[%s16108_s28 + $0x1d0] sm:$0xff] }
 0x1c8   : > { %1740 = vmatpush1.bf16.msra.mxu0 %v12022_v36  ;;  %1813 = vmatpush1.bf16.msra.mxu1 %v12024_v37  ;;  %v16329_v15 = vpack.c.bf16 %v777_v6, %v776_v5  ;;  %v792_v18 = vmul.f32 %v776_v5, %v776_v5  ;;  %v1016_v36 = vld [vmem:[%s16108_s28 + $0x198] sm:$0xff]  ;;  %v12012_v40 = vcombine.low %v1000_v26, %v1008_v27  ;;  %v781_v43 = vld [vmem:[%s16101_s23 + $0x28] sm:$0xff]  ;;  %v1055_v56 = vld [vmem:[%s16108_s28 + $0x2d0] sm:$0xff] }
 0x1c9   : > { %1741 = vmatprep.subr.bf16.mxu0 %v12039_v38  ;;  %1814 = vmatprep.subr.bf16.mxu1 %v12041_v39  ;;  %v1024_v37 = vld [vmem:[%s16108_s28 + $0x1d8] sm:$0xff]  ;;  %v793_v38 = vmul.f32 %v777_v6, %v777_v6  ;;  %v12010_v39 = vcombine.low %v999_v24, %v1007_v25  ;;  %v12027_v41 = vcombine.high %v1015_v33, %v1023_v34  ;;  %v782_v2 = vld [vmem:[%s16101_s23 + $0x30] sm:$0xff]  ;;  %v969_v23 = vld [vmem:[%s16108_s28 + $0x20] sm:$0xff] }
 0x1ca   : > { %800 = vadd.xlane.f32.xlu0 %v792_v18  ;;  %v12029_v42 = vcombine.high %v1016_v36, %v1024_v37  ;;  %v1040_v48 = vld [vmem:[%s16108_s28 + $0x258] sm:$0xff]  ;;  %v797_v49 = vmul.f32 %v781_v43, %v781_v43  ;;  %v12026_v50 = vcombine.low %v1015_v33, %v1023_v34  ;;  %v1063_v3 = vld [vmem:[%s16108_s28 + $0x310] sm:$0xff]  ;;  %v798_v7 = vmul.f32 %v782_v2, %v782_v2  ;;  %v977_v24 = vld [vmem:[%s16108_s28 + $0x60] sm:$0xff] }
 0x1cb   : > { %v783_v57 = vld [vmem:[%s16101_s23 + $0x38] sm:$0xff]  ;;  %v1079_v13 = vld [vmem:[%s16108_s28 + $0x390] sm:$0xff]  ;;  %v970_v25 = vld [vmem:[%s16108_s28 + $0x28] sm:$0xff] }
 0x1cc   : > { %1742 = vmatpush1.bf16.msra.mxu0 %v12038_v44  ;;  %1815 = vmatpush1.bf16.msra.mxu1 %v12040_v45  ;;  %v1031_v44 = vld [vmem:[%s16108_s28 + $0x210] sm:$0xff]  ;;  %v1048_v59 = vld [vmem:[%s16108_s28 + $0x298] sm:$0xff]  ;;  %v16376_v16 = vpack.c.bf16 %v783_v57, %v782_v2  ;;  %v978_v26 = vld [vmem:[%s16108_s28 + $0x68] sm:$0xff] }
 0x1cd   : > { %1743 = vmatprep.subr.bf16.mxu0 %v12055_v46  ;;  %1816 = vmatprep.subr.bf16.mxu1 %v12057_v47  ;;  %v1039_v45 = vld [vmem:[%s16108_s28 + $0x250] sm:$0xff]  ;;  %v780_v46 = vld [vmem:[%s16101_s23 + $0x20] sm:$0xff]  ;;  %v1032_v47 = vld [vmem:[%s16108_s28 + $0x218] sm:$0xff] }
 0x1ce   : > { %802 = vadd.xlane.f32.xlu0 %v793_v38  ;;  %v796_v51 = vmul.f32 %v780_v46, %v780_v46  ;;  %v16361_v58 = vpack.c.bf16 %v781_v43, %v780_v46  ;;  %810 = vadd.xlane.f32.xlu1 %v797_v49  ;;  %v1064_v5 = vld [vmem:[%s16108_s28 + $0x318] sm:$0xff]  ;;  %v1087_v14 = vld [vmem:[%s16108_s28 + $0x3d0] sm:$0xff]  ;;  %v986_v33 = vld [vmem:[%s16108_s28 + $0xa8] sm:$0xff] }
 0x1cf   : > { %v1072_v6 = vld [vmem:[%s16108_s28 + $0x358] sm:$0xff]  ;;  %v12090_v27 = vcombine.low %v1079_v13, %v1087_v14  ;;  %v994_v34 = vld [vmem:[%s16108_s28 + $0xe8] sm:$0xff]  ;;  %v1025_v49 = vld [vmem:[%s16108_s28 + $0x1e0] sm:$0xff] }
 0x1d0   : > { %1744 = vmatpush1.bf16.msra.mxu0 %v12054_v52  ;;  %1817 = vmatpush1.bf16.msra.mxu1 %v12056_v53  ;;  %v12028_v52 = vcombine.low %v1016_v36, %v1024_v37  ;;  %v12043_v53 = vcombine.high %v1031_v44, %v1039_v45  ;;  %v1080_v17 = vld [vmem:[%s16108_s28 + $0x398] sm:$0xff]  ;;  %v11982_v36 = vcombine.low %v969_v23, %v977_v24  ;;  %v1010_v43 = vld [vmem:[%s16108_s28 + $0x168] sm:$0xff]  ;;  %v1057_v2 = vld [vmem:[%s16108_s28 + $0x2e0] sm:$0xff] }
 0x1d1   : > { %1745 = vmatprep.subr.bf16.mxu0 %v12071_v54  ;;  %1818 = vmatprep.subr.bf16.mxu1 %v12073_v55  ;;  %v12045_v54 = vcombine.high %v1032_v47, %v1040_v48  ;;  %v1047_v55 = vld [vmem:[%s16108_s28 + $0x290] sm:$0xff]  ;;  %v1088_v18 = vld [vmem:[%s16108_s28 + $0x3d8] sm:$0xff]  ;;  %v11984_v37 = vcombine.low %v970_v25, %v978_v26 }
 0x1d2   : > { %808 = vadd.xlane.f32.xlu0 %v796_v51  ;;  %v12059_v0 = vcombine.high %v1047_v55, %v1055_v56  ;;  %v12092_v28 = vcombine.low %v1080_v17, %v1088_v18  ;;  %v1026_v51 = vld [vmem:[%s16108_s28 + $0x1e8] sm:$0xff] }
 0x1d4   : > { %1746 = vmatpush1.bf16.msra.mxu0 %v12070_v60  ;;  %1819 = vmatpush1.bf16.msra.mxu1 %v12072_v61  ;;  %v1056_v60 = vld [vmem:[%s16108_s28 + $0x2d8] sm:$0xff]  ;;  %v799_v61 = vmul.f32 %v783_v57, %v783_v57  ;;  %v1041_v57 = vld [vmem:[%s16108_s28 + $0x260] sm:$0xff] }
 0x1d5   : > { %1747 = vmatprep.subr.bf16.mxu0 %v12087_v62  ;;  %1820 = vmatprep.subr.bf16.mxu1 %v12089_v63  ;;  %v12042_v62 = vcombine.low %v1031_v44, %v1039_v45  ;;  %v12044_v63 = vcombine.low %v1032_v47, %v1040_v48  ;;  %v12061_v1 = vcombine.high %v1048_v59, %v1056_v60  ;;  %v1017_v48 = vld [vmem:[%s16108_s28 + $0x1a0] sm:$0xff] }
 0x1d6   : > { %814 = vadd.xlane.f32.xlu1 %v799_v61  ;;  %812 = vadd.xlane.f32.xlu0 %v798_v7  ;;  %v12000_v45 = vcombine.low %v986_v33, %v994_v34  ;;  %v12030_v61 = vcombine.low %v1017_v48, %v1025_v49 }
 0x1d8   : > { %1748 = vmatpush1.bf16.msra.mxu0 %v12086_v4  ;;  %1821 = vmatpush1.bf16.msra.mxu1 %v12088_v8  ;;  %v1071_v4 = vld [vmem:[%s16108_s28 + $0x350] sm:$0xff]  ;;  %v12058_v8 = vcombine.low %v1047_v55, %v1055_v56  ;;  %v1033_v56 = vld [vmem:[%s16108_s28 + $0x220] sm:$0xff] }
 0x1d9   : > { %1879 = vmatprep.subr.bf16.mxu0 %v11979_v10  ;;  %1952 = vmatprep.subr.bf16.mxu1 %v11981_v12  ;;  %v12060_v10 = vcombine.low %v1048_v59, %v1056_v60  ;;  %v12075_v11 = vcombine.high %v1063_v3, %v1071_v4  ;;  %v12077_v12 = vcombine.high %v1064_v5, %v1072_v6  ;;  %v1034_v59 = vld [vmem:[%s16108_s28 + $0x228] sm:$0xff] }
 0x1da   : > { %v1042_v60 = vld [vmem:[%s16108_s28 + $0x268] sm:$0xff] }
 0x1db   : > { %1766 = vmatmul.mubr.bf16.vlgmr.msra.gmra.mrb[0].mxu0 %v16329_v15  ;;  %1839 = vmatmul.mubr.bf16.vlgmr.msra.gmra.mrb[0].mxu1 %v16329_v15 }
 0x1dc   : > { %1880 = vmatpush1.bf16.msra.mxu0 %v11978_v19  ;;  %1953 = vmatpush1.bf16.msra.mxu1 %v11980_v20  ;;  %v12074_v19 = vcombine.low %v1063_v3, %v1071_v4  ;;  %v12076_v20 = vcombine.low %v1064_v5, %v1072_v6  ;;  %v1050_v3 = vld [vmem:[%s16108_s28 + $0x2a8] sm:$0xff]  ;;  %v12046_v5 = vcombine.low %v1033_v56, %v1041_v57 }
 0x1dd   : > { %1881 = vmatprep.subr.bf16.mxu0 %v11995_v21  ;;  %1954 = vmatprep.subr.bf16.mxu1 %v11997_v22  ;;  %v12091_v21 = vcombine.high %v1079_v13, %v1087_v14  ;;  %v12093_v22 = vcombine.high %v1080_v17, %v1088_v18  ;;  %v1058_v4 = vld [vmem:[%s16108_s28 + $0x2e8] sm:$0xff]  ;;  %v12048_v6 = vcombine.low %v1034_v59, %v1042_v60 }
 0x1de   : > { %1775 = vmatprep.mubr.bf16.mxu0 %v15623_v9  ;;  %1848 = vmatprep.mubr.bf16.mxu1 %v15623_v9  ;;  %v1074_v13 = vld [vmem:[%s16108_s28 + $0x368] sm:$0xff]  ;;  %v12064_v17 = vcombine.low %v1050_v3, %v1058_v4 }
 0x1e0   : > { %1882 = vmatpush1.bf16.msra.mxu0 %v11994_v29  ;;  %1955 = vmatpush1.bf16.msra.mxu1 %v11996_v30  ;;  %v11983_v29 = vcombine.high %v969_v23, %v977_v24  ;;  %v11985_v30 = vcombine.high %v970_v25, %v978_v26  ;;  %v1090_v23 = vld [vmem:[%s16108_s28 + $0x3e8] sm:$0xff] }
 0x1e1   : > { %1883 = vmatprep.subr.bf16.mxu0 %v12011_v31  ;;  %1956 = vmatprep.subr.bf16.mxu1 %v12013_v32  ;;  %v985_v31 = vld [vmem:[%s16108_s28 + $0xa0] sm:$0xff] }
 0x1e2   : > { %v993_v32 = vld [vmem:[%s16108_s28 + $0xe0] sm:$0xff] }
 0x1e3   : > { %1776 = vmatmul.mubr.bf16.gmra.mrb[4].mxu0 %v16344_v35  ;;  %1849 = vmatmul.mubr.bf16.gmra.mrb[4].mxu1 %v16344_v35  ;;  %v11999_v38 = vcombine.high %v985_v31, %v993_v32  ;;  %v11998_v44 = vcombine.low %v985_v31, %v993_v32  ;;  %v980_v31 = vld [vmem:[%s16108_s28 + $0x78] sm:$0xff] }
 0x1e4   : > { %1884 = vmatpush1.bf16.msra.mxu0 %v12010_v39  ;;  %1957 = vmatpush1.bf16.msra.mxu1 %v12012_v40  ;;  %v12001_v39 = vcombine.high %v986_v33, %v994_v34  ;;  %v1001_v40 = vld [vmem:[%s16108_s28 + $0x120] sm:$0xff] }
 0x1e5   : > { %1885 = vmatprep.subr.bf16.mxu0 %v12027_v41  ;;  %1958 = vmatprep.subr.bf16.mxu1 %v12029_v42  ;;  %v1009_v41 = vld [vmem:[%s16108_s28 + $0x160] sm:$0xff]  ;;  %v1002_v42 = vld [vmem:[%s16108_s28 + $0x128] sm:$0xff] }
 0x1e6   : > { %1785 = vmatprep.mubr.bf16.mxu0 %v15623_v9  ;;  %1858 = vmatprep.mubr.bf16.mxu1 %v15623_v9  ;;  %v12015_v46 = vcombine.high %v1001_v40, %v1009_v41  ;;  %v12017_v47 = vcombine.high %v1002_v42, %v1010_v43 }
 0x1e8   : > { %1886 = vmatpush1.bf16.msra.mxu0 %v12026_v50  ;;  %1959 = vmatpush1.bf16.msra.mxu1 %v12028_v52  ;;  %v1018_v50 = vld [vmem:[%s16108_s28 + $0x1a8] sm:$0xff]  ;;  %v12014_v52 = vcombine.low %v1001_v40, %v1009_v41  ;;  %v996_v40 = vld [vmem:[%s16108_s28 + $0xf8] sm:$0xff] }
 0x1e9   : > { %1887 = vmatprep.subr.bf16.mxu0 %v12043_v53  ;;  %1960 = vmatprep.subr.bf16.mxu1 %v12045_v54  ;;  %v12016_v53 = vcombine.low %v1002_v42, %v1010_v43  ;;  %v12031_v54 = vcombine.high %v1017_v48, %v1025_v49  ;;  %v12033_v55 = vcombine.high %v1018_v50, %v1026_v51  ;;  %v1012_v48 = vld [vmem:[%s16108_s28 + $0x178] sm:$0xff] }
 0x1eb   : > { %1786 = vmatmul.mubr.bf16.gmra.mrb[8].mxu0 %v16361_v58  ;;  %1859 = vmatmul.mubr.bf16.gmra.mrb[8].mxu1 %v16361_v58 }
 0x1ec   : > { %1888 = vmatpush1.bf16.msra.mxu0 %v12042_v62  ;;  %1961 = vmatpush1.bf16.msra.mxu1 %v12044_v63  ;;  %v12032_v62 = vcombine.low %v1018_v50, %v1026_v51  ;;  %v12047_v63 = vcombine.high %v1033_v56, %v1041_v57  ;;  %v1028_v56 = vld [vmem:[%s16108_s28 + $0x1f8] sm:$0xff] }
 0x1ed   : > { %1889 = vmatprep.subr.bf16.mxu0 %v12059_v0  ;;  %1962 = vmatprep.subr.bf16.mxu1 %v12061_v1  ;;  %v12049_v0 = vcombine.high %v1034_v59, %v1042_v60  ;;  %v1049_v1 = vld [vmem:[%s16108_s28 + $0x2a0] sm:$0xff] }
 0x1ee   : > { %1795 = vmatprep.mubr.bf16.mxu0 %v15623_v9  ;;  %1868 = vmatprep.mubr.bf16.mxu1 %v15623_v9  ;;  %v12063_v7 = vcombine.high %v1049_v1, %v1057_v2  ;;  %v12062_v14 = vcombine.low %v1049_v1, %v1057_v2  ;;  %v1044_v1 = vld [vmem:[%s16108_s28 + $0x278] sm:$0xff] }
 0x1f0   : > { %1890 = vmatpush1.bf16.msra.mxu0 %v12058_v8  ;;  %1963 = vmatpush1.bf16.msra.mxu1 %v12060_v10  ;;  %v12065_v8 = vcombine.high %v1050_v3, %v1058_v4  ;;  %v1065_v10 = vld [vmem:[%s16108_s28 + $0x320] sm:$0xff] }
 0x1f1   : > { %1891 = vmatprep.subr.bf16.mxu0 %v12075_v11  ;;  %1964 = vmatprep.subr.bf16.mxu1 %v12077_v12  ;;  %v1073_v11 = vld [vmem:[%s16108_s28 + $0x360] sm:$0xff]  ;;  %v1066_v12 = vld [vmem:[%s16108_s28 + $0x328] sm:$0xff] }
 0x1f2   : > { %v12079_v18 = vcombine.high %v1065_v10, %v1073_v11  ;;  %v12078_v24 = vcombine.low %v1065_v10, %v1073_v11  ;;  %v12080_v25 = vcombine.low %v1066_v12, %v1074_v13  ;;  %v1060_v10 = vld [vmem:[%s16108_s28 + $0x2f8] sm:$0xff] }
 0x1f3   : > { %1796 = vmatmul.mubr.bf16.gmra.mrb[12].mxu0 %v16376_v16  ;;  %1869 = vmatmul.mubr.bf16.gmra.mrb[12].mxu1 %v16376_v16 }
 0x1f4   : > { %1892 = vmatpush1.bf16.msra.mxu0 %v12074_v19  ;;  %1965 = vmatpush1.bf16.msra.mxu1 %v12076_v20  ;;  %v12081_v19 = vcombine.high %v1066_v12, %v1074_v13  ;;  %v1081_v20 = vld [vmem:[%s16108_s28 + $0x3a0] sm:$0xff] }
 0x1f5   : > { %1893 = vmatprep.subr.bf16.mxu0 %v12091_v21  ;;  %1966 = vmatprep.subr.bf16.mxu1 %v12093_v22  ;;  %v1089_v21 = vld [vmem:[%s16108_s28 + $0x3e0] sm:$0xff]  ;;  %v1082_v22 = vld [vmem:[%s16108_s28 + $0x3a8] sm:$0xff] }
 0x1f6   : > { %1911 = vmatprep.mubr.bf16.mxu0 %v15623_v9  ;;  %1984 = vmatprep.mubr.bf16.mxu1 %v15623_v9  ;;  %v12095_v26 = vcombine.high %v1081_v20, %v1089_v21  ;;  %v12094_v32 = vcombine.low %v1081_v20, %v1089_v21  ;;  %v12096_v33 = vcombine.low %v1082_v22, %v1090_v23  ;;  %v1076_v20 = vld [vmem:[%s16108_s28 + $0x378] sm:$0xff] }
 0x1f8   : > { %1894 = vmatpush1.bf16.msra.mxu0 %v12090_v27  ;;  %1967 = vmatpush1.bf16.msra.mxu1 %v12092_v28  ;;  %v12097_v27 = vcombine.high %v1082_v22, %v1090_v23  ;;  %v971_v28 = vld [vmem:[%s16108_s28 + $0x30] sm:$0xff] }
 0x1f9   : > { %2025 = vmatprep.subr.bf16.mxu0 %v11983_v29  ;;  %2098 = vmatprep.subr.bf16.mxu1 %v11985_v30  ;;  %v979_v29 = vld [vmem:[%s16108_s28 + $0x70] sm:$0xff]  ;;  %v972_v30 = vld [vmem:[%s16108_s28 + $0x38] sm:$0xff] }
 0x1fa   : > { %v11987_v34 = vcombine.high %v971_v28, %v979_v29  ;;  %v11986_v41 = vcombine.low %v971_v28, %v979_v29  ;;  %v11988_v42 = vcombine.low %v972_v30, %v980_v31  ;;  %v1092_v28 = vld [vmem:[%s16108_s28 + $0x3f8] sm:$0xff] }
 0x1fb   : > { %1912 = vmatmul.mubr.bf16.vlgmr.msra.gmra.mrb[16].mxu0 %v16329_v15  ;;  %1985 = vmatmul.mubr.bf16.vlgmr.msra.gmra.mrb[16].mxu1 %v16329_v15 }
 0x1fc   : > { %2026 = vmatpush1.bf16.msra.mxu0 %v11982_v36  ;;  %2099 = vmatpush1.bf16.msra.mxu1 %v11984_v37  ;;  %v11989_v36 = vcombine.high %v972_v30, %v980_v31  ;;  %v987_v37 = vld [vmem:[%s16108_s28 + $0xb0] sm:$0xff] }
 0x1fd   : > { %2027 = vmatprep.subr.bf16.mxu0 %v11999_v38  ;;  %2100 = vmatprep.subr.bf16.mxu1 %v12001_v39  ;;  %v995_v38 = vld [vmem:[%s16108_s28 + $0xf0] sm:$0xff]  ;;  %v988_v39 = vld [vmem:[%s16108_s28 + $0xb8] sm:$0xff] }
 0x1fe   : > { %1921 = vmatprep.mubr.bf16.mxu0 %v15623_v9  ;;  %1994 = vmatprep.mubr.bf16.mxu1 %v15623_v9  ;;  %v12003_v43 = vcombine.high %v987_v37, %v995_v38  ;;  %v12002_v49 = vcombine.low %v987_v37, %v995_v38  ;;  %v12004_v50 = vcombine.low %v988_v39, %v996_v40  ;;  %v784_v37 = vld [vmem:[#allocation3] sm:$0xff] }
 0x200   : > { %2028 = vmatpush1.bf16.msra.mxu0 %v11998_v44  ;;  %2101 = vmatpush1.bf16.msra.mxu1 %v12000_v45  ;;  %v12005_v44 = vcombine.high %v988_v39, %v996_v40  ;;  %v1003_v45 = vld [vmem:[%s16108_s28 + $0x130] sm:$0xff] }
 0x201   : > { %2029 = vmatprep.subr.bf16.mxu0 %v12015_v46  ;;  %2102 = vmatprep.subr.bf16.mxu1 %v12017_v47  ;;  %v1011_v46 = vld [vmem:[%s16108_s28 + $0x170] sm:$0xff]  ;;  %v1004_v47 = vld [vmem:[%s16108_s28 + $0x138] sm:$0xff] }
 0x202   : > { %v12019_v51 = vcombine.high %v1003_v45, %v1011_v46  ;;  %v12018_v57 = vcombine.low %v1003_v45, %v1011_v46  ;;  %v12020_v59 = vcombine.low %v1004_v47, %v1012_v48  ;;  %v788_v45 = vld [vmem:[#allocation3 + $0x20] sm:$0xff] }
 0x203   : > { %1922 = vmatmul.mubr.bf16.gmra.mrb[20].mxu0 %v16344_v35  ;;  %1995 = vmatmul.mubr.bf16.gmra.mrb[20].mxu1 %v16344_v35 }
 0x204   : > { %2030 = vmatpush1.bf16.msra.mxu0 %v12014_v52  ;;  %2103 = vmatpush1.bf16.msra.mxu1 %v12016_v53  ;;  %v12021_v52 = vcombine.high %v1004_v47, %v1012_v48  ;;  %v1019_v53 = vld [vmem:[%s16108_s28 + $0x1b0] sm:$0xff] }
 0x205   : > { %2031 = vmatprep.subr.bf16.mxu0 %v12031_v54  ;;  %2104 = vmatprep.subr.bf16.mxu1 %v12033_v55  ;;  %v1027_v54 = vld [vmem:[%s16108_s28 + $0x1f0] sm:$0xff]  ;;  %v1020_v55 = vld [vmem:[%s16108_s28 + $0x1b8] sm:$0xff] }
 0x206   : > { %1931 = vmatprep.mubr.bf16.mxu0 %v15623_v9  ;;  %2004 = vmatprep.mubr.bf16.mxu1 %v15623_v9  ;;  %v12035_v60 = vcombine.high %v1019_v53, %v1027_v54  ;;  %v12034_v2 = vcombine.low %v1019_v53, %v1027_v54  ;;  %v12036_v3 = vcombine.low %v1020_v55, %v1028_v56  ;;  %v790_v53 = vld [vmem:[#allocation3 + $0x30] sm:$0xff]  ;;  %v833_v54 = vld [vmem:[#allocation2] sm:$0xff] }
 0x208   : > { %2032 = vmatpush1.bf16.msra.mxu0 %v12030_v61  ;;  %2105 = vmatpush1.bf16.msra.mxu1 %v12032_v62  ;;  %v12037_v61 = vcombine.high %v1020_v55, %v1028_v56  ;;  %v1035_v62 = vld [vmem:[%s16108_s28 + $0x230] sm:$0xff] }
 0x209   : > { %2033 = vmatprep.subr.bf16.mxu0 %v12047_v63  ;;  %2106 = vmatprep.subr.bf16.mxu1 %v12049_v0  ;;  %v1043_v63 = vld [vmem:[%s16108_s28 + $0x270] sm:$0xff]  ;;  %v1036_v0 = vld [vmem:[%s16108_s28 + $0x238] sm:$0xff] }
 0x20a   : > { %v12051_v4 = vcombine.high %v1035_v62, %v1043_v63  ;;  %v12050_v11 = vcombine.low %v1035_v62, %v1043_v63  ;;  %v12052_v12 = vcombine.low %v1036_v0, %v1044_v1  ;;  %v835_v56 = vld [vmem:[#allocation2 + $0x10] sm:$0xff] }
 0x20b   : > { %1932 = vmatmul.mubr.bf16.gmra.mrb[24].mxu0 %v16361_v58  ;;  %2005 = vmatmul.mubr.bf16.gmra.mrb[24].mxu1 %v16361_v58 }
 0x20c   : > { %2034 = vmatpush1.bf16.msra.mxu0 %v12046_v5  ;;  %2107 = vmatpush1.bf16.msra.mxu1 %v12048_v6  ;;  %v12053_v5 = vcombine.high %v1036_v0, %v1044_v1  ;;  %v1051_v6 = vld [vmem:[%s16108_s28 + $0x2b0] sm:$0xff] }
 0x20d   : > { %2035 = vmatprep.subr.bf16.mxu0 %v12063_v7  ;;  %2108 = vmatprep.subr.bf16.mxu1 %v12065_v8  ;;  %v1059_v7 = vld [vmem:[%s16108_s28 + $0x2f0] sm:$0xff]  ;;  %v1052_v8 = vld [vmem:[%s16108_s28 + $0x2b8] sm:$0xff] }
 0x20e   : > { %1941 = vmatprep.mubr.bf16.mxu0 %v15623_v9  ;;  %2014 = vmatprep.mubr.bf16.mxu1 %v15623_v9  ;;  %v12067_v13 = vcombine.high %v1051_v6, %v1059_v7  ;;  %v12066_v21 = vcombine.low %v1051_v6, %v1059_v7  ;;  %v12068_v22 = vcombine.low %v1052_v8, %v1060_v10  ;;  %v851_v1 = vld [vmem:[#allocation2 + $0x90] sm:$0xff]  ;;  %v852_v7 = vld [vmem:[#allocation2 + $0x98] sm:$0xff] }
 0x210   : > { %2036 = vmatpush1.bf16.msra.mxu0 %v12062_v14  ;;  %2109 = vmatpush1.bf16.msra.mxu1 %v12064_v17  ;;  %v12069_v14 = vcombine.high %v1052_v8, %v1060_v10  ;;  %v1067_v17 = vld [vmem:[%s16108_s28 + $0x330] sm:$0xff] }
 0x211   : > { %2037 = vmatprep.subr.bf16.mxu0 %v12079_v18  ;;  %2110 = vmatprep.subr.bf16.mxu1 %v12081_v19  ;;  %v1075_v18 = vld [vmem:[%s16108_s28 + $0x370] sm:$0xff]  ;;  %v1068_v19 = vld [vmem:[%s16108_s28 + $0x338] sm:$0xff] }
 0x212   : > { %v12083_v23 = vcombine.high %v1067_v17, %v1075_v18  ;;  %v12082_v29 = vcombine.low %v1067_v17, %v1075_v18  ;;  %v12084_v30 = vcombine.low %v1068_v19, %v1076_v20 }
 0x213   : > { %1942 = vmatmul.mubr.bf16.gmra.mrb[28].mxu0 %v16376_v16  ;;  %2015 = vmatmul.mubr.bf16.gmra.mrb[28].mxu1 %v16376_v16 }
 0x214   : > { %2038 = vmatpush1.bf16.msra.mxu0 %v12078_v24  ;;  %2111 = vmatpush1.bf16.msra.mxu1 %v12080_v25  ;;  %v12085_v24 = vcombine.high %v1068_v19, %v1076_v20  ;;  %v1083_v25 = vld [vmem:[%s16108_s28 + $0x3b0] sm:$0xff]  ;;  %v865_v19 = vld [vmem:[#allocation2 + $0x100] sm:$0xff] }
 0x215   : > { %2039 = vmatprep.subr.bf16.mxu0 %v12095_v26  ;;  %2112 = vmatprep.subr.bf16.mxu1 %v12097_v27  ;;  %v1091_v26 = vld [vmem:[%s16108_s28 + $0x3f0] sm:$0xff]  ;;  %v1084_v27 = vld [vmem:[%s16108_s28 + $0x3b8] sm:$0xff] }
 0x216   : > { %2057 = vmatprep.mubr.bf16.mxu0 %v15623_v9  ;;  %2130 = vmatprep.mubr.bf16.mxu1 %v15623_v9  ;;  %v12099_v31 = vcombine.high %v1083_v25, %v1091_v26  ;;  %v867_v20 = vld [vmem:[#allocation2 + $0x110] sm:$0xff] }
 0x218   : > { %2040 = vmatpush1.bf16.msra.mxu0 %v12094_v32  ;;  %2113 = vmatpush1.bf16.msra.mxu1 %v12096_v33  ;;  %v12101_v32 = vcombine.high %v1084_v27, %v1092_v28  ;;  %v12098_v33 = vcombine.low %v1083_v25, %v1091_v26 }
 0x219   : > { %2171 = vmatprep.subr.bf16.mxu0 %v11987_v34  ;;  %2244 = vmatprep.subr.bf16.mxu1 %v11989_v36  ;;  %v12100_v34 = vcombine.low %v1084_v27, %v1092_v28  ;;  %v883_v28 = vld [vmem:[#allocation2 + $0x190] sm:$0xff] }
 0x21b   : > { %2058 = vmatmul.mubr.bf16.vlgmr.msra.gmra.mrb[32].mxu0 %v16329_v15  ;;  %2131 = vmatmul.mubr.bf16.vlgmr.msra.gmra.mrb[32].mxu1 %v16329_v15 }
 0x21c   : > { %2172 = vmatpush1.bf16.msra.mxu0 %v11986_v41  ;;  %2245 = vmatpush1.bf16.msra.mxu1 %v11988_v42 }
 0x21d   : > { %2173 = vmatprep.subr.bf16.mxu0 %v12003_v43  ;;  %2246 = vmatprep.subr.bf16.mxu1 %v12005_v44 }
 0x21e   : > { %2067 = vmatprep.mubr.bf16.mxu0 %v15623_v9  ;;  %2140 = vmatprep.mubr.bf16.mxu1 %v15623_v9 }
 0x220   : > { %2174 = vmatpush1.bf16.msra.mxu0 %v12002_v49  ;;  %2247 = vmatpush1.bf16.msra.mxu1 %v12004_v50  ;;  %v791_v49 = vld [vmem:[#allocation3 + $0x38] sm:$0xff] }
 0x221   : > { %2175 = vmatprep.subr.bf16.mxu0 %v12019_v51  ;;  %2248 = vmatprep.subr.bf16.mxu1 %v12021_v52 }
 0x223   : > { %2068 = vmatmul.mubr.bf16.gmra.mrb[36].mxu0 %v16344_v35  ;;  %2141 = vmatmul.mubr.bf16.gmra.mrb[36].mxu1 %v16344_v35 }
 0x224   : > { %2176 = vmatpush1.bf16.msra.mxu0 %v12018_v57  ;;  %2249 = vmatpush1.bf16.msra.mxu1 %v12020_v59  ;;  %v834_v57 = vld [vmem:[#allocation2 + $0x8] sm:$0xff] }
 0x225   : > { %2177 = vmatprep.subr.bf16.mxu0 %v12035_v60  ;;  %2250 = vmatprep.subr.bf16.mxu1 %v12037_v61  ;;  %v836_v60 = vld [vmem:[#allocation2 + $0x18] sm:$0xff]  ;;  %v849_v61 = vld [vmem:[#allocation2 + $0x80] sm:$0xff] }
 0x226   : > { %2077 = vmatprep.mubr.bf16.mxu0 %v15623_v9  ;;  %2150 = vmatprep.mubr.bf16.mxu1 %v15623_v9 }
 0x228   : > { %2178 = vmatpush1.bf16.msra.mxu0 %v12034_v2  ;;  %2251 = vmatpush1.bf16.msra.mxu1 %v12036_v3  ;;  %v850_v2 = vld [vmem:[#allocation2 + $0x88] sm:$0xff] }
 0x229   : > { %2179 = vmatprep.subr.bf16.mxu0 %v12051_v4  ;;  %2252 = vmatprep.subr.bf16.mxu1 %v12053_v5 }
 0x22b   : > { %2078 = vmatmul.mubr.bf16.gmra.mrb[40].mxu0 %v16361_v58  ;;  %2151 = vmatmul.mubr.bf16.gmra.mrb[40].mxu1 %v16361_v58 }
 0x22c   : > { %2180 = vmatpush1.bf16.msra.mxu0 %v12050_v11  ;;  %2253 = vmatpush1.bf16.msra.mxu1 %v12052_v12 }
 0x22d   : > { %2181 = vmatprep.subr.bf16.mxu0 %v12067_v13  ;;  %2254 = vmatprep.subr.bf16.mxu1 %v12069_v14 }
 0x22e   : > { %2087 = vmatprep.mubr.bf16.mxu0 %v15623_v9  ;;  %2160 = vmatprep.mubr.bf16.mxu1 %v15623_v9 }
 0x230   : > { %2182 = vmatpush1.bf16.msra.mxu0 %v12066_v21  ;;  %2255 = vmatpush1.bf16.msra.mxu1 %v12068_v22  ;;  %v866_v21 = vld [vmem:[#allocation2 + $0x108] sm:$0xff] }
 0x231   : > { %2183 = vmatprep.subr.bf16.mxu0 %v12083_v23  ;;  %2256 = vmatprep.subr.bf16.mxu1 %v12085_v24  ;;  %v868_v23 = vld [vmem:[#allocation2 + $0x118] sm:$0xff]  ;;  %v881_v24 = vld [vmem:[#allocation2 + $0x180] sm:$0xff] }
 0x233   : > { %2088 = vmatmul.mubr.bf16.gmra.mrb[44].mxu0 %v16376_v16  ;;  %2161 = vmatmul.mubr.bf16.gmra.mrb[44].mxu1 %v16376_v16 }
 0x234   : > { %2184 = vmatpush1.bf16.msra.mxu0 %v12082_v29  ;;  %2257 = vmatpush1.bf16.msra.mxu1 %v12084_v30  ;;  %v882_v29 = vld [vmem:[#allocation2 + $0x188] sm:$0xff] }
 0x235   : > { %2185 = vmatprep.subr.bf16.mxu0 %v12099_v31  ;;  %2258 = vmatprep.subr.bf16.mxu1 %v12101_v32 }
 0x236   : > { %2203 = vmatprep.mubr.bf16.mxu0 %v15623_v9  ;;  %2276 = vmatprep.mubr.bf16.mxu1 %v15623_v9 }
 0x238   : > { %2186 = vmatpush1.bf16.msra.mxu0 %v12098_v33  ;;  %2259 = vmatpush1.bf16.msra.mxu1 %v12100_v34  ;;  %v884_v34 = vld [vmem:[#allocation2 + $0x198] sm:$0xff] }
 0x23b   : > { %2204 = vmatmul.mubr.bf16.vlgmr.msra.gmra.mrb[48].mxu0 %v16329_v15  ;;  %2277 = vmatmul.mubr.bf16.vlgmr.msra.gmra.mrb[48].mxu1 %v16329_v15  ;;  %v786_v15 = vld [vmem:[#allocation3 + $0x10] sm:$0xff] }
 0x23c   : > { %2213 = vmatprep.mubr.bf16.mxu0 %v15623_v9  ;;  %2286 = vmatprep.mubr.bf16.mxu1 %v15623_v9 }
 0x243   : > { %2214 = vmatmul.mubr.bf16.gmra.mrb[52].mxu0 %v16344_v35  ;;  %2287 = vmatmul.mubr.bf16.gmra.mrb[52].mxu1 %v16344_v35 }
 0x244   : > { %2223 = vmatprep.mubr.bf16.mxu0 %v15623_v9  ;;  %2296 = vmatprep.mubr.bf16.mxu1 %v15623_v9 }
 0x24b   : > { %2224 = vmatmul.mubr.bf16.gmra.mrb[56].mxu0 %v16361_v58  ;;  %2297 = vmatmul.mubr.bf16.gmra.mrb[56].mxu1 %v16361_v58  ;;  %v787_v58 = vld [vmem:[#allocation3 + $0x18] sm:$0xff] }
 0x24c   : > { %2233 = vmatprep.mubr.bf16.mxu0 %v15623_v9  ;;  %2306 = vmatprep.mubr.bf16.mxu1 %v15623_v9  ;;  %v785_v9 = vld [vmem:[#allocation3 + $0x8] sm:$0xff] }
 0x24f   : > { %v805_v36 = vpop.xlane.xlu1 %804 }
 0x250   : > { %v818_v35 = vadd.f32 %v805_v36, %v786_v15 }
 0x252   : > { %827 = vst.msk [vmem:[#allocation3 + $0x10] sm:$0xff] %vm824_vm1, %v818_v35 }
 0x253   : > { %2234 = vmatmul.mubr.bf16.gmra.mrb[60].mxu0 %v16376_v16  ;;  %2307 = vmatmul.mubr.bf16.gmra.mrb[60].mxu1 %v16376_v16  ;;  %v807_v40 = vpop.xlane.xlu1 %806  ;;  %v789_v16 = vld [vmem:[#allocation3 + $0x28] sm:$0xff] }
 0x254   : > { %v819_v42 = vadd.f32 %v807_v40, %v787_v58 }
 0x256   : > { %828 = vst.msk [vmem:[#allocation3 + $0x18] sm:$0xff] %vm824_vm1, %v819_v42  ;;  %v899_v42 = vld [vmem:[#allocation2 + $0x210] sm:$0xff] }
 0x257   : > { %v801_v38 = vpop.xlane.xlu0 %800 }
 0x258   : > { %v816_v39 = vadd.f32 %v801_v38, %v784_v37 }
 0x25a   : > { %825 = vst.msk [vmem:[#allocation3] sm:$0xff] %vm824_vm1, %v816_v39 }
 0x25b   : > { %v803_v41 = vpop.xlane.xlu0 %802  ;;  %v811_v44 = vpop.xlane.xlu1 %810 }
 0x25c   : > { %v817_v43 = vadd.f32 %v803_v41, %v785_v9  ;;  %v821_v47 = vadd.f32 %v811_v44, %v789_v16  ;;  %v897_v41 = vld [vmem:[#allocation2 + $0x200] sm:$0xff]  ;;  %v898_v9 = vld [vmem:[#allocation2 + $0x208] sm:$0xff]  ;;  %v900_v16 = vld [vmem:[#allocation2 + $0x218] sm:$0xff] }
 0x25d   : > { %v913_v44 = vld [vmem:[#allocation2 + $0x280] sm:$0xff] }
 0x25e   : > { %826 = vst.msk [vmem:[#allocation3 + $0x8] sm:$0xff] %vm824_vm1, %v817_v43  ;;  %830 = vst.msk [vmem:[#allocation3 + $0x28] sm:$0xff] %vm824_vm1, %v821_v47 }
 0x25f   : > { %v809_v46 = vpop.xlane.xlu0 %808 }
 0x260   : > { %v820_v48 = vadd.f32 %v809_v46, %v788_v45 }
 0x262   : > { %829 = vst.msk [vmem:[#allocation3 + $0x20] sm:$0xff] %vm824_vm1, %v820_v48  ;;  %v915_v48 = vld [vmem:[#allocation2 + $0x290] sm:$0xff] }
 0x263   : > { %v815_v50 = vpop.xlane.xlu1 %814  ;;  %v813_v51 = vpop.xlane.xlu0 %812 }
 0x264   : > { %v823_v52 = vadd.f32 %v815_v50, %v791_v49  ;;  %v822_v55 = vadd.f32 %v813_v51, %v790_v53  ;;  %v914_v49 = vld [vmem:[#allocation2 + $0x288] sm:$0xff] }
 0x266   : > { %832 = vst.msk [vmem:[#allocation3 + $0x38] sm:$0xff] %vm824_vm1, %v823_v52  ;;  %831 = vst.msk [vmem:[#allocation3 + $0x30] sm:$0xff] %vm824_vm1, %v822_v55 }
 0x2ae   : > { %v1767_v59 = vpop.f32.mrb[0].mxu0  ;;  %v1840_v63 = vpop.f32.mrb[0].mxu1 }
 0x2af   : > { %v2317_v62 = vadd.f32 %v1767_v59, %v833_v54  ;;  %v1769_v0 = vpop.f32.mrb[1].mxu0  ;;  %v2319_v3 = vadd.f32 %v1840_v63, %v835_v56  ;;  %v1842_v5 = vpop.f32.mrb[1].mxu1  ;;  %v916_v54 = vld [vmem:[#allocation2 + $0x298] sm:$0xff] }
 0x2b0   : > { %v2318_v4 = vadd.f32 %v1769_v0, %v834_v57  ;;  %v1771_v6 = vpop.f32.mrb[2].mxu0  ;;  %v2320_v8 = vadd.f32 %v1842_v5, %v836_v60  ;;  %v1844_v11 = vpop.f32.mrb[2].mxu1  ;;  %v929_v0 = vld [vmem:[#allocation2 + $0x300] sm:$0xff] }
 0x2b1   : > { %2445 = vst [vmem:[#allocation2] sm:$0xff] %v2317_v62  ;;  %v2333_v10 = vadd.f32 %v1771_v6, %v849_v61  ;;  %v1773_v12 = vpop.f32.mrb[3].mxu0  ;;  %2447 = vst [vmem:[#allocation2 + $0x10] sm:$0xff] %v2319_v3  ;;  %v2335_v13 = vadd.f32 %v1844_v11, %v851_v1  ;;  %v1846_v17 = vpop.f32.mrb[3].mxu1  ;;  %v931_v1 = vld [vmem:[#allocation2 + $0x310] sm:$0xff]  ;;  %v945_v5 = vld [vmem:[#allocation2 + $0x380] sm:$0xff] }
 0x2b2   : > { %2446 = vst [vmem:[#allocation2 + $0x8] sm:$0xff] %v2318_v4  ;;  %v2334_v14 = vadd.f32 %v1773_v12, %v850_v2  ;;  %2448 = vst [vmem:[#allocation2 + $0x18] sm:$0xff] %v2320_v8  ;;  %v2336_v18 = vadd.f32 %v1846_v17, %v852_v7  ;;  %v930_v2 = vld [vmem:[#allocation2 + $0x308] sm:$0xff]  ;;  %v932_v4 = vld [vmem:[#allocation2 + $0x318] sm:$0xff] }
 0x2b3   : > { %2461 = vst [vmem:[#allocation2 + $0x80] sm:$0xff] %v2333_v10  ;;  %2463 = vst [vmem:[#allocation2 + $0x90] sm:$0xff] %v2335_v13  ;;  %v947_v10 = vld [vmem:[#allocation2 + $0x390] sm:$0xff]  ;;  %v946_v11 = vld [vmem:[#allocation2 + $0x388] sm:$0xff] }
 0x2b4   : > { %2462 = vst [vmem:[#allocation2 + $0x88] sm:$0xff] %v2334_v14  ;;  %2464 = vst [vmem:[#allocation2 + $0x98] sm:$0xff] %v2336_v18  ;;  %v948_v18 = vld [vmem:[#allocation2 + $0x398] sm:$0xff] }
 0x2b6   : > { %v1777_v22 = vpop.f32.mrb[4].mxu0  ;;  %v1850_v26 = vpop.f32.mrb[4].mxu1 }
 0x2b7   : > { %v2349_v25 = vadd.f32 %v1777_v22, %v865_v19  ;;  %v1779_v27 = vpop.f32.mrb[5].mxu0  ;;  %v2351_v30 = vadd.f32 %v1850_v26, %v867_v20  ;;  %v1852_v32 = vpop.f32.mrb[5].mxu1 }
 0x2b8   : > { %v2350_v31 = vadd.f32 %v1779_v27, %v866_v21  ;;  %v1781_v33 = vpop.f32.mrb[6].mxu0  ;;  %v2352_v15 = vadd.f32 %v1852_v32, %v868_v23  ;;  %v1854_v35 = vpop.f32.mrb[6].mxu1  ;;  %v837_v27 = vld [vmem:[#allocation2 + $0x20] sm:$0xff] }
 0x2b9   : > { %2477 = vst [vmem:[#allocation2 + $0x100] sm:$0xff] %v2349_v25  ;;  %v2365_v36 = vadd.f32 %v1781_v33, %v881_v24  ;;  %v1783_v37 = vpop.f32.mrb[7].mxu0  ;;  %2479 = vst [vmem:[#allocation2 + $0x110] sm:$0xff] %v2351_v30  ;;  %v2367_v38 = vadd.f32 %v1854_v35, %v883_v28  ;;  %v1856_v58 = vpop.f32.mrb[7].mxu1  ;;  %v839_v28 = vld [vmem:[#allocation2 + $0x30] sm:$0xff]  ;;  %v853_v32 = vld [vmem:[#allocation2 + $0xa0] sm:$0xff] }
 0x2ba   : > { %2478 = vst [vmem:[#allocation2 + $0x108] sm:$0xff] %v2350_v31  ;;  %v2366_v39 = vadd.f32 %v1783_v37, %v882_v29  ;;  %2480 = vst [vmem:[#allocation2 + $0x118] sm:$0xff] %v2352_v15  ;;  %v2368_v40 = vadd.f32 %v1856_v58, %v884_v34  ;;  %v838_v29 = vld [vmem:[#allocation2 + $0x28] sm:$0xff]  ;;  %v840_v31 = vld [vmem:[#allocation2 + $0x38] sm:$0xff] }
 0x2bb   : > { %2493 = vst [vmem:[#allocation2 + $0x180] sm:$0xff] %v2365_v36  ;;  %2495 = vst [vmem:[#allocation2 + $0x190] sm:$0xff] %v2367_v38  ;;  %v855_v36 = vld [vmem:[#allocation2 + $0xb0] sm:$0xff]  ;;  %v854_v35 = vld [vmem:[#allocation2 + $0xa8] sm:$0xff] }
 0x2bc   : > { %2494 = vst [vmem:[#allocation2 + $0x188] sm:$0xff] %v2366_v39  ;;  %2496 = vst [vmem:[#allocation2 + $0x198] sm:$0xff] %v2368_v40  ;;  %v856_v40 = vld [vmem:[#allocation2 + $0xb8] sm:$0xff] }
 0x2be   : > { %v1787_v43 = vpop.f32.mrb[8].mxu0  ;;  %v1860_v46 = vpop.f32.mrb[8].mxu1 }
 0x2bf   : > { %v2381_v45 = vadd.f32 %v1787_v43, %v897_v41  ;;  %v1789_v47 = vpop.f32.mrb[9].mxu0  ;;  %v2383_v50 = vadd.f32 %v1860_v46, %v899_v42  ;;  %v1862_v52 = vpop.f32.mrb[9].mxu1 }
 0x2c0   : > { %v2382_v51 = vadd.f32 %v1789_v47, %v898_v9  ;;  %v1791_v53 = vpop.f32.mrb[10].mxu0  ;;  %v2384_v55 = vadd.f32 %v1862_v52, %v900_v16  ;;  %v1864_v57 = vpop.f32.mrb[10].mxu1  ;;  %v869_v47 = vld [vmem:[#allocation2 + $0x120] sm:$0xff] }
 0x2c1   : > { %2509 = vst [vmem:[#allocation2 + $0x200] sm:$0xff] %v2381_v45  ;;  %v2397_v56 = vadd.f32 %v1791_v53, %v913_v44  ;;  %v1793_v59 = vpop.f32.mrb[11].mxu0  ;;  %2511 = vst [vmem:[#allocation2 + $0x210] sm:$0xff] %v2383_v50  ;;  %v2399_v60 = vadd.f32 %v1864_v57, %v915_v48  ;;  %v1866_v62 = vpop.f32.mrb[11].mxu1  ;;  %v871_v48 = vld [vmem:[#allocation2 + $0x130] sm:$0xff]  ;;  %v885_v52 = vld [vmem:[#allocation2 + $0x1a0] sm:$0xff] }
 0x2c2   : > { %2510 = vst [vmem:[#allocation2 + $0x208] sm:$0xff] %v2382_v51  ;;  %v2398_v61 = vadd.f32 %v1793_v59, %v914_v49  ;;  %2512 = vst [vmem:[#allocation2 + $0x218] sm:$0xff] %v2384_v55  ;;  %v2400_v63 = vadd.f32 %v1866_v62, %v916_v54  ;;  %v870_v49 = vld [vmem:[#allocation2 + $0x128] sm:$0xff]  ;;  %v872_v51 = vld [vmem:[#allocation2 + $0x138] sm:$0xff] }
 0x2c3   : > { %2525 = vst [vmem:[#allocation2 + $0x280] sm:$0xff] %v2397_v56  ;;  %2527 = vst [vmem:[#allocation2 + $0x290] sm:$0xff] %v2399_v60  ;;  %v887_v56 = vld [vmem:[#allocation2 + $0x1b0] sm:$0xff]  ;;  %v886_v57 = vld [vmem:[#allocation2 + $0x1a8] sm:$0xff] }
 0x2c4   : > { %2526 = vst [vmem:[#allocation2 + $0x288] sm:$0xff] %v2398_v61  ;;  %2528 = vst [vmem:[#allocation2 + $0x298] sm:$0xff] %v2400_v63  ;;  %v888_v63 = vld [vmem:[#allocation2 + $0x1b8] sm:$0xff] }
 0x2c6   : > { %v1797_v3 = vpop.f32.mrb[12].mxu0  ;;  %v1870_v7 = vpop.f32.mrb[12].mxu1 }
 0x2c7   : > { %v2413_v6 = vadd.f32 %v1797_v3, %v929_v0  ;;  %v1799_v8 = vpop.f32.mrb[13].mxu0  ;;  %v2415_v12 = vadd.f32 %v1870_v7, %v931_v1  ;;  %v1872_v14 = vpop.f32.mrb[13].mxu1 }
 0x2c8   : > { %v2414_v13 = vadd.f32 %v1799_v8, %v930_v2  ;;  %v1801_v17 = vpop.f32.mrb[14].mxu0  ;;  %v2416_v19 = vadd.f32 %v1872_v14, %v932_v4  ;;  %v1874_v21 = vpop.f32.mrb[14].mxu1  ;;  %v901_v8 = vld [vmem:[#allocation2 + $0x220] sm:$0xff] }
 0x2c9   : > { %2541 = vst [vmem:[#allocation2 + $0x300] sm:$0xff] %v2413_v6  ;;  %v2429_v20 = vadd.f32 %v1801_v17, %v945_v5  ;;  %v1803_v22 = vpop.f32.mrb[15].mxu0  ;;  %2543 = vst [vmem:[#allocation2 + $0x310] sm:$0xff] %v2415_v12  ;;  %v2431_v23 = vadd.f32 %v1874_v21, %v947_v10  ;;  %v1876_v25 = vpop.f32.mrb[15].mxu1  ;;  %v903_v10 = vld [vmem:[#allocation2 + $0x230] sm:$0xff]  ;;  %v917_v14 = vld [vmem:[#allocation2 + $0x2a0] sm:$0xff] }
 0x2ca   : > { %2542 = vst [vmem:[#allocation2 + $0x308] sm:$0xff] %v2414_v13  ;;  %v2430_v24 = vadd.f32 %v1803_v22, %v946_v11  ;;  %2544 = vst [vmem:[#allocation2 + $0x318] sm:$0xff] %v2416_v19  ;;  %v2432_v26 = vadd.f32 %v1876_v25, %v948_v18  ;;  %v902_v11 = vld [vmem:[#allocation2 + $0x228] sm:$0xff]  ;;  %v904_v13 = vld [vmem:[#allocation2 + $0x238] sm:$0xff] }
 0x2cb   : > { %2557 = vst [vmem:[#allocation2 + $0x380] sm:$0xff] %v2429_v20  ;;  %2559 = vst [vmem:[#allocation2 + $0x390] sm:$0xff] %v2431_v23  ;;  %v919_v20 = vld [vmem:[#allocation2 + $0x2b0] sm:$0xff]  ;;  %v918_v21 = vld [vmem:[#allocation2 + $0x2a8] sm:$0xff] }
 0x2cc   : > { %2558 = vst [vmem:[#allocation2 + $0x388] sm:$0xff] %v2430_v24  ;;  %2560 = vst [vmem:[#allocation2 + $0x398] sm:$0xff] %v2432_v26  ;;  %v920_v26 = vld [vmem:[#allocation2 + $0x2b8] sm:$0xff] }
 0x2ce   : > { %v1913_v30 = vpop.f32.mrb[16].mxu0  ;;  %v1986_v34 = vpop.f32.mrb[16].mxu1 }
 0x2cf   : > { %v2321_v33 = vadd.f32 %v1913_v30, %v837_v27  ;;  %v1915_v15 = vpop.f32.mrb[17].mxu0  ;;  %v2323_v37 = vadd.f32 %v1986_v34, %v839_v28  ;;  %v1988_v39 = vpop.f32.mrb[17].mxu1 }
 0x2d0   : > { %v2322_v38 = vadd.f32 %v1915_v15, %v838_v29  ;;  %v1917_v58 = vpop.f32.mrb[18].mxu0  ;;  %v2324_v41 = vadd.f32 %v1988_v39, %v840_v31  ;;  %v1990_v9 = vpop.f32.mrb[18].mxu1  ;;  %v933_v15 = vld [vmem:[#allocation2 + $0x320] sm:$0xff] }
 0x2d1   : > { %2449 = vst [vmem:[#allocation2 + $0x20] sm:$0xff] %v2321_v33  ;;  %v2337_v42 = vadd.f32 %v1917_v58, %v853_v32  ;;  %v1919_v43 = vpop.f32.mrb[19].mxu0  ;;  %2451 = vst [vmem:[#allocation2 + $0x30] sm:$0xff] %v2323_v37  ;;  %v2339_v16 = vadd.f32 %v1990_v9, %v855_v36  ;;  %v1992_v45 = vpop.f32.mrb[19].mxu1  ;;  %v935_v36 = vld [vmem:[#allocation2 + $0x330] sm:$0xff]  ;;  %v949_v39 = vld [vmem:[#allocation2 + $0x3a0] sm:$0xff] }
 0x2d2   : > { %2450 = vst [vmem:[#allocation2 + $0x28] sm:$0xff] %v2322_v38  ;;  %v2338_v44 = vadd.f32 %v1919_v43, %v854_v35  ;;  %2452 = vst [vmem:[#allocation2 + $0x38] sm:$0xff] %v2324_v41  ;;  %v2340_v46 = vadd.f32 %v1992_v45, %v856_v40  ;;  %v934_v35 = vld [vmem:[#allocation2 + $0x328] sm:$0xff]  ;;  %v936_v38 = vld [vmem:[#allocation2 + $0x338] sm:$0xff] }
 0x2d3   : > { %2465 = vst [vmem:[#allocation2 + $0xa0] sm:$0xff] %v2337_v42  ;;  %2467 = vst [vmem:[#allocation2 + $0xb0] sm:$0xff] %v2339_v16  ;;  %v951_v42 = vld [vmem:[#allocation2 + $0x3b0] sm:$0xff]  ;;  %v950_v9 = vld [vmem:[#allocation2 + $0x3a8] sm:$0xff] }
 0x2d4   : > { %2466 = vst [vmem:[#allocation2 + $0xa8] sm:$0xff] %v2338_v44  ;;  %2468 = vst [vmem:[#allocation2 + $0xb8] sm:$0xff] %v2340_v46  ;;  %v952_v46 = vld [vmem:[#allocation2 + $0x3b8] sm:$0xff] }
 0x2d6   : > { %v1923_v50 = vpop.f32.mrb[20].mxu0  ;;  %v1996_v54 = vpop.f32.mrb[20].mxu1 }
 0x2d7   : > { %v2353_v53 = vadd.f32 %v1923_v50, %v869_v47  ;;  %v1925_v55 = vpop.f32.mrb[21].mxu0  ;;  %v2355_v59 = vadd.f32 %v1996_v54, %v871_v48  ;;  %v1998_v61 = vpop.f32.mrb[21].mxu1 }
 0x2d8   : > { %v2354_v60 = vadd.f32 %v1925_v55, %v870_v49  ;;  %v1927_v62 = vpop.f32.mrb[22].mxu0  ;;  %v2356_v0 = vadd.f32 %v1998_v61, %v872_v51  ;;  %v2000_v2 = vpop.f32.mrb[22].mxu1  ;;  %v841_v55 = vld [vmem:[#allocation2 + $0x40] sm:$0xff] }
 0x2d9   : > { %2481 = vst [vmem:[#allocation2 + $0x120] sm:$0xff] %v2353_v53  ;;  %v2369_v1 = vadd.f32 %v1927_v62, %v885_v52  ;;  %v1929_v3 = vpop.f32.mrb[23].mxu0  ;;  %2483 = vst [vmem:[#allocation2 + $0x130] sm:$0xff] %v2355_v59  ;;  %v2371_v4 = vadd.f32 %v2000_v2, %v887_v56  ;;  %v2002_v6 = vpop.f32.mrb[23].mxu1  ;;  %v843_v56 = vld [vmem:[#allocation2 + $0x50] sm:$0xff]  ;;  %v857_v61 = vld [vmem:[#allocation2 + $0xc0] sm:$0xff] }
 0x2da   : > { %2482 = vst [vmem:[#allocation2 + $0x128] sm:$0xff] %v2354_v60  ;;  %v2370_v5 = vadd.f32 %v1929_v3, %v886_v57  ;;  %2484 = vst [vmem:[#allocation2 + $0x138] sm:$0xff] %v2356_v0  ;;  %v2372_v7 = vadd.f32 %v2002_v6, %v888_v63  ;;  %v842_v57 = vld [vmem:[#allocation2 + $0x48] sm:$0xff]  ;;  %v844_v60 = vld [vmem:[#allocation2 + $0x58] sm:$0xff] }
 0x2db   : > { %2497 = vst [vmem:[#allocation2 + $0x1a0] sm:$0xff] %v2369_v1  ;;  %2499 = vst [vmem:[#allocation2 + $0x1b0] sm:$0xff] %v2371_v4  ;;  %v859_v1 = vld [vmem:[#allocation2 + $0xd0] sm:$0xff]  ;;  %v858_v2 = vld [vmem:[#allocation2 + $0xc8] sm:$0xff] }
 0x2dc   : > { %2498 = vst [vmem:[#allocation2 + $0x1a8] sm:$0xff] %v2370_v5  ;;  %2500 = vst [vmem:[#allocation2 + $0x1b8] sm:$0xff] %v2372_v7  ;;  %v860_v7 = vld [vmem:[#allocation2 + $0xd8] sm:$0xff] }
 0x2de   : > { %v1933_v12 = vpop.f32.mrb[24].mxu0  ;;  %v2006_v18 = vpop.f32.mrb[24].mxu1 }
 0x2df   : > { %v2385_v17 = vadd.f32 %v1933_v12, %v901_v8  ;;  %v1935_v19 = vpop.f32.mrb[25].mxu0  ;;  %v2387_v22 = vadd.f32 %v2006_v18, %v903_v10  ;;  %v2008_v24 = vpop.f32.mrb[25].mxu1 }
 0x2e0   : > { %v2386_v23 = vadd.f32 %v1935_v19, %v902_v11  ;;  %v1937_v25 = vpop.f32.mrb[26].mxu0  ;;  %v2388_v27 = vadd.f32 %v2008_v24, %v904_v13  ;;  %v2010_v29 = vpop.f32.mrb[26].mxu1  ;;  %v873_v19 = vld [vmem:[#allocation2 + $0x140] sm:$0xff] }
 0x2e1   : > { %2513 = vst [vmem:[#allocation2 + $0x220] sm:$0xff] %v2385_v17  ;;  %v2401_v28 = vadd.f32 %v1937_v25, %v917_v14  ;;  %v1939_v30 = vpop.f32.mrb[27].mxu0  ;;  %2515 = vst [vmem:[#allocation2 + $0x230] sm:$0xff] %v2387_v22  ;;  %v2403_v31 = vadd.f32 %v2010_v29, %v919_v20  ;;  %v2012_v33 = vpop.f32.mrb[27].mxu1  ;;  %v875_v20 = vld [vmem:[#allocation2 + $0x150] sm:$0xff]  ;;  %v889_v24 = vld [vmem:[#allocation2 + $0x1c0] sm:$0xff] }
 0x2e2   : > { %2514 = vst [vmem:[#allocation2 + $0x228] sm:$0xff] %v2386_v23  ;;  %v2402_v32 = vadd.f32 %v1939_v30, %v918_v21  ;;  %2516 = vst [vmem:[#allocation2 + $0x238] sm:$0xff] %v2388_v27  ;;  %v2404_v34 = vadd.f32 %v2012_v33, %v920_v26  ;;  %v874_v21 = vld [vmem:[#allocation2 + $0x148] sm:$0xff]  ;;  %v876_v23 = vld [vmem:[#allocation2 + $0x158] sm:$0xff] }
 0x2e3   : > { %2529 = vst [vmem:[#allocation2 + $0x2a0] sm:$0xff] %v2401_v28  ;;  %2531 = vst [vmem:[#allocation2 + $0x2b0] sm:$0xff] %v2403_v31  ;;  %v891_v28 = vld [vmem:[#allocation2 + $0x1d0] sm:$0xff]  ;;  %v890_v29 = vld [vmem:[#allocation2 + $0x1c8] sm:$0xff] }
 0x2e4   : > { %2530 = vst [vmem:[#allocation2 + $0x2a8] sm:$0xff] %v2402_v32  ;;  %2532 = vst [vmem:[#allocation2 + $0x2b8] sm:$0xff] %v2404_v34  ;;  %v892_v34 = vld [vmem:[#allocation2 + $0x1d8] sm:$0xff] }
 0x2e6   : > { %v1943_v37 = vpop.f32.mrb[28].mxu0  ;;  %v2016_v40 = vpop.f32.mrb[28].mxu1 }
 0x2e7   : > { %v2417_v58 = vadd.f32 %v1943_v37, %v933_v15  ;;  %v1945_v41 = vpop.f32.mrb[29].mxu0  ;;  %v2419_v43 = vadd.f32 %v2016_v40, %v935_v36  ;;  %v2018_v44 = vpop.f32.mrb[29].mxu1 }
 0x2e8   : > { %v2418_v16 = vadd.f32 %v1945_v41, %v934_v35  ;;  %v1947_v45 = vpop.f32.mrb[30].mxu0  ;;  %v2420_v47 = vadd.f32 %v2018_v44, %v936_v38  ;;  %v2020_v49 = vpop.f32.mrb[30].mxu1  ;;  %v905_v41 = vld [vmem:[#allocation2 + $0x240] sm:$0xff] }
 0x2e9   : > { %2545 = vst [vmem:[#allocation2 + $0x320] sm:$0xff] %v2417_v58  ;;  %v2433_v48 = vadd.f32 %v1947_v45, %v949_v39  ;;  %v1949_v50 = vpop.f32.mrb[31].mxu0  ;;  %2547 = vst [vmem:[#allocation2 + $0x330] sm:$0xff] %v2419_v43  ;;  %v2435_v51 = vadd.f32 %v2020_v49, %v951_v42  ;;  %v2022_v53 = vpop.f32.mrb[31].mxu1  ;;  %v907_v42 = vld [vmem:[#allocation2 + $0x250] sm:$0xff]  ;;  %v921_v44 = vld [vmem:[#allocation2 + $0x2c0] sm:$0xff] }
 0x2ea   : > { %2546 = vst [vmem:[#allocation2 + $0x328] sm:$0xff] %v2418_v16  ;;  %v2434_v52 = vadd.f32 %v1949_v50, %v950_v9  ;;  %2548 = vst [vmem:[#allocation2 + $0x338] sm:$0xff] %v2420_v47  ;;  %v2436_v54 = vadd.f32 %v2022_v53, %v952_v46  ;;  %v906_v9 = vld [vmem:[#allocation2 + $0x248] sm:$0xff]  ;;  %v908_v16 = vld [vmem:[#allocation2 + $0x258] sm:$0xff] }
 0x2eb   : > { %2561 = vst [vmem:[#allocation2 + $0x3a0] sm:$0xff] %v2433_v48  ;;  %2563 = vst [vmem:[#allocation2 + $0x3b0] sm:$0xff] %v2435_v51  ;;  %v923_v48 = vld [vmem:[#allocation2 + $0x2d0] sm:$0xff]  ;;  %v922_v49 = vld [vmem:[#allocation2 + $0x2c8] sm:$0xff] }
 0x2ec   : > { %2562 = vst [vmem:[#allocation2 + $0x3a8] sm:$0xff] %v2434_v52  ;;  %2564 = vst [vmem:[#allocation2 + $0x3b8] sm:$0xff] %v2436_v54  ;;  %v924_v54 = vld [vmem:[#allocation2 + $0x2d8] sm:$0xff] }
 0x2ee   : > { %v2059_v59 = vpop.f32.mrb[32].mxu0  ;;  %v2132_v63 = vpop.f32.mrb[32].mxu1 }
 0x2ef   : > { %v2325_v62 = vadd.f32 %v2059_v59, %v841_v55  ;;  %v2061_v0 = vpop.f32.mrb[33].mxu0  ;;  %v2327_v3 = vadd.f32 %v2132_v63, %v843_v56  ;;  %v2134_v5 = vpop.f32.mrb[33].mxu1 }
 0x2f0   : > { %v2326_v4 = vadd.f32 %v2061_v0, %v842_v57  ;;  %v2063_v6 = vpop.f32.mrb[34].mxu0  ;;  %v2328_v8 = vadd.f32 %v2134_v5, %v844_v60  ;;  %v2136_v11 = vpop.f32.mrb[34].mxu1  ;;  %v937_v0 = vld [vmem:[#allocation2 + $0x340] sm:$0xff] }
 0x2f1   : > { %2453 = vst [vmem:[#allocation2 + $0x40] sm:$0xff] %v2325_v62  ;;  %v2341_v10 = vadd.f32 %v2063_v6, %v857_v61  ;;  %v2065_v12 = vpop.f32.mrb[35].mxu0  ;;  %2455 = vst [vmem:[#allocation2 + $0x50] sm:$0xff] %v2327_v3  ;;  %v2343_v13 = vadd.f32 %v2136_v11, %v859_v1  ;;  %v2138_v17 = vpop.f32.mrb[35].mxu1  ;;  %v939_v1 = vld [vmem:[#allocation2 + $0x350] sm:$0xff]  ;;  %v953_v5 = vld [vmem:[#allocation2 + $0x3c0] sm:$0xff] }
 0x2f2   : > { %2454 = vst [vmem:[#allocation2 + $0x48] sm:$0xff] %v2326_v4  ;;  %v2342_v14 = vadd.f32 %v2065_v12, %v858_v2  ;;  %2456 = vst [vmem:[#allocation2 + $0x58] sm:$0xff] %v2328_v8  ;;  %v2344_v18 = vadd.f32 %v2138_v17, %v860_v7  ;;  %v938_v2 = vld [vmem:[#allocation2 + $0x348] sm:$0xff]  ;;  %v940_v4 = vld [vmem:[#allocation2 + $0x358] sm:$0xff] }
 0x2f3   : > { %2469 = vst [vmem:[#allocation2 + $0xc0] sm:$0xff] %v2341_v10  ;;  %2471 = vst [vmem:[#allocation2 + $0xd0] sm:$0xff] %v2343_v13  ;;  %v955_v10 = vld [vmem:[#allocation2 + $0x3d0] sm:$0xff]  ;;  %v954_v11 = vld [vmem:[#allocation2 + $0x3c8] sm:$0xff] }
 0x2f4   : > { %2470 = vst [vmem:[#allocation2 + $0xc8] sm:$0xff] %v2342_v14  ;;  %2472 = vst [vmem:[#allocation2 + $0xd8] sm:$0xff] %v2344_v18  ;;  %v956_v18 = vld [vmem:[#allocation2 + $0x3d8] sm:$0xff] }
 0x2f6   : > { %v2069_v22 = vpop.f32.mrb[36].mxu0  ;;  %v2142_v26 = vpop.f32.mrb[36].mxu1 }
 0x2f7   : > { %v2357_v25 = vadd.f32 %v2069_v22, %v873_v19  ;;  %v2071_v27 = vpop.f32.mrb[37].mxu0  ;;  %v2359_v30 = vadd.f32 %v2142_v26, %v875_v20  ;;  %v2144_v32 = vpop.f32.mrb[37].mxu1 }
 0x2f8   : > { %v2358_v31 = vadd.f32 %v2071_v27, %v874_v21  ;;  %v2073_v33 = vpop.f32.mrb[38].mxu0  ;;  %v2360_v15 = vadd.f32 %v2144_v32, %v876_v23  ;;  %v2146_v35 = vpop.f32.mrb[38].mxu1  ;;  %v845_v27 = vld [vmem:[#allocation2 + $0x60] sm:$0xff] }
 0x2f9   : > { %2485 = vst [vmem:[#allocation2 + $0x140] sm:$0xff] %v2357_v25  ;;  %v2373_v36 = vadd.f32 %v2073_v33, %v889_v24  ;;  %v2075_v37 = vpop.f32.mrb[39].mxu0  ;;  %2487 = vst [vmem:[#allocation2 + $0x150] sm:$0xff] %v2359_v30  ;;  %v2375_v38 = vadd.f32 %v2146_v35, %v891_v28  ;;  %v2148_v58 = vpop.f32.mrb[39].mxu1  ;;  %v847_v28 = vld [vmem:[#allocation2 + $0x70] sm:$0xff]  ;;  %v861_v32 = vld [vmem:[#allocation2 + $0xe0] sm:$0xff] }
 0x2fa   : > { %2486 = vst [vmem:[#allocation2 + $0x148] sm:$0xff] %v2358_v31  ;;  %v2374_v39 = vadd.f32 %v2075_v37, %v890_v29  ;;  %2488 = vst [vmem:[#allocation2 + $0x158] sm:$0xff] %v2360_v15  ;;  %v2376_v40 = vadd.f32 %v2148_v58, %v892_v34  ;;  %v846_v29 = vld [vmem:[#allocation2 + $0x68] sm:$0xff]  ;;  %v848_v31 = vld [vmem:[#allocation2 + $0x78] sm:$0xff] }
 0x2fb   : > { %2501 = vst [vmem:[#allocation2 + $0x1c0] sm:$0xff] %v2373_v36  ;;  %2503 = vst [vmem:[#allocation2 + $0x1d0] sm:$0xff] %v2375_v38  ;;  %v863_v36 = vld [vmem:[#allocation2 + $0xf0] sm:$0xff]  ;;  %v862_v35 = vld [vmem:[#allocation2 + $0xe8] sm:$0xff] }
 0x2fc   : > { %2502 = vst [vmem:[#allocation2 + $0x1c8] sm:$0xff] %v2374_v39  ;;  %2504 = vst [vmem:[#allocation2 + $0x1d8] sm:$0xff] %v2376_v40  ;;  %v864_v40 = vld [vmem:[#allocation2 + $0xf8] sm:$0xff] }
 0x2fe   : > { %v2079_v43 = vpop.f32.mrb[40].mxu0  ;;  %v2152_v46 = vpop.f32.mrb[40].mxu1 }
 0x2ff   : > { %v2389_v45 = vadd.f32 %v2079_v43, %v905_v41  ;;  %v2081_v47 = vpop.f32.mrb[41].mxu0  ;;  %v2391_v50 = vadd.f32 %v2152_v46, %v907_v42  ;;  %v2154_v52 = vpop.f32.mrb[41].mxu1 }
 0x300   : > { %v2390_v51 = vadd.f32 %v2081_v47, %v906_v9  ;;  %v2083_v53 = vpop.f32.mrb[42].mxu0  ;;  %v2392_v55 = vadd.f32 %v2154_v52, %v908_v16  ;;  %v2156_v57 = vpop.f32.mrb[42].mxu1  ;;  %v877_v47 = vld [vmem:[#allocation2 + $0x160] sm:$0xff] }
 0x301   : > { %2517 = vst [vmem:[#allocation2 + $0x240] sm:$0xff] %v2389_v45  ;;  %v2405_v56 = vadd.f32 %v2083_v53, %v921_v44  ;;  %v2085_v59 = vpop.f32.mrb[43].mxu0  ;;  %2519 = vst [vmem:[#allocation2 + $0x250] sm:$0xff] %v2391_v50  ;;  %v2407_v60 = vadd.f32 %v2156_v57, %v923_v48  ;;  %v2158_v62 = vpop.f32.mrb[43].mxu1  ;;  %v879_v48 = vld [vmem:[#allocation2 + $0x170] sm:$0xff]  ;;  %v893_v52 = vld [vmem:[#allocation2 + $0x1e0] sm:$0xff] }
 0x302   : > { %2518 = vst [vmem:[#allocation2 + $0x248] sm:$0xff] %v2390_v51  ;;  %v2406_v61 = vadd.f32 %v2085_v59, %v922_v49  ;;  %2520 = vst [vmem:[#allocation2 + $0x258] sm:$0xff] %v2392_v55  ;;  %v2408_v63 = vadd.f32 %v2158_v62, %v924_v54  ;;  %v878_v49 = vld [vmem:[#allocation2 + $0x168] sm:$0xff]  ;;  %v880_v51 = vld [vmem:[#allocation2 + $0x178] sm:$0xff] }
 0x303   : > { %2533 = vst [vmem:[#allocation2 + $0x2c0] sm:$0xff] %v2405_v56  ;;  %2535 = vst [vmem:[#allocation2 + $0x2d0] sm:$0xff] %v2407_v60  ;;  %v895_v56 = vld [vmem:[#allocation2 + $0x1f0] sm:$0xff]  ;;  %v894_v57 = vld [vmem:[#allocation2 + $0x1e8] sm:$0xff] }
 0x304   : > { %2534 = vst [vmem:[#allocation2 + $0x2c8] sm:$0xff] %v2406_v61  ;;  %2536 = vst [vmem:[#allocation2 + $0x2d8] sm:$0xff] %v2408_v63  ;;  %v896_v63 = vld [vmem:[#allocation2 + $0x1f8] sm:$0xff] }
 0x306   : > { %v2089_v3 = vpop.f32.mrb[44].mxu0  ;;  %v2162_v7 = vpop.f32.mrb[44].mxu1 }
 0x307   : > { %v2421_v6 = vadd.f32 %v2089_v3, %v937_v0  ;;  %v2091_v8 = vpop.f32.mrb[45].mxu0  ;;  %v2423_v12 = vadd.f32 %v2162_v7, %v939_v1  ;;  %v2164_v14 = vpop.f32.mrb[45].mxu1 }
 0x308   : > { %v2422_v13 = vadd.f32 %v2091_v8, %v938_v2  ;;  %v2093_v17 = vpop.f32.mrb[46].mxu0  ;;  %v2424_v19 = vadd.f32 %v2164_v14, %v940_v4  ;;  %v2166_v21 = vpop.f32.mrb[46].mxu1  ;;  %v909_v8 = vld [vmem:[#allocation2 + $0x260] sm:$0xff] }
 0x309   : > { %2549 = vst [vmem:[#allocation2 + $0x340] sm:$0xff] %v2421_v6  ;;  %v2437_v20 = vadd.f32 %v2093_v17, %v953_v5  ;;  %v2095_v22 = vpop.f32.mrb[47].mxu0  ;;  %2551 = vst [vmem:[#allocation2 + $0x350] sm:$0xff] %v2423_v12  ;;  %v2439_v23 = vadd.f32 %v2166_v21, %v955_v10  ;;  %v2168_v25 = vpop.f32.mrb[47].mxu1  ;;  %v911_v10 = vld [vmem:[#allocation2 + $0x270] sm:$0xff]  ;;  %v925_v14 = vld [vmem:[#allocation2 + $0x2e0] sm:$0xff] }
 0x30a   : > { %2550 = vst [vmem:[#allocation2 + $0x348] sm:$0xff] %v2422_v13  ;;  %v2438_v24 = vadd.f32 %v2095_v22, %v954_v11  ;;  %2552 = vst [vmem:[#allocation2 + $0x358] sm:$0xff] %v2424_v19  ;;  %v2440_v26 = vadd.f32 %v2168_v25, %v956_v18  ;;  %v910_v11 = vld [vmem:[#allocation2 + $0x268] sm:$0xff]  ;;  %v912_v13 = vld [vmem:[#allocation2 + $0x278] sm:$0xff] }
 0x30b   : > { %2565 = vst [vmem:[#allocation2 + $0x3c0] sm:$0xff] %v2437_v20  ;;  %2567 = vst [vmem:[#allocation2 + $0x3d0] sm:$0xff] %v2439_v23  ;;  %v927_v20 = vld [vmem:[#allocation2 + $0x2f0] sm:$0xff]  ;;  %v926_v21 = vld [vmem:[#allocation2 + $0x2e8] sm:$0xff] }
 0x30c   : > { %2566 = vst [vmem:[#allocation2 + $0x3c8] sm:$0xff] %v2438_v24  ;;  %2568 = vst [vmem:[#allocation2 + $0x3d8] sm:$0xff] %v2440_v26  ;;  %v928_v26 = vld [vmem:[#allocation2 + $0x2f8] sm:$0xff] }
 0x30e   : > { %v2205_v30 = vpop.f32.mrb[48].mxu0  ;;  %v2278_v34 = vpop.f32.mrb[48].mxu1 }
 0x30f   : > { %v2329_v33 = vadd.f32 %v2205_v30, %v845_v27  ;;  %v2207_v15 = vpop.f32.mrb[49].mxu0  ;;  %v2331_v37 = vadd.f32 %v2278_v34, %v847_v28  ;;  %v2280_v39 = vpop.f32.mrb[49].mxu1 }
 0x310   : > { %v2330_v38 = vadd.f32 %v2207_v15, %v846_v29  ;;  %v2209_v58 = vpop.f32.mrb[50].mxu0  ;;  %v2332_v41 = vadd.f32 %v2280_v39, %v848_v31  ;;  %v2282_v9 = vpop.f32.mrb[50].mxu1  ;;  %v941_v15 = vld [vmem:[#allocation2 + $0x360] sm:$0xff] }
 0x311   : > { %2457 = vst [vmem:[#allocation2 + $0x60] sm:$0xff] %v2329_v33  ;;  %v2345_v42 = vadd.f32 %v2209_v58, %v861_v32  ;;  %v2211_v43 = vpop.f32.mrb[51].mxu0  ;;  %2459 = vst [vmem:[#allocation2 + $0x70] sm:$0xff] %v2331_v37  ;;  %v2347_v16 = vadd.f32 %v2282_v9, %v863_v36  ;;  %v2284_v45 = vpop.f32.mrb[51].mxu1  ;;  %v943_v36 = vld [vmem:[#allocation2 + $0x370] sm:$0xff]  ;;  %v957_v39 = vld [vmem:[#allocation2 + $0x3e0] sm:$0xff] }
 0x312   : > { %2458 = vst [vmem:[#allocation2 + $0x68] sm:$0xff] %v2330_v38  ;;  %v2346_v44 = vadd.f32 %v2211_v43, %v862_v35  ;;  %2460 = vst [vmem:[#allocation2 + $0x78] sm:$0xff] %v2332_v41  ;;  %v2348_v46 = vadd.f32 %v2284_v45, %v864_v40  ;;  %v942_v35 = vld [vmem:[#allocation2 + $0x368] sm:$0xff]  ;;  %v944_v38 = vld [vmem:[#allocation2 + $0x378] sm:$0xff] }
 0x313   : > { %2473 = vst [vmem:[#allocation2 + $0xe0] sm:$0xff] %v2345_v42  ;;  %2475 = vst [vmem:[#allocation2 + $0xf0] sm:$0xff] %v2347_v16  ;;  %v959_v42 = vld [vmem:[#allocation2 + $0x3f0] sm:$0xff]  ;;  %v958_v9 = vld [vmem:[#allocation2 + $0x3e8] sm:$0xff] }
 0x314   : > { %2474 = vst [vmem:[#allocation2 + $0xe8] sm:$0xff] %v2346_v44  ;;  %2476 = vst [vmem:[#allocation2 + $0xf8] sm:$0xff] %v2348_v46  ;;  %v960_v46 = vld [vmem:[#allocation2 + $0x3f8] sm:$0xff] }
 0x316   : > { %v2215_v50 = vpop.f32.mrb[52].mxu0  ;;  %v2288_v54 = vpop.f32.mrb[52].mxu1 }
 0x317   : > { %v2361_v53 = vadd.f32 %v2215_v50, %v877_v47  ;;  %v2217_v55 = vpop.f32.mrb[53].mxu0  ;;  %v2363_v59 = vadd.f32 %v2288_v54, %v879_v48  ;;  %v2290_v61 = vpop.f32.mrb[53].mxu1 }
 0x318   : > { %v2362_v60 = vadd.f32 %v2217_v55, %v878_v49  ;;  %v2219_v62 = vpop.f32.mrb[54].mxu0  ;;  %v2364_v0 = vadd.f32 %v2290_v61, %v880_v51  ;;  %v2292_v2 = vpop.f32.mrb[54].mxu1 }
 0x319   : > { %2489 = vst [vmem:[#allocation2 + $0x160] sm:$0xff] %v2361_v53  ;;  %v2377_v1 = vadd.f32 %v2219_v62, %v893_v52  ;;  %v2221_v3 = vpop.f32.mrb[55].mxu0  ;;  %2491 = vst [vmem:[#allocation2 + $0x170] sm:$0xff] %v2363_v59  ;;  %v2379_v4 = vadd.f32 %v2292_v2, %v895_v56  ;;  %v2294_v6 = vpop.f32.mrb[55].mxu1 }
 0x31a   : > { %2490 = vst [vmem:[#allocation2 + $0x168] sm:$0xff] %v2362_v60  ;;  %v2378_v5 = vadd.f32 %v2221_v3, %v894_v57  ;;  %2492 = vst [vmem:[#allocation2 + $0x178] sm:$0xff] %v2364_v0  ;;  %v2380_v7 = vadd.f32 %v2294_v6, %v896_v63 }
 0x31b   : > { %2505 = vst [vmem:[#allocation2 + $0x1e0] sm:$0xff] %v2377_v1  ;;  %2507 = vst [vmem:[#allocation2 + $0x1f0] sm:$0xff] %v2379_v4 }
 0x31c   : > { %2506 = vst [vmem:[#allocation2 + $0x1e8] sm:$0xff] %v2378_v5  ;;  %2508 = vst [vmem:[#allocation2 + $0x1f8] sm:$0xff] %v2380_v7 }
 0x31e   : > { %v2225_v12 = vpop.f32.mrb[56].mxu0  ;;  %v2298_v18 = vpop.f32.mrb[56].mxu1 }
 0x31f   : > { %v2393_v17 = vadd.f32 %v2225_v12, %v909_v8  ;;  %v2227_v19 = vpop.f32.mrb[57].mxu0  ;;  %v2395_v22 = vadd.f32 %v2298_v18, %v911_v10  ;;  %v2300_v24 = vpop.f32.mrb[57].mxu1 }
 0x320   : > { %v2394_v23 = vadd.f32 %v2227_v19, %v910_v11  ;;  %v2229_v25 = vpop.f32.mrb[58].mxu0  ;;  %v2396_v27 = vadd.f32 %v2300_v24, %v912_v13  ;;  %v2302_v29 = vpop.f32.mrb[58].mxu1 }
 0x321   : > { %2521 = vst [vmem:[#allocation2 + $0x260] sm:$0xff] %v2393_v17  ;;  %v2409_v28 = vadd.f32 %v2229_v25, %v925_v14  ;;  %v2231_v30 = vpop.f32.mrb[59].mxu0  ;;  %2523 = vst [vmem:[#allocation2 + $0x270] sm:$0xff] %v2395_v22  ;;  %v2411_v31 = vadd.f32 %v2302_v29, %v927_v20  ;;  %v2304_v33 = vpop.f32.mrb[59].mxu1 }
 0x322   : > { %2522 = vst [vmem:[#allocation2 + $0x268] sm:$0xff] %v2394_v23  ;;  %v2410_v32 = vadd.f32 %v2231_v30, %v926_v21  ;;  %2524 = vst [vmem:[#allocation2 + $0x278] sm:$0xff] %v2396_v27  ;;  %v2412_v34 = vadd.f32 %v2304_v33, %v928_v26 }
 0x323   : > { %2537 = vst [vmem:[#allocation2 + $0x2e0] sm:$0xff] %v2409_v28  ;;  %2539 = vst [vmem:[#allocation2 + $0x2f0] sm:$0xff] %v2411_v31 }
 0x324   : > { %2538 = vst [vmem:[#allocation2 + $0x2e8] sm:$0xff] %v2410_v32  ;;  %2540 = vst [vmem:[#allocation2 + $0x2f8] sm:$0xff] %v2412_v34 }
 0x326   : > { %v2235_v37 = vpop.f32.mrb[60].mxu0  ;;  %v2308_v40 = vpop.f32.mrb[60].mxu1 }
 0x327   : > { %v2425_v58 = vadd.f32 %v2235_v37, %v941_v15  ;;  %v2237_v41 = vpop.f32.mrb[61].mxu0  ;;  %v2427_v43 = vadd.f32 %v2308_v40, %v943_v36  ;;  %v2310_v44 = vpop.f32.mrb[61].mxu1 }
 0x328   : > { %v2426_v16 = vadd.f32 %v2237_v41, %v942_v35  ;;  %v2239_v45 = vpop.f32.mrb[62].mxu0  ;;  %v2428_v47 = vadd.f32 %v2310_v44, %v944_v38  ;;  %v2312_v49 = vpop.f32.mrb[62].mxu1 }
 0x329   : > { %2553 = vst [vmem:[#allocation2 + $0x360] sm:$0xff] %v2425_v58  ;;  %v2441_v48 = vadd.f32 %v2239_v45, %v957_v39  ;;  %v2241_v50 = vpop.f32.mrb[63].mxu0  ;;  %2555 = vst [vmem:[#allocation2 + $0x370] sm:$0xff] %v2427_v43  ;;  %v2443_v51 = vadd.f32 %v2312_v49, %v959_v42  ;;  %v2314_v53 = vpop.f32.mrb[63].mxu1 }
 0x32a   : > { %2554 = vst [vmem:[#allocation2 + $0x368] sm:$0xff] %v2426_v16  ;;  %v2442_v52 = vadd.f32 %v2241_v50, %v958_v9  ;;  %2556 = vst [vmem:[#allocation2 + $0x378] sm:$0xff] %v2428_v47  ;;  %v2444_v54 = vadd.f32 %v2314_v53, %v960_v46 }
 0x32b   : > { %2569 = vst [vmem:[#allocation2 + $0x3e0] sm:$0xff] %v2441_v48  ;;  %2571 = vst [vmem:[#allocation2 + $0x3f0] sm:$0xff] %v2443_v51 }
 0x32c   : > { %2570 = vst [vmem:[#allocation2 + $0x3e8] sm:$0xff] %v2442_v52  ;;  %2572 = vst [vmem:[#allocation2 + $0x3f8] sm:$0xff] %v2444_v54 }
 0x32d PF: > { %s17650_s19 = sld [smem:[#allocation33_spill]] }
 0x333   : > { %p12102_p12 = scmp.ne.s32.totalorder %s17650_s19, 1 }
 0x334   : > { %v2579_v55 = vld [vmem:[#allocation3 + $0x10] sm:$0xff] (!%p12102_p12)  ;;  %v2577_v56 = vld [vmem:[#allocation3] sm:$0xff] (!%p12102_p12)  ;;  %v2580_v57 = vld [vmem:[#allocation3 + $0x18] sm:$0xff] (!%p12102_p12)  ;;  %v15624_v59 = vmov (!%p12102_p12), 0  }
 0x335   : > { %2576 = sbr.rel (%p12102_p12) target bundleno = 2114 (0x842), region = 104  ;;  %13761 = vset.pattern.permute.xlu1 (!%p12102_p12), %v15624_v59  ;;  %13760 = vset.pattern.permute.xlu0 (!%p12102_p12), %v15624_v59  ;;  %v2587_v60 = vmax.f32 (!%p12102_p12), %v2579_v55, 1e-24  ;;  %v2585_v61 = vmax.f32 (!%p12102_p12), %v2577_v56, 1e-24  ;;  %v2578_v63 = vld [vmem:[#allocation3 + $0x8] sm:$0xff] (!%p12102_p12) }
 0x336   : > { %v2588_v62 = vmax.f32 (!%p12102_p12), %v2580_v57, 1e-24  ;;  %v2582_v0 = vld [vmem:[#allocation3 + $0x28] sm:$0xff] (!%p12102_p12)  ;;  %v2581_v1 = vld [vmem:[#allocation3 + $0x20] sm:$0xff] (!%p12102_p12)  ;;  %v2586_v2 = vmax.f32 (!%p12102_p12), %v2578_v63, 1e-24 }
 0x337   : > { %14530 = vrsqrt.f32 (!%p12102_p12), %v2587_v60  ;;  %v2590_v3 = vmax.f32 (!%p12102_p12), %v2582_v0, 1e-24  ;;  %v2584_v4 = vld [vmem:[#allocation3 + $0x38] sm:$0xff] (!%p12102_p12)  ;;  %v2589_v5 = vmax.f32 (!%p12102_p12), %v2581_v1, 1e-24  ;;  %v2583_v6 = vld [vmem:[#allocation3 + $0x30] sm:$0xff] (!%p12102_p12) }
 0x338   : > { %14532 = vrsqrt.f32 (!%p12102_p12), %v2585_v61  ;;  %v13762_v7 = vld [vmem:[#allocation11 + $0x4] ss:$16 sps:$4 sm:$0xff] (!%p12102_p12)   ;;  %v13764_v8 = vld [vmem:[#allocation11 + $0xc] ss:$16 sps:$4 sm:$0xff] (!%p12102_p12)   ;;  %v13766_v10 = vld [vmem:[#allocation11] ss:$16 sps:$4 sm:$0xff] (!%p12102_p12)  }
 0x339   : > { %14534 = vrsqrt.f32 (!%p12102_p12), %v2588_v62  ;;  %v13767_v11 = vld [vmem:[#allocation11 + $0x8] ss:$16 sps:$4 sm:$0xff] (!%p12102_p12)   ;;  %v2592_v12 = vmax.f32 (!%p12102_p12), %v2584_v4, 1e-24  ;;  %6395 = vmatprep.subr.bf16.mxu0 (!%p12102_p12), %v13762_v7  ;;  %6979 = vmatprep.subr.bf16.mxu1 (!%p12102_p12), %v13764_v8  ;;  %v13768_v13 = vld [vmem:[#allocation11 + $0x24] ss:$16 sps:$4 sm:$0xff] (!%p12102_p12)  }
 0x33a   : > { %14536 = vrsqrt.f32 (!%p12102_p12), %v2586_v2  ;;  %6396 = vmatpush1.bf16.msra.mxu0 (!%p12102_p12), %v13766_v10  ;;  %6980 = vmatpush1.bf16.msra.mxu1 (!%p12102_p12), %v13767_v11  ;;  %v13770_v14 = vld [vmem:[#allocation11 + $0x2c] ss:$16 sps:$4 sm:$0xff] (!%p12102_p12)   ;;  %v13772_v17 = vld [vmem:[#allocation11 + $0x20] ss:$16 sps:$4 sm:$0xff] (!%p12102_p12)   ;;  %v2591_v18 = vmax.f32 (!%p12102_p12), %v2583_v6, 1e-24 }
 0x33b   : > { %14538 = vrsqrt.f32 (!%p12102_p12), %v2590_v3  ;;  %6397 = vmatprep.subr.bf16.mxu0 (!%p12102_p12), %v13768_v13  ;;  %v13773_v19 = vld [vmem:[#allocation11 + $0x28] ss:$16 sps:$4 sm:$0xff] (!%p12102_p12)   ;;  %6981 = vmatprep.subr.bf16.mxu1 (!%p12102_p12), %v13770_v14  ;;  %v13774_v20 = vld [vmem:[#allocation11 + $0x44] ss:$16 sps:$4 sm:$0xff] (!%p12102_p12)   ;;  %v13776_v21 = vld [vmem:[#allocation11 + $0x4c] ss:$16 sps:$4 sm:$0xff] (!%p12102_p12)  }
 0x33c   : > { %14540 = vrsqrt.f32 %v2589_v5  ;;  %v13778_v22 = vld [vmem:[#allocation11 + $0x40] ss:$16 sps:$4 sm:$0xff]   ;;  %v13779_v24 = vld [vmem:[#allocation11 + $0x48] ss:$16 sps:$4 sm:$0xff]   ;;  %v13780_v26 = vld [vmem:[#allocation11 + $0x64] ss:$16 sps:$4 sm:$0xff]  }
 0x33d   : > { %14542 = vrsqrt.f32 %v2592_v12  ;;  %v13782_v28 = vld [vmem:[#allocation11 + $0x6c] ss:$16 sps:$4 sm:$0xff]   ;;  %v13784_v30 = vld [vmem:[#allocation11 + $0x60] ss:$16 sps:$4 sm:$0xff]   ;;  %v13785_v31 = vld [vmem:[#allocation11 + $0x68] ss:$16 sps:$4 sm:$0xff]  }
 0x33e   : > { %6398 = vmatpush1.bf16.msra.mxu0 %v13772_v17  ;;  %6982 = vmatpush1.bf16.msra.mxu1 %v13773_v19  ;;  %14544 = vrsqrt.f32 %v2591_v18  ;;  %v13786_v32 = vld [vmem:[#allocation11 + $0x84] ss:$16 sps:$4 sm:$0xff]   ;;  %v13788_v34 = vld [vmem:[#allocation11 + $0x8c] ss:$16 sps:$4 sm:$0xff]   ;;  %v13790_v36 = vld [vmem:[#allocation11 + $0x80] ss:$16 sps:$4 sm:$0xff]  }
 0x33f   : > { %6399 = vmatprep.subr.bf16.mxu0 %v13774_v20  ;;  %6983 = vmatprep.subr.bf16.mxu1 %v13776_v21  ;;  %v13791_v35 = vld [vmem:[#allocation11 + $0x88] ss:$16 sps:$4 sm:$0xff]   ;;  %v13792_v37 = vld [vmem:[#allocation11 + $0xa4] ss:$16 sps:$4 sm:$0xff]   ;;  %v13794_v39 = vld [vmem:[#allocation11 + $0xac] ss:$16 sps:$4 sm:$0xff]  }
 0x340   : > { %v13796_v40 = vld [vmem:[#allocation11 + $0xa0] ss:$16 sps:$4 sm:$0xff]   ;;  %v13797_v41 = vld [vmem:[#allocation11 + $0xa8] ss:$16 sps:$4 sm:$0xff]   ;;  %v13798_v42 = vld [vmem:[#allocation11 + $0xc4] ss:$16 sps:$4 sm:$0xff]  }
 0x341   : > { %v14531_v23 = vpop.eup %14530  ;;  %v13800_v9 = vld [vmem:[#allocation11 + $0xcc] ss:$16 sps:$4 sm:$0xff]   ;;  %v13802_v43 = vld [vmem:[#allocation11 + $0xc0] ss:$16 sps:$4 sm:$0xff]   ;;  %v13803_v16 = vld [vmem:[#allocation11 + $0xc8] ss:$16 sps:$4 sm:$0xff]  }
 0x342   : > { %v14533_v25 = vpop.eup %14532  ;;  %2741 = vperm.xlu1 %13761, %v14531_v23   ;;  %6400 = vmatpush1.bf16.msra.mxu0 %v13778_v22  ;;  %v13804_v44 = vld [vmem:[#allocation11 + $0xe4] ss:$16 sps:$4 sm:$0xff]   ;;  %v13806_v45 = vld [vmem:[#allocation11 + $0xec] ss:$16 sps:$4 sm:$0xff]   ;;  %v13808_v46 = vld [vmem:[#allocation11 + $0xe0] ss:$16 sps:$4 sm:$0xff]   ;;  %v2901_v22 = vlaneseq }
 0x343   : > { %v14535_v27 = vpop.eup %14534  ;;  %2731 = vperm.xlu0 %13760, %v14533_v25   ;;  %6984 = vmatpush1.bf16.msra.mxu1 %v13779_v24  ;;  %v13809_v47 = vld [vmem:[#allocation11 + $0xe8] ss:$16 sps:$4 sm:$0xff]   ;;  %v13810_v48 = vld [vmem:[#allocation11 + $0x104] ss:$16 sps:$4 sm:$0xff]   ;;  %v13812_v49 = vld [vmem:[#allocation11 + $0x10c] ss:$16 sps:$4 sm:$0xff]  }
 0x344   : > { %v14537_v29 = vpop.eup %14536  ;;  %6401 = vmatprep.subr.bf16.mxu0 %v13780_v26  ;;  %6985 = vmatprep.subr.bf16.mxu1 %v13782_v28  ;;  %v13814_v50 = vld [vmem:[#allocation11 + $0x100] ss:$16 sps:$4 sm:$0xff]   ;;  %v13815_v51 = vld [vmem:[#allocation11 + $0x108] ss:$16 sps:$4 sm:$0xff]   ;;  %v13816_v52 = vld [vmem:[#allocation11 + $0x124] ss:$16 sps:$4 sm:$0xff]  }
 0x345   : > { %v14539_v33 = vpop.eup %14538  ;;  %v13818_v53 = vld [vmem:[#allocation11 + $0x12c] ss:$16 sps:$4 sm:$0xff]   ;;  %v13820_v54 = vld [vmem:[#allocation11 + $0x120] ss:$16 sps:$4 sm:$0xff]   ;;  %v13821_v55 = vld [vmem:[#allocation11 + $0x128] ss:$16 sps:$4 sm:$0xff]  }
 0x346   : > { %2746 = vperm.xlu1 %13761, %v14535_v27   ;;  %v14541_v15 = vpop.eup %14540  ;;  %6402 = vmatpush1.bf16.msra.mxu0 %v13784_v30  ;;  %v13822_v56 = vld [vmem:[#allocation11 + $0x144] ss:$16 sps:$4 sm:$0xff]   ;;  %v13824_v57 = vld [vmem:[#allocation11 + $0x14c] ss:$16 sps:$4 sm:$0xff]   ;;  %v13826_v59 = vld [vmem:[#allocation11 + $0x140] ss:$16 sps:$4 sm:$0xff]  }
 0x347   : > { %2736 = vperm.xlu0 %13760, %v14537_v29   ;;  %6986 = vmatpush1.bf16.msra.mxu1 %v13785_v31  ;;  %v14543_v38 = vpop.eup %14542  ;;  %v13827_v60 = vld [vmem:[#allocation11 + $0x148] ss:$16 sps:$4 sm:$0xff]   ;;  %v13828_v61 = vld [vmem:[#allocation11 + $0x164] ss:$16 sps:$4 sm:$0xff]   ;;  %v13830_v62 = vld [vmem:[#allocation11 + $0x16c] ss:$16 sps:$4 sm:$0xff]  }
 0x348   : > { %6403 = vmatprep.subr.bf16.mxu0 %v13786_v32  ;;  %6987 = vmatprep.subr.bf16.mxu1 %v13788_v34  ;;  %v14545_v58 = vpop.eup %14544  ;;  %v13832_v63 = vld [vmem:[#allocation11 + $0x160] ss:$16 sps:$4 sm:$0xff]   ;;  %v13833_v0 = vld [vmem:[#allocation11 + $0x168] ss:$16 sps:$4 sm:$0xff]   ;;  %v13834_v1 = vld [vmem:[#allocation11 + $0x184] ss:$16 sps:$4 sm:$0xff]  }
 0x349   : > { %v13836_v2 = vld [vmem:[#allocation11 + $0x18c] ss:$16 sps:$4 sm:$0xff]   ;;  %v13838_v3 = vld [vmem:[#allocation11 + $0x180] ss:$16 sps:$4 sm:$0xff]   ;;  %v13839_v4 = vld [vmem:[#allocation11 + $0x188] ss:$16 sps:$4 sm:$0xff]  }
 0x34a   : > { %2756 = vperm.xlu1 %13761, %v14539_v33   ;;  %6404 = vmatpush1.bf16.msra.mxu0 %v13790_v36  ;;  %v13840_v5 = vld [vmem:[#allocation11 + $0x1a4] ss:$16 sps:$4 sm:$0xff]   ;;  %v13842_v6 = vld [vmem:[#allocation11 + $0x1ac] ss:$16 sps:$4 sm:$0xff]   ;;  %v13844_v7 = vld [vmem:[#allocation11 + $0x1a0] ss:$16 sps:$4 sm:$0xff]  }
 0x34b   : > { %2751 = vperm.xlu0 %13760, %v14541_v15   ;;  %6988 = vmatpush1.bf16.msra.mxu1 %v13791_v35  ;;  %v13845_v8 = vld [vmem:[#allocation11 + $0x1a8] ss:$16 sps:$4 sm:$0xff]   ;;  %v13846_v10 = vld [vmem:[#allocation11 + $0x1c4] ss:$16 sps:$4 sm:$0xff]   ;;  %v13848_v11 = vld [vmem:[#allocation11 + $0x1cc] ss:$16 sps:$4 sm:$0xff]  }
 0x34c   : > { %6405 = vmatprep.subr.bf16.mxu0 %v13792_v37  ;;  %6989 = vmatprep.subr.bf16.mxu1 %v13794_v39  ;;  %v13850_v12 = vld [vmem:[#allocation11 + $0x1c0] ss:$16 sps:$4 sm:$0xff]   ;;  %v13851_v13 = vld [vmem:[#allocation11 + $0x1c8] ss:$16 sps:$4 sm:$0xff]   ;;  %v13852_v14 = vld [vmem:[#allocation11 + $0x1e4] ss:$16 sps:$4 sm:$0xff]  }
 0x34d   : > { %v13854_v17 = vld [vmem:[#allocation11 + $0x1ec] ss:$16 sps:$4 sm:$0xff]   ;;  %v13856_v18 = vld [vmem:[#allocation11 + $0x1e0] ss:$16 sps:$4 sm:$0xff]   ;;  %v13857_v19 = vld [vmem:[#allocation11 + $0x1e8] ss:$16 sps:$4 sm:$0xff]  }
 0x34e   : > { %2766 = vperm.xlu1 %13761, %v14543_v38   ;;  %6406 = vmatpush1.bf16.msra.mxu0 %v13796_v40  ;;  %v13860_v20 = vld [vmem:[#allocation11 + $0x204] ss:$16 sps:$4 sm:$0xff]   ;;  %v13863_v21 = vld [vmem:[#allocation11 + $0x20c] ss:$16 sps:$4 sm:$0xff]   ;;  %v16503_v23 = vshrl.u32 %v2901_v22, 7 }
 0x34f   : > { %2761 = vperm.xlu0 %13760, %v14545_v58   ;;  %6990 = vmatpush1.bf16.msra.mxu1 %v13797_v41  ;;  %v16511_v26 = vld [vmem:[#allocation10] sm:$0xff]  ;;  %v2634_v27 = vld [vmem:[#allocation2 + $0x108] sm:$0xff] }
 0x350   : > { %6407 = vmatprep.subr.bf16.mxu0 %v13798_v42  ;;  %6991 = vmatprep.subr.bf16.mxu1 %v13800_v9  ;;  %v16506_v24 = vsub.s32 1, %v16503_v23  ;;  %v16509_v25 = vsub.s32 0, %v16503_v23  ;;  %v2602_v28 = vld [vmem:[#allocation2 + $0x8] sm:$0xff]  ;;  %v2601_v29 = vld [vmem:[#allocation2] sm:$0xff] }
 0x351   : > { %v2618_v15 = vld [vmem:[#allocation2 + $0x88] sm:$0xff]  ;;  %v2617_v35 = vld [vmem:[#allocation2 + $0x80] sm:$0xff] }
 0x352   : > { %6408 = vmatpush1.bf16.msra.mxu0 %v13802_v43  ;;  %v16517_v31 = vrot.slane %v16511_v26, %v16506_v24  ;;  %v16521_v32 = vrot.slane %v16511_v26, %v16509_v25  ;;  %v2650_v38 = vld [vmem:[#allocation2 + $0x188] sm:$0xff]  ;;  %v2633_v58 = vld [vmem:[#allocation2 + $0x100] sm:$0xff] }
 0x353   : > { %6992 = vmatpush1.bf16.msra.mxu1 %v13803_v16  ;;  %6409 = vmatprep.subr.bf16.mxu0 %v13804_v44  ;;  %v2649_v9 = vld [vmem:[#allocation2 + $0x180] sm:$0xff] }
 0x354   : > { %6993 = vmatprep.subr.bf16.mxu1 %v13806_v45  ;;  %v2713_v22 = vld [vmem:[#allocation2 + $0x380] sm:$0xff] }
 0x356   : > { %6410 = vmatpush1.bf16.msra.mxu0 %v13808_v46 }
 0x357   : > { %6994 = vmatpush1.bf16.msra.mxu1 %v13809_v47  ;;  %6411 = vmatprep.subr.bf16.mxu0 %v13810_v48 }
 0x358   : > { %6995 = vmatprep.subr.bf16.mxu1 %v13812_v49  ;;  %v2682_v49 = vld [vmem:[#allocation2 + $0x288] sm:$0xff] }
 0x35a   : > { %6412 = vmatpush1.bf16.msra.mxu0 %v13814_v50 }
 0x35b   : > { %6996 = vmatpush1.bf16.msra.mxu1 %v13815_v51  ;;  %6413 = vmatprep.subr.bf16.mxu0 %v13816_v52 }
 0x35c   : > { %6997 = vmatprep.subr.bf16.mxu1 %v13818_v53  ;;  %v2666_v53 = vld [vmem:[#allocation2 + $0x208] sm:$0xff] }
 0x35e   : > { %6414 = vmatpush1.bf16.msra.mxu0 %v13820_v54 }
 0x35f   : > { %6998 = vmatpush1.bf16.msra.mxu1 %v13821_v55  ;;  %6415 = vmatprep.subr.bf16.mxu0 %v13822_v56 }
 0x360   : > { %6999 = vmatprep.subr.bf16.mxu1 %v13824_v57 }
 0x362   : > { %6416 = vmatpush1.bf16.msra.mxu0 %v13826_v59 }
 0x363   : > { %7000 = vmatpush1.bf16.msra.mxu1 %v13827_v60  ;;  %6417 = vmatprep.subr.bf16.mxu0 %v13828_v61  ;;  %v2665_v60 = vld [vmem:[#allocation2 + $0x200] sm:$0xff] }
 0x364   : > { %7001 = vmatprep.subr.bf16.mxu1 %v13830_v62  ;;  %v2681_v62 = vld [vmem:[#allocation2 + $0x280] sm:$0xff] }
 0x366   : > { %6418 = vmatpush1.bf16.msra.mxu0 %v13832_v63 }
 0x367   : > { %7002 = vmatpush1.bf16.msra.mxu1 %v13833_v0  ;;  %6419 = vmatprep.subr.bf16.mxu0 %v13834_v1  ;;  %v2714_v1 = vld [vmem:[#allocation2 + $0x388] sm:$0xff] }
 0x368   : > { %7003 = vmatprep.subr.bf16.mxu1 %v13836_v2 }
 0x36a   : > { %6420 = vmatpush1.bf16.msra.mxu0 %v13838_v3 }
 0x36b   : > { %7004 = vmatpush1.bf16.msra.mxu1 %v13839_v4  ;;  %6421 = vmatprep.subr.bf16.mxu0 %v13840_v5  ;;  %v2698_v5 = vld [vmem:[#allocation2 + $0x308] sm:$0xff] }
 0x36c   : > { %7005 = vmatprep.subr.bf16.mxu1 %v13842_v6 }
 0x36e   : > { %6422 = vmatpush1.bf16.msra.mxu0 %v13844_v7 }
 0x36f   : > { %7006 = vmatpush1.bf16.msra.mxu1 %v13845_v8  ;;  %6423 = vmatprep.subr.bf16.mxu0 %v13846_v10 }
 0x370   : > { %7007 = vmatprep.subr.bf16.mxu1 %v13848_v11 }
 0x372   : > { %6424 = vmatpush1.bf16.msra.mxu0 %v13850_v12  ;;  %v13858_v12 = vld [vmem:[#allocation11 + $0x200] ss:$16 sps:$4 sm:$0xff]  }
 0x373   : > { %7008 = vmatpush1.bf16.msra.mxu1 %v13851_v13  ;;  %6425 = vmatprep.subr.bf16.mxu0 %v13852_v14  ;;  %v13861_v13 = vld [vmem:[#allocation11 + $0x208] ss:$16 sps:$4 sm:$0xff]  }
 0x374   : > { %7009 = vmatprep.subr.bf16.mxu1 %v13854_v17  ;;  %v2697_v17 = vld [vmem:[#allocation2 + $0x300] sm:$0xff] }
 0x376   : > { %6426 = vmatpush1.bf16.msra.mxu0 %v13856_v18 }
 0x377   : > { %7010 = vmatpush1.bf16.msra.mxu1 %v13857_v19  ;;  %6468 = vmatprep.subr.bf16.mxu0 %v13860_v20  ;;  %v13866_v19 = vld [vmem:[#allocation11 + $0x224] ss:$16 sps:$4 sm:$0xff]   ;;  %v13869_v20 = vld [vmem:[#allocation11 + $0x22c] ss:$16 sps:$4 sm:$0xff]  }
 0x378   : > { %7052 = vmatprep.subr.bf16.mxu1 %v13863_v21 }
 0x3c1   : > { %v16513_v30 = vpop.permute.xlu1 %2741 }
 0x3c2   : > { %v16523_v33 = vpop.permute.xlu0 %2731  ;;  %v2802_v34 = vmul.f32 %v16513_v30, %v2634_v27  ;;  %v2801_v46 = vmul.f32 %v16513_v30, %v2633_v58  ;;  %v13872_v58 = vld [vmem:[#allocation11 + $0x244] ss:$16 sps:$4 sm:$0xff]  }
 0x3c3   : > { %v2770_v36 = vmul.f32 %v16523_v33, %v2602_v28  ;;  %v2769_v37 = vmul.f32 %v16523_v33, %v2601_v29 }
 0x3c4   : > { %v3014_v39 = vadd.f32 %v16517_v31, %v2802_v34  ;;  %v3013_v55 = vadd.f32 %v16521_v32, %v2801_v46  ;;  %v16568_v46 = vsub.s32 3, %v16503_v23 }
 0x3c5   : > { %v16529_v40 = vpop.permute.xlu1 %2746  ;;  %v2982_v41 = vadd.f32 %v16517_v31, %v2770_v36  ;;  %v2981_v42 = vadd.f32 %v16521_v32, %v2769_v37  ;;  %v13864_v36 = vld [vmem:[#allocation11 + $0x220] ss:$16 sps:$4 sm:$0xff]  }
 0x3c6   : > { %v16533_v43 = vpop.permute.xlu0 %2736  ;;  %v2818_v16 = vmul.f32 %v16529_v40, %v2650_v38  ;;  %14546 = vtanh.f32 %v3014_v39  ;;  %v2817_v48 = vmul.f32 %v16529_v40, %v2649_v9 }
 0x3c7   : > { %v2786_v44 = vmul.f32 %v16533_v43, %v2618_v15  ;;  %v2785_v45 = vmul.f32 %v16533_v43, %v2617_v35  ;;  %14548 = vtanh.f32 %v2982_v41  ;;  %v13867_v35 = vld [vmem:[#allocation11 + $0x228] ss:$16 sps:$4 sm:$0xff]  }
 0x3c8   : > { %v3030_v47 = vadd.f32 %v16517_v31, %v2818_v16  ;;  %14550 = vtanh.f32 %v2981_v42  ;;  %v3029_v57 = vadd.f32 %v16521_v32, %v2817_v48  ;;  %v2620_v42 = vld [vmem:[#allocation2 + $0x98] sm:$0xff] }
 0x3c9   : > { %v16541_v50 = vpop.permute.xlu1 %2756  ;;  %v2998_v51 = vadd.f32 %v16517_v31, %v2786_v44  ;;  %v2997_v52 = vadd.f32 %v16521_v32, %v2785_v45  ;;  %v13875_v16 = vld [vmem:[#allocation11 + $0x24c] ss:$16 sps:$4 sm:$0xff]  }
 0x3ca   : > { %v16545_v54 = vpop.permute.xlu0 %2751  ;;  %14552 = vtanh.f32 %v3030_v47  ;;  %v2850_v56 = vmul.f32 %v16541_v50, %v2682_v49  ;;  %v2849_v7 = vmul.f32 %v16541_v50, %v2681_v62  ;;  %v2604_v45 = vld [vmem:[#allocation2 + $0x18] sm:$0xff]  ;;  %v2788_v47 = vmul.f32 %v16533_v43, %v2620_v42 }
 0x3cb   : > { %14554 = vtanh.f32 %v2998_v51  ;;  %v2834_v59 = vmul.f32 %v16545_v54, %v2666_v53  ;;  %v2833_v4 = vmul.f32 %v16545_v54, %v2665_v60  ;;  %v13873_v49 = vld [vmem:[#allocation11 + $0x248] ss:$16 sps:$4 sm:$0xff]   ;;  %v16576_v60 = vrot.slane %v16511_v26, %v16568_v46  ;;  %v13911_v42 = vld [vmem:[#allocation11 + $0x30c] ss:$16 sps:$4 sm:$0xff]  }
 0x3cc   : > { %14556 = vtanh.f32 %v2997_v52  ;;  %v3062_v61 = vadd.f32 %v16517_v31, %v2850_v56  ;;  %v3061_v29 = vadd.f32 %v16521_v32, %v2849_v7  ;;  %v13881_v56 = vld [vmem:[#allocation11 + $0x26c] ss:$16 sps:$4 sm:$0xff]  }
 0x3cd   : > { %14558 = vtanh.f32 %v3013_v55  ;;  %v16552_v63 = vpop.permute.xlu1 %2766  ;;  %v3046_v0 = vadd.f32 %v16517_v31, %v2834_v59  ;;  %v3045_v21 = vadd.f32 %v16521_v32, %v2833_v4  ;;  %v13878_v55 = vld [vmem:[#allocation11 + $0x264] ss:$16 sps:$4 sm:$0xff]   ;;  %v2772_v59 = vmul.f32 %v16523_v33, %v2604_v45  ;;  %v13917_v45 = vld [vmem:[#allocation11 + $0x32c] ss:$16 sps:$4 sm:$0xff]  }
 0x3ce   : > { %14560 = vtanh.f32 %v3029_v57  ;;  %v16555_v3 = vpop.permute.xlu0 %2761  ;;  %v2882_v10 = vmul.f32 %v16552_v63, %v2714_v1  ;;  %v2881_v44 = vmul.f32 %v16552_v63, %v2713_v22  ;;  %v13879_v1 = vld [vmem:[#allocation11 + $0x268] ss:$16 sps:$4 sm:$0xff]   ;;  %v13884_v4 = vld [vmem:[#allocation11 + $0x284] ss:$16 sps:$4 sm:$0xff]  }
 0x3cf   : > { %14562 = vtanh.f32 %v3062_v61  ;;  %v2866_v14 = vmul.f32 %v16555_v3, %v2698_v5  ;;  %v2865_v41 = vmul.f32 %v16555_v3, %v2697_v17  ;;  %v3000_v61 = vadd.f32 %v16576_v60, %v2788_v47  ;;  %v13887_v5 = vld [vmem:[#allocation11 + $0x28c] ss:$16 sps:$4 sm:$0xff]   ;;  %v13915_v47 = vld [vmem:[#allocation11 + $0x328] ss:$16 sps:$4 sm:$0xff]  }
 0x3d0   : > { %v14547_v2 = vpop.eup %14546  ;;  %14564 = vtanh.f32 %v3046_v0  ;;  %v3094_v15 = vadd.f32 %v16517_v31, %v2882_v10  ;;  %v3093_v57 = vadd.f32 %v16521_v32, %v2881_v44  ;;  %v13876_v0 = vld [vmem:[#allocation11 + $0x260] ss:$16 sps:$4 sm:$0xff]   ;;  %v13914_v44 = vld [vmem:[#allocation11 + $0x324] ss:$16 sps:$4 sm:$0xff]  }
 0x3d1   : > { %v14549_v6 = vpop.eup %14548  ;;  %v3078_v38 = vadd.f32 %v16517_v31, %v2866_v14  ;;  %14566 = vtanh.f32 %v3045_v21  ;;  %v13870_v31 = vld [vmem:[#allocation11 + $0x240] ss:$16 sps:$4 sm:$0xff]   ;;  %v3077_v52 = vadd.f32 %v16521_v32, %v2865_v41  ;;  %v2984_v32 = vadd.f32 %v16576_v60, %v2772_v59  ;;  %v13893_v14 = vld [vmem:[#allocation11 + $0x2ac] ss:$16 sps:$4 sm:$0xff]   ;;  %v13908_v41 = vld [vmem:[#allocation11 + $0x304] ss:$16 sps:$4 sm:$0xff]  }
 0x3d2   : > { %v14551_v8 = vpop.eup %14550  ;;  %14568 = vtanh.f32 %v3061_v29  ;;  %v13899_v21 = vld [vmem:[#allocation11 + $0x2cc] ss:$16 sps:$4 sm:$0xff]   ;;  %v13897_v29 = vld [vmem:[#allocation11 + $0x2c8] ss:$16 sps:$4 sm:$0xff]   ;;  %v16581_v59 = vsub.s32 2, %v16503_v23 }
 0x3d3   : > { %14570 = vtanh.f32 %v3094_v15 }
 0x3d4   : > { %v14553_v11 = vpop.eup %14552  ;;  %14572 = vtanh.f32 %v3078_v38 }
 0x3d5   : > { %v14555_v18 = vpop.eup %14554  ;;  %v3254_v37 = vpack.c.bf16 %v14553_v11, %v14547_v2  ;;  %14574 = vtanh.f32 %v3077_v52  ;;  %v13885_v11 = vld [vmem:[#allocation11 + $0x288] ss:$16 sps:$4 sm:$0xff]  }
 0x3d6   : > { %v14557_v27 = vpop.eup %14556  ;;  %v3238_v28 = vpack.c.bf16 %v14555_v18, %v14549_v6  ;;  %14576 = vtanh.f32 %v3093_v57  ;;  %v13888_v18 = vld [vmem:[#allocation11 + $0x2a0] ss:$16 sps:$4 sm:$0xff]   ;;  %v13921_v52 = vld [vmem:[#allocation11 + $0x348] ss:$16 sps:$4 sm:$0xff]  }
 0x3d7   : > { %v3237_v34 = vpack.c.bf16 %v14557_v27, %v14551_v8  ;;  %v14559_v39 = vpop.eup %14558  ;;  %14578 = vtanh.f32 %v3000_v61  ;;  %v13882_v8 = vld [vmem:[#allocation11 + $0x280] ss:$16 sps:$4 sm:$0xff]   ;;  %v2636_v57 = vld [vmem:[#allocation2 + $0x118] sm:$0xff] }
 0x3d8   : > { %6427 = vmatprep.mubr.bf16.mxu0 %v3238_v28  ;;  %7011 = vmatprep.mubr.bf16.mxu1 %v3238_v28  ;;  %v14561_v9 = vpop.eup %14560  ;;  %14580 = vtanh.f32 %v2984_v32  ;;  %v13894_v28 = vld [vmem:[#allocation11 + $0x2c0] ss:$16 sps:$4 sm:$0xff]   ;;  %v13935_v32 = vld [vmem:[#allocation11 + $0x38c] ss:$16 sps:$4 sm:$0xff]  }
 0x3d9   : > { %6428 = vmatmul.mubr.bf16.vlgmr.msra.gmra.mrb[0].mxu0 %v3237_v34  ;;  %7012 = vmatmul.mubr.bf16.vlgmr.msra.gmra.mrb[0].mxu1 %v3237_v34  ;;  %v14563_v48 = vpop.eup %14562  ;;  %v3253_v51 = vpack.c.bf16 %v14561_v9, %v14559_v39  ;;  %v13900_v39 = vld [vmem:[#allocation11 + $0x2e0] ss:$16 sps:$4 sm:$0xff]  }
 0x3da   : > { %6469 = vmatpush1.bf16.msra.mxu0 %v13858_v12  ;;  %7053 = vmatpush1.bf16.msra.mxu1 %v13861_v13  ;;  %v14565_v53 = vpop.eup %14564  ;;  %v13890_v13 = vld [vmem:[#allocation11 + $0x2a4] ss:$16 sps:$4 sm:$0xff]   ;;  %v13906_v9 = vld [vmem:[#allocation11 + $0x300] ss:$16 sps:$4 sm:$0xff]  }
 0x3db   : > { %6470 = vmatprep.subr.bf16.mxu0 %v13866_v19  ;;  %7054 = vmatprep.subr.bf16.mxu1 %v13869_v20  ;;  %v3270_v62 = vpack.c.bf16 %v14563_v48, %v14565_v53  ;;  %v14567_v2 = vpop.eup %14566  ;;  %v13891_v19 = vld [vmem:[#allocation11 + $0x2a8] ss:$16 sps:$4 sm:$0xff]   ;;  %v13896_v20 = vld [vmem:[#allocation11 + $0x2c4] ss:$16 sps:$4 sm:$0xff]   ;;  %v13924_v61 = vld [vmem:[#allocation11 + $0x360] ss:$16 sps:$4 sm:$0xff]  }
 0x3dc   : > { %6437 = vmatprep.mubr.bf16.mxu0 %v3254_v37  ;;  %7021 = vmatprep.mubr.bf16.mxu1 %v3254_v37  ;;  %v14569_v6 = vpop.eup %14568  ;;  %v13920_v48 = vld [vmem:[#allocation11 + $0x344] ss:$16 sps:$4 sm:$0xff]  }
 0x3dd   : > { %v14571_v7 = vpop.eup %14570  ;;  %v3269_v12 = vpack.c.bf16 %v14569_v6, %v14567_v2  ;;  %v2619_v53 = vld [vmem:[#allocation2 + $0x90] sm:$0xff]  ;;  %v16587_v6 = vrot.slane %v16511_v26, %v16581_v59 }
 0x3de   : > { %6471 = vmatpush1.bf16.msra.mxu0 %v13864_v36  ;;  %7055 = vmatpush1.bf16.msra.mxu1 %v13867_v35  ;;  %v14573_v10 = vpop.eup %14572  ;;  %v13902_v36 = vld [vmem:[#allocation11 + $0x2e4] ss:$16 sps:$4 sm:$0xff]   ;;  %v13905_v35 = vld [vmem:[#allocation11 + $0x2ec] ss:$16 sps:$4 sm:$0xff]  }
 0x3df   : > { %6472 = vmatprep.subr.bf16.mxu0 %v13872_v58  ;;  %7056 = vmatprep.subr.bf16.mxu1 %v13875_v16  ;;  %v3286_v17 = vpack.c.bf16 %v14571_v7, %v14573_v10  ;;  %v14575_v22 = vpop.eup %14574  ;;  %v13903_v58 = vld [vmem:[#allocation11 + $0x2e8] ss:$16 sps:$4 sm:$0xff]   ;;  %v2603_v2 = vld [vmem:[#allocation2 + $0x10] sm:$0xff] }
 0x3e0   : > { %v14577_v27 = vpop.eup %14576  ;;  %v13909_v16 = vld [vmem:[#allocation11 + $0x308] ss:$16 sps:$4 sm:$0xff]  }
 0x3e1   : > { %6438 = vmatmul.mubr.bf16.gmra.mrb[4].mxu0 %v3253_v51  ;;  %7022 = vmatmul.mubr.bf16.gmra.mrb[4].mxu1 %v3253_v51  ;;  %v14579_v34 = vpop.eup %14578  ;;  %v3285_v15 = vpack.c.bf16 %v14577_v27, %v14575_v22  ;;  %v13918_v51 = vld [vmem:[#allocation11 + $0x340] ss:$16 sps:$4 sm:$0xff]   ;;  %v13933_v10 = vld [vmem:[#allocation11 + $0x388] ss:$16 sps:$4 sm:$0xff]  }
 0x3e2   : > { %6473 = vmatpush1.bf16.msra.mxu0 %v13870_v31  ;;  %7057 = vmatpush1.bf16.msra.mxu1 %v13873_v49  ;;  %v14581_v37 = vpop.eup %14580  ;;  %v13912_v31 = vld [vmem:[#allocation11 + $0x320] ss:$16 sps:$4 sm:$0xff]   ;;  %v13923_v49 = vld [vmem:[#allocation11 + $0x34c] ss:$16 sps:$4 sm:$0xff]   ;;  %v13939_v27 = vld [vmem:[#allocation11 + $0x3a8] ss:$16 sps:$4 sm:$0xff]  }
 0x3e3   : > { %6447 = vmatprep.mubr.bf16.mxu0 %v3270_v62  ;;  %7031 = vmatprep.mubr.bf16.mxu1 %v3270_v62  ;;  %v3240_v38 = vpack.c.bf16 %v14579_v34, %v14581_v37  ;;  %v13927_v62 = vld [vmem:[#allocation11 + $0x368] ss:$16 sps:$4 sm:$0xff]   ;;  %v13936_v22 = vld [vmem:[#allocation11 + $0x3a0] ss:$16 sps:$4 sm:$0xff]   ;;  %v13947_v37 = vld [vmem:[#allocation11 + $0x3cc] ss:$16 sps:$4 sm:$0xff]  }
 0x3e4   : > { %6474 = vmatprep.subr.bf16.mxu0 %v13878_v55  ;;  %7058 = vmatprep.subr.bf16.mxu1 %v13881_v56  ;;  %v13926_v55 = vld [vmem:[#allocation11 + $0x364] ss:$16 sps:$4 sm:$0xff]   ;;  %v13929_v56 = vld [vmem:[#allocation11 + $0x36c] ss:$16 sps:$4 sm:$0xff]  }
 0x3e5   : > { %v2684_v34 = vld [vmem:[#allocation2 + $0x298] sm:$0xff] }
 0x3e6   : > { %6475 = vmatpush1.bf16.msra.mxu0 %v13876_v0  ;;  %7059 = vmatpush1.bf16.msra.mxu1 %v13879_v1  ;;  %v2652_v0 = vld [vmem:[#allocation2 + $0x198] sm:$0xff]  ;;  %v13932_v1 = vld [vmem:[#allocation11 + $0x384] ss:$16 sps:$4 sm:$0xff]  }
 0x3e7   : > { %6476 = vmatprep.subr.bf16.mxu0 %v13884_v4  ;;  %7060 = vmatprep.subr.bf16.mxu1 %v13887_v5  ;;  %v2787_v4 = vmul.f32 %v16533_v43, %v2619_v53  ;;  %v2804_v5 = vmul.f32 %v16513_v30, %v2636_v57  ;;  %v2820_v7 = vmul.f32 %v16529_v40, %v2652_v0  ;;  %v13951_v53 = vld [vmem:[#allocation11 + $0x3e8] ss:$16 sps:$4 sm:$0xff]   ;;  %v13959_v57 = vld [vmem:[#allocation11 + $0x40c] ss:$16 sps:$4 sm:$0xff]  }
 0x3e9   : > { %6448 = vmatmul.mubr.bf16.gmra.mrb[8].mxu0 %v3269_v12  ;;  %7032 = vmatmul.mubr.bf16.gmra.mrb[8].mxu1 %v3269_v12  ;;  %v2635_v12 = vld [vmem:[#allocation2 + $0x110] sm:$0xff] }
 0x3ea   : > { %6477 = vmatpush1.bf16.msra.mxu0 %v13882_v8  ;;  %7061 = vmatpush1.bf16.msra.mxu1 %v13885_v11  ;;  %v13930_v8 = vld [vmem:[#allocation11 + $0x380] ss:$16 sps:$4 sm:$0xff]   ;;  %v2771_v11 = vmul.f32 %v16523_v33, %v2603_v2 }
 0x3eb   : > { %6457 = vmatprep.mubr.bf16.mxu0 %v3286_v17  ;;  %7041 = vmatprep.mubr.bf16.mxu1 %v3286_v17  ;;  %v13941_v17 = vld [vmem:[#allocation11 + $0x3ac] ss:$16 sps:$4 sm:$0xff]  }
 0x3ec   : > { %6478 = vmatprep.subr.bf16.mxu0 %v13890_v13  ;;  %7062 = vmatprep.subr.bf16.mxu1 %v13893_v14  ;;  %v2651_v13 = vld [vmem:[#allocation2 + $0x190] sm:$0xff] }
 0x3ed   : > { %v13938_v14 = vld [vmem:[#allocation11 + $0x3a4] ss:$16 sps:$4 sm:$0xff]  }
 0x3ee   : > { %6479 = vmatpush1.bf16.msra.mxu0 %v13888_v18  ;;  %7063 = vmatpush1.bf16.msra.mxu1 %v13891_v19  ;;  %v2999_v18 = vadd.f32 %v16587_v6, %v2787_v4  ;;  %v2668_v19 = vld [vmem:[#allocation2 + $0x218] sm:$0xff]  ;;  %v13954_v4 = vld [vmem:[#allocation11 + $0x400] ss:$16 sps:$4 sm:$0xff]  }
 0x3ef   : > { %6480 = vmatprep.subr.bf16.mxu0 %v13896_v20  ;;  %7064 = vmatprep.subr.bf16.mxu1 %v13899_v21  ;;  %v3016_v20 = vadd.f32 %v16576_v60, %v2804_v5  ;;  %v3032_v21 = vadd.f32 %v16576_v60, %v2820_v7  ;;  %v13957_v5 = vld [vmem:[#allocation11 + $0x408] ss:$16 sps:$4 sm:$0xff]  }
 0x3f0   : > { %14582 = vtanh.f32 %v2999_v18  ;;  %v2715_v18 = vld [vmem:[#allocation2 + $0x390] sm:$0xff] }
 0x3f1   : > { %6458 = vmatmul.mubr.bf16.gmra.mrb[12].mxu0 %v3285_v15  ;;  %7042 = vmatmul.mubr.bf16.gmra.mrb[12].mxu1 %v3285_v15  ;;  %v13944_v15 = vld [vmem:[#allocation11 + $0x3c4] ss:$16 sps:$4 sm:$0xff]   ;;  %14584 = vtanh.f32 %v3016_v20  ;;  %v2622_v20 = vld [vmem:[#allocation2 + $0xa8] sm:$0xff] }
 0x3f2   : > { %6481 = vmatpush1.bf16.msra.mxu0 %v13894_v28  ;;  %7065 = vmatpush1.bf16.msra.mxu1 %v13897_v29  ;;  %v2983_v28 = vadd.f32 %v16587_v6, %v2771_v11  ;;  %v2803_v29 = vmul.f32 %v16513_v30, %v2635_v12  ;;  %14586 = vtanh.f32 %v3032_v21  ;;  %v13965_v11 = vld [vmem:[#allocation11 + $0x42c] ss:$16 sps:$4 sm:$0xff]  }
 0x3f3   : > { %6500 = vmatprep.mubr.bf16.mxu0 %v3240_v38  ;;  %7084 = vmatprep.mubr.bf16.mxu1 %v3240_v38  ;;  %v2852_v38 = vmul.f32 %v16541_v50, %v2684_v34  ;;  %v2606_v34 = vld [vmem:[#allocation2 + $0x28] sm:$0xff] }
 0x3f4   : > { %6482 = vmatprep.subr.bf16.mxu0 %v13902_v36  ;;  %7066 = vmatprep.subr.bf16.mxu1 %v13905_v35  ;;  %v2819_v36 = vmul.f32 %v16529_v40, %v2651_v13  ;;  %v2836_v35 = vmul.f32 %v16545_v54, %v2668_v19  ;;  %14588 = vtanh.f32 %v2983_v28  ;;  %v2699_v13 = vld [vmem:[#allocation2 + $0x310] sm:$0xff] }
 0x3f5   : > { %v2867_v21 = vmul.f32 %v16555_v3, %v2699_v13  ;;  %v13960_v28 = vld [vmem:[#allocation11 + $0x420] ss:$16 sps:$4 sm:$0xff]  }
 0x3f6   : > { %6483 = vmatpush1.bf16.msra.mxu0 %v13900_v39  ;;  %7067 = vmatpush1.bf16.msra.mxu1 %v13903_v58  ;;  %v13942_v39 = vld [vmem:[#allocation11 + $0x3c0] ss:$16 sps:$4 sm:$0xff]   ;;  %v13945_v58 = vld [vmem:[#allocation11 + $0x3c8] ss:$16 sps:$4 sm:$0xff]  }
 0x3f7   : > { %6484 = vmatprep.subr.bf16.mxu0 %v13908_v41  ;;  %7068 = vmatprep.subr.bf16.mxu1 %v13911_v42  ;;  %v3015_v41 = vadd.f32 %v16587_v6, %v2803_v29  ;;  %v13950_v42 = vld [vmem:[#allocation11 + $0x3e4] ss:$16 sps:$4 sm:$0xff]   ;;  %v13963_v29 = vld [vmem:[#allocation11 + $0x428] ss:$16 sps:$4 sm:$0xff]  }
 0x3f9   : > { %14590 = vtanh.f32 %v3015_v41  ;;  %v2774_v41 = vmul.f32 %v16523_v33, %v2606_v34  ;;  %v14007_v34 = vld [vmem:[#allocation11 + $0x50c] ss:$16 sps:$4 sm:$0xff]  }
 0x3fa   : > { %6485 = vmatpush1.bf16.msra.mxu0 %v13906_v9  ;;  %7069 = vmatpush1.bf16.msra.mxu1 %v13909_v16  ;;  %v3031_v9 = vadd.f32 %v16587_v6, %v2819_v36  ;;  %v2667_v16 = vld [vmem:[#allocation2 + $0x210] sm:$0xff] }
 0x3fb   : > { %6486 = vmatprep.subr.bf16.mxu0 %v13914_v44  ;;  %7070 = vmatprep.subr.bf16.mxu1 %v13917_v45  ;;  %v2683_v44 = vld [vmem:[#allocation2 + $0x290] sm:$0xff]  ;;  %v3048_v45 = vadd.f32 %v16576_v60, %v2836_v35  ;;  %v13971_v35 = vld [vmem:[#allocation11 + $0x44c] ss:$16 sps:$4 sm:$0xff]  }
 0x3fc   : > { %14592 = vtanh.f32 %v3031_v9  ;;  %v13968_v36 = vld [vmem:[#allocation11 + $0x444] ss:$16 sps:$4 sm:$0xff]   ;;  %v13966_v9 = vld [vmem:[#allocation11 + $0x440] ss:$16 sps:$4 sm:$0xff]  }
 0x3fd   : > { %14594 = vtanh.f32 %v3048_v45 }
 0x3fe   : > { %6487 = vmatpush1.bf16.msra.mxu0 %v13912_v31  ;;  %7071 = vmatpush1.bf16.msra.mxu1 %v13915_v47  ;;  %v13953_v31 = vld [vmem:[#allocation11 + $0x3ec] ss:$16 sps:$4 sm:$0xff]   ;;  %v3064_v47 = vadd.f32 %v16576_v60, %v2852_v38 }
 0x3ff   : > { %6488 = vmatprep.subr.bf16.mxu0 %v13920_v48  ;;  %7072 = vmatprep.subr.bf16.mxu1 %v13923_v49  ;;  %v2700_v48 = vld [vmem:[#allocation2 + $0x318] sm:$0xff]  ;;  %v13948_v49 = vld [vmem:[#allocation11 + $0x3e0] ss:$16 sps:$4 sm:$0xff]  }
 0x400   : > { %14596 = vtanh.f32 %v3064_v47 }
 0x402   : > { %6489 = vmatpush1.bf16.msra.mxu0 %v13918_v51  ;;  %7073 = vmatpush1.bf16.msra.mxu1 %v13921_v52  ;;  %v2835_v51 = vmul.f32 %v16545_v54, %v2667_v16  ;;  %v2716_v52 = vld [vmem:[#allocation2 + $0x398] sm:$0xff] }
 0x403   : > { %6490 = vmatprep.subr.bf16.mxu0 %v13926_v55  ;;  %7074 = vmatprep.subr.bf16.mxu1 %v13929_v56  ;;  %v2851_v55 = vmul.f32 %v16541_v50, %v2683_v44  ;;  %v13956_v56 = vld [vmem:[#allocation11 + $0x404] ss:$16 sps:$4 sm:$0xff]   ;;  %v2884_v0 = vmul.f32 %v16552_v63, %v2716_v52  ;;  %v13969_v16 = vld [vmem:[#allocation11 + $0x448] ss:$16 sps:$4 sm:$0xff]   ;;  %v13972_v52 = vld [vmem:[#allocation11 + $0x460] ss:$16 sps:$4 sm:$0xff]  }
 0x405   : > { %v3063_v7 = vadd.f32 %v16587_v6, %v2851_v55  ;;  %v13980_v55 = vld [vmem:[#allocation11 + $0x484] ss:$16 sps:$4 sm:$0xff]  }
 0x406   : > { %6491 = vmatpush1.bf16.msra.mxu0 %v13924_v61  ;;  %7075 = vmatpush1.bf16.msra.mxu1 %v13927_v62  ;;  %v2868_v61 = vmul.f32 %v16555_v3, %v2700_v48  ;;  %v14583_v62 = vpop.eup %14582  ;;  %v13974_v48 = vld [vmem:[#allocation11 + $0x464] ss:$16 sps:$4 sm:$0xff]  }
 0x407   : > { %6492 = vmatprep.subr.bf16.mxu0 %v13932_v1  ;;  %7076 = vmatprep.subr.bf16.mxu1 %v13935_v32  ;;  %v14585_v1 = vpop.eup %14584  ;;  %v3047_v32 = vadd.f32 %v16587_v6, %v2835_v51 }
 0x408   : > { %v14587_v2 = vpop.eup %14586  ;;  %v3080_v12 = vadd.f32 %v16576_v60, %v2868_v61 }
 0x409   : > { %v3256_v19 = vpack.c.bf16 %v14587_v2, %v14585_v1  ;;  %14598 = vtanh.f32 %v3047_v32  ;;  %v13986_v1 = vld [vmem:[#allocation11 + $0x4a4] ss:$16 sps:$4 sm:$0xff]   ;;  %v13989_v32 = vld [vmem:[#allocation11 + $0x4ac] ss:$16 sps:$4 sm:$0xff]  }
 0x40a   : > { %6493 = vmatpush1.bf16.msra.mxu0 %v13930_v8  ;;  %7077 = vmatpush1.bf16.msra.mxu1 %v13933_v10  ;;  %v14589_v8 = vpop.eup %14588  ;;  %v13962_v10 = vld [vmem:[#allocation11 + $0x424] ss:$16 sps:$4 sm:$0xff]   ;;  %14600 = vtanh.f32 %v3063_v7  ;;  %v13987_v7 = vld [vmem:[#allocation11 + $0x4a8] ss:$16 sps:$4 sm:$0xff]  }
 0x40b   : > { %6494 = vmatprep.subr.bf16.mxu0 %v13938_v14  ;;  %7078 = vmatprep.subr.bf16.mxu1 %v13941_v17  ;;  %v3239_v14 = vpack.c.bf16 %v14583_v62, %v14589_v8  ;;  %v3096_v17 = vadd.f32 %v16576_v60, %v2884_v0  ;;  %14602 = vtanh.f32 %v3080_v12  ;;  %v2883_v60 = vmul.f32 %v16552_v63, %v2715_v18  ;;  %v13978_v62 = vld [vmem:[#allocation11 + $0x480] ss:$16 sps:$4 sm:$0xff]   ;;  %v13981_v0 = vld [vmem:[#allocation11 + $0x488] ss:$16 sps:$4 sm:$0xff]   ;;  %v13998_v18 = vld [vmem:[#allocation11 + $0x4e4] ss:$16 sps:$4 sm:$0xff]  }
 0x40d   : > { %14604 = vtanh.f32 %v3096_v17  ;;  %v3095_v44 = vadd.f32 %v16587_v6, %v2883_v60  ;;  %v13993_v17 = vld [vmem:[#allocation11 + $0x4c8] ss:$16 sps:$4 sm:$0xff]   ;;  %v14004_v60 = vld [vmem:[#allocation11 + $0x504] ss:$16 sps:$4 sm:$0xff]  }
 0x40e   : > { %6495 = vmatpush1.bf16.msra.mxu0 %v13936_v22  ;;  %7079 = vmatpush1.bf16.msra.mxu1 %v13939_v27  ;;  %v16613_v22 = vsub.s32 5, %v16503_v23  ;;  %v14591_v27 = vpop.eup %14590 }
 0x40f   : > { %6496 = vmatprep.subr.bf16.mxu0 %v13944_v15  ;;  %7080 = vmatprep.subr.bf16.mxu1 %v13947_v37  ;;  %v14593_v15 = vpop.eup %14592  ;;  %v2790_v37 = vmul.f32 %v16533_v43, %v2622_v20 }
 0x410   : > { %v14595_v38 = vpop.eup %14594  ;;  %v3255_v45 = vpack.c.bf16 %v14593_v15, %v14591_v27  ;;  %v14002_v15 = vld [vmem:[#allocation11 + $0x500] ss:$16 sps:$4 sm:$0xff]  }
 0x412   : > { %6497 = vmatpush1.bf16.msra.mxu0 %v13942_v39  ;;  %7081 = vmatpush1.bf16.msra.mxu1 %v13945_v58  ;;  %v14597_v39 = vpop.eup %14596  ;;  %v3079_v58 = vadd.f32 %v16587_v6, %v2867_v21 }
 0x413   : > { %6498 = vmatprep.subr.bf16.mxu0 %v13950_v42  ;;  %7082 = vmatprep.subr.bf16.mxu1 %v13953_v31  ;;  %v16621_v42 = vrot.slane %v16511_v26, %v16613_v22  ;;  %v3272_v47 = vpack.c.bf16 %v14597_v39, %v14595_v38  ;;  %v14599_v51 = vpop.eup %14598  ;;  %v14008_v38 = vld [vmem:[#allocation11 + $0x520] ss:$16 sps:$4 sm:$0xff]   ;;  %v14011_v39 = vld [vmem:[#allocation11 + $0x528] ss:$16 sps:$4 sm:$0xff]  }
 0x414   : > { %14606 = vtanh.f32 %v3079_v58  ;;  %v14601_v6 = vpop.eup %14600  ;;  %v14016_v58 = vld [vmem:[#allocation11 + $0x544] ss:$16 sps:$4 sm:$0xff]  }
 0x415   : > { %v3002_v31 = vadd.f32 %v16621_v42, %v2790_v37  ;;  %v2986_v26 = vadd.f32 %v16621_v42, %v2774_v41  ;;  %14608 = vtanh.f32 %v3095_v44  ;;  %v3271_v2 = vpack.c.bf16 %v14601_v6, %v14599_v51  ;;  %v14013_v37 = vld [vmem:[#allocation11 + $0x52c] ss:$16 sps:$4 sm:$0xff]   ;;  %v14017_v44 = vld [vmem:[#allocation11 + $0x548] ss:$16 sps:$4 sm:$0xff]   ;;  %v2605_v51 = vld [vmem:[#allocation2 + $0x20] sm:$0xff] }
 0x416   : > { %6499 = vmatpush1.bf16.msra.mxu0 %v13948_v49  ;;  %7083 = vmatpush1.bf16.msra.mxu1 %v13951_v53  ;;  %v13977_v49 = vld [vmem:[#allocation11 + $0x46c] ss:$16 sps:$4 sm:$0xff]   ;;  %v13975_v53 = vld [vmem:[#allocation11 + $0x468] ss:$16 sps:$4 sm:$0xff]  }
 0x417   : > { %6541 = vmatprep.subr.bf16.mxu0 %v13956_v56  ;;  %7125 = vmatprep.subr.bf16.mxu1 %v13959_v57  ;;  %v13983_v56 = vld [vmem:[#allocation11 + $0x48c] ss:$16 sps:$4 sm:$0xff]   ;;  %14610 = vtanh.f32 %v3002_v31  ;;  %v14603_v57 = vpop.eup %14602 }
 0x418   : > { %v14605_v61 = vpop.eup %14604  ;;  %14612 = vtanh.f32 %v2986_v26  ;;  %v14019_v41 = vld [vmem:[#allocation11 + $0x54c] ss:$16 sps:$4 sm:$0xff]   ;;  %v14020_v26 = vld [vmem:[#allocation11 + $0x560] ss:$16 sps:$4 sm:$0xff]  }
 0x419   : > { %6501 = vmatmul.mubr.bf16.vlgmr.msra.gmra.mrb[0].mxu0 %v3239_v14  ;;  %7085 = vmatmul.mubr.bf16.vlgmr.msra.gmra.mrb[0].mxu1 %v3239_v14  ;;  %v13990_v14 = vld [vmem:[#allocation11 + $0x4c0] ss:$16 sps:$4 sm:$0xff]   ;;  %v2654_v31 = vld [vmem:[#allocation2 + $0x1a8] sm:$0xff] }
 0x41a   : > { %6510 = vmatprep.mubr.bf16.mxu0 %v3256_v19  ;;  %6542 = vmatpush1.bf16.msra.mxu0 %v13954_v4  ;;  %v3288_v4 = vpack.c.bf16 %v14605_v61, %v14603_v57  ;;  %v16631_v57 = vld [vmem:[#allocation10] sm:$0xff] }
 0x41b   : > { %7094 = vmatprep.mubr.bf16.mxu1 %v3256_v19  ;;  %7126 = vmatpush1.bf16.msra.mxu1 %v13957_v5  ;;  %v13984_v5 = vld [vmem:[#allocation11 + $0x4a0] ss:$16 sps:$4 sm:$0xff]   ;;  %v14001_v19 = vld [vmem:[#allocation11 + $0x4ec] ss:$16 sps:$4 sm:$0xff]  }
 0x41c   : > { %6543 = vmatprep.subr.bf16.mxu0 %v13962_v10  ;;  %7127 = vmatprep.subr.bf16.mxu1 %v13965_v11  ;;  %v13992_v10 = vld [vmem:[#allocation11 + $0x4c4] ss:$16 sps:$4 sm:$0xff]   ;;  %v13995_v11 = vld [vmem:[#allocation11 + $0x4cc] ss:$16 sps:$4 sm:$0xff]  }
 0x41e   : > { %6544 = vmatpush1.bf16.msra.mxu0 %v13960_v28  ;;  %v14607_v8 = vpop.eup %14606  ;;  %v13996_v28 = vld [vmem:[#allocation11 + $0x4e0] ss:$16 sps:$4 sm:$0xff]  }
 0x41f   : > { %7128 = vmatpush1.bf16.msra.mxu1 %v13963_v29  ;;  %6545 = vmatprep.subr.bf16.mxu0 %v13968_v36  ;;  %v14609_v12 = vpop.eup %14608  ;;  %v13999_v29 = vld [vmem:[#allocation11 + $0x4e8] ss:$16 sps:$4 sm:$0xff]  }
 0x420   : > { %7129 = vmatprep.subr.bf16.mxu1 %v13971_v35  ;;  %v3287_v21 = vpack.c.bf16 %v14609_v12, %v14607_v8  ;;  %v14005_v36 = vld [vmem:[#allocation11 + $0x508] ss:$16 sps:$4 sm:$0xff]   ;;  %v14010_v35 = vld [vmem:[#allocation11 + $0x524] ss:$16 sps:$4 sm:$0xff]   ;;  %v14037_v12 = vld [vmem:[#allocation11 + $0x5ac] ss:$16 sps:$4 sm:$0xff]  }
 0x421   : > { %6511 = vmatmul.mubr.bf16.gmra.mrb[4].mxu0 %v3255_v45  ;;  %7095 = vmatmul.mubr.bf16.gmra.mrb[4].mxu1 %v3255_v45  ;;  %v14611_v13 = vpop.eup %14610  ;;  %v2638_v45 = vld [vmem:[#allocation2 + $0x128] sm:$0xff]  ;;  %v14034_v8 = vld [vmem:[#allocation11 + $0x5a4] ss:$16 sps:$4 sm:$0xff]  }
 0x422   : > { %6520 = vmatprep.mubr.bf16.mxu0 %v3272_v47  ;;  %6546 = vmatpush1.bf16.msra.mxu0 %v13966_v9  ;;  %v14613_v20 = vpop.eup %14612  ;;  %v2621_v9 = vld [vmem:[#allocation2 + $0xa0] sm:$0xff]  ;;  %v2806_v6 = vmul.f32 %v16513_v30, %v2638_v45 }
 0x423   : > { %7104 = vmatprep.mubr.bf16.mxu1 %v3272_v47  ;;  %7130 = vmatpush1.bf16.msra.mxu1 %v13969_v16  ;;  %v3242_v27 = vpack.c.bf16 %v14611_v13, %v14613_v20  ;;  %v14014_v16 = vld [vmem:[#allocation11 + $0x540] ss:$16 sps:$4 sm:$0xff]   ;;  %v14022_v47 = vld [vmem:[#allocation11 + $0x564] ss:$16 sps:$4 sm:$0xff]  }
 0x424   : > { %6547 = vmatprep.subr.bf16.mxu0 %v13974_v48  ;;  %7131 = vmatprep.subr.bf16.mxu1 %v13977_v49  ;;  %v16627_v48 = vsub.s32 4, %v16503_v23  ;;  %v14025_v49 = vld [vmem:[#allocation11 + $0x56c] ss:$16 sps:$4 sm:$0xff]   ;;  %v14040_v20 = vld [vmem:[#allocation11 + $0x5c4] ss:$16 sps:$4 sm:$0xff]  }
 0x425   : > { %v14044_v45 = vld [vmem:[#allocation11 + $0x5e0] ss:$16 sps:$4 sm:$0xff]  }
 0x426   : > { %6548 = vmatpush1.bf16.msra.mxu0 %v13972_v52  ;;  %v2789_v52 = vmul.f32 %v16533_v43, %v2621_v9  ;;  %v16635_v61 = vrot.slane %v16631_v57, %v16627_v48  ;;  %v2718_v9 = vld [vmem:[#allocation2 + $0x3a8] sm:$0xff] }
 0x427   : > { %7132 = vmatpush1.bf16.msra.mxu1 %v13975_v53  ;;  %6549 = vmatprep.subr.bf16.mxu0 %v13980_v55  ;;  %v14023_v53 = vld [vmem:[#allocation11 + $0x568] ss:$16 sps:$4 sm:$0xff]   ;;  %v14028_v55 = vld [vmem:[#allocation11 + $0x584] ss:$16 sps:$4 sm:$0xff]  }
 0x428   : > { %7133 = vmatprep.subr.bf16.mxu1 %v13983_v56  ;;  %v14031_v56 = vld [vmem:[#allocation11 + $0x58c] ss:$16 sps:$4 sm:$0xff]  }
 0x429   : > { %6521 = vmatmul.mubr.bf16.gmra.mrb[8].mxu0 %v3271_v2  ;;  %7105 = vmatmul.mubr.bf16.gmra.mrb[8].mxu1 %v3271_v2  ;;  %v2653_v2 = vld [vmem:[#allocation2 + $0x1a0] sm:$0xff] }
 0x42a   : > { %6530 = vmatprep.mubr.bf16.mxu0 %v3288_v4  ;;  %6550 = vmatpush1.bf16.msra.mxu0 %v13978_v62  ;;  %v2822_v62 = vmul.f32 %v16529_v40, %v2654_v31  ;;  %v14047_v31 = vld [vmem:[#allocation11 + $0x5e8] ss:$16 sps:$4 sm:$0xff]  }
 0x42b   : > { %7114 = vmatprep.mubr.bf16.mxu1 %v3288_v4  ;;  %7134 = vmatpush1.bf16.msra.mxu1 %v13981_v0  ;;  %v2773_v0 = vmul.f32 %v16523_v33, %v2605_v51  ;;  %v2670_v4 = vld [vmem:[#allocation2 + $0x228] sm:$0xff] }
 0x42c   : > { %6551 = vmatprep.subr.bf16.mxu0 %v13986_v1  ;;  %7135 = vmatprep.subr.bf16.mxu1 %v13989_v32  ;;  %v3001_v1 = vadd.f32 %v16635_v61, %v2789_v52  ;;  %v2637_v32 = vld [vmem:[#allocation2 + $0x120] sm:$0xff] }
 0x42d   : > { %v2985_v13 = vadd.f32 %v16635_v61, %v2773_v0 }
 0x42e   : > { %6552 = vmatpush1.bf16.msra.mxu0 %v13984_v5  ;;  %v14026_v5 = vld [vmem:[#allocation11 + $0x580] ss:$16 sps:$4 sm:$0xff]   ;;  %14614 = vtanh.f32 %v3001_v1 }
 0x42f   : > { %7136 = vmatpush1.bf16.msra.mxu1 %v13987_v7  ;;  %6553 = vmatprep.subr.bf16.mxu0 %v13992_v10  ;;  %v14029_v7 = vld [vmem:[#allocation11 + $0x588] ss:$16 sps:$4 sm:$0xff]   ;;  %v3018_v10 = vadd.f32 %v16621_v42, %v2806_v6  ;;  %v2701_v1 = vld [vmem:[#allocation2 + $0x320] sm:$0xff] }
 0x430   : > { %7137 = vmatprep.subr.bf16.mxu1 %v13995_v11  ;;  %v3034_v11 = vadd.f32 %v16621_v42, %v2822_v62  ;;  %v14050_v62 = vld [vmem:[#allocation11 + $0x600] ss:$16 sps:$4 sm:$0xff]  }
 0x431   : > { %6531 = vmatmul.mubr.bf16.gmra.mrb[12].mxu0 %v3287_v21  ;;  %7115 = vmatmul.mubr.bf16.gmra.mrb[12].mxu1 %v3287_v21  ;;  %v2821_v21 = vmul.f32 %v16529_v40, %v2653_v2  ;;  %14616 = vtanh.f32 %v3018_v10 }
 0x432   : > { %6554 = vmatpush1.bf16.msra.mxu0 %v13990_v14  ;;  %6573 = vmatprep.mubr.bf16.mxu0 %v3242_v27  ;;  %v2805_v14 = vmul.f32 %v16513_v30, %v2637_v32  ;;  %14618 = vtanh.f32 %v3034_v11  ;;  %v2717_v32 = vld [vmem:[#allocation2 + $0x3a0] sm:$0xff]  ;;  %v14061_v11 = vld [vmem:[#allocation11 + $0x62c] ss:$16 sps:$4 sm:$0xff]  }
 0x433   : > { %7138 = vmatpush1.bf16.msra.mxu1 %v13993_v17  ;;  %7157 = vmatprep.mubr.bf16.mxu1 %v3242_v27  ;;  %v2686_v17 = vld [vmem:[#allocation2 + $0x2a8] sm:$0xff]  ;;  %14620 = vtanh.f32 %v2985_v13 }
 0x434   : > { %6555 = vmatprep.subr.bf16.mxu0 %v13998_v18  ;;  %7139 = vmatprep.subr.bf16.mxu1 %v14001_v19  ;;  %v14032_v18 = vld [vmem:[#allocation11 + $0x5a0] ss:$16 sps:$4 sm:$0xff]   ;;  %v14035_v19 = vld [vmem:[#allocation11 + $0x5a8] ss:$16 sps:$4 sm:$0xff]   ;;  %v14043_v27 = vld [vmem:[#allocation11 + $0x5cc] ss:$16 sps:$4 sm:$0xff]  }
 0x436   : > { %6556 = vmatpush1.bf16.msra.mxu0 %v13996_v28  ;;  %v2838_v28 = vmul.f32 %v16545_v54, %v2670_v4  ;;  %v14053_v4 = vld [vmem:[#allocation11 + $0x608] ss:$16 sps:$4 sm:$0xff]  }
 0x437   : > { %7140 = vmatpush1.bf16.msra.mxu1 %v13999_v29  ;;  %6557 = vmatprep.subr.bf16.mxu0 %v14004_v60  ;;  %v2854_v29 = vmul.f32 %v16541_v50, %v2686_v17  ;;  %v2669_v60 = vld [vmem:[#allocation2 + $0x220] sm:$0xff]  ;;  %v16661_v17 = vsub.s32 7, %v16503_v23 }
 0x438   : > { %7141 = vmatprep.subr.bf16.mxu1 %v14007_v34  ;;  %v3017_v34 = vadd.f32 %v16635_v61, %v2805_v14  ;;  %v14615_v52 = vpop.eup %14614  ;;  %v2869_v14 = vmul.f32 %v16555_v3, %v2701_v1  ;;  %v14082_v1 = vld [vmem:[#allocation11 + $0x6a4] ss:$16 sps:$4 sm:$0xff]  }
 0x43a   : > { %6558 = vmatpush1.bf16.msra.mxu0 %v14002_v15  ;;  %v2685_v15 = vld [vmem:[#allocation2 + $0x2a0] sm:$0xff]  ;;  %14622 = vtanh.f32 %v3017_v34 }
 0x43b   : > { %7142 = vmatpush1.bf16.msra.mxu1 %v14005_v36  ;;  %6559 = vmatprep.subr.bf16.mxu0 %v14010_v35  ;;  %v14038_v36 = vld [vmem:[#allocation11 + $0x5c0] ss:$16 sps:$4 sm:$0xff]   ;;  %v14041_v35 = vld [vmem:[#allocation11 + $0x5c8] ss:$16 sps:$4 sm:$0xff]   ;;  %v14617_v6 = vpop.eup %14616 }
 0x43c   : > { %7143 = vmatprep.subr.bf16.mxu1 %v14013_v37  ;;  %v14046_v37 = vld [vmem:[#allocation11 + $0x5e4] ss:$16 sps:$4 sm:$0xff]  }
 0x43e   : > { %6560 = vmatpush1.bf16.msra.mxu0 %v14008_v38  ;;  %v3033_v38 = vadd.f32 %v16635_v61, %v2821_v21 }
 0x43f   : > { %7144 = vmatpush1.bf16.msra.mxu1 %v14011_v39  ;;  %6561 = vmatprep.subr.bf16.mxu0 %v14016_v58  ;;  %v2702_v39 = vld [vmem:[#allocation2 + $0x328] sm:$0xff] }
 0x440   : > { %7145 = vmatprep.subr.bf16.mxu1 %v14019_v41  ;;  %v14049_v58 = vld [vmem:[#allocation11 + $0x5ec] ss:$16 sps:$4 sm:$0xff]   ;;  %v3050_v41 = vadd.f32 %v16621_v42, %v2838_v28  ;;  %14624 = vtanh.f32 %v3033_v38  ;;  %v2870_v51 = vmul.f32 %v16555_v3, %v2702_v39  ;;  %v14062_v38 = vld [vmem:[#allocation11 + $0x640] ss:$16 sps:$4 sm:$0xff]  }
 0x442   : > { %6562 = vmatpush1.bf16.msra.mxu0 %v14014_v16  ;;  %v3066_v16 = vadd.f32 %v16621_v42, %v2854_v29  ;;  %14626 = vtanh.f32 %v3050_v41  ;;  %v14059_v29 = vld [vmem:[#allocation11 + $0x628] ss:$16 sps:$4 sm:$0xff]  }
 0x443   : > { %7146 = vmatpush1.bf16.msra.mxu1 %v14017_v44  ;;  %6563 = vmatprep.subr.bf16.mxu0 %v14022_v47  ;;  %v2837_v44 = vmul.f32 %v16545_v54, %v2669_v60  ;;  %v14052_v47 = vld [vmem:[#allocation11 + $0x604] ss:$16 sps:$4 sm:$0xff]   ;;  %v14065_v41 = vld [vmem:[#allocation11 + $0x648] ss:$16 sps:$4 sm:$0xff]  }
 0x444   : > { %7147 = vmatprep.subr.bf16.mxu1 %v14025_v49  ;;  %v2853_v49 = vmul.f32 %v16541_v50, %v2685_v15  ;;  %14628 = vtanh.f32 %v3066_v16  ;;  %v14064_v60 = vld [vmem:[#allocation11 + $0x644] ss:$16 sps:$4 sm:$0xff]   ;;  %v14067_v15 = vld [vmem:[#allocation11 + $0x64c] ss:$16 sps:$4 sm:$0xff]  }
 0x446   : > { %6564 = vmatpush1.bf16.msra.mxu0 %v14020_v26  ;;  %v14055_v26 = vld [vmem:[#allocation11 + $0x60c] ss:$16 sps:$4 sm:$0xff]   ;;  %v3065_v0 = vadd.f32 %v16635_v61, %v2853_v49  ;;  %v14068_v49 = vld [vmem:[#allocation11 + $0x660] ss:$16 sps:$4 sm:$0xff]  }
 0x447   : > { %7148 = vmatpush1.bf16.msra.mxu1 %v14023_v53  ;;  %6565 = vmatprep.subr.bf16.mxu0 %v14028_v55  ;;  %v2886_v53 = vmul.f32 %v16552_v63, %v2718_v9  ;;  %v3049_v55 = vadd.f32 %v16635_v61, %v2837_v44  ;;  %v14070_v9 = vld [vmem:[#allocation11 + $0x664] ss:$16 sps:$4 sm:$0xff]  }
 0x448   : > { %7149 = vmatprep.subr.bf16.mxu1 %v14031_v56  ;;  %v14619_v56 = vpop.eup %14618 }
 0x449   : > { %v14621_v2 = vpop.eup %14620  ;;  %v3258_v13 = vpack.c.bf16 %v14619_v56, %v14617_v6  ;;  %14630 = vtanh.f32 %v3049_v55  ;;  %v14074_v56 = vld [vmem:[#allocation11 + $0x680] ss:$16 sps:$4 sm:$0xff]  }
 0x44a   : > { %6566 = vmatpush1.bf16.msra.mxu0 %v14026_v5  ;;  %v14058_v5 = vld [vmem:[#allocation11 + $0x624] ss:$16 sps:$4 sm:$0xff]   ;;  %v3241_v10 = vpack.c.bf16 %v14615_v52, %v14621_v2  ;;  %14632 = vtanh.f32 %v3065_v0 }
 0x44b   : > { %7150 = vmatpush1.bf16.msra.mxu1 %v14029_v7  ;;  %6567 = vmatprep.subr.bf16.mxu0 %v14034_v8  ;;  %v3082_v7 = vadd.f32 %v16621_v42, %v2870_v51  ;;  %v2624_v8 = vld [vmem:[#allocation2 + $0xb8] sm:$0xff]  ;;  %v14076_v52 = vld [vmem:[#allocation11 + $0x684] ss:$16 sps:$4 sm:$0xff]  }
 0x44c   : > { %7151 = vmatprep.subr.bf16.mxu1 %v14037_v12  ;;  %v3098_v12 = vadd.f32 %v16621_v42, %v2886_v53  ;;  %v14056_v42 = vld [vmem:[#allocation11 + $0x620] ss:$16 sps:$4 sm:$0xff]   ;;  %v14071_v51 = vld [vmem:[#allocation11 + $0x668] ss:$16 sps:$4 sm:$0xff]   ;;  %v14079_v53 = vld [vmem:[#allocation11 + $0x68c] ss:$16 sps:$4 sm:$0xff]  }
 0x44d   : > { %14634 = vtanh.f32 %v3082_v7  ;;  %v14083_v7 = vld [vmem:[#allocation11 + $0x6a8] ss:$16 sps:$4 sm:$0xff]  }
 0x44e   : > { %6568 = vmatpush1.bf16.msra.mxu0 %v14032_v18  ;;  %v14623_v18 = vpop.eup %14622  ;;  %14636 = vtanh.f32 %v3098_v12  ;;  %v14086_v12 = vld [vmem:[#allocation11 + $0x6c0] ss:$16 sps:$4 sm:$0xff]  }
 0x44f   : > { %7152 = vmatpush1.bf16.msra.mxu1 %v14035_v19  ;;  %6569 = vmatprep.subr.bf16.mxu0 %v14040_v20  ;;  %v2885_v19 = vmul.f32 %v16552_v63, %v2717_v32  ;;  %v2608_v20 = vld [vmem:[#allocation2 + $0x38] sm:$0xff]  ;;  %v14625_v21 = vpop.eup %14624 }
 0x450   : > { %7153 = vmatprep.subr.bf16.mxu1 %v14043_v27  ;;  %v2792_v27 = vmul.f32 %v16533_v43, %v2624_v8  ;;  %v14627_v28 = vpop.eup %14626  ;;  %v14085_v32 = vld [vmem:[#allocation11 + $0x6ac] ss:$16 sps:$4 sm:$0xff]   ;;  %v14088_v8 = vld [vmem:[#allocation11 + $0x6c4] ss:$16 sps:$4 sm:$0xff]  }
 0x451   : > { %v14629_v34 = vpop.eup %14628  ;;  %v3097_v39 = vadd.f32 %v16635_v61, %v2885_v19 }
 0x452   : > { %6570 = vmatpush1.bf16.msra.mxu0 %v14038_v36  ;;  %v3081_v36 = vadd.f32 %v16635_v61, %v2869_v14  ;;  %v3274_v44 = vpack.c.bf16 %v14629_v34, %v14627_v28  ;;  %v14100_v28 = vld [vmem:[#allocation11 + $0x704] ss:$16 sps:$4 sm:$0xff]   ;;  %v14101_v34 = vld [vmem:[#allocation11 + $0x708] ss:$16 sps:$4 sm:$0xff]  }
 0x453   : > { %7154 = vmatpush1.bf16.msra.mxu1 %v14041_v35  ;;  %6571 = vmatprep.subr.bf16.mxu0 %v14046_v37  ;;  %v2776_v35 = vmul.f32 %v16523_v33, %v2608_v20  ;;  %v16669_v37 = vrot.slane %v16631_v57, %v16661_v17  ;;  %v14094_v20 = vld [vmem:[#allocation11 + $0x6e4] ss:$16 sps:$4 sm:$0xff]  }
 0x454   : > { %7155 = vmatprep.subr.bf16.mxu1 %v14049_v58  ;;  %v3257_v58 = vpack.c.bf16 %v14625_v21, %v14623_v18  ;;  %14638 = vtanh.f32 %v3081_v36  ;;  %v14089_v18 = vld [vmem:[#allocation11 + $0x6c8] ss:$16 sps:$4 sm:$0xff]   ;;  %v14097_v21 = vld [vmem:[#allocation11 + $0x6ec] ss:$16 sps:$4 sm:$0xff]  }
 0x455   : > { %v3004_v16 = vadd.f32 %v16669_v37, %v2792_v27  ;;  %14640 = vtanh.f32 %v3097_v39  ;;  %v14095_v27 = vld [vmem:[#allocation11 + $0x6e8] ss:$16 sps:$4 sm:$0xff]   ;;  %v14109_v36 = vld [vmem:[#allocation11 + $0x72c] ss:$16 sps:$4 sm:$0xff]   ;;  %v14112_v39 = vld [vmem:[#allocation11 + $0x744] ss:$16 sps:$4 sm:$0xff]  }
 0x456   : > { %6572 = vmatpush1.bf16.msra.mxu0 %v14044_v45  ;;  %v14073_v45 = vld [vmem:[#allocation11 + $0x66c] ss:$16 sps:$4 sm:$0xff]  }
 0x457   : > { %7156 = vmatpush1.bf16.msra.mxu1 %v14047_v31  ;;  %6614 = vmatprep.subr.bf16.mxu0 %v14052_v47  ;;  %v2988_v31 = vadd.f32 %v16669_v37, %v2776_v35  ;;  %v14631_v47 = vpop.eup %14630  ;;  %14642 = vtanh.f32 %v3004_v16  ;;  %v14104_v35 = vld [vmem:[#allocation11 + $0x720] ss:$16 sps:$4 sm:$0xff]   ;;  %v14113_v16 = vld [vmem:[#allocation11 + $0x748] ss:$16 sps:$4 sm:$0xff]  }
 0x458   : > { %7198 = vmatprep.subr.bf16.mxu1 %v14055_v26  ;;  %v14633_v61 = vpop.eup %14632 }
 0x459   : > { %6574 = vmatmul.mubr.bf16.vlgmr.msra.gmra.mrb[0].mxu0 %v3241_v10  ;;  %v14635_v26 = vpop.eup %14634  ;;  %14644 = vtanh.f32 %v2988_v31  ;;  %v3273_v55 = vpack.c.bf16 %v14633_v61, %v14631_v47  ;;  %v14121_v31 = vld [vmem:[#allocation11 + $0x76c] ss:$16 sps:$4 sm:$0xff]   ;;  %v16675_v61 = vsub.s32 6, %v16503_v23 }
 0x45a   : > { %7158 = vmatmul.mubr.bf16.vlgmr.msra.gmra.mrb[0].mxu1 %v3241_v10  ;;  %6583 = vmatprep.mubr.bf16.mxu0 %v3258_v13  ;;  %v14637_v6 = vpop.eup %14636  ;;  %v2656_v47 = vld [vmem:[#allocation2 + $0x1b8] sm:$0xff] }
 0x45b   : > { %6615 = vmatpush1.bf16.msra.mxu0 %v14050_v62  ;;  %7167 = vmatprep.mubr.bf16.mxu1 %v3258_v13  ;;  %v14077_v62 = vld [vmem:[#allocation11 + $0x688] ss:$16 sps:$4 sm:$0xff]   ;;  %v3290_v0 = vpack.c.bf16 %v14637_v6, %v14635_v26  ;;  %v14124_v6 = vld [vmem:[#allocation11 + $0x784] ss:$16 sps:$4 sm:$0xff]   ;;  %v14127_v23 = vld [vmem:[#allocation11 + $0x78c] ss:$16 sps:$4 sm:$0xff]  }
 0x45c   : > { %7199 = vmatpush1.bf16.msra.mxu1 %v14053_v4  ;;  %6616 = vmatprep.subr.bf16.mxu0 %v14058_v5  ;;  %v14080_v4 = vld [vmem:[#allocation11 + $0x6a0] ss:$16 sps:$4 sm:$0xff]  }
 0x45d   : > { %7200 = vmatprep.subr.bf16.mxu1 %v14061_v11  ;;  %v14091_v11 = vld [vmem:[#allocation11 + $0x6cc] ss:$16 sps:$4 sm:$0xff]  }
 0x45e   : > { %v14639_v2 = vpop.eup %14638 }
 0x45f   : > { %6617 = vmatpush1.bf16.msra.mxu0 %v14056_v42  ;;  %v14641_v5 = vpop.eup %14640  ;;  %v14092_v42 = vld [vmem:[#allocation11 + $0x6e0] ss:$16 sps:$4 sm:$0xff]  }
 0x460   : > { %7201 = vmatpush1.bf16.msra.mxu1 %v14059_v29  ;;  %6618 = vmatprep.subr.bf16.mxu0 %v14064_v60  ;;  %v3289_v14 = vpack.c.bf16 %v14641_v5, %v14639_v2  ;;  %v14103_v29 = vld [vmem:[#allocation11 + $0x70c] ss:$16 sps:$4 sm:$0xff]   ;;  %v14098_v60 = vld [vmem:[#allocation11 + $0x700] ss:$16 sps:$4 sm:$0xff]   ;;  %v14125_v5 = vld [vmem:[#allocation11 + $0x788] ss:$16 sps:$4 sm:$0xff]  }
 0x461   : > { %6584 = vmatmul.mubr.bf16.gmra.mrb[4].mxu0 %v3257_v58  ;;  %7202 = vmatprep.subr.bf16.mxu1 %v14067_v15  ;;  %v14643_v10 = vpop.eup %14642  ;;  %v14106_v15 = vld [vmem:[#allocation11 + $0x724] ss:$16 sps:$4 sm:$0xff]  }
 0x462   : > { %7168 = vmatmul.mubr.bf16.gmra.mrb[4].mxu1 %v3257_v58  ;;  %6593 = vmatprep.mubr.bf16.mxu0 %v3274_v44  ;;  %v14115_v58 = vld [vmem:[#allocation11 + $0x74c] ss:$16 sps:$4 sm:$0xff]  }
 0x463   : > { %6619 = vmatpush1.bf16.msra.mxu0 %v14062_v38  ;;  %7177 = vmatprep.mubr.bf16.mxu1 %v3274_v44  ;;  %v14645_v13 = vpop.eup %14644  ;;  %v14107_v38 = vld [vmem:[#allocation11 + $0x728] ss:$16 sps:$4 sm:$0xff]   ;;  %v14118_v44 = vld [vmem:[#allocation11 + $0x764] ss:$16 sps:$4 sm:$0xff]  }
 0x464   : > { %7203 = vmatpush1.bf16.msra.mxu1 %v14065_v41  ;;  %6620 = vmatprep.subr.bf16.mxu0 %v14070_v9  ;;  %v3244_v19 = vpack.c.bf16 %v14643_v10, %v14645_v13  ;;  %v2623_v41 = vld [vmem:[#allocation2 + $0xb0] sm:$0xff]  ;;  %v14133_v10 = vld [vmem:[#allocation11 + $0x7ac] ss:$16 sps:$4 sm:$0xff]  }
 0x465   : > { %7204 = vmatprep.subr.bf16.mxu1 %v14073_v45  ;;  %v14110_v9 = vld [vmem:[#allocation11 + $0x740] ss:$16 sps:$4 sm:$0xff]   ;;  %v2640_v45 = vld [vmem:[#allocation2 + $0x138] sm:$0xff]  ;;  %v2791_v26 = vmul.f32 %v16533_v43, %v2623_v41 }
 0x466   : > { %v2688_v13 = vld [vmem:[#allocation2 + $0x2b8] sm:$0xff] }
 0x467   : > { %6621 = vmatpush1.bf16.msra.mxu0 %v14068_v49  ;;  %v2607_v49 = vld [vmem:[#allocation2 + $0x30] sm:$0xff]  ;;  %v14145_v41 = vld [vmem:[#allocation11 + $0x7ec] ss:$16 sps:$4 sm:$0xff]  }
 0x468   : > { %7205 = vmatpush1.bf16.msra.mxu1 %v14071_v51  ;;  %6622 = vmatprep.subr.bf16.mxu0 %v14076_v52  ;;  %v14116_v51 = vld [vmem:[#allocation11 + $0x760] ss:$16 sps:$4 sm:$0xff]   ;;  %v2808_v52 = vmul.f32 %v16513_v30, %v2640_v45 }
 0x469   : > { %6594 = vmatmul.mubr.bf16.gmra.mrb[8].mxu0 %v3273_v55  ;;  %7206 = vmatprep.subr.bf16.mxu1 %v14079_v53  ;;  %v14119_v53 = vld [vmem:[#allocation11 + $0x768] ss:$16 sps:$4 sm:$0xff]   ;;  %v14140_v45 = vld [vmem:[#allocation11 + $0x7e0] ss:$16 sps:$4 sm:$0xff]  }
 0x46a   : > { %7178 = vmatmul.mubr.bf16.gmra.mrb[8].mxu1 %v3273_v55  ;;  %6603 = vmatprep.mubr.bf16.mxu0 %v3290_v0  ;;  %v16681_v55 = vrot.slane %v16631_v57, %v16675_v61  ;;  %v3020_v2 = vadd.f32 %v16669_v37, %v2808_v52 }
 0x46b   : > { %6623 = vmatpush1.bf16.msra.mxu0 %v14074_v56  ;;  %7187 = vmatprep.mubr.bf16.mxu1 %v3290_v0  ;;  %v2824_v56 = vmul.f32 %v16529_v40, %v2656_v47 }
 0x46c   : > { %7207 = vmatpush1.bf16.msra.mxu1 %v14077_v62  ;;  %6624 = vmatprep.subr.bf16.mxu0 %v14082_v1  ;;  %v2775_v62 = vmul.f32 %v16523_v33, %v2607_v49  ;;  %v3003_v0 = vadd.f32 %v16681_v55, %v2791_v26  ;;  %v2639_v1 = vld [vmem:[#allocation2 + $0x130] sm:$0xff]  ;;  %v14143_v49 = vld [vmem:[#allocation11 + $0x7e8] ss:$16 sps:$4 sm:$0xff]  }
 0x46d   : > { %7208 = vmatprep.subr.bf16.mxu1 %v14085_v32  ;;  %v14122_v32 = vld [vmem:[#allocation11 + $0x780] ss:$16 sps:$4 sm:$0xff]   ;;  %v3036_v57 = vadd.f32 %v16669_v37, %v2824_v56  ;;  %v14148_v26 = vld [vmem:[#allocation11 + $0x804] ss:$16 sps:$4 sm:$0xff]  }
 0x46e   : > { %14646 = vtanh.f32 %v3003_v0 }
 0x46f   : > { %6625 = vmatpush1.bf16.msra.mxu0 %v14080_v4  ;;  %v2655_v4 = vld [vmem:[#allocation2 + $0x1b0] sm:$0xff]  ;;  %14648 = vtanh.f32 %v3020_v2 }
 0x470   : > { %7209 = vmatpush1.bf16.msra.mxu1 %v14083_v7  ;;  %6626 = vmatprep.subr.bf16.mxu0 %v14088_v8  ;;  %v14130_v7 = vld [vmem:[#allocation11 + $0x7a4] ss:$16 sps:$4 sm:$0xff]   ;;  %v2672_v8 = vld [vmem:[#allocation2 + $0x238] sm:$0xff]  ;;  %14650 = vtanh.f32 %v3036_v57  ;;  %v14146_v2 = vld [vmem:[#allocation11 + $0x800] ss:$16 sps:$4 sm:$0xff]  }
 0x471   : > { %6604 = vmatmul.mubr.bf16.gmra.mrb[12].mxu0 %v3289_v14  ;;  %7210 = vmatprep.subr.bf16.mxu1 %v14091_v11  ;;  %v2987_v11 = vadd.f32 %v16681_v55, %v2775_v62 }
 0x472   : > { %7188 = vmatmul.mubr.bf16.gmra.mrb[12].mxu1 %v3289_v14  ;;  %6646 = vmatprep.mubr.bf16.mxu0 %v3244_v19  ;;  %v2823_v14 = vmul.f32 %v16529_v40, %v2655_v4 }
 0x473   : > { %6627 = vmatpush1.bf16.msra.mxu0 %v14086_v12  ;;  %7230 = vmatprep.mubr.bf16.mxu1 %v3244_v19  ;;  %v2807_v12 = vmul.f32 %v16513_v30, %v2639_v1  ;;  %v2840_v19 = vmul.f32 %v16545_v54, %v2672_v8  ;;  %14652 = vtanh.f32 %v2987_v11  ;;  %v2703_v1 = vld [vmem:[#allocation2 + $0x330] sm:$0xff]  ;;  %v14157_v11 = vld [vmem:[#allocation11 + $0x82c] ss:$16 sps:$4 sm:$0xff]  }
 0x474   : > { %7211 = vmatpush1.bf16.msra.mxu1 %v14089_v18  ;;  %6628 = vmatprep.subr.bf16.mxu0 %v14094_v20  ;;  %v14128_v18 = vld [vmem:[#allocation11 + $0x7a0] ss:$16 sps:$4 sm:$0xff]   ;;  %v14131_v20 = vld [vmem:[#allocation11 + $0x7a8] ss:$16 sps:$4 sm:$0xff]   ;;  %v14154_v8 = vld [vmem:[#allocation11 + $0x824] ss:$16 sps:$4 sm:$0xff]  }
 0x475   : > { %7212 = vmatprep.subr.bf16.mxu1 %v14097_v21  ;;  %v14136_v21 = vld [vmem:[#allocation11 + $0x7c4] ss:$16 sps:$4 sm:$0xff]  }
 0x477   : > { %6629 = vmatpush1.bf16.msra.mxu0 %v14092_v42  ;;  %v2856_v42 = vmul.f32 %v16541_v50, %v2688_v13 }
 0x478   : > { %7213 = vmatpush1.bf16.msra.mxu1 %v14095_v27  ;;  %6630 = vmatprep.subr.bf16.mxu0 %v14100_v28  ;;  %v14139_v27 = vld [vmem:[#allocation11 + $0x7cc] ss:$16 sps:$4 sm:$0xff]   ;;  %v3019_v28 = vadd.f32 %v16681_v55, %v2807_v12  ;;  %v14647_v47 = vpop.eup %14646  ;;  %v2871_v12 = vmul.f32 %v16555_v3, %v2703_v1 }
 0x479   : > { %7214 = vmatprep.subr.bf16.mxu1 %v14103_v29  ;;  %v3035_v29 = vadd.f32 %v16681_v55, %v2823_v14  ;;  %v14649_v52 = vpop.eup %14648  ;;  %v14181_v1 = vld [vmem:[#allocation11 + $0x8ac] ss:$16 sps:$4 sm:$0xff]  }
 0x47a   : > { %14654 = vtanh.f32 %v3019_v28  ;;  %v14651_v56 = vpop.eup %14650  ;;  %v14160_v28 = vld [vmem:[#allocation11 + $0x844] ss:$16 sps:$4 sm:$0xff]  }
 0x47b   : > { %6631 = vmatpush1.bf16.msra.mxu0 %v14098_v60  ;;  %v2671_v60 = vld [vmem:[#allocation2 + $0x230] sm:$0xff]  ;;  %14656 = vtanh.f32 %v3035_v29  ;;  %v3260_v57 = vpack.c.bf16 %v14651_v56, %v14649_v52 }
 0x47c   : > { %7215 = vmatpush1.bf16.msra.mxu1 %v14101_v34  ;;  %6632 = vmatprep.subr.bf16.mxu0 %v14106_v15  ;;  %v14134_v34 = vld [vmem:[#allocation11 + $0x7c0] ss:$16 sps:$4 sm:$0xff]   ;;  %v3052_v15 = vadd.f32 %v16669_v37, %v2840_v19 }
 0x47d   : > { %7216 = vmatprep.subr.bf16.mxu1 %v14109_v36  ;;  %v2687_v36 = vld [vmem:[#allocation2 + $0x2b0] sm:$0xff]  ;;  %v14653_v62 = vpop.eup %14652 }
 0x47e   : > { %14658 = vtanh.f32 %v3052_v15  ;;  %v14170_v56 = vld [vmem:[#allocation11 + $0x880] ss:$16 sps:$4 sm:$0xff]  }
 0x47f   : > { %6633 = vmatpush1.bf16.msra.mxu0 %v14104_v35  ;;  %v14137_v35 = vld [vmem:[#allocation11 + $0x7c8] ss:$16 sps:$4 sm:$0xff]  }
 0x480   : > { %7217 = vmatpush1.bf16.msra.mxu1 %v14107_v38  ;;  %6634 = vmatprep.subr.bf16.mxu0 %v14112_v39  ;;  %v14142_v38 = vld [vmem:[#allocation11 + $0x7e4] ss:$16 sps:$4 sm:$0xff]   ;;  %v3068_v39 = vadd.f32 %v16669_v37, %v2856_v42 }
 0x481   : > { %7218 = vmatprep.subr.bf16.mxu1 %v14115_v58  ;;  %v2704_v58 = vld [vmem:[#allocation2 + $0x338] sm:$0xff] }
 0x482   : > { %14660 = vtanh.f32 %v3068_v39  ;;  %v14158_v39 = vld [vmem:[#allocation11 + $0x840] ss:$16 sps:$4 sm:$0xff]  }
 0x483   : > { %6635 = vmatpush1.bf16.msra.mxu0 %v14110_v9  ;;  %v2839_v9 = vmul.f32 %v16545_v54, %v2671_v60  ;;  %v14163_v60 = vld [vmem:[#allocation11 + $0x84c] ss:$16 sps:$4 sm:$0xff]  }
 0x484   : > { %7219 = vmatpush1.bf16.msra.mxu1 %v14113_v16  ;;  %6636 = vmatprep.subr.bf16.mxu0 %v14118_v44  ;;  %v2720_v16 = vld [vmem:[#allocation2 + $0x3b8] sm:$0xff]  ;;  %v2855_v44 = vmul.f32 %v16541_v50, %v2687_v36  ;;  %v14655_v13 = vpop.eup %14654 }
 0x485   : > { %7220 = vmatprep.subr.bf16.mxu1 %v14121_v31  ;;  %v2872_v31 = vmul.f32 %v16555_v3, %v2704_v58  ;;  %v14657_v19 = vpop.eup %14656 }
 0x487   : > { %6637 = vmatpush1.bf16.msra.mxu0 %v14116_v51  ;;  %v2888_v51 = vmul.f32 %v16552_v63, %v2720_v16  ;;  %v3084_v0 = vadd.f32 %v16669_v37, %v2872_v31  ;;  %v14166_v16 = vld [vmem:[#allocation11 + $0x864] ss:$16 sps:$4 sm:$0xff]  }
 0x488   : > { %7221 = vmatpush1.bf16.msra.mxu1 %v14119_v53  ;;  %6638 = vmatprep.subr.bf16.mxu0 %v14124_v6  ;;  %v14151_v53 = vld [vmem:[#allocation11 + $0x80c] ss:$16 sps:$4 sm:$0xff]   ;;  %v3051_v6 = vadd.f32 %v16681_v55, %v2839_v9  ;;  %v14659_v42 = vpop.eup %14658 }
 0x489   : > { %7222 = vmatprep.subr.bf16.mxu1 %v14127_v23  ;;  %v3067_v23 = vadd.f32 %v16681_v55, %v2855_v44  ;;  %v3100_v4 = vadd.f32 %v16669_v37, %v2888_v51  ;;  %v16707_v37 = vld [vmem:[#allocation10 + $0x8] sm:$0xff]  ;;  %v14172_v51 = vld [vmem:[#allocation11 + $0x884] ss:$16 sps:$4 sm:$0xff]  }
 0x48a   : > { %14662 = vtanh.f32 %v3051_v6  ;;  %v16714_v36 = vrot.slane %v16707_v37, %v16506_v24  ;;  %v14169_v44 = vld [vmem:[#allocation11 + $0x86c] ss:$16 sps:$4 sm:$0xff]  }
 0x48b   : > { %6639 = vmatpush1.bf16.msra.mxu0 %v14122_v32  ;;  %v3243_v32 = vpack.c.bf16 %v14647_v47, %v14653_v62  ;;  %14664 = vtanh.f32 %v3067_v23  ;;  %v14164_v47 = vld [vmem:[#allocation11 + $0x860] ss:$16 sps:$4 sm:$0xff]   ;;  %v14173_v23 = vld [vmem:[#allocation11 + $0x888] ss:$16 sps:$4 sm:$0xff]  }
 0x48c   : > { %7223 = vmatpush1.bf16.msra.mxu1 %v14125_v5  ;;  %6640 = vmatprep.subr.bf16.mxu0 %v14130_v7  ;;  %v2719_v5 = vld [vmem:[#allocation2 + $0x3b0] sm:$0xff]  ;;  %v14149_v7 = vld [vmem:[#allocation11 + $0x808] ss:$16 sps:$4 sm:$0xff]   ;;  %14666 = vtanh.f32 %v3084_v0  ;;  %v14661_v29 = vpop.eup %14660 }
 0x48d   : > { %7224 = vmatprep.subr.bf16.mxu1 %v14133_v10  ;;  %v2626_v10 = vld [vmem:[#allocation2 + $0xc8] sm:$0xff]  ;;  %v2887_v14 = vmul.f32 %v16552_v63, %v2719_v5  ;;  %14668 = vtanh.f32 %v3100_v4  ;;  %v3276_v9 = vpack.c.bf16 %v14661_v29, %v14659_v42  ;;  %v14178_v0 = vld [vmem:[#allocation11 + $0x8a4] ss:$16 sps:$4 sm:$0xff]  }
 0x48e   : > { %v14179_v5 = vld [vmem:[#allocation11 + $0x8a8] ss:$16 sps:$4 sm:$0xff]   ;;  %v14196_v42 = vld [vmem:[#allocation11 + $0x904] ss:$16 sps:$4 sm:$0xff]  }
 0x48f   : > { %6641 = vmatpush1.bf16.msra.mxu0 %v14128_v18  ;;  %v2610_v18 = vld [vmem:[#allocation2 + $0x48] sm:$0xff] }
 0x490   : > { %7225 = vmatpush1.bf16.msra.mxu1 %v14131_v20  ;;  %6642 = vmatprep.subr.bf16.mxu0 %v14136_v21  ;;  %v14152_v20 = vld [vmem:[#allocation11 + $0x820] ss:$16 sps:$4 sm:$0xff]   ;;  %v2794_v21 = vmul.f32 %v16533_v43, %v2626_v10  ;;  %v2778_v15 = vmul.f32 %v16523_v33, %v2610_v18  ;;  %v14190_v18 = vld [vmem:[#allocation11 + $0x8e4] ss:$16 sps:$4 sm:$0xff]   ;;  %v14197_v29 = vld [vmem:[#allocation11 + $0x908] ss:$16 sps:$4 sm:$0xff]  }
 0x491   : > { %7226 = vmatprep.subr.bf16.mxu1 %v14139_v27  ;;  %v14155_v27 = vld [vmem:[#allocation11 + $0x828] ss:$16 sps:$4 sm:$0xff]  }
 0x492   : > { %v3006_v58 = vadd.f32 %v16714_v36, %v2794_v21  ;;  %v14191_v21 = vld [vmem:[#allocation11 + $0x8e8] ss:$16 sps:$4 sm:$0xff]  }
 0x493   : > { %6643 = vmatpush1.bf16.msra.mxu0 %v14134_v34  ;;  %v3083_v34 = vadd.f32 %v16681_v55, %v2871_v12  ;;  %v14182_v12 = vld [vmem:[#allocation11 + $0x8c0] ss:$16 sps:$4 sm:$0xff]  }
 0x494   : > { %7227 = vmatpush1.bf16.msra.mxu1 %v14137_v35  ;;  %6644 = vmatprep.subr.bf16.mxu0 %v14142_v38  ;;  %v3099_v35 = vadd.f32 %v16681_v55, %v2887_v14  ;;  %v3259_v38 = vpack.c.bf16 %v14657_v19, %v14655_v13  ;;  %v14663_v31 = vpop.eup %14662  ;;  %v14185_v13 = vld [vmem:[#allocation11 + $0x8c8] ss:$16 sps:$4 sm:$0xff]   ;;  %v14193_v19 = vld [vmem:[#allocation11 + $0x8ec] ss:$16 sps:$4 sm:$0xff]  }
 0x495   : > { %7228 = vmatprep.subr.bf16.mxu1 %v14145_v41  ;;  %v14161_v41 = vld [vmem:[#allocation11 + $0x848] ss:$16 sps:$4 sm:$0xff]   ;;  %14670 = vtanh.f32 %v3083_v34  ;;  %v14665_v55 = vpop.eup %14664  ;;  %v14205_v34 = vld [vmem:[#allocation11 + $0x92c] ss:$16 sps:$4 sm:$0xff]  }
 0x496   : > { %14672 = vtanh.f32 %v3099_v35  ;;  %v3275_v6 = vpack.c.bf16 %v14665_v55, %v14663_v31  ;;  %v14203_v35 = vld [vmem:[#allocation11 + $0x928] ss:$16 sps:$4 sm:$0xff]   ;;  %v2609_v55 = vld [vmem:[#allocation2 + $0x40] sm:$0xff] }
 0x497   : > { %6645 = vmatpush1.bf16.msra.mxu0 %v14140_v45  ;;  %v2990_v45 = vadd.f32 %v16714_v36, %v2778_v15  ;;  %14674 = vtanh.f32 %v3006_v58  ;;  %v14200_v15 = vld [vmem:[#allocation11 + $0x920] ss:$16 sps:$4 sm:$0xff]   ;;  %v2658_v31 = vld [vmem:[#allocation2 + $0x1c8] sm:$0xff] }
 0x498   : > { %7229 = vmatpush1.bf16.msra.mxu1 %v14143_v49  ;;  %6687 = vmatprep.subr.bf16.mxu0 %v14148_v26  ;;  %v14667_v49 = vpop.eup %14666  ;;  %v14167_v26 = vld [vmem:[#allocation11 + $0x868] ss:$16 sps:$4 sm:$0xff]   ;;  %v14206_v58 = vld [vmem:[#allocation11 + $0x940] ss:$16 sps:$4 sm:$0xff]  }
 0x499   : > { %7271 = vmatprep.subr.bf16.mxu1 %v14151_v53  ;;  %v14669_v52 = vpop.eup %14668  ;;  %v14175_v53 = vld [vmem:[#allocation11 + $0x88c] ss:$16 sps:$4 sm:$0xff]   ;;  %14676 = vtanh.f32 %v2990_v45 }
 0x49a   : > { %6647 = vmatmul.mubr.bf16.vlgmr.msra.gmra.mrb[0].mxu0 %v3243_v32  ;;  %v3292_v62 = vpack.c.bf16 %v14669_v52, %v14667_v49  ;;  %v14217_v45 = vld [vmem:[#allocation11 + $0x96c] ss:$16 sps:$4 sm:$0xff]   ;;  %v14212_v49 = vld [vmem:[#allocation11 + $0x960] ss:$16 sps:$4 sm:$0xff]   ;;  %v14220_v52 = vld [vmem:[#allocation11 + $0x984] ss:$16 sps:$4 sm:$0xff]  }
 0x49b   : > { %7231 = vmatmul.mubr.bf16.vlgmr.msra.gmra.mrb[0].mxu1 %v3243_v32  ;;  %6656 = vmatprep.mubr.bf16.mxu0 %v3260_v57 }
 0x49c   : > { %6688 = vmatpush1.bf16.msra.mxu0 %v14146_v2  ;;  %7240 = vmatprep.mubr.bf16.mxu1 %v3260_v57  ;;  %v14176_v2 = vld [vmem:[#allocation11 + $0x8a0] ss:$16 sps:$4 sm:$0xff]  }
 0x49d   : > { %7272 = vmatpush1.bf16.msra.mxu1 %v14149_v7  ;;  %6689 = vmatprep.subr.bf16.mxu0 %v14154_v8  ;;  %v14184_v7 = vld [vmem:[#allocation11 + $0x8c4] ss:$16 sps:$4 sm:$0xff]   ;;  %v14187_v8 = vld [vmem:[#allocation11 + $0x8cc] ss:$16 sps:$4 sm:$0xff]  }
 0x49e   : > { %7273 = vmatprep.subr.bf16.mxu1 %v14157_v11 }
 0x49f   : > { %v14671_v32 = vpop.eup %14670 }
 0x4a0   : > { %6690 = vmatpush1.bf16.msra.mxu0 %v14152_v20  ;;  %v14673_v4 = vpop.eup %14672  ;;  %v14188_v20 = vld [vmem:[#allocation11 + $0x8e0] ss:$16 sps:$4 sm:$0xff]  }
 0x4a1   : > { %7274 = vmatpush1.bf16.msra.mxu1 %v14155_v27  ;;  %6691 = vmatprep.subr.bf16.mxu0 %v14160_v28  ;;  %v14675_v57 = vpop.eup %14674  ;;  %v3291_v11 = vpack.c.bf16 %v14673_v4, %v14671_v32  ;;  %v14199_v27 = vld [vmem:[#allocation11 + $0x90c] ss:$16 sps:$4 sm:$0xff]   ;;  %v14194_v28 = vld [vmem:[#allocation11 + $0x900] ss:$16 sps:$4 sm:$0xff]   ;;  %v14221_v4 = vld [vmem:[#allocation11 + $0x988] ss:$16 sps:$4 sm:$0xff]  }
 0x4a2   : > { %6657 = vmatmul.mubr.bf16.gmra.mrb[4].mxu0 %v3259_v38  ;;  %7275 = vmatprep.subr.bf16.mxu1 %v14163_v60  ;;  %v14202_v60 = vld [vmem:[#allocation11 + $0x924] ss:$16 sps:$4 sm:$0xff]  }
 0x4a3   : > { %7241 = vmatmul.mubr.bf16.gmra.mrb[4].mxu1 %v3259_v38  ;;  %6666 = vmatprep.mubr.bf16.mxu0 %v3276_v9  ;;  %v14677_v10 = vpop.eup %14676  ;;  %v14208_v38 = vld [vmem:[#allocation11 + $0x944] ss:$16 sps:$4 sm:$0xff]  }
 0x4a4   : > { %6692 = vmatpush1.bf16.msra.mxu0 %v14158_v39  ;;  %7250 = vmatprep.mubr.bf16.mxu1 %v3276_v9  ;;  %v3246_v14 = vpack.c.bf16 %v14675_v57, %v14677_v10  ;;  %v14211_v39 = vld [vmem:[#allocation11 + $0x94c] ss:$16 sps:$4 sm:$0xff]   ;;  %v14209_v9 = vld [vmem:[#allocation11 + $0x948] ss:$16 sps:$4 sm:$0xff]  }
 0x4a5   : > { %7276 = vmatpush1.bf16.msra.mxu1 %v14161_v41  ;;  %6693 = vmatprep.subr.bf16.mxu0 %v14166_v16  ;;  %v2625_v41 = vld [vmem:[#allocation2 + $0xc0] sm:$0xff]  ;;  %v2674_v57 = vld [vmem:[#allocation2 + $0x248] sm:$0xff] }
 0x4a6   : > { %7277 = vmatprep.subr.bf16.mxu1 %v14169_v44  ;;  %v14214_v16 = vld [vmem:[#allocation11 + $0x964] ss:$16 sps:$4 sm:$0xff]   ;;  %v2642_v44 = vld [vmem:[#allocation2 + $0x148] sm:$0xff] }
 0x4a8   : > { %6694 = vmatpush1.bf16.msra.mxu0 %v14164_v47  ;;  %v2793_v47 = vmul.f32 %v16533_v43, %v2625_v41  ;;  %v14241_v41 = vld [vmem:[#allocation11 + $0x9ec] ss:$16 sps:$4 sm:$0xff]  }
 0x4a9   : > { %7278 = vmatpush1.bf16.msra.mxu1 %v14167_v26  ;;  %6695 = vmatprep.subr.bf16.mxu0 %v14172_v51  ;;  %v2810_v26 = vmul.f32 %v16513_v30, %v2642_v44  ;;  %v14215_v51 = vld [vmem:[#allocation11 + $0x968] ss:$16 sps:$4 sm:$0xff]  }
 0x4aa   : > { %6667 = vmatmul.mubr.bf16.gmra.mrb[8].mxu0 %v3275_v6  ;;  %7279 = vmatprep.subr.bf16.mxu1 %v14175_v53  ;;  %v16723_v53 = vrot.slane %v16707_v37, %v16509_v25 }
 0x4ab   : > { %7251 = vmatmul.mubr.bf16.gmra.mrb[8].mxu1 %v3275_v6  ;;  %6676 = vmatprep.mubr.bf16.mxu0 %v3292_v62  ;;  %v2826_v6 = vmul.f32 %v16529_v40, %v2658_v31  ;;  %v3022_v32 = vadd.f32 %v16714_v36, %v2810_v26 }
 0x4ac   : > { %6696 = vmatpush1.bf16.msra.mxu0 %v14170_v56  ;;  %7260 = vmatprep.mubr.bf16.mxu1 %v3292_v62  ;;  %v14223_v56 = vld [vmem:[#allocation11 + $0x98c] ss:$16 sps:$4 sm:$0xff]   ;;  %v3005_v62 = vadd.f32 %v16723_v53, %v2793_v47  ;;  %v14239_v47 = vld [vmem:[#allocation11 + $0x9e8] ss:$16 sps:$4 sm:$0xff]  }
 0x4ad   : > { %7280 = vmatpush1.bf16.msra.mxu1 %v14173_v23  ;;  %6697 = vmatprep.subr.bf16.mxu0 %v14178_v0  ;;  %v2777_v23 = vmul.f32 %v16523_v33, %v2609_v55  ;;  %v2641_v0 = vld [vmem:[#allocation2 + $0x140] sm:$0xff] }
 0x4ae   : > { %7281 = vmatprep.subr.bf16.mxu1 %v14181_v1  ;;  %v14218_v1 = vld [vmem:[#allocation11 + $0x980] ss:$16 sps:$4 sm:$0xff]   ;;  %14678 = vtanh.f32 %v3005_v62 }
 0x4af   : > { %v2989_v10 = vadd.f32 %v16723_v53, %v2777_v23  ;;  %14680 = vtanh.f32 %v3022_v32 }
 0x4b0   : > { %6698 = vmatpush1.bf16.msra.mxu0 %v14176_v2  ;;  %v2657_v2 = vld [vmem:[#allocation2 + $0x1c0] sm:$0xff] }
 0x4b1   : > { %7282 = vmatpush1.bf16.msra.mxu1 %v14179_v5  ;;  %6699 = vmatprep.subr.bf16.mxu0 %v14184_v7  ;;  %v14226_v5 = vld [vmem:[#allocation11 + $0x9a4] ss:$16 sps:$4 sm:$0xff]   ;;  %v3038_v7 = vadd.f32 %v16714_v36, %v2826_v6 }
 0x4b2   : > { %6677 = vmatmul.mubr.bf16.gmra.mrb[12].mxu0 %v3291_v11  ;;  %7283 = vmatprep.subr.bf16.mxu1 %v14187_v8  ;;  %v14229_v8 = vld [vmem:[#allocation11 + $0x9ac] ss:$16 sps:$4 sm:$0xff]  }
 0x4b3   : > { %7261 = vmatmul.mubr.bf16.gmra.mrb[12].mxu1 %v3291_v11  ;;  %6719 = vmatprep.mubr.bf16.mxu0 %v3246_v14  ;;  %v2809_v11 = vmul.f32 %v16513_v30, %v2641_v0  ;;  %14682 = vtanh.f32 %v3038_v7  ;;  %v14245_v7 = vld [vmem:[#allocation11 + $0xa08] ss:$16 sps:$4 sm:$0xff]  }
 0x4b4   : > { %6700 = vmatpush1.bf16.msra.mxu0 %v14182_v12  ;;  %7303 = vmatprep.mubr.bf16.mxu1 %v3246_v14  ;;  %v2690_v12 = vld [vmem:[#allocation2 + $0x2c8] sm:$0xff]  ;;  %v14224_v14 = vld [vmem:[#allocation11 + $0x9a0] ss:$16 sps:$4 sm:$0xff]   ;;  %14684 = vtanh.f32 %v2989_v10  ;;  %v2628_v10 = vld [vmem:[#allocation2 + $0xd8] sm:$0xff] }
 0x4b5   : > { %7284 = vmatpush1.bf16.msra.mxu1 %v14185_v13  ;;  %6701 = vmatprep.subr.bf16.mxu0 %v14190_v18  ;;  %v2825_v13 = vmul.f32 %v16529_v40, %v2657_v2  ;;  %v2842_v18 = vmul.f32 %v16545_v54, %v2674_v57  ;;  %v14242_v2 = vld [vmem:[#allocation11 + $0xa00] ss:$16 sps:$4 sm:$0xff]  }
 0x4b6   : > { %7285 = vmatprep.subr.bf16.mxu1 %v14193_v19  ;;  %v14227_v19 = vld [vmem:[#allocation11 + $0x9a8] ss:$16 sps:$4 sm:$0xff]  }
 0x4b8   : > { %6702 = vmatpush1.bf16.msra.mxu0 %v14188_v20  ;;  %v14232_v20 = vld [vmem:[#allocation11 + $0x9c4] ss:$16 sps:$4 sm:$0xff]   ;;  %v14679_v55 = vpop.eup %14678 }
 0x4b9   : > { %7286 = vmatpush1.bf16.msra.mxu1 %v14191_v21  ;;  %6703 = vmatprep.subr.bf16.mxu0 %v14196_v42  ;;  %v2858_v21 = vmul.f32 %v16541_v50, %v2690_v12  ;;  %v14235_v42 = vld [vmem:[#allocation11 + $0x9cc] ss:$16 sps:$4 sm:$0xff]  }
 0x4ba   : > { %7287 = vmatprep.subr.bf16.mxu1 %v14199_v27  ;;  %v3021_v27 = vadd.f32 %v16723_v53, %v2809_v11  ;;  %v14253_v11 = vld [vmem:[#allocation11 + $0xa2c] ss:$16 sps:$4 sm:$0xff]  }
 0x4bc   : > { %6704 = vmatpush1.bf16.msra.mxu0 %v14194_v28  ;;  %v3037_v28 = vadd.f32 %v16723_v53, %v2825_v13  ;;  %14686 = vtanh.f32 %v3021_v27  ;;  %v14256_v27 = vld [vmem:[#allocation11 + $0xa44] ss:$16 sps:$4 sm:$0xff]  }
 0x4bd   : > { %7288 = vmatpush1.bf16.msra.mxu1 %v14197_v29  ;;  %6705 = vmatprep.subr.bf16.mxu0 %v14202_v60  ;;  %v2673_v29 = vld [vmem:[#allocation2 + $0x240] sm:$0xff] }
 0x4be   : > { %7289 = vmatprep.subr.bf16.mxu1 %v14205_v34  ;;  %v14230_v60 = vld [vmem:[#allocation11 + $0x9c0] ss:$16 sps:$4 sm:$0xff]   ;;  %v3054_v34 = vadd.f32 %v16714_v36, %v2842_v18  ;;  %14688 = vtanh.f32 %v3037_v28  ;;  %v2612_v18 = vld [vmem:[#allocation2 + $0x58] sm:$0xff] }
 0x4c0   : > { %6706 = vmatpush1.bf16.msra.mxu0 %v14200_v15  ;;  %v2689_v15 = vld [vmem:[#allocation2 + $0x2c0] sm:$0xff]  ;;  %14690 = vtanh.f32 %v3054_v34  ;;  %v2780_v34 = vmul.f32 %v16523_v33, %v2612_v18 }
 0x4c1   : > { %7290 = vmatpush1.bf16.msra.mxu1 %v14203_v35  ;;  %6707 = vmatprep.subr.bf16.mxu0 %v14208_v38  ;;  %v14233_v35 = vld [vmem:[#allocation11 + $0x9c8] ss:$16 sps:$4 sm:$0xff]   ;;  %v14238_v38 = vld [vmem:[#allocation11 + $0x9e4] ss:$16 sps:$4 sm:$0xff]   ;;  %v2857_v44 = vmul.f32 %v16541_v50, %v2689_v15  ;;  %v16754_v15 = vrot.slane %v16707_v37, %v16568_v46 }
 0x4c2   : > { %7291 = vmatprep.subr.bf16.mxu1 %v14211_v39  ;;  %v3070_v39 = vadd.f32 %v16714_v36, %v2858_v21  ;;  %v14286_v18 = vld [vmem:[#allocation11 + $0xae4] ss:$16 sps:$4 sm:$0xff]  }
 0x4c3   : > { %v3069_v23 = vadd.f32 %v16723_v53, %v2857_v44  ;;  %v14265_v44 = vld [vmem:[#allocation11 + $0xa6c] ss:$16 sps:$4 sm:$0xff]  }
 0x4c4   : > { %6708 = vmatpush1.bf16.msra.mxu0 %v14206_v58  ;;  %v2706_v58 = vld [vmem:[#allocation2 + $0x348] sm:$0xff]  ;;  %14692 = vtanh.f32 %v3070_v39  ;;  %v14254_v39 = vld [vmem:[#allocation11 + $0xa40] ss:$16 sps:$4 sm:$0xff]  }
 0x4c5   : > { %7292 = vmatpush1.bf16.msra.mxu1 %v14209_v9  ;;  %6709 = vmatprep.subr.bf16.mxu0 %v14214_v16  ;;  %v2841_v9 = vmul.f32 %v16545_v54, %v2673_v29  ;;  %v2722_v16 = vld [vmem:[#allocation2 + $0x3c8] sm:$0xff]  ;;  %v2874_v31 = vmul.f32 %v16555_v3, %v2706_v58 }
 0x4c6   : > { %7293 = vmatprep.subr.bf16.mxu1 %v14217_v45  ;;  %v14236_v45 = vld [vmem:[#allocation11 + $0x9e0] ss:$16 sps:$4 sm:$0xff]   ;;  %v2890_v26 = vmul.f32 %v16552_v63, %v2722_v16  ;;  %v14259_v29 = vld [vmem:[#allocation11 + $0xa4c] ss:$16 sps:$4 sm:$0xff]   ;;  %v14262_v16 = vld [vmem:[#allocation11 + $0xa64] ss:$16 sps:$4 sm:$0xff]  }
 0x4c7   : > { %v3053_v6 = vadd.f32 %v16723_v53, %v2841_v9  ;;  %v3086_v0 = vadd.f32 %v16714_v36, %v2874_v31 }
 0x4c8   : > { %6710 = vmatpush1.bf16.msra.mxu0 %v14212_v49  ;;  %v14244_v49 = vld [vmem:[#allocation11 + $0xa04] ss:$16 sps:$4 sm:$0xff]  }
 0x4c9   : > { %7294 = vmatpush1.bf16.msra.mxu1 %v14215_v51  ;;  %6711 = vmatprep.subr.bf16.mxu0 %v14220_v52  ;;  %v14681_v51 = vpop.eup %14680  ;;  %v14247_v52 = vld [vmem:[#allocation11 + $0xa0c] ss:$16 sps:$4 sm:$0xff]   ;;  %14694 = vtanh.f32 %v3053_v6 }
 0x4ca   : > { %7295 = vmatprep.subr.bf16.mxu1 %v14223_v56  ;;  %v14683_v56 = vpop.eup %14682  ;;  %14696 = vtanh.f32 %v3069_v23  ;;  %v14269_v23 = vld [vmem:[#allocation11 + $0xa88] ss:$16 sps:$4 sm:$0xff]  }
 0x4cb   : > { %v14685_v62 = vpop.eup %14684  ;;  %v3262_v57 = vpack.c.bf16 %v14683_v56, %v14681_v51  ;;  %14698 = vtanh.f32 %v3086_v0  ;;  %v14266_v56 = vld [vmem:[#allocation11 + $0xa80] ss:$16 sps:$4 sm:$0xff]   ;;  %v14274_v0 = vld [vmem:[#allocation11 + $0xaa4] ss:$16 sps:$4 sm:$0xff]  }
 0x4cc   : > { %6712 = vmatpush1.bf16.msra.mxu0 %v14218_v1  ;;  %v2705_v1 = vld [vmem:[#allocation2 + $0x340] sm:$0xff]  ;;  %v3245_v32 = vpack.c.bf16 %v14679_v55, %v14685_v62  ;;  %v14687_v13 = vpop.eup %14686 }
 0x4cd   : > { %7296 = vmatpush1.bf16.msra.mxu1 %v14221_v4  ;;  %6713 = vmatprep.subr.bf16.mxu0 %v14226_v5  ;;  %v3102_v4 = vadd.f32 %v16714_v36, %v2890_v26  ;;  %v2721_v5 = vld [vmem:[#allocation2 + $0x3c0] sm:$0xff]  ;;  %v2873_v12 = vmul.f32 %v16555_v3, %v2705_v1  ;;  %v14689_v36 = vpop.eup %14688  ;;  %v14277_v1 = vld [vmem:[#allocation11 + $0xaac] ss:$16 sps:$4 sm:$0xff]  }
 0x4ce   : > { %7297 = vmatprep.subr.bf16.mxu1 %v14229_v8  ;;  %v14250_v8 = vld [vmem:[#allocation11 + $0xa24] ss:$16 sps:$4 sm:$0xff]   ;;  %v14691_v21 = vpop.eup %14690  ;;  %v14260_v55 = vld [vmem:[#allocation11 + $0xa60] ss:$16 sps:$4 sm:$0xff]  }
 0x4cf   : > { %14700 = vtanh.f32 %v3102_v4  ;;  %v14693_v28 = vpop.eup %14692  ;;  %v14268_v26 = vld [vmem:[#allocation11 + $0xa84] ss:$16 sps:$4 sm:$0xff]  }
 0x4d0   : > { %6714 = vmatpush1.bf16.msra.mxu0 %v14224_v14  ;;  %v2889_v14 = vmul.f32 %v16552_v63, %v2721_v5  ;;  %v3278_v9 = vpack.c.bf16 %v14693_v28, %v14691_v21  ;;  %v14275_v5 = vld [vmem:[#allocation11 + $0xaa8] ss:$16 sps:$4 sm:$0xff]   ;;  %v14292_v21 = vld [vmem:[#allocation11 + $0xb04] ss:$16 sps:$4 sm:$0xff]  }
 0x4d1   : > { %7298 = vmatpush1.bf16.msra.mxu1 %v14227_v19  ;;  %6715 = vmatprep.subr.bf16.mxu0 %v14232_v20  ;;  %v14248_v19 = vld [vmem:[#allocation11 + $0xa20] ss:$16 sps:$4 sm:$0xff]   ;;  %v2796_v20 = vmul.f32 %v16533_v43, %v2628_v10  ;;  %v14293_v28 = vld [vmem:[#allocation11 + $0xb08] ss:$16 sps:$4 sm:$0xff]  }
 0x4d2   : > { %7299 = vmatprep.subr.bf16.mxu1 %v14235_v42  ;;  %v14251_v42 = vld [vmem:[#allocation11 + $0xa28] ss:$16 sps:$4 sm:$0xff]  }
 0x4d3   : > { %v3008_v58 = vadd.f32 %v16754_v15, %v2796_v20  ;;  %v14695_v31 = vpop.eup %14694  ;;  %v14287_v20 = vld [vmem:[#allocation11 + $0xae8] ss:$16 sps:$4 sm:$0xff]  }
 0x4d4   : > { %6716 = vmatpush1.bf16.msra.mxu0 %v14230_v60  ;;  %v3085_v60 = vadd.f32 %v16723_v53, %v2873_v12  ;;  %v14278_v12 = vld [vmem:[#allocation11 + $0xac0] ss:$16 sps:$4 sm:$0xff]  }
 0x4d5   : > { %7300 = vmatpush1.bf16.msra.mxu1 %v14233_v35  ;;  %6717 = vmatprep.subr.bf16.mxu0 %v14238_v38  ;;  %v3101_v35 = vadd.f32 %v16723_v53, %v2889_v14  ;;  %v3261_v38 = vpack.c.bf16 %v14689_v36, %v14687_v13  ;;  %v14697_v53 = vpop.eup %14696  ;;  %v14281_v13 = vld [vmem:[#allocation11 + $0xac8] ss:$16 sps:$4 sm:$0xff]   ;;  %v14289_v36 = vld [vmem:[#allocation11 + $0xaec] ss:$16 sps:$4 sm:$0xff]  }
 0x4d6   : > { %7301 = vmatprep.subr.bf16.mxu1 %v14241_v41  ;;  %v14257_v41 = vld [vmem:[#allocation11 + $0xa48] ss:$16 sps:$4 sm:$0xff]   ;;  %14702 = vtanh.f32 %v3085_v60  ;;  %v3277_v6 = vpack.c.bf16 %v14697_v53, %v14695_v31  ;;  %v14301_v60 = vld [vmem:[#allocation11 + $0xb2c] ss:$16 sps:$4 sm:$0xff]   ;;  %v2611_v53 = vld [vmem:[#allocation2 + $0x50] sm:$0xff] }
 0x4d7   : > { %14704 = vtanh.f32 %v3101_v35  ;;  %v14299_v35 = vld [vmem:[#allocation11 + $0xb28] ss:$16 sps:$4 sm:$0xff]  }
 0x4d8   : > { %6718 = vmatpush1.bf16.msra.mxu0 %v14236_v45  ;;  %v2992_v45 = vadd.f32 %v16754_v15, %v2780_v34  ;;  %14706 = vtanh.f32 %v3008_v58  ;;  %v14296_v34 = vld [vmem:[#allocation11 + $0xb20] ss:$16 sps:$4 sm:$0xff]   ;;  %v2660_v31 = vld [vmem:[#allocation2 + $0x1d8] sm:$0xff] }
 0x4d9   : > { %7302 = vmatpush1.bf16.msra.mxu1 %v14239_v47  ;;  %6760 = vmatprep.subr.bf16.mxu0 %v14244_v49  ;;  %v14699_v47 = vpop.eup %14698  ;;  %v14263_v49 = vld [vmem:[#allocation11 + $0xa68] ss:$16 sps:$4 sm:$0xff]   ;;  %v14302_v58 = vld [vmem:[#allocation11 + $0xb40] ss:$16 sps:$4 sm:$0xff]  }
 0x4da   : > { %7344 = vmatprep.subr.bf16.mxu1 %v14247_v52  ;;  %v14701_v51 = vpop.eup %14700  ;;  %v14271_v52 = vld [vmem:[#allocation11 + $0xa8c] ss:$16 sps:$4 sm:$0xff]   ;;  %14708 = vtanh.f32 %v2992_v45 }
 0x4db   : > { %6720 = vmatmul.mubr.bf16.vlgmr.msra.gmra.mrb[0].mxu0 %v3245_v32  ;;  %v3294_v62 = vpack.c.bf16 %v14701_v51, %v14699_v47  ;;  %v14313_v45 = vld [vmem:[#allocation11 + $0xb6c] ss:$16 sps:$4 sm:$0xff]   ;;  %v14308_v47 = vld [vmem:[#allocation11 + $0xb60] ss:$16 sps:$4 sm:$0xff]   ;;  %v14316_v51 = vld [vmem:[#allocation11 + $0xb84] ss:$16 sps:$4 sm:$0xff]  }
 0x4dc   : > { %7304 = vmatmul.mubr.bf16.vlgmr.msra.gmra.mrb[0].mxu1 %v3245_v32  ;;  %6729 = vmatprep.mubr.bf16.mxu0 %v3262_v57 }
 0x4dd   : > { %6761 = vmatpush1.bf16.msra.mxu0 %v14242_v2  ;;  %7313 = vmatprep.mubr.bf16.mxu1 %v3262_v57  ;;  %v14272_v2 = vld [vmem:[#allocation11 + $0xaa0] ss:$16 sps:$4 sm:$0xff]  }
 0x4de   : > { %7345 = vmatpush1.bf16.msra.mxu1 %v14245_v7  ;;  %6762 = vmatprep.subr.bf16.mxu0 %v14250_v8  ;;  %v14280_v7 = vld [vmem:[#allocation11 + $0xac4] ss:$16 sps:$4 sm:$0xff]   ;;  %v14283_v8 = vld [vmem:[#allocation11 + $0xacc] ss:$16 sps:$4 sm:$0xff]  }
 0x4df   : > { %7346 = vmatprep.subr.bf16.mxu1 %v14253_v11 }
 0x4e0   : > { %v14703_v32 = vpop.eup %14702 }
 0x4e1   : > { %6763 = vmatpush1.bf16.msra.mxu0 %v14248_v19  ;;  %v14705_v4 = vpop.eup %14704  ;;  %v14284_v19 = vld [vmem:[#allocation11 + $0xae0] ss:$16 sps:$4 sm:$0xff]  }
 0x4e2   : > { %7347 = vmatpush1.bf16.msra.mxu1 %v14251_v42  ;;  %6764 = vmatprep.subr.bf16.mxu0 %v14256_v27  ;;  %v14707_v57 = vpop.eup %14706  ;;  %v3293_v11 = vpack.c.bf16 %v14705_v4, %v14703_v32  ;;  %v14295_v42 = vld [vmem:[#allocation11 + $0xb0c] ss:$16 sps:$4 sm:$0xff]   ;;  %v14290_v27 = vld [vmem:[#allocation11 + $0xb00] ss:$16 sps:$4 sm:$0xff]   ;;  %v14317_v4 = vld [vmem:[#allocation11 + $0xb88] ss:$16 sps:$4 sm:$0xff]  }
 0x4e3   : > { %6730 = vmatmul.mubr.bf16.gmra.mrb[4].mxu0 %v3261_v38  ;;  %7348 = vmatprep.subr.bf16.mxu1 %v14259_v29  ;;  %v14298_v29 = vld [vmem:[#allocation11 + $0xb24] ss:$16 sps:$4 sm:$0xff]  }
 0x4e4   : > { %7314 = vmatmul.mubr.bf16.gmra.mrb[4].mxu1 %v3261_v38  ;;  %6739 = vmatprep.mubr.bf16.mxu0 %v3278_v9  ;;  %v14709_v10 = vpop.eup %14708  ;;  %v14304_v38 = vld [vmem:[#allocation11 + $0xb44] ss:$16 sps:$4 sm:$0xff]  }
 0x4e5   : > { %6765 = vmatpush1.bf16.msra.mxu0 %v14254_v39  ;;  %7323 = vmatprep.mubr.bf16.mxu1 %v3278_v9  ;;  %v3248_v14 = vpack.c.bf16 %v14707_v57, %v14709_v10  ;;  %v14307_v39 = vld [vmem:[#allocation11 + $0xb4c] ss:$16 sps:$4 sm:$0xff]   ;;  %v14305_v9 = vld [vmem:[#allocation11 + $0xb48] ss:$16 sps:$4 sm:$0xff]  }
 0x4e6   : > { %7349 = vmatpush1.bf16.msra.mxu1 %v14257_v41  ;;  %6766 = vmatprep.subr.bf16.mxu0 %v14262_v16  ;;  %v2627_v41 = vld [vmem:[#allocation2 + $0xd0] sm:$0xff]  ;;  %v2676_v57 = vld [vmem:[#allocation2 + $0x258] sm:$0xff] }
 0x4e7   : > { %7350 = vmatprep.subr.bf16.mxu1 %v14265_v44  ;;  %v14310_v16 = vld [vmem:[#allocation11 + $0xb64] ss:$16 sps:$4 sm:$0xff]   ;;  %v2644_v44 = vld [vmem:[#allocation2 + $0x158] sm:$0xff] }
 0x4e9   : > { %6767 = vmatpush1.bf16.msra.mxu0 %v14260_v55  ;;  %v2795_v55 = vmul.f32 %v16533_v43, %v2627_v41  ;;  %v14337_v41 = vld [vmem:[#allocation11 + $0xbec] ss:$16 sps:$4 sm:$0xff]  }
 0x4ea   : > { %7351 = vmatpush1.bf16.msra.mxu1 %v14263_v49  ;;  %6768 = vmatprep.subr.bf16.mxu0 %v14268_v26  ;;  %v2812_v49 = vmul.f32 %v16513_v30, %v2644_v44  ;;  %v14311_v26 = vld [vmem:[#allocation11 + $0xb68] ss:$16 sps:$4 sm:$0xff]  }
 0x4eb   : > { %6740 = vmatmul.mubr.bf16.gmra.mrb[8].mxu0 %v3277_v6  ;;  %7352 = vmatprep.subr.bf16.mxu1 %v14271_v52  ;;  %v16763_v52 = vrot.slane %v16707_v37, %v16581_v59 }
 0x4ec   : > { %7324 = vmatmul.mubr.bf16.gmra.mrb[8].mxu1 %v3277_v6  ;;  %6749 = vmatprep.mubr.bf16.mxu0 %v3294_v62  ;;  %v2828_v6 = vmul.f32 %v16529_v40, %v2660_v31  ;;  %v3024_v32 = vadd.f32 %v16754_v15, %v2812_v49 }
 0x4ed   : > { %6769 = vmatpush1.bf16.msra.mxu0 %v14266_v56  ;;  %7333 = vmatprep.mubr.bf16.mxu1 %v3294_v62  ;;  %v14319_v56 = vld [vmem:[#allocation11 + $0xb8c] ss:$16 sps:$4 sm:$0xff]   ;;  %v3007_v62 = vadd.f32 %v16763_v52, %v2795_v55  ;;  %v14335_v55 = vld [vmem:[#allocation11 + $0xbe8] ss:$16 sps:$4 sm:$0xff]  }
 0x4ee   : > { %7353 = vmatpush1.bf16.msra.mxu1 %v14269_v23  ;;  %6770 = vmatprep.subr.bf16.mxu0 %v14274_v0  ;;  %v2779_v23 = vmul.f32 %v16523_v33, %v2611_v53  ;;  %v2643_v0 = vld [vmem:[#allocation2 + $0x150] sm:$0xff] }
 0x4ef   : > { %7354 = vmatprep.subr.bf16.mxu1 %v14277_v1  ;;  %v14314_v1 = vld [vmem:[#allocation11 + $0xb80] ss:$16 sps:$4 sm:$0xff]   ;;  %14710 = vtanh.f32 %v3007_v62 }
 0x4f0   : > { %v2991_v10 = vadd.f32 %v16763_v52, %v2779_v23  ;;  %14712 = vtanh.f32 %v3024_v32 }
 0x4f1   : > { %6771 = vmatpush1.bf16.msra.mxu0 %v14272_v2  ;;  %v2659_v2 = vld [vmem:[#allocation2 + $0x1d0] sm:$0xff] }
 0x4f2   : > { %7355 = vmatpush1.bf16.msra.mxu1 %v14275_v5  ;;  %6772 = vmatprep.subr.bf16.mxu0 %v14280_v7  ;;  %v14322_v5 = vld [vmem:[#allocation11 + $0xba4] ss:$16 sps:$4 sm:$0xff]   ;;  %v3040_v7 = vadd.f32 %v16754_v15, %v2828_v6 }
 0x4f3   : > { %6750 = vmatmul.mubr.bf16.gmra.mrb[12].mxu0 %v3293_v11  ;;  %7356 = vmatprep.subr.bf16.mxu1 %v14283_v8  ;;  %v14325_v8 = vld [vmem:[#allocation11 + $0xbac] ss:$16 sps:$4 sm:$0xff]  }
 0x4f4   : > { %7334 = vmatmul.mubr.bf16.gmra.mrb[12].mxu1 %v3293_v11  ;;  %6792 = vmatprep.mubr.bf16.mxu0 %v3248_v14  ;;  %v2811_v11 = vmul.f32 %v16513_v30, %v2643_v0  ;;  %14714 = vtanh.f32 %v3040_v7  ;;  %v14341_v7 = vld [vmem:[#allocation11 + $0xc08] ss:$16 sps:$4 sm:$0xff]  }
 0x4f5   : > { %6773 = vmatpush1.bf16.msra.mxu0 %v14278_v12  ;;  %7376 = vmatprep.mubr.bf16.mxu1 %v3248_v14  ;;  %v2692_v12 = vld [vmem:[#allocation2 + $0x2d8] sm:$0xff]  ;;  %v14320_v14 = vld [vmem:[#allocation11 + $0xba0] ss:$16 sps:$4 sm:$0xff]   ;;  %14716 = vtanh.f32 %v2991_v10  ;;  %v2630_v10 = vld [vmem:[#allocation2 + $0xe8] sm:$0xff] }
 0x4f6   : > { %7357 = vmatpush1.bf16.msra.mxu1 %v14281_v13  ;;  %6774 = vmatprep.subr.bf16.mxu0 %v14286_v18  ;;  %v2827_v13 = vmul.f32 %v16529_v40, %v2659_v2  ;;  %v2844_v18 = vmul.f32 %v16545_v54, %v2676_v57  ;;  %v14338_v2 = vld [vmem:[#allocation11 + $0xc00] ss:$16 sps:$4 sm:$0xff]  }
 0x4f7   : > { %7358 = vmatprep.subr.bf16.mxu1 %v14289_v36  ;;  %v14323_v36 = vld [vmem:[#allocation11 + $0xba8] ss:$16 sps:$4 sm:$0xff]  }
 0x4f9   : > { %6775 = vmatpush1.bf16.msra.mxu0 %v14284_v19  ;;  %v14328_v19 = vld [vmem:[#allocation11 + $0xbc4] ss:$16 sps:$4 sm:$0xff]   ;;  %v14711_v53 = vpop.eup %14710 }
 0x4fa   : > { %7359 = vmatpush1.bf16.msra.mxu1 %v14287_v20  ;;  %6776 = vmatprep.subr.bf16.mxu0 %v14292_v21  ;;  %v2860_v20 = vmul.f32 %v16541_v50, %v2692_v12  ;;  %v14331_v21 = vld [vmem:[#allocation11 + $0xbcc] ss:$16 sps:$4 sm:$0xff]  }
 0x4fb   : > { %7360 = vmatprep.subr.bf16.mxu1 %v14295_v42  ;;  %v3023_v42 = vadd.f32 %v16763_v52, %v2811_v11  ;;  %v14349_v11 = vld [vmem:[#allocation11 + $0xc2c] ss:$16 sps:$4 sm:$0xff]  }
 0x4fd   : > { %6777 = vmatpush1.bf16.msra.mxu0 %v14290_v27  ;;  %v3039_v27 = vadd.f32 %v16763_v52, %v2827_v13  ;;  %14718 = vtanh.f32 %v3023_v42  ;;  %v14352_v42 = vld [vmem:[#allocation11 + $0xc44] ss:$16 sps:$4 sm:$0xff]  }
 0x4fe   : > { %7361 = vmatpush1.bf16.msra.mxu1 %v14293_v28  ;;  %6778 = vmatprep.subr.bf16.mxu0 %v14298_v29  ;;  %v2675_v28 = vld [vmem:[#allocation2 + $0x250] sm:$0xff] }
 0x4ff   : > { %7362 = vmatprep.subr.bf16.mxu1 %v14301_v60  ;;  %v14326_v29 = vld [vmem:[#allocation11 + $0xbc0] ss:$16 sps:$4 sm:$0xff]   ;;  %v3056_v60 = vadd.f32 %v16754_v15, %v2844_v18  ;;  %14720 = vtanh.f32 %v3039_v27  ;;  %v2614_v18 = vld [vmem:[#allocation2 + $0x68] sm:$0xff] }
 0x501   : > { %6779 = vmatpush1.bf16.msra.mxu0 %v14296_v34  ;;  %v2691_v34 = vld [vmem:[#allocation2 + $0x2d0] sm:$0xff]  ;;  %14722 = vtanh.f32 %v3056_v60  ;;  %v2782_v60 = vmul.f32 %v16523_v33, %v2614_v18  ;;  %v14385_v18 = vld [vmem:[#allocation11 + $0xcec] ss:$16 sps:$4 sm:$0xff]  }
 0x502   : > { %7363 = vmatpush1.bf16.msra.mxu1 %v14299_v35  ;;  %6780 = vmatprep.subr.bf16.mxu0 %v14304_v38  ;;  %v14329_v35 = vld [vmem:[#allocation11 + $0xbc8] ss:$16 sps:$4 sm:$0xff]   ;;  %v14334_v38 = vld [vmem:[#allocation11 + $0xbe4] ss:$16 sps:$4 sm:$0xff]   ;;  %v2859_v44 = vmul.f32 %v16541_v50, %v2691_v34  ;;  %v16794_v34 = vrot.slane %v16707_v37, %v16613_v22 }
 0x503   : > { %7364 = vmatprep.subr.bf16.mxu1 %v14307_v39  ;;  %v3072_v39 = vadd.f32 %v16754_v15, %v2860_v20 }
 0x504   : > { %v3071_v23 = vadd.f32 %v16763_v52, %v2859_v44  ;;  %v14361_v44 = vld [vmem:[#allocation11 + $0xc6c] ss:$16 sps:$4 sm:$0xff]  }
 0x505   : > { %6781 = vmatpush1.bf16.msra.mxu0 %v14302_v58  ;;  %v2708_v58 = vld [vmem:[#allocation2 + $0x358] sm:$0xff]  ;;  %14724 = vtanh.f32 %v3072_v39  ;;  %v14350_v39 = vld [vmem:[#allocation11 + $0xc40] ss:$16 sps:$4 sm:$0xff]  }
 0x506   : > { %7365 = vmatpush1.bf16.msra.mxu1 %v14305_v9  ;;  %6782 = vmatprep.subr.bf16.mxu0 %v14310_v16  ;;  %v2843_v9 = vmul.f32 %v16545_v54, %v2675_v28  ;;  %v2724_v16 = vld [vmem:[#allocation2 + $0x3d8] sm:$0xff]  ;;  %v2876_v31 = vmul.f32 %v16555_v3, %v2708_v58 }
 0x507   : > { %7366 = vmatprep.subr.bf16.mxu1 %v14313_v45  ;;  %v14332_v45 = vld [vmem:[#allocation11 + $0xbe0] ss:$16 sps:$4 sm:$0xff]   ;;  %v2892_v49 = vmul.f32 %v16552_v63, %v2724_v16  ;;  %v14355_v28 = vld [vmem:[#allocation11 + $0xc4c] ss:$16 sps:$4 sm:$0xff]   ;;  %v14358_v16 = vld [vmem:[#allocation11 + $0xc64] ss:$16 sps:$4 sm:$0xff]  }
 0x508   : > { %v3055_v6 = vadd.f32 %v16763_v52, %v2843_v9  ;;  %v3088_v0 = vadd.f32 %v16754_v15, %v2876_v31  ;;  %v14356_v31 = vld [vmem:[#allocation11 + $0xc60] ss:$16 sps:$4 sm:$0xff]  }
 0x509   : > { %6783 = vmatpush1.bf16.msra.mxu0 %v14308_v47  ;;  %v14340_v47 = vld [vmem:[#allocation11 + $0xc04] ss:$16 sps:$4 sm:$0xff]  }
 0x50a   : > { %7367 = vmatpush1.bf16.msra.mxu1 %v14311_v26  ;;  %6784 = vmatprep.subr.bf16.mxu0 %v14316_v51  ;;  %v14713_v26 = vpop.eup %14712  ;;  %v14343_v51 = vld [vmem:[#allocation11 + $0xc0c] ss:$16 sps:$4 sm:$0xff]   ;;  %14726 = vtanh.f32 %v3055_v6  ;;  %v14362_v6 = vld [vmem:[#allocation11 + $0xc80] ss:$16 sps:$4 sm:$0xff]  }
 0x50b   : > { %7368 = vmatprep.subr.bf16.mxu1 %v14319_v56  ;;  %v14715_v56 = vpop.eup %14714  ;;  %14728 = vtanh.f32 %v3071_v23 }
 0x50c   : > { %v14717_v62 = vpop.eup %14716  ;;  %v3264_v57 = vpack.c.bf16 %v14715_v56, %v14713_v26  ;;  %14730 = vtanh.f32 %v3088_v0  ;;  %v14367_v26 = vld [vmem:[#allocation11 + $0xc8c] ss:$16 sps:$4 sm:$0xff]   ;;  %v14365_v56 = vld [vmem:[#allocation11 + $0xc88] ss:$16 sps:$4 sm:$0xff]  }
 0x50d   : > { %6785 = vmatpush1.bf16.msra.mxu0 %v14314_v1  ;;  %v2707_v1 = vld [vmem:[#allocation2 + $0x350] sm:$0xff]  ;;  %v3247_v32 = vpack.c.bf16 %v14711_v53, %v14717_v62  ;;  %v14719_v13 = vpop.eup %14718  ;;  %v14373_v0 = vld [vmem:[#allocation11 + $0xcac] ss:$16 sps:$4 sm:$0xff]  }
 0x50e   : > { %7369 = vmatpush1.bf16.msra.mxu1 %v14317_v4  ;;  %6786 = vmatprep.subr.bf16.mxu0 %v14322_v5  ;;  %v3104_v4 = vadd.f32 %v16754_v15, %v2892_v49  ;;  %v2723_v5 = vld [vmem:[#allocation2 + $0x3d0] sm:$0xff]  ;;  %v2875_v12 = vmul.f32 %v16555_v3, %v2707_v1  ;;  %v14721_v15 = vpop.eup %14720 }
 0x50f   : > { %7370 = vmatprep.subr.bf16.mxu1 %v14325_v8  ;;  %v14346_v8 = vld [vmem:[#allocation11 + $0xc24] ss:$16 sps:$4 sm:$0xff]   ;;  %v14723_v20 = vpop.eup %14722 }
 0x510   : > { %14732 = vtanh.f32 %v3104_v4  ;;  %v14725_v27 = vpop.eup %14724  ;;  %v14370_v62 = vld [vmem:[#allocation11 + $0xca4] ss:$16 sps:$4 sm:$0xff]   ;;  %v14371_v4 = vld [vmem:[#allocation11 + $0xca8] ss:$16 sps:$4 sm:$0xff]  }
 0x511   : > { %6787 = vmatpush1.bf16.msra.mxu0 %v14320_v14  ;;  %v2891_v14 = vmul.f32 %v16552_v63, %v2723_v5  ;;  %v3280_v9 = vpack.c.bf16 %v14725_v27, %v14723_v20  ;;  %v14376_v5 = vld [vmem:[#allocation11 + $0xcc4] ss:$16 sps:$4 sm:$0xff]   ;;  %v14391_v20 = vld [vmem:[#allocation11 + $0xd0c] ss:$16 sps:$4 sm:$0xff]  }
 0x512   : > { %7371 = vmatpush1.bf16.msra.mxu1 %v14323_v36  ;;  %6788 = vmatprep.subr.bf16.mxu0 %v14328_v19  ;;  %v14344_v36 = vld [vmem:[#allocation11 + $0xc20] ss:$16 sps:$4 sm:$0xff]   ;;  %v2798_v19 = vmul.f32 %v16533_v43, %v2630_v10  ;;  %v14394_v27 = vld [vmem:[#allocation11 + $0xd24] ss:$16 sps:$4 sm:$0xff]  }
 0x513   : > { %7372 = vmatprep.subr.bf16.mxu1 %v14331_v21  ;;  %v14347_v21 = vld [vmem:[#allocation11 + $0xc28] ss:$16 sps:$4 sm:$0xff]  }
 0x514   : > { %v3010_v58 = vadd.f32 %v16794_v34, %v2798_v19  ;;  %v14727_v37 = vpop.eup %14726  ;;  %v14388_v19 = vld [vmem:[#allocation11 + $0xd04] ss:$16 sps:$4 sm:$0xff]  }
 0x515   : > { %6789 = vmatpush1.bf16.msra.mxu0 %v14326_v29  ;;  %v3087_v29 = vadd.f32 %v16763_v52, %v2875_v12  ;;  %v14377_v12 = vld [vmem:[#allocation11 + $0xcc8] ss:$16 sps:$4 sm:$0xff]  }
 0x516   : > { %7373 = vmatpush1.bf16.msra.mxu1 %v14329_v35  ;;  %6790 = vmatprep.subr.bf16.mxu0 %v14334_v38  ;;  %v3103_v35 = vadd.f32 %v16763_v52, %v2891_v14  ;;  %v3263_v38 = vpack.c.bf16 %v14721_v15, %v14719_v13  ;;  %v14729_v52 = vpop.eup %14728  ;;  %v14382_v14 = vld [vmem:[#allocation11 + $0xce4] ss:$16 sps:$4 sm:$0xff]   ;;  %v14380_v15 = vld [vmem:[#allocation11 + $0xce0] ss:$16 sps:$4 sm:$0xff]  }
 0x517   : > { %7374 = vmatprep.subr.bf16.mxu1 %v14337_v41  ;;  %v14353_v41 = vld [vmem:[#allocation11 + $0xc48] ss:$16 sps:$4 sm:$0xff]   ;;  %14734 = vtanh.f32 %v3087_v29  ;;  %v14731_v53 = vpop.eup %14730  ;;  %v14392_v29 = vld [vmem:[#allocation11 + $0xd20] ss:$16 sps:$4 sm:$0xff]  }
 0x518   : > { %14736 = vtanh.f32 %v3103_v35  ;;  %v14400_v35 = vld [vmem:[#allocation11 + $0xd44] ss:$16 sps:$4 sm:$0xff]  }
 0x519   : > { %6791 = vmatpush1.bf16.msra.mxu0 %v14332_v45  ;;  %v2994_v45 = vadd.f32 %v16794_v34, %v2782_v60  ;;  %14738 = vtanh.f32 %v3010_v58  ;;  %v14395_v60 = vld [vmem:[#allocation11 + $0xd28] ss:$16 sps:$4 sm:$0xff]   ;;  %v2629_v58 = vld [vmem:[#allocation2 + $0xe0] sm:$0xff] }
 0x51a   : > { %7375 = vmatpush1.bf16.msra.mxu1 %v14335_v55  ;;  %6833 = vmatprep.subr.bf16.mxu0 %v14340_v47  ;;  %v14359_v55 = vld [vmem:[#allocation11 + $0xc68] ss:$16 sps:$4 sm:$0xff]   ;;  %v14364_v47 = vld [vmem:[#allocation11 + $0xc84] ss:$16 sps:$4 sm:$0xff]   ;;  %v14733_v49 = vpop.eup %14732 }
 0x51b   : > { %7417 = vmatprep.subr.bf16.mxu1 %v14343_v51  ;;  %14740 = vtanh.f32 %v2994_v45  ;;  %v3279_v51 = vpack.c.bf16 %v14729_v52, %v14727_v37  ;;  %v3296_v23 = vpack.c.bf16 %v14733_v49, %v14731_v53  ;;  %v2662_v45 = vld [vmem:[#allocation2 + $0x1e8] sm:$0xff]  ;;  %v2613_v37 = vld [vmem:[#allocation2 + $0x60] sm:$0xff]  ;;  %v2797_v52 = vmul.f32 %v16533_v43, %v2629_v58 }
 0x51c   : > { %6793 = vmatmul.mubr.bf16.vlgmr.msra.gmra.mrb[0].mxu0 %v3247_v32  ;;  %v16801_v49 = vld [vmem:[#allocation10 + $0x8] sm:$0xff] }
 0x51d   : > { %7377 = vmatmul.mubr.bf16.vlgmr.msra.gmra.mrb[0].mxu1 %v3247_v32  ;;  %6802 = vmatprep.mubr.bf16.mxu0 %v3264_v57  ;;  %v14368_v32 = vld [vmem:[#allocation11 + $0xca0] ss:$16 sps:$4 sm:$0xff]   ;;  %v14433_v58 = vld [vmem:[#allocation11 + $0xdec] ss:$16 sps:$4 sm:$0xff]  }
 0x51e   : > { %6834 = vmatpush1.bf16.msra.mxu0 %v14338_v2  ;;  %7386 = vmatprep.mubr.bf16.mxu1 %v3264_v57  ;;  %v14379_v57 = vld [vmem:[#allocation11 + $0xccc] ss:$16 sps:$4 sm:$0xff]  }
 0x51f   : > { %7418 = vmatpush1.bf16.msra.mxu1 %v14341_v7  ;;  %6835 = vmatprep.subr.bf16.mxu0 %v14346_v8 }
 0x520   : > { %7419 = vmatprep.subr.bf16.mxu1 %v14349_v11  ;;  %v14374_v11 = vld [vmem:[#allocation11 + $0xcc0] ss:$16 sps:$4 sm:$0xff]  }
 0x521   : > { %v14735_v1 = vpop.eup %14734 }
 0x522   : > { %6836 = vmatpush1.bf16.msra.mxu0 %v14344_v36  ;;  %v14737_v2 = vpop.eup %14736  ;;  %v14383_v36 = vld [vmem:[#allocation11 + $0xce8] ss:$16 sps:$4 sm:$0xff]  }
 0x523   : > { %7420 = vmatpush1.bf16.msra.mxu1 %v14347_v21  ;;  %6837 = vmatprep.subr.bf16.mxu0 %v14352_v42  ;;  %v14739_v7 = vpop.eup %14738  ;;  %v3295_v10 = vpack.c.bf16 %v14737_v2, %v14735_v1  ;;  %v14386_v21 = vld [vmem:[#allocation11 + $0xd00] ss:$16 sps:$4 sm:$0xff]   ;;  %v14389_v42 = vld [vmem:[#allocation11 + $0xd08] ss:$16 sps:$4 sm:$0xff]  }
 0x524   : > { %6803 = vmatmul.mubr.bf16.gmra.mrb[4].mxu0 %v3263_v38  ;;  %7421 = vmatprep.subr.bf16.mxu1 %v14355_v28  ;;  %v14397_v28 = vld [vmem:[#allocation11 + $0xd2c] ss:$16 sps:$4 sm:$0xff]   ;;  %v14413_v2 = vld [vmem:[#allocation11 + $0xd88] ss:$16 sps:$4 sm:$0xff]  }
 0x525   : > { %7387 = vmatmul.mubr.bf16.gmra.mrb[4].mxu1 %v3263_v38  ;;  %6812 = vmatprep.mubr.bf16.mxu0 %v3280_v9  ;;  %v14741_v8 = vpop.eup %14740  ;;  %v14403_v38 = vld [vmem:[#allocation11 + $0xd4c] ss:$16 sps:$4 sm:$0xff]  }
 0x526   : > { %6838 = vmatpush1.bf16.msra.mxu0 %v14350_v39  ;;  %7396 = vmatprep.mubr.bf16.mxu1 %v3280_v9  ;;  %v3250_v13 = vpack.c.bf16 %v14739_v7, %v14741_v8  ;;  %v14398_v39 = vld [vmem:[#allocation11 + $0xd40] ss:$16 sps:$4 sm:$0xff]   ;;  %v14406_v9 = vld [vmem:[#allocation11 + $0xd64] ss:$16 sps:$4 sm:$0xff]   ;;  %v2678_v7 = vld [vmem:[#allocation2 + $0x268] sm:$0xff] }
 0x527   : > { %7422 = vmatpush1.bf16.msra.mxu1 %v14353_v41  ;;  %6839 = vmatprep.subr.bf16.mxu0 %v14358_v16  ;;  %v14401_v41 = vld [vmem:[#allocation11 + $0xd48] ss:$16 sps:$4 sm:$0xff]  }
 0x528   : > { %7423 = vmatprep.subr.bf16.mxu1 %v14361_v44  ;;  %v2646_v16 = vld [vmem:[#allocation2 + $0x168] sm:$0xff] }
 0x529   : > { %v14409_v44 = vld [vmem:[#allocation11 + $0xd6c] ss:$16 sps:$4 sm:$0xff]   ;;  %v2814_v53 = vmul.f32 %v16513_v30, %v2646_v16 }
 0x52a   : > { %6840 = vmatpush1.bf16.msra.mxu0 %v14356_v31  ;;  %v14404_v31 = vld [vmem:[#allocation11 + $0xd60] ss:$16 sps:$4 sm:$0xff]  }
 0x52b   : > { %7424 = vmatpush1.bf16.msra.mxu1 %v14359_v55  ;;  %6841 = vmatprep.subr.bf16.mxu0 %v14364_v47  ;;  %v14407_v55 = vld [vmem:[#allocation11 + $0xd68] ss:$16 sps:$4 sm:$0xff]   ;;  %v14412_v47 = vld [vmem:[#allocation11 + $0xd84] ss:$16 sps:$4 sm:$0xff]   ;;  %v3026_v1 = vadd.f32 %v16794_v34, %v2814_v53 }
 0x52c   : > { %6813 = vmatmul.mubr.bf16.gmra.mrb[8].mxu0 %v3279_v51  ;;  %7425 = vmatprep.subr.bf16.mxu1 %v14367_v26  ;;  %v16805_v26 = vrot.slane %v16801_v49, %v16627_v48 }
 0x52d   : > { %7397 = vmatmul.mubr.bf16.gmra.mrb[8].mxu1 %v3279_v51  ;;  %6822 = vmatprep.mubr.bf16.mxu0 %v3296_v23  ;;  %v2830_v51 = vmul.f32 %v16529_v40, %v2662_v45 }
 0x52e   : > { %6842 = vmatpush1.bf16.msra.mxu0 %v14362_v6  ;;  %7406 = vmatprep.mubr.bf16.mxu1 %v3296_v23  ;;  %v14415_v6 = vld [vmem:[#allocation11 + $0xd8c] ss:$16 sps:$4 sm:$0xff]   ;;  %v3009_v23 = vadd.f32 %v16805_v26, %v2797_v52  ;;  %v14431_v52 = vld [vmem:[#allocation11 + $0xde8] ss:$16 sps:$4 sm:$0xff]  }
 0x52f   : > { %7426 = vmatpush1.bf16.msra.mxu1 %v14365_v56  ;;  %6843 = vmatprep.subr.bf16.mxu0 %v14370_v62  ;;  %v2781_v56 = vmul.f32 %v16523_v33, %v2613_v37  ;;  %v2645_v62 = vld [vmem:[#allocation2 + $0x160] sm:$0xff] }
 0x530   : > { %7427 = vmatprep.subr.bf16.mxu1 %v14373_v0  ;;  %v14410_v0 = vld [vmem:[#allocation11 + $0xd80] ss:$16 sps:$4 sm:$0xff]   ;;  %14742 = vtanh.f32 %v3009_v23 }
 0x531   : > { %v2993_v8 = vadd.f32 %v16805_v26, %v2781_v56  ;;  %14744 = vtanh.f32 %v3026_v1 }
 0x532   : > { %6844 = vmatpush1.bf16.msra.mxu0 %v14368_v32  ;;  %v2661_v32 = vld [vmem:[#allocation2 + $0x1e0] sm:$0xff] }
 0x533   : > { %7428 = vmatpush1.bf16.msra.mxu1 %v14371_v4  ;;  %6845 = vmatprep.subr.bf16.mxu0 %v14376_v5  ;;  %v14418_v4 = vld [vmem:[#allocation11 + $0xda4] ss:$16 sps:$4 sm:$0xff]   ;;  %v3042_v5 = vadd.f32 %v16794_v34, %v2830_v51 }
 0x534   : > { %6823 = vmatmul.mubr.bf16.gmra.mrb[12].mxu0 %v3295_v10  ;;  %7429 = vmatprep.subr.bf16.mxu1 %v14379_v57  ;;  %v14421_v57 = vld [vmem:[#allocation11 + $0xdac] ss:$16 sps:$4 sm:$0xff]  }
 0x535   : > { %7407 = vmatmul.mubr.bf16.gmra.mrb[12].mxu1 %v3295_v10  ;;  %6865 = vmatprep.mubr.bf16.mxu0 %v3250_v13  ;;  %v2813_v10 = vmul.f32 %v16513_v30, %v2645_v62  ;;  %14746 = vtanh.f32 %v3042_v5  ;;  %v14437_v5 = vld [vmem:[#allocation11 + $0xe08] ss:$16 sps:$4 sm:$0xff]  }
 0x536   : > { %6846 = vmatpush1.bf16.msra.mxu0 %v14374_v11  ;;  %7449 = vmatprep.mubr.bf16.mxu1 %v3250_v13  ;;  %v2694_v11 = vld [vmem:[#allocation2 + $0x2e8] sm:$0xff]  ;;  %v14416_v13 = vld [vmem:[#allocation11 + $0xda0] ss:$16 sps:$4 sm:$0xff]   ;;  %14748 = vtanh.f32 %v2993_v8  ;;  %v2632_v8 = vld [vmem:[#allocation2 + $0xf8] sm:$0xff] }
 0x537   : > { %7430 = vmatpush1.bf16.msra.mxu1 %v14377_v12  ;;  %6847 = vmatprep.subr.bf16.mxu0 %v14382_v14  ;;  %v2829_v12 = vmul.f32 %v16529_v40, %v2661_v32  ;;  %v2846_v14 = vmul.f32 %v16545_v54, %v2678_v7  ;;  %v14434_v32 = vld [vmem:[#allocation11 + $0xe00] ss:$16 sps:$4 sm:$0xff]  }
 0x538   : > { %7431 = vmatprep.subr.bf16.mxu1 %v14385_v18  ;;  %v14419_v18 = vld [vmem:[#allocation11 + $0xda8] ss:$16 sps:$4 sm:$0xff]  }
 0x53a   : > { %6848 = vmatpush1.bf16.msra.mxu0 %v14380_v15  ;;  %v14424_v15 = vld [vmem:[#allocation11 + $0xdc4] ss:$16 sps:$4 sm:$0xff]   ;;  %v14743_v37 = vpop.eup %14742 }
 0x53b   : > { %7432 = vmatpush1.bf16.msra.mxu1 %v14383_v36  ;;  %6849 = vmatprep.subr.bf16.mxu0 %v14388_v19  ;;  %v2862_v36 = vmul.f32 %v16541_v50, %v2694_v11  ;;  %v14427_v19 = vld [vmem:[#allocation11 + $0xdcc] ss:$16 sps:$4 sm:$0xff]  }
 0x53c   : > { %7433 = vmatprep.subr.bf16.mxu1 %v14391_v20  ;;  %v3025_v20 = vadd.f32 %v16805_v26, %v2813_v10  ;;  %v14445_v10 = vld [vmem:[#allocation11 + $0xe2c] ss:$16 sps:$4 sm:$0xff]  }
 0x53e   : > { %6850 = vmatpush1.bf16.msra.mxu0 %v14386_v21  ;;  %v3041_v21 = vadd.f32 %v16805_v26, %v2829_v12  ;;  %14750 = vtanh.f32 %v3025_v20  ;;  %v14448_v20 = vld [vmem:[#allocation11 + $0xe44] ss:$16 sps:$4 sm:$0xff]  }
 0x53f   : > { %7434 = vmatpush1.bf16.msra.mxu1 %v14389_v42  ;;  %6851 = vmatprep.subr.bf16.mxu0 %v14394_v27  ;;  %v2677_v42 = vld [vmem:[#allocation2 + $0x260] sm:$0xff] }
 0x540   : > { %7435 = vmatprep.subr.bf16.mxu1 %v14397_v28  ;;  %v14422_v27 = vld [vmem:[#allocation11 + $0xdc0] ss:$16 sps:$4 sm:$0xff]   ;;  %v3058_v28 = vadd.f32 %v16794_v34, %v2846_v14  ;;  %14752 = vtanh.f32 %v3041_v21  ;;  %v2616_v14 = vld [vmem:[#allocation2 + $0x78] sm:$0xff] }
 0x542   : > { %6852 = vmatpush1.bf16.msra.mxu0 %v14392_v29  ;;  %v2693_v29 = vld [vmem:[#allocation2 + $0x2e0] sm:$0xff]  ;;  %14754 = vtanh.f32 %v3058_v28  ;;  %v2784_v28 = vmul.f32 %v16523_v33, %v2616_v14 }
 0x543   : > { %7436 = vmatpush1.bf16.msra.mxu1 %v14395_v60  ;;  %6853 = vmatprep.subr.bf16.mxu0 %v14400_v35  ;;  %v14425_v60 = vld [vmem:[#allocation11 + $0xdc8] ss:$16 sps:$4 sm:$0xff]   ;;  %v14430_v35 = vld [vmem:[#allocation11 + $0xde4] ss:$16 sps:$4 sm:$0xff]   ;;  %v2861_v16 = vmul.f32 %v16541_v50, %v2693_v29  ;;  %v16836_v29 = vrot.slane %v16801_v49, %v16661_v17 }
 0x544   : > { %7437 = vmatprep.subr.bf16.mxu1 %v14403_v38  ;;  %v3074_v38 = vadd.f32 %v16794_v34, %v2862_v36  ;;  %v14478_v14 = vld [vmem:[#allocation11 + $0xee4] ss:$16 sps:$4 sm:$0xff]  }
 0x545   : > { %v3073_v56 = vadd.f32 %v16805_v26, %v2861_v16  ;;  %v14457_v16 = vld [vmem:[#allocation11 + $0xe6c] ss:$16 sps:$4 sm:$0xff]  }
 0x546   : > { %6854 = vmatpush1.bf16.msra.mxu0 %v14398_v39  ;;  %v2710_v39 = vld [vmem:[#allocation2 + $0x368] sm:$0xff]  ;;  %14756 = vtanh.f32 %v3074_v38  ;;  %v14446_v38 = vld [vmem:[#allocation11 + $0xe40] ss:$16 sps:$4 sm:$0xff]  }
 0x547   : > { %7438 = vmatpush1.bf16.msra.mxu1 %v14401_v41  ;;  %6855 = vmatprep.subr.bf16.mxu0 %v14406_v9  ;;  %v2845_v41 = vmul.f32 %v16545_v54, %v2677_v42  ;;  %v2726_v9 = vld [vmem:[#allocation2 + $0x3e8] sm:$0xff]  ;;  %v2878_v45 = vmul.f32 %v16555_v3, %v2710_v39 }
 0x548   : > { %7439 = vmatprep.subr.bf16.mxu1 %v14409_v44  ;;  %v14428_v44 = vld [vmem:[#allocation11 + $0xde0] ss:$16 sps:$4 sm:$0xff]   ;;  %v2894_v53 = vmul.f32 %v16552_v63, %v2726_v9  ;;  %v14451_v42 = vld [vmem:[#allocation11 + $0xe4c] ss:$16 sps:$4 sm:$0xff]   ;;  %v14454_v9 = vld [vmem:[#allocation11 + $0xe64] ss:$16 sps:$4 sm:$0xff]  }
 0x549   : > { %v3057_v51 = vadd.f32 %v16805_v26, %v2845_v41  ;;  %v3090_v62 = vadd.f32 %v16794_v34, %v2878_v45 }
 0x54a   : > { %6856 = vmatpush1.bf16.msra.mxu0 %v14404_v31  ;;  %v14436_v31 = vld [vmem:[#allocation11 + $0xe04] ss:$16 sps:$4 sm:$0xff]  }
 0x54b   : > { %7440 = vmatpush1.bf16.msra.mxu1 %v14407_v55  ;;  %6857 = vmatprep.subr.bf16.mxu0 %v14412_v47  ;;  %v14745_v55 = vpop.eup %14744  ;;  %v14439_v47 = vld [vmem:[#allocation11 + $0xe0c] ss:$16 sps:$4 sm:$0xff]   ;;  %14758 = vtanh.f32 %v3057_v51 }
 0x54c   : > { %7441 = vmatprep.subr.bf16.mxu1 %v14415_v6  ;;  %v14747_v6 = vpop.eup %14746  ;;  %14760 = vtanh.f32 %v3073_v56  ;;  %v14461_v56 = vld [vmem:[#allocation11 + $0xe88] ss:$16 sps:$4 sm:$0xff]  }
 0x54d   : > { %v14749_v23 = vpop.eup %14748  ;;  %v3266_v7 = vpack.c.bf16 %v14747_v6, %v14745_v55  ;;  %14762 = vtanh.f32 %v3090_v62  ;;  %v14458_v6 = vld [vmem:[#allocation11 + $0xe80] ss:$16 sps:$4 sm:$0xff]   ;;  %v14466_v62 = vld [vmem:[#allocation11 + $0xea4] ss:$16 sps:$4 sm:$0xff]  }
 0x54e   : > { %6858 = vmatpush1.bf16.msra.mxu0 %v14410_v0  ;;  %v2709_v0 = vld [vmem:[#allocation2 + $0x360] sm:$0xff]  ;;  %v3249_v1 = vpack.c.bf16 %v14743_v37, %v14749_v23  ;;  %v14751_v12 = vpop.eup %14750 }
 0x54f   : > { %7442 = vmatpush1.bf16.msra.mxu1 %v14413_v2  ;;  %6859 = vmatprep.subr.bf16.mxu0 %v14418_v4  ;;  %v3106_v2 = vadd.f32 %v16794_v34, %v2894_v53  ;;  %v2725_v4 = vld [vmem:[#allocation2 + $0x3e0] sm:$0xff]  ;;  %v2877_v11 = vmul.f32 %v16555_v3, %v2709_v0  ;;  %v14753_v34 = vpop.eup %14752  ;;  %v14469_v0 = vld [vmem:[#allocation11 + $0xeac] ss:$16 sps:$4 sm:$0xff]  }
 0x550   : > { %7443 = vmatprep.subr.bf16.mxu1 %v14421_v57  ;;  %v14442_v57 = vld [vmem:[#allocation11 + $0xe24] ss:$16 sps:$4 sm:$0xff]   ;;  %v14755_v36 = vpop.eup %14754  ;;  %v14452_v37 = vld [vmem:[#allocation11 + $0xe60] ss:$16 sps:$4 sm:$0xff]  }
 0x551   : > { %14764 = vtanh.f32 %v3106_v2  ;;  %v14757_v21 = vpop.eup %14756  ;;  %v14460_v53 = vld [vmem:[#allocation11 + $0xe84] ss:$16 sps:$4 sm:$0xff]  }
 0x552   : > { %6860 = vmatpush1.bf16.msra.mxu0 %v14416_v13  ;;  %v2893_v13 = vmul.f32 %v16552_v63, %v2725_v4  ;;  %v3282_v41 = vpack.c.bf16 %v14757_v21, %v14755_v36  ;;  %v14467_v4 = vld [vmem:[#allocation11 + $0xea8] ss:$16 sps:$4 sm:$0xff]   ;;  %v14484_v36 = vld [vmem:[#allocation11 + $0xf04] ss:$16 sps:$4 sm:$0xff]  }
 0x553   : > { %7444 = vmatpush1.bf16.msra.mxu1 %v14419_v18  ;;  %6861 = vmatprep.subr.bf16.mxu0 %v14424_v15  ;;  %v14440_v18 = vld [vmem:[#allocation11 + $0xe20] ss:$16 sps:$4 sm:$0xff]   ;;  %v2800_v15 = vmul.f32 %v16533_v43, %v2632_v8  ;;  %v14485_v21 = vld [vmem:[#allocation11 + $0xf08] ss:$16 sps:$4 sm:$0xff]  }
 0x554   : > { %7445 = vmatprep.subr.bf16.mxu1 %v14427_v19  ;;  %v14443_v19 = vld [vmem:[#allocation11 + $0xe28] ss:$16 sps:$4 sm:$0xff]  }
 0x555   : > { %v3012_v39 = vadd.f32 %v16836_v29, %v2800_v15  ;;  %v14759_v45 = vpop.eup %14758  ;;  %v14479_v15 = vld [vmem:[#allocation11 + $0xee8] ss:$16 sps:$4 sm:$0xff]  }
 0x556   : > { %6862 = vmatpush1.bf16.msra.mxu0 %v14422_v27  ;;  %v3089_v27 = vadd.f32 %v16805_v26, %v2877_v11  ;;  %v14470_v11 = vld [vmem:[#allocation11 + $0xec0] ss:$16 sps:$4 sm:$0xff]  }
 0x557   : > { %7446 = vmatpush1.bf16.msra.mxu1 %v14425_v60  ;;  %6863 = vmatprep.subr.bf16.mxu0 %v14430_v35  ;;  %v3105_v60 = vadd.f32 %v16805_v26, %v2893_v13  ;;  %v3265_v35 = vpack.c.bf16 %v14753_v34, %v14751_v12  ;;  %v14761_v26 = vpop.eup %14760  ;;  %v14473_v12 = vld [vmem:[#allocation11 + $0xec8] ss:$16 sps:$4 sm:$0xff]   ;;  %v14481_v34 = vld [vmem:[#allocation11 + $0xeec] ss:$16 sps:$4 sm:$0xff]  }
 0x558   : > { %7447 = vmatprep.subr.bf16.mxu1 %v14433_v58  ;;  %v14449_v58 = vld [vmem:[#allocation11 + $0xe48] ss:$16 sps:$4 sm:$0xff]   ;;  %14766 = vtanh.f32 %v3089_v27  ;;  %v3281_v51 = vpack.c.bf16 %v14761_v26, %v14759_v45  ;;  %v14493_v27 = vld [vmem:[#allocation11 + $0xf2c] ss:$16 sps:$4 sm:$0xff]   ;;  %v2615_v26 = vld [vmem:[#allocation2 + $0x70] sm:$0xff] }
 0x559   : > { %14768 = vtanh.f32 %v3105_v60  ;;  %v14491_v60 = vld [vmem:[#allocation11 + $0xf28] ss:$16 sps:$4 sm:$0xff]  }
 0x55a   : > { %6864 = vmatpush1.bf16.msra.mxu0 %v14428_v44  ;;  %v2996_v44 = vadd.f32 %v16836_v29, %v2784_v28  ;;  %14770 = vtanh.f32 %v3012_v39  ;;  %v14488_v28 = vld [vmem:[#allocation11 + $0xf20] ss:$16 sps:$4 sm:$0xff]   ;;  %v2664_v45 = vld [vmem:[#allocation2 + $0x1f8] sm:$0xff] }
 0x55b   : > { %7448 = vmatpush1.bf16.msra.mxu1 %v14431_v52  ;;  %6906 = vmatprep.subr.bf16.mxu0 %v14436_v31  ;;  %v14763_v52 = vpop.eup %14762  ;;  %v14455_v31 = vld [vmem:[#allocation11 + $0xe68] ss:$16 sps:$4 sm:$0xff]   ;;  %v14494_v39 = vld [vmem:[#allocation11 + $0xf40] ss:$16 sps:$4 sm:$0xff]  }
 0x55c   : > { %7490 = vmatprep.subr.bf16.mxu1 %v14439_v47  ;;  %v14765_v55 = vpop.eup %14764  ;;  %v14463_v47 = vld [vmem:[#allocation11 + $0xe8c] ss:$16 sps:$4 sm:$0xff]   ;;  %14772 = vtanh.f32 %v2996_v44 }
 0x55d   : > { %6866 = vmatmul.mubr.bf16.vlgmr.msra.gmra.mrb[0].mxu0 %v3249_v1  ;;  %v3298_v23 = vpack.c.bf16 %v14765_v55, %v14763_v52  ;;  %v14505_v44 = vld [vmem:[#allocation11 + $0xf6c] ss:$16 sps:$4 sm:$0xff]   ;;  %v14500_v52 = vld [vmem:[#allocation11 + $0xf60] ss:$16 sps:$4 sm:$0xff]   ;;  %v14508_v55 = vld [vmem:[#allocation11 + $0xf84] ss:$16 sps:$4 sm:$0xff]  }
 0x55e   : > { %7450 = vmatmul.mubr.bf16.vlgmr.msra.gmra.mrb[0].mxu1 %v3249_v1  ;;  %6875 = vmatprep.mubr.bf16.mxu0 %v3266_v7 }
 0x55f   : > { %6907 = vmatpush1.bf16.msra.mxu0 %v14434_v32  ;;  %7459 = vmatprep.mubr.bf16.mxu1 %v3266_v7  ;;  %v14464_v32 = vld [vmem:[#allocation11 + $0xea0] ss:$16 sps:$4 sm:$0xff]  }
 0x560   : > { %7491 = vmatpush1.bf16.msra.mxu1 %v14437_v5  ;;  %6908 = vmatprep.subr.bf16.mxu0 %v14442_v57  ;;  %v14472_v5 = vld [vmem:[#allocation11 + $0xec4] ss:$16 sps:$4 sm:$0xff]   ;;  %v14475_v57 = vld [vmem:[#allocation11 + $0xecc] ss:$16 sps:$4 sm:$0xff]  }
 0x561   : > { %7492 = vmatprep.subr.bf16.mxu1 %v14445_v10 }
 0x562   : > { %v14767_v1 = vpop.eup %14766 }
 0x563   : > { %6909 = vmatpush1.bf16.msra.mxu0 %v14440_v18  ;;  %v14769_v2 = vpop.eup %14768  ;;  %v14476_v18 = vld [vmem:[#allocation11 + $0xee0] ss:$16 sps:$4 sm:$0xff]  }
 0x564   : > { %7493 = vmatpush1.bf16.msra.mxu1 %v14443_v19  ;;  %6910 = vmatprep.subr.bf16.mxu0 %v14448_v20  ;;  %v14771_v7 = vpop.eup %14770  ;;  %v3297_v10 = vpack.c.bf16 %v14769_v2, %v14767_v1  ;;  %v14487_v19 = vld [vmem:[#allocation11 + $0xf0c] ss:$16 sps:$4 sm:$0xff]   ;;  %v14482_v20 = vld [vmem:[#allocation11 + $0xf00] ss:$16 sps:$4 sm:$0xff]   ;;  %v14514_v2 = vld [vmem:[#allocation11 + $0xfa4] ss:$16 sps:$4 sm:$0xff]  }
 0x565   : > { %6876 = vmatmul.mubr.bf16.gmra.mrb[4].mxu0 %v3265_v35  ;;  %7494 = vmatprep.subr.bf16.mxu1 %v14451_v42  ;;  %v14490_v42 = vld [vmem:[#allocation11 + $0xf24] ss:$16 sps:$4 sm:$0xff]  }
 0x566   : > { %7460 = vmatmul.mubr.bf16.gmra.mrb[4].mxu1 %v3265_v35  ;;  %6885 = vmatprep.mubr.bf16.mxu0 %v3282_v41  ;;  %v14773_v8 = vpop.eup %14772  ;;  %v14496_v35 = vld [vmem:[#allocation11 + $0xf44] ss:$16 sps:$4 sm:$0xff]  }
 0x567   : > { %6911 = vmatpush1.bf16.msra.mxu0 %v14446_v38  ;;  %7469 = vmatprep.mubr.bf16.mxu1 %v3282_v41  ;;  %v3252_v13 = vpack.c.bf16 %v14771_v7, %v14773_v8  ;;  %v14499_v38 = vld [vmem:[#allocation11 + $0xf4c] ss:$16 sps:$4 sm:$0xff]   ;;  %v14497_v41 = vld [vmem:[#allocation11 + $0xf48] ss:$16 sps:$4 sm:$0xff]   ;;  %v2663_v1 = vld [vmem:[#allocation2 + $0x1f0] sm:$0xff] }
 0x568   : > { %7495 = vmatpush1.bf16.msra.mxu1 %v14449_v58  ;;  %6912 = vmatprep.subr.bf16.mxu0 %v14454_v9  ;;  %v2631_v58 = vld [vmem:[#allocation2 + $0xf0] sm:$0xff]  ;;  %v2831_v8 = vmul.f32 %v16529_v40, %v2663_v1 }
 0x569   : > { %7496 = vmatprep.subr.bf16.mxu1 %v14457_v16  ;;  %v14502_v9 = vld [vmem:[#allocation11 + $0xf64] ss:$16 sps:$4 sm:$0xff]   ;;  %v2648_v16 = vld [vmem:[#allocation2 + $0x178] sm:$0xff] }
 0x56b   : > { %6913 = vmatpush1.bf16.msra.mxu0 %v14452_v37  ;;  %v2799_v37 = vmul.f32 %v16533_v43, %v2631_v58 }
 0x56c   : > { %7497 = vmatpush1.bf16.msra.mxu1 %v14455_v31  ;;  %6914 = vmatprep.subr.bf16.mxu0 %v14460_v53  ;;  %v2816_v31 = vmul.f32 %v16513_v30, %v2648_v16  ;;  %v14503_v53 = vld [vmem:[#allocation11 + $0xf68] ss:$16 sps:$4 sm:$0xff]   ;;  %v14524_v16 = vld [vmem:[#allocation11 + $0xfe0] ss:$16 sps:$4 sm:$0xff]  }
 0x56d   : > { %6886 = vmatmul.mubr.bf16.gmra.mrb[8].mxu0 %v3281_v51  ;;  %7498 = vmatprep.subr.bf16.mxu1 %v14463_v47  ;;  %v16845_v47 = vrot.slane %v16801_v49, %v16675_v61 }
 0x56e   : > { %7470 = vmatmul.mubr.bf16.gmra.mrb[8].mxu1 %v3281_v51  ;;  %6895 = vmatprep.mubr.bf16.mxu0 %v3298_v23  ;;  %v2832_v51 = vmul.f32 %v16529_v40, %v2664_v45  ;;  %v2679_v40 = vld [vmem:[#allocation2 + $0x270] sm:$0xff] }
 0x56f   : > { %6915 = vmatpush1.bf16.msra.mxu0 %v14458_v6  ;;  %7479 = vmatprep.mubr.bf16.mxu1 %v3298_v23  ;;  %v14511_v6 = vld [vmem:[#allocation11 + $0xf8c] ss:$16 sps:$4 sm:$0xff]   ;;  %v3011_v43 = vadd.f32 %v16845_v47, %v2799_v37  ;;  %v2647_v23 = vld [vmem:[#allocation2 + $0x170] sm:$0xff] }
 0x570   : > { %7499 = vmatpush1.bf16.msra.mxu1 %v14461_v56  ;;  %6916 = vmatprep.subr.bf16.mxu0 %v14466_v62  ;;  %v2783_v56 = vmul.f32 %v16523_v33, %v2615_v26  ;;  %v14506_v62 = vld [vmem:[#allocation11 + $0xf80] ss:$16 sps:$4 sm:$0xff]   ;;  %v3044_v49 = vadd.f32 %v16836_v29, %v2832_v51  ;;  %v2815_v33 = vmul.f32 %v16513_v30, %v2647_v23  ;;  %v14527_v26 = vld [vmem:[#allocation11 + $0xfe8] ss:$16 sps:$4 sm:$0xff]  }
 0x571   : > { %7500 = vmatprep.subr.bf16.mxu1 %v14469_v0  ;;  %v3028_v0 = vadd.f32 %v16836_v29, %v2816_v31  ;;  %14774 = vtanh.f32 %v3011_v43  ;;  %v7619_v51 = vld [vmem:[#allocation14 + $0x80] sm:$0xff] }
 0x572   : > { %v2995_v7 = vadd.f32 %v16845_v47, %v2783_v56  ;;  %v3027_v30 = vadd.f32 %v16845_v47, %v2815_v33  ;;  %v2711_v23 = vld [vmem:[#allocation2 + $0x370] sm:$0xff] }
 0x573   : > { %6917 = vmatpush1.bf16.msra.mxu0 %v14464_v32  ;;  %v14509_v32 = vld [vmem:[#allocation11 + $0xf88] ss:$16 sps:$4 sm:$0xff]   ;;  %14776 = vtanh.f32 %v3028_v0  ;;  %v7628_v0 = vld [vmem:[#allocation14 + $0xc8] sm:$0xff]  ;;  %v2879_v33 = vmul.f32 %v16555_v3, %v2711_v23 }
 0x574   : > { %7501 = vmatpush1.bf16.msra.mxu1 %v14467_v4  ;;  %6918 = vmatprep.subr.bf16.mxu0 %v14472_v5  ;;  %v2680_v4 = vld [vmem:[#allocation2 + $0x278] sm:$0xff]  ;;  %14778 = vtanh.f32 %v3044_v49 }
 0x575   : > { %6896 = vmatmul.mubr.bf16.gmra.mrb[12].mxu0 %v3297_v10  ;;  %7502 = vmatprep.subr.bf16.mxu1 %v14475_v57  ;;  %v14517_v5 = vld [vmem:[#allocation11 + $0xfac] ss:$16 sps:$4 sm:$0xff]   ;;  %14780 = vtanh.f32 %v2995_v7 }
 0x576   : > { %7480 = vmatmul.mubr.bf16.gmra.mrb[12].mxu1 %v3297_v10  ;;  %6938 = vmatprep.mubr.bf16.mxu0 %v3252_v13  ;;  %v2696_v57 = vld [vmem:[#allocation2 + $0x2f8] sm:$0xff]  ;;  %v14512_v10 = vld [vmem:[#allocation11 + $0xfa0] ss:$16 sps:$4 sm:$0xff]   ;;  %14782 = vtanh.f32 %v3027_v30 }
 0x577   : > { %6919 = vmatpush1.bf16.msra.mxu0 %v14470_v11  ;;  %7522 = vmatprep.mubr.bf16.mxu1 %v3252_v13  ;;  %v2848_v11 = vmul.f32 %v16545_v54, %v2680_v4  ;;  %v14520_v13 = vld [vmem:[#allocation11 + $0xfc4] ss:$16 sps:$4 sm:$0xff]  }
 0x578   : > { %7503 = vmatpush1.bf16.msra.mxu1 %v14473_v12  ;;  %6920 = vmatprep.subr.bf16.mxu0 %v14478_v14  ;;  %v14515_v12 = vld [vmem:[#allocation11 + $0xfa8] ss:$16 sps:$4 sm:$0xff]   ;;  %v2864_v14 = vmul.f32 %v16541_v50, %v2696_v57 }
 0x579   : > { %7504 = vmatprep.subr.bf16.mxu1 %v14481_v34  ;;  %v14523_v34 = vld [vmem:[#allocation11 + $0xfcc] ss:$16 sps:$4 sm:$0xff]  }
 0x57b   : > { %6921 = vmatpush1.bf16.msra.mxu0 %v14476_v18  ;;  %v3043_v18 = vadd.f32 %v16845_v47, %v2831_v8  ;;  %v14775_v45 = vpop.eup %14774  ;;  %v7635_v8 = vld [vmem:[#allocation14 + $0x100] sm:$0xff] }
 0x57c   : > { %7505 = vmatpush1.bf16.msra.mxu1 %v14479_v15  ;;  %6922 = vmatprep.subr.bf16.mxu0 %v14484_v36  ;;  %v14518_v15 = vld [vmem:[#allocation11 + $0xfc0] ss:$16 sps:$4 sm:$0xff]   ;;  %v3060_v36 = vadd.f32 %v16836_v29, %v2848_v11 }
 0x57d   : > { %7506 = vmatprep.subr.bf16.mxu1 %v14487_v19  ;;  %v2695_v19 = vld [vmem:[#allocation2 + $0x2f0] sm:$0xff]  ;;  %14784 = vtanh.f32 %v3043_v18 }
 0x57e   : > { %v2863_v58 = vmul.f32 %v16541_v50, %v2695_v19  ;;  %14786 = vtanh.f32 %v3060_v36  ;;  %v7651_v19 = vld [vmem:[#allocation14 + $0x180] sm:$0xff] }
 0x57f   : > { %6923 = vmatpush1.bf16.msra.mxu0 %v14482_v20  ;;  %v2712_v20 = vld [vmem:[#allocation2 + $0x378] sm:$0xff] }
 0x580   : > { %7507 = vmatpush1.bf16.msra.mxu1 %v14485_v21  ;;  %6924 = vmatprep.subr.bf16.mxu0 %v14490_v42  ;;  %v14521_v21 = vld [vmem:[#allocation11 + $0xfc8] ss:$16 sps:$4 sm:$0xff]   ;;  %v14526_v42 = vld [vmem:[#allocation11 + $0xfe4] ss:$16 sps:$4 sm:$0xff]  }
 0x581   : > { %7508 = vmatprep.subr.bf16.mxu1 %v14493_v27  ;;  %v3076_v27 = vadd.f32 %v16836_v29, %v2864_v14 }
 0x583   : > { %6925 = vmatpush1.bf16.msra.mxu0 %v14488_v28  ;;  %v2728_v28 = vld [vmem:[#allocation2 + $0x3f8] sm:$0xff]  ;;  %14788 = vtanh.f32 %v3076_v27 }
 0x584   : > { %7509 = vmatpush1.bf16.msra.mxu1 %v14491_v60  ;;  %6926 = vmatprep.subr.bf16.mxu0 %v14496_v35  ;;  %v14529_v60 = vld [vmem:[#allocation11 + $0xfec] ss:$16 sps:$4 sm:$0xff]   ;;  %v2847_v35 = vmul.f32 %v16545_v54, %v2679_v40  ;;  %v2896_v37 = vmul.f32 %v16552_v63, %v2728_v28 }
 0x585   : > { %7510 = vmatprep.subr.bf16.mxu1 %v14499_v38  ;;  %v7603_v38 = vld [vmem:[#allocation14] sm:$0xff] }
 0x586   : > { %v3059_v31 = vadd.f32 %v16845_v47, %v2847_v35 }
 0x587   : > { %6927 = vmatpush1.bf16.msra.mxu0 %v14494_v39  ;;  %v7611_v39 = vld [vmem:[#allocation14 + $0x40] sm:$0xff] }
 0x588   : > { %7511 = vmatpush1.bf16.msra.mxu1 %v14497_v41  ;;  %6928 = vmatprep.subr.bf16.mxu0 %v14502_v9  ;;  %v7604_v41 = vld [vmem:[#allocation14 + $0x8] sm:$0xff]  ;;  %v12616_v54 = vcombine.high %v7603_v38, %v7611_v39  ;;  %v12615_v49 = vcombine.low %v7603_v38, %v7611_v39  ;;  %14790 = vtanh.f32 %v3059_v31 }
 0x589   : > { %7512 = vmatprep.subr.bf16.mxu1 %v14505_v44  ;;  %v7612_v9 = vld [vmem:[#allocation14 + $0x48] sm:$0xff]  ;;  %v2880_v44 = vmul.f32 %v16555_v3, %v2712_v20  ;;  %v7659_v20 = vld [vmem:[#allocation14 + $0x1c0] sm:$0xff] }
 0x58a   : > { %v12618_v50 = vcombine.high %v7604_v41, %v7612_v9  ;;  %v12664_v38 = vcombine.high %v7651_v19, %v7659_v20 }
 0x58b   : > { %6929 = vmatpush1.bf16.msra.mxu0 %v14500_v52  ;;  %v14777_v52 = vpop.eup %14776  ;;  %v3092_v43 = vadd.f32 %v16836_v29, %v2880_v44 }
 0x58c   : > { %7513 = vmatpush1.bf16.msra.mxu1 %v14503_v53  ;;  %6930 = vmatprep.subr.bf16.mxu0 %v14508_v55  ;;  %v14779_v53 = vpop.eup %14778  ;;  %v3075_v55 = vadd.f32 %v16845_v47, %v2863_v58  ;;  %v7667_v58 = vld [vmem:[#allocation14 + $0x200] sm:$0xff] }
 0x58d   : > { %7514 = vmatprep.subr.bf16.mxu1 %v14511_v6  ;;  %v7627_v6 = vld [vmem:[#allocation14 + $0xc0] sm:$0xff]  ;;  %v14781_v56 = vpop.eup %14780  ;;  %v3268_v4 = vpack.c.bf16 %v14779_v53, %v14777_v52 }
 0x58e   : > { %v3251_v1 = vpack.c.bf16 %v14775_v45, %v14781_v56  ;;  %v12632_v7 = vcombine.high %v7619_v51, %v7627_v6  ;;  %14792 = vtanh.f32 %v3075_v55  ;;  %v14783_v11 = vpop.eup %14782  ;;  %v12663_v45 = vcombine.low %v7651_v19, %v7659_v20  ;;  %v7691_v53 = vld [vmem:[#allocation14 + $0x2c0] sm:$0xff]  ;;  %v7684_v55 = vld [vmem:[#allocation14 + $0x288] sm:$0xff] }
 0x58f   : > { %6931 = vmatpush1.bf16.msra.mxu0 %v14506_v62  ;;  %v7620_v62 = vld [vmem:[#allocation14 + $0x88] sm:$0xff]  ;;  %14794 = vtanh.f32 %v3092_v43  ;;  %v14785_v14 = vpop.eup %14784 }
 0x590   : > { %7515 = vmatpush1.bf16.msra.mxu1 %v14509_v32  ;;  %6932 = vmatprep.subr.bf16.mxu0 %v14514_v2  ;;  %v3108_v32 = vadd.f32 %v16836_v29, %v2896_v37  ;;  %v2727_v2 = vld [vmem:[#allocation2 + $0x3f0] sm:$0xff]  ;;  %v12634_v57 = vcombine.high %v7620_v62, %v7628_v0  ;;  %v14787_v30 = vpop.eup %14786  ;;  %v12633_v3 = vcombine.low %v7620_v62, %v7628_v0 }
 0x591   : > { %7516 = vmatprep.subr.bf16.mxu1 %v14517_v5  ;;  %v12617_v5 = vcombine.low %v7604_v41, %v7612_v9  ;;  %v2895_v29 = vmul.f32 %v16552_v63, %v2727_v2  ;;  %v14789_v40 = vpop.eup %14788  ;;  %v3267_v27 = vpack.c.bf16 %v14785_v14, %v14783_v11  ;;  %v7675_v41 = vld [vmem:[#allocation14 + $0x240] sm:$0xff]  ;;  %v7700_v2 = vld [vmem:[#allocation14 + $0x308] sm:$0xff] }
 0x592   : > { %14796 = vtanh.f32 %v3108_v32  ;;  %v14791_v9 = vpop.eup %14790  ;;  %v12679_v56 = vcombine.low %v7667_v58, %v7675_v41  ;;  %v7707_v32 = vld [vmem:[#allocation14 + $0x340] sm:$0xff] }
 0x593   : > { %6933 = vmatpush1.bf16.msra.mxu0 %v14512_v10  ;;  %v7643_v10 = vld [vmem:[#allocation14 + $0x140] sm:$0xff]  ;;  %v3107_v63 = vadd.f32 %v16845_v47, %v2895_v29  ;;  %v7716_v29 = vld [vmem:[#allocation14 + $0x388] sm:$0xff] }
 0x594   : > { %7517 = vmatpush1.bf16.msra.mxu1 %v14515_v12  ;;  %6934 = vmatprep.subr.bf16.mxu0 %v14520_v13  ;;  %v7636_v12 = vld [vmem:[#allocation14 + $0x108] sm:$0xff]  ;;  %v12648_v18 = vcombine.high %v7635_v8, %v7643_v10  ;;  %v12647_v28 = vcombine.low %v7635_v8, %v7643_v10  ;;  %v7715_v10 = vld [vmem:[#allocation14 + $0x380] sm:$0xff] }
 0x595   : > { %7518 = vmatprep.subr.bf16.mxu1 %v14523_v34  ;;  %v7644_v13 = vld [vmem:[#allocation14 + $0x148] sm:$0xff]  ;;  %v12631_v34 = vcombine.low %v7619_v51, %v7627_v6  ;;  %v7723_v11 = vld [vmem:[#allocation14 + $0x3c0] sm:$0xff] }
 0x596   : > { %v12650_v36 = vcombine.high %v7636_v12, %v7644_v13  ;;  %v12649_v35 = vcombine.low %v7636_v12, %v7644_v13  ;;  %v7692_v51 = vld [vmem:[#allocation14 + $0x2c8] sm:$0xff]  ;;  %v12727_v19 = vcombine.low %v7715_v10, %v7723_v11 }
 0x597   : > { %6935 = vmatpush1.bf16.msra.mxu0 %v14518_v15  ;;  %v3091_v15 = vadd.f32 %v16845_v47, %v2879_v33  ;;  %v7668_v47 = vld [vmem:[#allocation14 + $0x208] sm:$0xff]  ;;  %v12698_v0 = vcombine.high %v7684_v55, %v7692_v51  ;;  %v12697_v33 = vcombine.low %v7684_v55, %v7692_v51 }
 0x598   : > { %7519 = vmatpush1.bf16.msra.mxu1 %v14521_v21  ;;  %6936 = vmatprep.subr.bf16.mxu0 %v14526_v42  ;;  %v7652_v21 = vld [vmem:[#allocation14 + $0x188] sm:$0xff]  ;;  %v14793_v44 = vpop.eup %14792 }
 0x599   : > { %7520 = vmatprep.subr.bf16.mxu1 %v14529_v60  ;;  %v7660_v42 = vld [vmem:[#allocation14 + $0x1c8] sm:$0xff]  ;;  %v3284_v60 = vpack.c.bf16 %v14789_v40, %v14787_v30  ;;  %14798 = vtanh.f32 %v3091_v15  ;;  %v3283_v6 = vpack.c.bf16 %v14793_v44, %v14791_v9  ;;  %v12728_v30 = vcombine.high %v7715_v10, %v7723_v11  ;;  %v7739_v40 = vld [vmem:[#allocation14 + $0x440] sm:$0xff] }
 0x59a   : > { %v12666_v39 = vcombine.high %v7652_v21, %v7660_v42  ;;  %14800 = vtanh.f32 %v3107_v63  ;;  %v12665_v37 = vcombine.low %v7652_v21, %v7660_v42  ;;  %v7724_v12 = vld [vmem:[#allocation14 + $0x3c8] sm:$0xff]  ;;  %v7747_v42 = vld [vmem:[#allocation14 + $0x480] sm:$0xff] }
 0x59b   : > { %6937 = vmatpush1.bf16.msra.mxu0 %v14524_v16  ;;  %v7676_v16 = vld [vmem:[#allocation14 + $0x248] sm:$0xff]  ;;  %v12729_v20 = vcombine.low %v7716_v29, %v7724_v12  ;;  %v7771_v9 = vld [vmem:[#allocation14 + $0x540] sm:$0xff] }
 0x59c   : > { %7521 = vmatpush1.bf16.msra.mxu1 %v14527_v26  ;;  %9223 = vmatprep.subr.bf16.mxu0 %v12616_v54  ;;  %v14795_v26 = vpop.eup %14794  ;;  %v12680_v54 = vcombine.high %v7667_v58, %v7675_v41  ;;  %v12682_v31 = vcombine.high %v7668_v47, %v7676_v16  ;;  %v12681_v23 = vcombine.low %v7668_v47, %v7676_v16  ;;  %v7732_v15 = vld [vmem:[#allocation14 + $0x408] sm:$0xff]  ;;  %v7763_v41 = vld [vmem:[#allocation14 + $0x500] sm:$0xff] }
 0x59d   : > { %9296 = vmatprep.subr.bf16.mxu1 %v12618_v50  ;;  %v14797_v52 = vpop.eup %14796  ;;  %v7683_v50 = vld [vmem:[#allocation14 + $0x280] sm:$0xff]  ;;  %v7764_v47 = vld [vmem:[#allocation14 + $0x508] sm:$0xff] }
 0x59e   : > { %6939 = vmatmul.mubr.bf16.vlgmr.msra.gmra.mrb[0].mxu0 %v3251_v1  ;;  %v3300_v43 = vpack.c.bf16 %v14797_v52, %v14795_v26  ;;  %v12696_v62 = vcombine.high %v7683_v50, %v7691_v53  ;;  %v7772_v16 = vld [vmem:[#allocation14 + $0x548] sm:$0xff]  ;;  %v12776_v26 = vcombine.high %v7763_v41, %v7771_v9  ;;  %v7787_v52 = vld [vmem:[#allocation14 + $0x5c0] sm:$0xff] }
 0x59f   : > { %7523 = vmatmul.mubr.bf16.vlgmr.msra.gmra.mrb[0].mxu1 %v3251_v1  ;;  %6948 = vmatprep.mubr.bf16.mxu0 %v3268_v4  ;;  %v7699_v1 = vld [vmem:[#allocation14 + $0x300] sm:$0xff]  ;;  %v12777_v55 = vcombine.low %v7764_v47, %v7772_v16 }
 0x5a0   : > { %7532 = vmatprep.mubr.bf16.mxu1 %v3268_v4  ;;  %9224 = vmatpush1.bf16.msra.mxu0 %v12615_v49  ;;  %v7708_v49 = vld [vmem:[#allocation14 + $0x348] sm:$0xff]  ;;  %v12711_v14 = vcombine.low %v7699_v1, %v7707_v32 }
 0x5a1   : > { %9297 = vmatpush1.bf16.msra.mxu1 %v12617_v5  ;;  %9225 = vmatprep.subr.bf16.mxu0 %v12632_v7  ;;  %v12695_v5 = vcombine.low %v7683_v50, %v7691_v53  ;;  %v12714_v8 = vcombine.high %v7700_v2, %v7708_v49  ;;  %v7788_v50 = vld [vmem:[#allocation14 + $0x5c8] sm:$0xff]  ;;  %v12775_v53 = vcombine.low %v7763_v41, %v7771_v9 }
 0x5a2   : > { %9298 = vmatprep.subr.bf16.mxu1 %v12634_v57  ;;  %v12712_v57 = vcombine.high %v7699_v1, %v7707_v32 }
 0x5a3   : > { %v14799_v4 = vpop.eup %14798 }
 0x5a4   : > { %9226 = vmatpush1.bf16.msra.mxu0 %v12631_v34  ;;  %v14801_v7 = vpop.eup %14800  ;;  %v12713_v34 = vcombine.low %v7700_v2, %v7708_v49  ;;  %v7811_v49 = vld [vmem:[#allocation14 + $0x680] sm:$0xff] }
 0x5a5   : > { %9299 = vmatpush1.bf16.msra.mxu1 %v12633_v3  ;;  %9227 = vmatprep.subr.bf16.mxu0 %v12648_v18  ;;  %v3299_v13 = vpack.c.bf16 %v14801_v7, %v14799_v4  ;;  %v12730_v3 = vcombine.high %v7716_v29, %v7724_v12  ;;  %v7731_v18 = vld [vmem:[#allocation14 + $0x400] sm:$0xff]  ;;  %v7820_v7 = vld [vmem:[#allocation14 + $0x6c8] sm:$0xff] }
 0x5a6   : > { %6949 = vmatmul.mubr.bf16.gmra.mrb[4].mxu0 %v3267_v27  ;;  %9300 = vmatprep.subr.bf16.mxu1 %v12650_v36  ;;  %v7740_v36 = vld [vmem:[#allocation14 + $0x448] sm:$0xff]  ;;  %v12744_v63 = vcombine.high %v7731_v18, %v7739_v40  ;;  %v7819_v4 = vld [vmem:[#allocation14 + $0x6c0] sm:$0xff] }
 0x5a7   : > { %7533 = vmatmul.mubr.bf16.gmra.mrb[4].mxu1 %v3267_v27  ;;  %6958 = vmatprep.mubr.bf16.mxu0 %v3284_v60  ;;  %v12746_v21 = vcombine.high %v7732_v15, %v7740_v36  ;;  %v7755_v27 = vld [vmem:[#allocation14 + $0x4c0] sm:$0xff]  ;;  %v12823_v11 = vcombine.low %v7811_v49, %v7819_v4 }
 0x5a8   : > { %7542 = vmatprep.mubr.bf16.mxu1 %v3284_v60  ;;  %9228 = vmatpush1.bf16.msra.mxu0 %v12647_v28  ;;  %v7748_v28 = vld [vmem:[#allocation14 + $0x488] sm:$0xff]  ;;  %v12759_v44 = vcombine.low %v7747_v42, %v7755_v27  ;;  %v7827_v12 = vld [vmem:[#allocation14 + $0x700] sm:$0xff] }
 0x5a9   : > { %9301 = vmatpush1.bf16.msra.mxu1 %v12649_v35  ;;  %9229 = vmatprep.subr.bf16.mxu0 %v12664_v38  ;;  %v7756_v60 = vld [vmem:[#allocation14 + $0x4c8] sm:$0xff]  ;;  %v12743_v35 = vcombine.low %v7731_v18, %v7739_v40  ;;  %v12745_v38 = vcombine.low %v7732_v15, %v7740_v36  ;;  %v7843_v15 = vld [vmem:[#allocation14 + $0x780] sm:$0xff] }
 0x5aa   : > { %9302 = vmatprep.subr.bf16.mxu1 %v12666_v39  ;;  %v12760_v39 = vcombine.high %v7747_v42, %v7755_v27  ;;  %v12762_v58 = vcombine.high %v7748_v28, %v7756_v60  ;;  %v7851_v36 = vld [vmem:[#allocation14 + $0x7c0] sm:$0xff] }
 0x5ac   : > { %9230 = vmatpush1.bf16.msra.mxu0 %v12663_v45  ;;  %v12761_v45 = vcombine.low %v7748_v28, %v7756_v60  ;;  %v16873_v28 = vld [vmem:[#allocation14 + $0x10] sm:$0xff] }
 0x5ad   : > { %9303 = vmatpush1.bf16.msra.mxu1 %v12665_v37  ;;  %9231 = vmatprep.subr.bf16.mxu0 %v12680_v54  ;;  %v12778_v37 = vcombine.high %v7764_v47, %v7772_v16  ;;  %v7779_v54 = vld [vmem:[#allocation14 + $0x580] sm:$0xff]  ;;  %v16875_v60 = vld [vmem:[#allocation14 + $0x50] sm:$0xff]  ;;  %v3813_v47 = vld [vmem:[#allocation13] sm:$0xf] }
 0x5ae   : > { %6959 = vmatmul.mubr.bf16.gmra.mrb[8].mxu0 %v3283_v6  ;;  %9304 = vmatprep.subr.bf16.mxu1 %v12682_v31  ;;  %v7780_v31 = vld [vmem:[#allocation14 + $0x588] sm:$0xff]  ;;  %v12792_v51 = vcombine.high %v7779_v54, %v7787_v52  ;;  %v16886_v16 = vrot.slane %v3813_v47, %v16509_v25 }
 0x5af   : > { %7543 = vmatmul.mubr.bf16.gmra.mrb[8].mxu1 %v3283_v6  ;;  %6968 = vmatprep.mubr.bf16.mxu0 %v3300_v43  ;;  %v12794_v6 = vcombine.high %v7780_v31, %v7788_v50  ;;  %v12793_v1 = vcombine.low %v7780_v31, %v7788_v50 }
 0x5b0   : > { %7552 = vmatprep.mubr.bf16.mxu1 %v3300_v43  ;;  %9232 = vmatpush1.bf16.msra.mxu0 %v12679_v56  ;;  %v7795_v56 = vld [vmem:[#allocation14 + $0x600] sm:$0xff] }
 0x5b1   : > { %9305 = vmatpush1.bf16.msra.mxu1 %v12681_v23  ;;  %9233 = vmatprep.subr.bf16.mxu0 %v12696_v62  ;;  %v7803_v43 = vld [vmem:[#allocation14 + $0x640] sm:$0xff]  ;;  %v7796_v23 = vld [vmem:[#allocation14 + $0x608] sm:$0xff] }
 0x5b2   : > { %9306 = vmatprep.subr.bf16.mxu1 %v12698_v0  ;;  %v7804_v62 = vld [vmem:[#allocation14 + $0x648] sm:$0xff]  ;;  %v12791_v0 = vcombine.low %v7779_v54, %v7787_v52  ;;  %v12808_v32 = vcombine.high %v7795_v56, %v7803_v43 }
 0x5b3   : > { %v12810_v2 = vcombine.high %v7796_v23, %v7804_v62 }
 0x5b4   : > { %9234 = vmatpush1.bf16.msra.mxu0 %v12695_v5  ;;  %v7812_v5 = vld [vmem:[#allocation14 + $0x688] sm:$0xff] }
 0x5b5   : > { %9307 = vmatpush1.bf16.msra.mxu1 %v12697_v33  ;;  %9235 = vmatprep.subr.bf16.mxu0 %v12712_v57  ;;  %v12807_v33 = vcombine.low %v7795_v56, %v7803_v43  ;;  %v12809_v57 = vcombine.low %v7796_v23, %v7804_v62  ;;  %v12826_v10 = vcombine.high %v7812_v5, %v7820_v7  ;;  %v16902_v62 = vld [vmem:[#allocation14 + $0x90] sm:$0xff] }
 0x5b6   : > { %6969 = vmatmul.mubr.bf16.gmra.mrb[12].mxu0 %v3299_v13  ;;  %9308 = vmatprep.subr.bf16.mxu1 %v12714_v8  ;;  %v12824_v8 = vcombine.high %v7811_v49, %v7819_v4  ;;  %v12825_v29 = vcombine.low %v7812_v5, %v7820_v7  ;;  %v7622_v49 = vld [vmem:[#allocation14 + $0x98] sm:$0xff] }
 0x5b7   : > { %7553 = vmatmul.mubr.bf16.gmra.mrb[12].mxu1 %v3299_v13  ;;  %v7835_v13 = vld [vmem:[#allocation14 + $0x740] sm:$0xff]  ;;  %v7630_v4 = vld [vmem:[#allocation14 + $0xd8] sm:$0xff] }
 0x5b8   : > { %9236 = vmatpush1.bf16.msra.mxu0 %v12711_v14  ;;  %v7828_v14 = vld [vmem:[#allocation14 + $0x708] sm:$0xff] }
 0x5b9   : > { %9309 = vmatpush1.bf16.msra.mxu1 %v12713_v34  ;;  %9237 = vmatprep.subr.bf16.mxu0 %v12728_v30  ;;  %v12839_v34 = vcombine.low %v7827_v12, %v7835_v13  ;;  %v12840_v30 = vcombine.high %v7827_v12, %v7835_v13  ;;  %v16918_v12 = vld [vmem:[#allocation14 + $0x118] sm:$0xff] }
 0x5ba   : > { %9310 = vmatprep.subr.bf16.mxu1 %v12730_v3  ;;  %v7836_v3 = vld [vmem:[#allocation14 + $0x748] sm:$0xff]  ;;  %v16920_v13 = vld [vmem:[#allocation14 + $0x158] sm:$0xff] }
 0x5bb   : > { %v12841_v18 = vcombine.low %v7828_v14, %v7836_v3  ;;  %v12842_v40 = vcombine.high %v7828_v14, %v7836_v3 }
 0x5bc   : > { %9238 = vmatpush1.bf16.msra.mxu0 %v12727_v19  ;;  %v7844_v19 = vld [vmem:[#allocation14 + $0x788] sm:$0xff] }
 0x5bd   : > { %9311 = vmatpush1.bf16.msra.mxu1 %v12729_v20  ;;  %9239 = vmatprep.subr.bf16.mxu0 %v12744_v63  ;;  %v12855_v20 = vcombine.low %v7843_v15, %v7851_v36  ;;  %v12856_v63 = vcombine.high %v7843_v15, %v7851_v36 }
 0x5be   : > { %9312 = vmatprep.subr.bf16.mxu1 %v12746_v21  ;;  %v7852_v21 = vld [vmem:[#allocation14 + $0x7c8] sm:$0xff] }
 0x5bf   : > { %v12857_v42 = vcombine.low %v7844_v19, %v7852_v21  ;;  %v12858_v27 = vcombine.high %v7844_v19, %v7852_v21 }
 0x5c0   : > { %9240 = vmatpush1.bf16.msra.mxu0 %v12743_v35  ;;  %v16877_v35 = vld [vmem:[#allocation14 + $0x18] sm:$0xff] }
 0x5c1   : > { %9313 = vmatpush1.bf16.msra.mxu1 %v12745_v38  ;;  %9241 = vmatprep.subr.bf16.mxu0 %v12760_v39  ;;  %v12619_v38 = vcombine.low %v16873_v28, %v16875_v60  ;;  %v12620_v39 = vcombine.high %v16873_v28, %v16875_v60  ;;  %v12654_v28 = vcombine.high %v16918_v12, %v16920_v13  ;;  %v16934_v60 = vld [vmem:[#allocation14 + $0x190] sm:$0xff] }
 0x5c2   : > { %9314 = vmatprep.subr.bf16.mxu1 %v12762_v58  ;;  %v7614_v58 = vld [vmem:[#allocation14 + $0x58] sm:$0xff] }
 0x5c3   : > { %v12621_v41 = vcombine.low %v16877_v35, %v7614_v58  ;;  %v12622_v9 = vcombine.high %v16877_v35, %v7614_v58  ;;  %v16938_v58 = vld [vmem:[#allocation14 + $0x1d0] sm:$0xff] }
 0x5c4   : > { %9242 = vmatpush1.bf16.msra.mxu0 %v12759_v44  ;;  %v16889_v44 = vrot.slane %v3813_v47, %v16581_v59 }
 0x5c5   : > { %9315 = vmatpush1.bf16.msra.mxu1 %v12761_v45  ;;  %9243 = vmatprep.subr.bf16.mxu0 %v12776_v26  ;;  %v16892_v45 = vrot.slane %v3813_v47, %v16506_v24  ;;  %v16895_v26 = vrot.slane %v3813_v47, %v16568_v46 }
 0x5c6   : > { %9316 = vmatprep.subr.bf16.mxu1 %v12778_v37 }
 0x5c8   : > { %9244 = vmatpush1.bf16.msra.mxu0 %v12775_v53 }
 0x5c9   : > { %9317 = vmatpush1.bf16.msra.mxu1 %v12777_v55  ;;  %9245 = vmatprep.subr.bf16.mxu0 %v12792_v51 }
 0x5ca   : > { %9318 = vmatprep.subr.bf16.mxu1 %v12794_v6 }
 0x5cc   : > { %9246 = vmatpush1.bf16.msra.mxu0 %v12791_v0 }
 0x5cd   : > { %9319 = vmatpush1.bf16.msra.mxu1 %v12793_v1  ;;  %9247 = vmatprep.subr.bf16.mxu0 %v12808_v32 }
 0x5ce   : > { %9320 = vmatprep.subr.bf16.mxu1 %v12810_v2  ;;  %v7629_v2 = vld [vmem:[#allocation14 + $0xd0] sm:$0xff] }
 0x5cf   : > { %v12635_v3 = vcombine.low %v16902_v62, %v7629_v2 }
 0x5d0   : > { %9248 = vmatpush1.bf16.msra.mxu0 %v12807_v33 }
 0x5d1   : > { %9321 = vmatpush1.bf16.msra.mxu1 %v12809_v57  ;;  %9249 = vmatprep.subr.bf16.mxu0 %v12824_v8  ;;  %v12636_v57 = vcombine.high %v16902_v62, %v7629_v2  ;;  %v12638_v8 = vcombine.high %v7622_v49, %v7630_v4 }
 0x5d2   : > { %9322 = vmatprep.subr.bf16.mxu1 %v12826_v10  ;;  %v16912_v10 = vld [vmem:[#allocation14 + $0x110] sm:$0xff] }
 0x5d4   : > { %9250 = vmatpush1.bf16.msra.mxu0 %v12823_v11  ;;  %v16914_v11 = vld [vmem:[#allocation14 + $0x150] sm:$0xff] }
 0x5d5   : > { %9323 = vmatpush1.bf16.msra.mxu1 %v12825_v29  ;;  %9251 = vmatprep.subr.bf16.mxu0 %v12840_v30 }
 0x5d6   : > { %9324 = vmatprep.subr.bf16.mxu1 %v12842_v40 }
 0x5d8   : > { %9252 = vmatpush1.bf16.msra.mxu0 %v12839_v34 }
 0x5d9   : > { %9325 = vmatpush1.bf16.msra.mxu1 %v12841_v18  ;;  %9253 = vmatprep.subr.bf16.mxu0 %v12856_v63  ;;  %v12637_v18 = vcombine.low %v7622_v49, %v7630_v4 }
 0x5da   : > { %9326 = vmatprep.subr.bf16.mxu1 %v12858_v27 }
 0x5dc   : > { %9254 = vmatpush1.bf16.msra.mxu0 %v12855_v20  ;;  %v12652_v20 = vcombine.high %v16912_v10, %v16914_v11 }
 0x5dd   : > { %9327 = vmatpush1.bf16.msra.mxu1 %v12857_v42  ;;  %9369 = vmatprep.subr.bf16.mxu0 %v12620_v39 }
 0x5de   : > { %9442 = vmatprep.subr.bf16.mxu1 %v12622_v9  ;;  %v16942_v9 = vld [vmem:[#allocation14 + $0x1d8] sm:$0xff] }
 0x671   : > { %v6940_v37 = vpop.f32.mrb[0].mxu0 }
 0x672   : > { %v13330_v54 = vadd.f32 %v6940_v37, %v16886_v16  ;;  %v7524_v52 = vpop.f32.mrb[0].mxu1  ;;  %v6942_v31 = vpop.f32.mrb[1].mxu0 }
 0x673   : > { %v13346_v50 = vadd.f32 %v7524_v52, %v16889_v44  ;;  %v13331_v53 = vadd.f32 %v6942_v31, %v16892_v45  ;;  %v7526_v55 = vpop.f32.mrb[1].mxu1  ;;  %v6944_v51 = vpop.f32.mrb[2].mxu0  ;;  %v12651_v52 = vcombine.low %v16912_v10, %v16914_v11  ;;  %v12653_v31 = vcombine.low %v16918_v12, %v16920_v13  ;;  %v16982_v13 = vld [vmem:[#allocation14 + $0x290] sm:$0xff] }
 0x674   : > { %7563 = vst [vmem:[#allocation20] sm:$0xff] %v13330_v54  ;;  %v13347_v6 = vadd.f32 %v7526_v55, %v16895_v26  ;;  %v13332_v56 = vadd.f32 %v6944_v51, %v16886_v16  ;;  %v7528_v43 = vpop.f32.mrb[2].mxu1  ;;  %v6946_v23 = vpop.f32.mrb[3].mxu0  ;;  %v16957_v55 = vld [vmem:[#allocation14 + $0x210] sm:$0xff] }
 0x675   : > { %7565 = vst [vmem:[#allocation20 + $0x10] sm:$0xff] %v13346_v50  ;;  %7564 = vst [vmem:[#allocation20 + $0x8] sm:$0xff] %v13331_v53  ;;  %v13348_v0 = vadd.f32 %v7528_v43, %v16889_v44  ;;  %v13333_v1 = vadd.f32 %v6946_v23, %v16892_v45  ;;  %v7530_v32 = vpop.f32.mrb[3].mxu1  ;;  %v12668_v50 = vcombine.high %v16934_v60, %v16938_v58  ;;  %v16959_v51 = vld [vmem:[#allocation14 + $0x250] sm:$0xff]  ;;  %v16965_v43 = vld [vmem:[#allocation14 + $0x258] sm:$0xff] }
 0x676   : > { %7566 = vst [vmem:[#allocation20 + $0x18] sm:$0xff] %v13347_v6  ;;  %7567 = vst [vmem:[#allocation20 + $0x20] sm:$0xff] %v13332_v56  ;;  %v16906_v5 = vpack.c.bf16 %v13332_v56, %v13330_v54  ;;  %v13349_v7 = vadd.f32 %v7530_v32, %v16895_v26  ;;  %v16963_v56 = vld [vmem:[#allocation14 + $0x218] sm:$0xff] }
 0x677   : > { %7569 = vst [vmem:[#allocation20 + $0x30] sm:$0xff] %v13348_v0  ;;  %7568 = vst [vmem:[#allocation20 + $0x28] sm:$0xff] %v13333_v1  ;;  %v16909_v33 = vpack.c.bf16 %v13333_v1, %v13331_v53  ;;  %v12667_v1 = vcombine.low %v16934_v60, %v16938_v58  ;;  %v12686_v12 = vcombine.high %v16963_v56, %v16965_v43 }
 0x678   : > { %7570 = vst [vmem:[#allocation20 + $0x38] sm:$0xff] %v13349_v7 }
 0x679   : > { %v6950_v29 = vpop.f32.mrb[4].mxu0  ;;  %9255 = vmatprep.mubr.bf16.mxu0 %v16909_v33  ;;  %9328 = vmatprep.mubr.bf16.mxu1 %v16909_v33 }
 0x67a   : > { %v13334_v14 = vadd.f32 %v6950_v29, %v16886_v16  ;;  %v7534_v34 = vpop.f32.mrb[4].mxu1  ;;  %v6952_v30 = vpop.f32.mrb[5].mxu0  ;;  %9256 = vmatmul.mubr.bf16.vlgmr.msra.gmra.mrb[16].mxu0 %v16906_v5  ;;  %9329 = vmatmul.mubr.bf16.vlgmr.msra.gmra.mrb[16].mxu1 %v16906_v5 }
 0x67b   : > { %v13350_v40 = vadd.f32 %v7534_v34, %v16889_v44  ;;  %v13335_v15 = vadd.f32 %v6952_v30, %v16892_v45  ;;  %v7536_v36 = vpop.f32.mrb[5].mxu1  ;;  %9370 = vmatpush1.bf16.msra.mxu0 %v12619_v38  ;;  %9443 = vmatpush1.bf16.msra.mxu1 %v12621_v41  ;;  %v6954_v19 = vpop.f32.mrb[6].mxu0  ;;  %v16940_v41 = vld [vmem:[#allocation14 + $0x198] sm:$0xff] }
 0x67c   : > { %7571 = vst [vmem:[#allocation20 + $0x40] sm:$0xff] %v13334_v14  ;;  %v13351_v63 = vadd.f32 %v7536_v36, %v16895_v26  ;;  %v13336_v21 = vadd.f32 %v6954_v19, %v16886_v16  ;;  %v7538_v42 = vpop.f32.mrb[6].mxu1  ;;  %v6956_v27 = vpop.f32.mrb[7].mxu0  ;;  %9371 = vmatprep.subr.bf16.mxu0 %v12636_v57  ;;  %9444 = vmatprep.subr.bf16.mxu1 %v12638_v8 }
 0x67d   : > { %7573 = vst [vmem:[#allocation20 + $0x50] sm:$0xff] %v13350_v40  ;;  %7572 = vst [vmem:[#allocation20 + $0x48] sm:$0xff] %v13335_v15  ;;  %v13352_v35 = vadd.f32 %v7538_v42, %v16889_v44  ;;  %v13337_v38 = vadd.f32 %v6956_v27, %v16892_v45  ;;  %v7540_v39 = vpop.f32.mrb[7].mxu1  ;;  %v12670_v53 = vcombine.high %v16940_v41, %v16942_v9  ;;  %v16990_v40 = vld [vmem:[#allocation14 + $0x2d8] sm:$0xff]  ;;  %v7701_v27 = vld [vmem:[#allocation14 + $0x310] sm:$0xff] }
 0x67e   : > { %7574 = vst [vmem:[#allocation20 + $0x58] sm:$0xff] %v13351_v63  ;;  %7575 = vst [vmem:[#allocation20 + $0x60] sm:$0xff] %v13336_v21  ;;  %v16944_v47 = vpack.c.bf16 %v13336_v21, %v13334_v14  ;;  %v13353_v37 = vadd.f32 %v7540_v39, %v16895_v26  ;;  %v12669_v32 = vcombine.low %v16940_v41, %v16942_v9 }
 0x67f   : > { %7577 = vst [vmem:[#allocation20 + $0x70] sm:$0xff] %v13352_v35  ;;  %7576 = vst [vmem:[#allocation20 + $0x68] sm:$0xff] %v13337_v38  ;;  %v16947_v54 = vpack.c.bf16 %v13337_v38, %v13335_v15  ;;  %9372 = vmatpush1.bf16.msra.mxu0 %v12635_v3  ;;  %9445 = vmatpush1.bf16.msra.mxu1 %v12637_v18  ;;  %v12684_v57 = vcombine.high %v16957_v55, %v16959_v51  ;;  %v16986_v3 = vld [vmem:[#allocation14 + $0x2d0] sm:$0xff]  ;;  %v16988_v18 = vld [vmem:[#allocation14 + $0x298] sm:$0xff] }
 0x680   : > { %7578 = vst [vmem:[#allocation20 + $0x78] sm:$0xff] %v13353_v37  ;;  %9373 = vmatprep.subr.bf16.mxu0 %v12652_v20  ;;  %9446 = vmatprep.subr.bf16.mxu1 %v12654_v28  ;;  %v12683_v20 = vcombine.low %v16957_v55, %v16959_v51  ;;  %v12685_v63 = vcombine.low %v16963_v56, %v16965_v43  ;;  %v7709_v28 = vld [vmem:[#allocation14 + $0x350] sm:$0xff]  ;;  %v7702_v35 = vld [vmem:[#allocation14 + $0x318] sm:$0xff] }
 0x681   : > { %v6960_v6 = vpop.f32.mrb[8].mxu0  ;;  %9265 = vmatprep.mubr.bf16.mxu0 %v16947_v54  ;;  %9338 = vmatprep.mubr.bf16.mxu1 %v16947_v54  ;;  %v12700_v21 = vcombine.high %v16982_v13, %v16986_v3  ;;  %v12702_v42 = vcombine.high %v16988_v18, %v16990_v40  ;;  %v7710_v38 = vld [vmem:[#allocation14 + $0x358] sm:$0xff]  ;;  %v12699_v9 = vcombine.low %v16982_v13, %v16986_v3  ;;  %v7749_v3 = vld [vmem:[#allocation14 + $0x490] sm:$0xff] }
 0x682   : > { %v13338_v23 = vadd.f32 %v6960_v6, %v16886_v16  ;;  %v7544_v62 = vpop.f32.mrb[8].mxu1  ;;  %v6962_v0 = vpop.f32.mrb[9].mxu0  ;;  %9266 = vmatmul.mubr.bf16.gmra.mrb[20].mxu0 %v16944_v47  ;;  %9339 = vmatmul.mubr.bf16.gmra.mrb[20].mxu1 %v16944_v47  ;;  %v12701_v37 = vcombine.low %v16988_v18, %v16990_v40  ;;  %v12716_v55 = vcombine.high %v7701_v27, %v7709_v28  ;;  %v7757_v18 = vld [vmem:[#allocation14 + $0x4d0] sm:$0xff]  ;;  %v7750_v40 = vld [vmem:[#allocation14 + $0x498] sm:$0xff] }
 0x683   : > { %v13354_v2 = vadd.f32 %v7544_v62, %v16889_v44  ;;  %v13339_v49 = vadd.f32 %v6962_v0, %v16892_v45  ;;  %v7546_v4 = vpop.f32.mrb[9].mxu1  ;;  %9374 = vmatpush1.bf16.msra.mxu0 %v12651_v52  ;;  %9447 = vmatpush1.bf16.msra.mxu1 %v12653_v31  ;;  %v6964_v7 = vpop.f32.mrb[10].mxu0 }
 0x684   : > { %7579 = vst [vmem:[#allocation20 + $0x80] sm:$0xff] %v13338_v23  ;;  %v13355_v8 = vadd.f32 %v7546_v4, %v16895_v26  ;;  %v13340_v10 = vadd.f32 %v6964_v7, %v16886_v16  ;;  %v7548_v11 = vpop.f32.mrb[10].mxu1  ;;  %v6966_v29 = vpop.f32.mrb[11].mxu0  ;;  %9375 = vmatprep.subr.bf16.mxu0 %v12668_v50  ;;  %9448 = vmatprep.subr.bf16.mxu1 %v12670_v53  ;;  %v7718_v4 = vld [vmem:[#allocation14 + $0x398] sm:$0xff] }
 0x685   : > { %7581 = vst [vmem:[#allocation20 + $0x90] sm:$0xff] %v13354_v2  ;;  %7580 = vst [vmem:[#allocation20 + $0x88] sm:$0xff] %v13339_v49  ;;  %v13356_v14 = vadd.f32 %v7548_v11, %v16889_v44  ;;  %v13341_v34 = vadd.f32 %v6966_v29, %v16892_v45  ;;  %v7550_v30 = vpop.f32.mrb[11].mxu1  ;;  %v7726_v7 = vld [vmem:[#allocation14 + $0x3d8] sm:$0xff]  ;;  %v7741_v11 = vld [vmem:[#allocation14 + $0x450] sm:$0xff] }
 0x686   : > { %7582 = vst [vmem:[#allocation20 + $0x98] sm:$0xff] %v13355_v8  ;;  %7583 = vst [vmem:[#allocation20 + $0xa0] sm:$0xff] %v13340_v10  ;;  %v16992_v15 = vpack.c.bf16 %v13340_v10, %v13338_v23  ;;  %v13357_v36 = vadd.f32 %v7550_v30, %v16895_v26  ;;  %v12718_v23 = vcombine.high %v7702_v35, %v7710_v38  ;;  %v7734_v29 = vld [vmem:[#allocation14 + $0x418] sm:$0xff] }
 0x687   : > { %7585 = vst [vmem:[#allocation20 + $0xb0] sm:$0xff] %v13356_v14  ;;  %7584 = vst [vmem:[#allocation20 + $0xa8] sm:$0xff] %v13341_v34  ;;  %v16995_v19 = vpack.c.bf16 %v13341_v34, %v13339_v49  ;;  %9376 = vmatpush1.bf16.msra.mxu0 %v12667_v1  ;;  %9449 = vmatpush1.bf16.msra.mxu1 %v12669_v32  ;;  %v7717_v32 = vld [vmem:[#allocation14 + $0x390] sm:$0xff]  ;;  %v12717_v8 = vcombine.low %v7702_v35, %v7710_v38  ;;  %v7774_v35 = vld [vmem:[#allocation14 + $0x558] sm:$0xff] }
 0x688   : > { %7586 = vst [vmem:[#allocation20 + $0xb8] sm:$0xff] %v13357_v36  ;;  %9377 = vmatprep.subr.bf16.mxu0 %v12684_v57  ;;  %9450 = vmatprep.subr.bf16.mxu1 %v12686_v12  ;;  %v12734_v10 = vcombine.high %v7718_v4, %v7726_v7  ;;  %v7742_v12 = vld [vmem:[#allocation14 + $0x458] sm:$0xff]  ;;  %v12733_v14 = vcombine.low %v7718_v4, %v7726_v7 }
 0x689   : > { %v6970_v60 = vpop.f32.mrb[12].mxu0  ;;  %9275 = vmatprep.mubr.bf16.mxu0 %v16995_v19  ;;  %9348 = vmatprep.mubr.bf16.mxu1 %v16995_v19  ;;  %v12750_v30 = vcombine.high %v7734_v29, %v7742_v12  ;;  %v7758_v36 = vld [vmem:[#allocation14 + $0x4d8] sm:$0xff]  ;;  %v12763_v38 = vcombine.low %v7749_v3, %v7757_v18 }
 0x68a   : > { %v13342_v39 = vadd.f32 %v6970_v60, %v16886_v16  ;;  %v7554_v58 = vpop.f32.mrb[12].mxu1  ;;  %v6972_v41 = vpop.f32.mrb[13].mxu0  ;;  %9276 = vmatmul.mubr.bf16.gmra.mrb[24].mxu0 %v16992_v15  ;;  %9349 = vmatmul.mubr.bf16.gmra.mrb[24].mxu1 %v16992_v15  ;;  %v7766_v60 = vld [vmem:[#allocation14 + $0x518] sm:$0xff] }
 0x68b   : > { %v13358_v52 = vadd.f32 %v7554_v58, %v16889_v44  ;;  %v13343_v31 = vadd.f32 %v6972_v41, %v16892_v45  ;;  %v7556_v50 = vpop.f32.mrb[13].mxu1  ;;  %9378 = vmatpush1.bf16.msra.mxu0 %v12683_v20  ;;  %9451 = vmatpush1.bf16.msra.mxu1 %v12685_v63  ;;  %v6974_v53 = vpop.f32.mrb[14].mxu0  ;;  %v12749_v63 = vcombine.low %v7734_v29, %v7742_v12  ;;  %v7814_v4 = vld [vmem:[#allocation14 + $0x698] sm:$0xff] }
 0x68c   : > { %7587 = vst [vmem:[#allocation20 + $0xc0] sm:$0xff] %v13342_v39  ;;  %v13359_v51 = vadd.f32 %v7556_v50, %v16895_v26  ;;  %v13344_v6 = vadd.f32 %v6974_v53, %v16886_v16  ;;  %v7558_v56 = vpop.f32.mrb[14].mxu1  ;;  %v6976_v43 = vpop.f32.mrb[15].mxu0  ;;  %9379 = vmatprep.subr.bf16.mxu0 %v12700_v21  ;;  %9452 = vmatprep.subr.bf16.mxu1 %v12702_v42  ;;  %v7725_v16 = vld [vmem:[#allocation14 + $0x3d0] sm:$0xff]  ;;  %v7822_v7 = vld [vmem:[#allocation14 + $0x6d8] sm:$0xff] }
 0x68d   : > { %7589 = vst [vmem:[#allocation20 + $0xd0] sm:$0xff] %v13358_v52  ;;  %7588 = vst [vmem:[#allocation20 + $0xc8] sm:$0xff] %v13343_v31  ;;  %v13360_v62 = vadd.f32 %v7558_v56, %v16889_v44  ;;  %v13345_v0 = vadd.f32 %v6976_v43, %v16892_v45  ;;  %v7560_v1 = vpop.f32.mrb[15].mxu1  ;;  %v12715_v44 = vcombine.low %v7701_v27, %v7709_v28  ;;  %v7733_v45 = vld [vmem:[#allocation14 + $0x410] sm:$0xff]  ;;  %v7782_v52 = vld [vmem:[#allocation14 + $0x598] sm:$0xff] }
 0x68e   : > { %7590 = vst [vmem:[#allocation20 + $0xd8] sm:$0xff] %v13359_v51  ;;  %7591 = vst [vmem:[#allocation20 + $0xe0] sm:$0xff] %v13344_v6  ;;  %v17020_v2 = vpack.c.bf16 %v13344_v6, %v13342_v39  ;;  %v13361_v49 = vadd.f32 %v7560_v1, %v16895_v26  ;;  %v12732_v26 = vcombine.high %v7717_v32, %v7725_v16  ;;  %v7765_v27 = vld [vmem:[#allocation14 + $0x510] sm:$0xff]  ;;  %v7798_v43 = vld [vmem:[#allocation14 + $0x618] sm:$0xff] }
 0x68f   : > { %7593 = vst [vmem:[#allocation20 + $0xf0] sm:$0xff] %v13360_v62  ;;  %7592 = vst [vmem:[#allocation20 + $0xe8] sm:$0xff] %v13345_v0  ;;  %v17023_v57 = vpack.c.bf16 %v13345_v0, %v13343_v31  ;;  %9380 = vmatpush1.bf16.msra.mxu0 %v12699_v9  ;;  %9453 = vmatpush1.bf16.msra.mxu1 %v12701_v37  ;;  %v12731_v13 = vcombine.low %v7717_v32, %v7725_v16  ;;  %v7773_v28 = vld [vmem:[#allocation14 + $0x550] sm:$0xff]  ;;  %v7790_v31 = vld [vmem:[#allocation14 + $0x5d8] sm:$0xff] }
 0x690   : > { %7594 = vst [vmem:[#allocation20 + $0xf8] sm:$0xff] %v13361_v49  ;;  %9381 = vmatprep.subr.bf16.mxu0 %v12716_v55  ;;  %9454 = vmatprep.subr.bf16.mxu1 %v12718_v23  ;;  %v12748_v34 = vcombine.high %v7733_v45, %v7741_v11  ;;  %v12747_v20 = vcombine.low %v7733_v45, %v7741_v11  ;;  %v7781_v9 = vld [vmem:[#allocation14 + $0x590] sm:$0xff]  ;;  %v7806_v23 = vld [vmem:[#allocation14 + $0x658] sm:$0xff] }
 0x691   : > { %9285 = vmatprep.mubr.bf16.mxu0 %v17023_v57  ;;  %9358 = vmatprep.mubr.bf16.mxu1 %v17023_v57  ;;  %v12764_v21 = vcombine.high %v7749_v3, %v7757_v18  ;;  %v12766_v42 = vcombine.high %v7750_v40, %v7758_v36  ;;  %v12765_v39 = vcombine.low %v7750_v40, %v7758_v36  ;;  %v7789_v37 = vld [vmem:[#allocation14 + $0x5d0] sm:$0xff]  ;;  %v7830_v29 = vld [vmem:[#allocation14 + $0x718] sm:$0xff] }
 0x692   : > { %9286 = vmatmul.mubr.bf16.gmra.mrb[28].mxu0 %v17020_v2  ;;  %9359 = vmatmul.mubr.bf16.gmra.mrb[28].mxu1 %v17020_v2  ;;  %v12780_v58 = vcombine.high %v7765_v27, %v7773_v28  ;;  %v12782_v41 = vcombine.high %v7766_v60, %v7774_v35  ;;  %v12779_v50 = vcombine.low %v7765_v27, %v7773_v28  ;;  %v7797_v6 = vld [vmem:[#allocation14 + $0x610] sm:$0xff]  ;;  %v7838_v12 = vld [vmem:[#allocation14 + $0x758] sm:$0xff]  ;;  %v7607_v27 = vld [vmem:[#allocation14 + $0x20] sm:$0xff] }
 0x693   : > { %9382 = vmatpush1.bf16.msra.mxu0 %v12715_v44  ;;  %9455 = vmatpush1.bf16.msra.mxu1 %v12717_v8  ;;  %v12781_v53 = vcombine.low %v7766_v60, %v7774_v35  ;;  %v12796_v55 = vcombine.high %v7781_v9, %v7789_v37  ;;  %v12798_v51 = vcombine.high %v7782_v52, %v7790_v31  ;;  %v7805_v56 = vld [vmem:[#allocation14 + $0x650] sm:$0xff]  ;;  %v7846_v40 = vld [vmem:[#allocation14 + $0x798] sm:$0xff]  ;;  %v7615_v28 = vld [vmem:[#allocation14 + $0x60] sm:$0xff] }
 0x694   : > { %9401 = vmatprep.mubr.bf16.mxu0 %v16909_v33  ;;  %9474 = vmatprep.mubr.bf16.mxu1 %v16909_v33  ;;  %v12795_v62 = vcombine.low %v7781_v9, %v7789_v37  ;;  %v12797_v0 = vcombine.low %v7782_v52, %v7790_v31  ;;  %v12812_v1 = vcombine.high %v7797_v6, %v7805_v56  ;;  %v7813_v49 = vld [vmem:[#allocation14 + $0x690] sm:$0xff]  ;;  %v7854_v36 = vld [vmem:[#allocation14 + $0x7d8] sm:$0xff]  ;;  %v7608_v60 = vld [vmem:[#allocation14 + $0x28] sm:$0xff] }
 0x695   : > { %9383 = vmatprep.subr.bf16.mxu0 %v12732_v26  ;;  %9456 = vmatprep.subr.bf16.mxu1 %v12734_v10  ;;  %v12814_v32 = vcombine.high %v7798_v43, %v7806_v23  ;;  %v7821_v16 = vld [vmem:[#allocation14 + $0x6d0] sm:$0xff]  ;;  %v12811_v44 = vcombine.low %v7797_v6, %v7805_v56  ;;  %v12813_v8 = vcombine.low %v7798_v43, %v7806_v23  ;;  %v7616_v35 = vld [vmem:[#allocation14 + $0x68] sm:$0xff]  ;;  %v7623_v9 = vld [vmem:[#allocation14 + $0xa0] sm:$0xff] }
 0x696   : > { %v12828_v45 = vcombine.high %v7813_v49, %v7821_v16  ;;  %v12830_v26 = vcombine.high %v7814_v4, %v7822_v7  ;;  %v7829_v10 = vld [vmem:[#allocation14 + $0x710] sm:$0xff]  ;;  %v7631_v37 = vld [vmem:[#allocation14 + $0xe0] sm:$0xff]  ;;  %v7624_v52 = vld [vmem:[#allocation14 + $0xa8] sm:$0xff] }
 0x697   : > { %9384 = vmatpush1.bf16.msra.mxu0 %v12731_v13  ;;  %9457 = vmatpush1.bf16.msra.mxu1 %v12733_v14  ;;  %v7837_v11 = vld [vmem:[#allocation14 + $0x750] sm:$0xff]  ;;  %v12827_v13 = vcombine.low %v7813_v49, %v7821_v16  ;;  %v12829_v14 = vcombine.low %v7814_v4, %v7822_v7  ;;  %v7632_v31 = vld [vmem:[#allocation14 + $0xe8] sm:$0xff]  ;;  %v7639_v6 = vld [vmem:[#allocation14 + $0x120] sm:$0xff] }
 0x698   : > { %9385 = vmatprep.subr.bf16.mxu0 %v12748_v34  ;;  %9458 = vmatprep.subr.bf16.mxu1 %v12750_v30  ;;  %v12844_v34 = vcombine.high %v7829_v10, %v7837_v11  ;;  %v12846_v30 = vcombine.high %v7830_v29, %v7838_v12  ;;  %v7845_v3 = vld [vmem:[#allocation14 + $0x790] sm:$0xff]  ;;  %v7647_v56 = vld [vmem:[#allocation14 + $0x160] sm:$0xff]  ;;  %v7640_v43 = vld [vmem:[#allocation14 + $0x128] sm:$0xff] }
 0x699   : > { %v7853_v18 = vld [vmem:[#allocation14 + $0x7d0] sm:$0xff]  ;;  %v7648_v23 = vld [vmem:[#allocation14 + $0x168] sm:$0xff]  ;;  %v7655_v49 = vld [vmem:[#allocation14 + $0x1a0] sm:$0xff] }
 0x69a   : > { %v7663_v16 = vld [vmem:[#allocation14 + $0x1e0] sm:$0xff]  ;;  %v7656_v4 = vld [vmem:[#allocation14 + $0x1a8] sm:$0xff] }
 0x69b   : > { %9386 = vmatpush1.bf16.msra.mxu0 %v12747_v20  ;;  %9459 = vmatpush1.bf16.msra.mxu1 %v12749_v63  ;;  %v12843_v20 = vcombine.low %v7829_v10, %v7837_v11  ;;  %v12845_v63 = vcombine.low %v7830_v29, %v7838_v12  ;;  %v7664_v7 = vld [vmem:[#allocation14 + $0x1e8] sm:$0xff]  ;;  %v7671_v10 = vld [vmem:[#allocation14 + $0x220] sm:$0xff] }
 0x69c   : > { %9387 = vmatprep.subr.bf16.mxu0 %v12764_v21  ;;  %9460 = vmatprep.subr.bf16.mxu1 %v12766_v42  ;;  %v12860_v21 = vcombine.high %v7845_v3, %v7853_v18  ;;  %v12862_v42 = vcombine.high %v7846_v40, %v7854_v36  ;;  %v7679_v11 = vld [vmem:[#allocation14 + $0x260] sm:$0xff]  ;;  %v7672_v29 = vld [vmem:[#allocation14 + $0x228] sm:$0xff] }
 0x69d   : > { %v7680_v12 = vld [vmem:[#allocation14 + $0x268] sm:$0xff] }
 0x69f   : > { %9388 = vmatpush1.bf16.msra.mxu0 %v12763_v38  ;;  %9461 = vmatpush1.bf16.msra.mxu1 %v12765_v39  ;;  %v12859_v38 = vcombine.low %v7845_v3, %v7853_v18  ;;  %v12861_v39 = vcombine.low %v7846_v40, %v7854_v36  ;;  %v7687_v3 = vld [vmem:[#allocation14 + $0x2a0] sm:$0xff]  ;;  %v7688_v40 = vld [vmem:[#allocation14 + $0x2a8] sm:$0xff] }
 0x6a0   : > { %9389 = vmatprep.subr.bf16.mxu0 %v12780_v58  ;;  %9462 = vmatprep.subr.bf16.mxu1 %v12782_v41  ;;  %v12624_v58 = vcombine.high %v7607_v27, %v7615_v28  ;;  %v12626_v41 = vcombine.high %v7608_v60, %v7616_v35  ;;  %v7695_v18 = vld [vmem:[#allocation14 + $0x2e0] sm:$0xff]  ;;  %v7696_v36 = vld [vmem:[#allocation14 + $0x2e8] sm:$0xff] }
 0x6a3   : > { %9390 = vmatpush1.bf16.msra.mxu0 %v12779_v50  ;;  %9463 = vmatpush1.bf16.msra.mxu1 %v12781_v53  ;;  %v12623_v50 = vcombine.low %v7607_v27, %v7615_v28  ;;  %v12625_v53 = vcombine.low %v7608_v60, %v7616_v35  ;;  %v7703_v27 = vld [vmem:[#allocation14 + $0x320] sm:$0xff]  ;;  %v7704_v60 = vld [vmem:[#allocation14 + $0x328] sm:$0xff] }
 0x6a4   : > { %9391 = vmatprep.subr.bf16.mxu0 %v12796_v55  ;;  %9464 = vmatprep.subr.bf16.mxu1 %v12798_v51  ;;  %v12640_v55 = vcombine.high %v7623_v9, %v7631_v37  ;;  %v12642_v51 = vcombine.high %v7624_v52, %v7632_v31  ;;  %v7711_v28 = vld [vmem:[#allocation14 + $0x360] sm:$0xff]  ;;  %v7712_v35 = vld [vmem:[#allocation14 + $0x368] sm:$0xff] }
 0x6a7   : > { %9392 = vmatpush1.bf16.msra.mxu0 %v12795_v62  ;;  %9465 = vmatpush1.bf16.msra.mxu1 %v12797_v0  ;;  %v12639_v62 = vcombine.low %v7623_v9, %v7631_v37  ;;  %v12641_v0 = vcombine.low %v7624_v52, %v7632_v31  ;;  %v7719_v9 = vld [vmem:[#allocation14 + $0x3a0] sm:$0xff]  ;;  %v7720_v52 = vld [vmem:[#allocation14 + $0x3a8] sm:$0xff] }
 0x6a8   : > { %9393 = vmatprep.subr.bf16.mxu0 %v12812_v1  ;;  %9466 = vmatprep.subr.bf16.mxu1 %v12814_v32  ;;  %v12656_v1 = vcombine.high %v7639_v6, %v7647_v56  ;;  %v12658_v32 = vcombine.high %v7640_v43, %v7648_v23  ;;  %v7727_v37 = vld [vmem:[#allocation14 + $0x3e0] sm:$0xff]  ;;  %v7728_v31 = vld [vmem:[#allocation14 + $0x3e8] sm:$0xff] }
 0x6ab   : > { %9394 = vmatpush1.bf16.msra.mxu0 %v12811_v44  ;;  %9467 = vmatpush1.bf16.msra.mxu1 %v12813_v8  ;;  %v12655_v44 = vcombine.low %v7639_v6, %v7647_v56  ;;  %v12657_v8 = vcombine.low %v7640_v43, %v7648_v23  ;;  %v7735_v6 = vld [vmem:[#allocation14 + $0x420] sm:$0xff]  ;;  %v7736_v43 = vld [vmem:[#allocation14 + $0x428] sm:$0xff] }
 0x6ac   : > { %9395 = vmatprep.subr.bf16.mxu0 %v12828_v45  ;;  %9468 = vmatprep.subr.bf16.mxu1 %v12830_v26  ;;  %v12672_v45 = vcombine.high %v7655_v49, %v7663_v16  ;;  %v12674_v26 = vcombine.high %v7656_v4, %v7664_v7  ;;  %v7743_v56 = vld [vmem:[#allocation14 + $0x460] sm:$0xff]  ;;  %v7744_v23 = vld [vmem:[#allocation14 + $0x468] sm:$0xff] }
 0x6af   : > { %9396 = vmatpush1.bf16.msra.mxu0 %v12827_v13  ;;  %9469 = vmatpush1.bf16.msra.mxu1 %v12829_v14  ;;  %v12671_v13 = vcombine.low %v7655_v49, %v7663_v16  ;;  %v12673_v14 = vcombine.low %v7656_v4, %v7664_v7  ;;  %v7751_v49 = vld [vmem:[#allocation14 + $0x4a0] sm:$0xff]  ;;  %v7752_v4 = vld [vmem:[#allocation14 + $0x4a8] sm:$0xff] }
 0x6b0   : > { %9397 = vmatprep.subr.bf16.mxu0 %v12844_v34  ;;  %9470 = vmatprep.subr.bf16.mxu1 %v12846_v30  ;;  %v12688_v34 = vcombine.high %v7671_v10, %v7679_v11  ;;  %v12690_v30 = vcombine.high %v7672_v29, %v7680_v12  ;;  %v7759_v16 = vld [vmem:[#allocation14 + $0x4e0] sm:$0xff]  ;;  %v7760_v7 = vld [vmem:[#allocation14 + $0x4e8] sm:$0xff] }
 0x6b3   : > { %9398 = vmatpush1.bf16.msra.mxu0 %v12843_v20  ;;  %9471 = vmatpush1.bf16.msra.mxu1 %v12845_v63  ;;  %v12687_v20 = vcombine.low %v7671_v10, %v7679_v11  ;;  %v12689_v63 = vcombine.low %v7672_v29, %v7680_v12  ;;  %v7767_v10 = vld [vmem:[#allocation14 + $0x520] sm:$0xff]  ;;  %v7768_v29 = vld [vmem:[#allocation14 + $0x528] sm:$0xff] }
 0x6b4   : > { %9399 = vmatprep.subr.bf16.mxu0 %v12860_v21  ;;  %9472 = vmatprep.subr.bf16.mxu1 %v12862_v42  ;;  %v12704_v21 = vcombine.high %v7687_v3, %v7695_v18  ;;  %v12706_v42 = vcombine.high %v7688_v40, %v7696_v36  ;;  %v7775_v11 = vld [vmem:[#allocation14 + $0x560] sm:$0xff]  ;;  %v7776_v12 = vld [vmem:[#allocation14 + $0x568] sm:$0xff] }
 0x6b7   : > { %9400 = vmatpush1.bf16.msra.mxu0 %v12859_v38  ;;  %9473 = vmatpush1.bf16.msra.mxu1 %v12861_v39  ;;  %v12703_v38 = vcombine.low %v7687_v3, %v7695_v18  ;;  %v12705_v39 = vcombine.low %v7688_v40, %v7696_v36  ;;  %v7783_v3 = vld [vmem:[#allocation14 + $0x5a0] sm:$0xff]  ;;  %v7784_v40 = vld [vmem:[#allocation14 + $0x5a8] sm:$0xff] }
 0x6b8   : > { %9515 = vmatprep.subr.bf16.mxu0 %v12624_v58  ;;  %9588 = vmatprep.subr.bf16.mxu1 %v12626_v41  ;;  %v12720_v58 = vcombine.high %v7703_v27, %v7711_v28  ;;  %v12722_v41 = vcombine.high %v7704_v60, %v7712_v35  ;;  %v7791_v18 = vld [vmem:[#allocation14 + $0x5e0] sm:$0xff]  ;;  %v7792_v36 = vld [vmem:[#allocation14 + $0x5e8] sm:$0xff] }
 0x6ba   : > { %9402 = vmatmul.mubr.bf16.vlgmr.msra.gmra.mrb[32].mxu0 %v16906_v5  ;;  %9475 = vmatmul.mubr.bf16.vlgmr.msra.gmra.mrb[32].mxu1 %v16906_v5 }
 0x6bb   : > { %9411 = vmatprep.mubr.bf16.mxu0 %v16947_v54  ;;  %9484 = vmatprep.mubr.bf16.mxu1 %v16947_v54 }
 0x6bc   : > { %9516 = vmatpush1.bf16.msra.mxu0 %v12623_v50  ;;  %9589 = vmatpush1.bf16.msra.mxu1 %v12625_v53  ;;  %v12719_v50 = vcombine.low %v7703_v27, %v7711_v28  ;;  %v12721_v53 = vcombine.low %v7704_v60, %v7712_v35  ;;  %v7799_v27 = vld [vmem:[#allocation14 + $0x620] sm:$0xff]  ;;  %v7800_v60 = vld [vmem:[#allocation14 + $0x628] sm:$0xff] }
 0x6bd   : > { %9517 = vmatprep.subr.bf16.mxu0 %v12640_v55  ;;  %9590 = vmatprep.subr.bf16.mxu1 %v12642_v51  ;;  %v12736_v55 = vcombine.high %v7719_v9, %v7727_v37  ;;  %v12738_v51 = vcombine.high %v7720_v52, %v7728_v31  ;;  %v7807_v28 = vld [vmem:[#allocation14 + $0x660] sm:$0xff]  ;;  %v7808_v35 = vld [vmem:[#allocation14 + $0x668] sm:$0xff] }
 0x6c0   : > { %9518 = vmatpush1.bf16.msra.mxu0 %v12639_v62  ;;  %9591 = vmatpush1.bf16.msra.mxu1 %v12641_v0  ;;  %v12735_v62 = vcombine.low %v7719_v9, %v7727_v37  ;;  %v12737_v0 = vcombine.low %v7720_v52, %v7728_v31  ;;  %v7815_v9 = vld [vmem:[#allocation14 + $0x6a0] sm:$0xff]  ;;  %v7816_v52 = vld [vmem:[#allocation14 + $0x6a8] sm:$0xff] }
 0x6c1   : > { %9519 = vmatprep.subr.bf16.mxu0 %v12656_v1  ;;  %9592 = vmatprep.subr.bf16.mxu1 %v12658_v32  ;;  %v12752_v1 = vcombine.high %v7735_v6, %v7743_v56  ;;  %v12754_v32 = vcombine.high %v7736_v43, %v7744_v23  ;;  %v7823_v37 = vld [vmem:[#allocation14 + $0x6e0] sm:$0xff]  ;;  %v7824_v31 = vld [vmem:[#allocation14 + $0x6e8] sm:$0xff] }
 0x6c2   : > { %9412 = vmatmul.mubr.bf16.gmra.mrb[36].mxu0 %v16944_v47  ;;  %9485 = vmatmul.mubr.bf16.gmra.mrb[36].mxu1 %v16944_v47 }
 0x6c3   : > { %9421 = vmatprep.mubr.bf16.mxu0 %v16995_v19  ;;  %9494 = vmatprep.mubr.bf16.mxu1 %v16995_v19 }
 0x6c4   : > { %9520 = vmatpush1.bf16.msra.mxu0 %v12655_v44  ;;  %9593 = vmatpush1.bf16.msra.mxu1 %v12657_v8  ;;  %v12751_v44 = vcombine.low %v7735_v6, %v7743_v56  ;;  %v12753_v8 = vcombine.low %v7736_v43, %v7744_v23  ;;  %v7831_v6 = vld [vmem:[#allocation14 + $0x720] sm:$0xff]  ;;  %v7832_v43 = vld [vmem:[#allocation14 + $0x728] sm:$0xff] }
 0x6c5   : > { %9521 = vmatprep.subr.bf16.mxu0 %v12672_v45  ;;  %9594 = vmatprep.subr.bf16.mxu1 %v12674_v26  ;;  %v12768_v45 = vcombine.high %v7751_v49, %v7759_v16  ;;  %v12770_v26 = vcombine.high %v7752_v4, %v7760_v7  ;;  %v7839_v56 = vld [vmem:[#allocation14 + $0x760] sm:$0xff]  ;;  %v7840_v23 = vld [vmem:[#allocation14 + $0x768] sm:$0xff] }
 0x6c8   : > { %9522 = vmatpush1.bf16.msra.mxu0 %v12671_v13  ;;  %9595 = vmatpush1.bf16.msra.mxu1 %v12673_v14  ;;  %v12767_v13 = vcombine.low %v7751_v49, %v7759_v16  ;;  %v12769_v14 = vcombine.low %v7752_v4, %v7760_v7  ;;  %v7847_v49 = vld [vmem:[#allocation14 + $0x7a0] sm:$0xff]  ;;  %v7848_v4 = vld [vmem:[#allocation14 + $0x7a8] sm:$0xff] }
 0x6c9   : > { %9523 = vmatprep.subr.bf16.mxu0 %v12688_v34  ;;  %9596 = vmatprep.subr.bf16.mxu1 %v12690_v30  ;;  %v12784_v34 = vcombine.high %v7767_v10, %v7775_v11  ;;  %v12786_v30 = vcombine.high %v7768_v29, %v7776_v12  ;;  %v7855_v16 = vld [vmem:[#allocation14 + $0x7e0] sm:$0xff]  ;;  %v7856_v7 = vld [vmem:[#allocation14 + $0x7e8] sm:$0xff] }
 0x6ca   : > { %9422 = vmatmul.mubr.bf16.gmra.mrb[40].mxu0 %v16992_v15  ;;  %9495 = vmatmul.mubr.bf16.gmra.mrb[40].mxu1 %v16992_v15 }
 0x6cb   : > { %9431 = vmatprep.mubr.bf16.mxu0 %v17023_v57  ;;  %9504 = vmatprep.mubr.bf16.mxu1 %v17023_v57 }
 0x6cc   : > { %9524 = vmatpush1.bf16.msra.mxu0 %v12687_v20  ;;  %9597 = vmatpush1.bf16.msra.mxu1 %v12689_v63  ;;  %v12783_v20 = vcombine.low %v7767_v10, %v7775_v11  ;;  %v12785_v63 = vcombine.low %v7768_v29, %v7776_v12  ;;  %v7609_v10 = vld [vmem:[#allocation14 + $0x30] sm:$0xff]  ;;  %v7610_v29 = vld [vmem:[#allocation14 + $0x38] sm:$0xff] }
 0x6cd   : > { %9525 = vmatprep.subr.bf16.mxu0 %v12704_v21  ;;  %9598 = vmatprep.subr.bf16.mxu1 %v12706_v42  ;;  %v12800_v21 = vcombine.high %v7783_v3, %v7791_v18  ;;  %v12802_v42 = vcombine.high %v7784_v40, %v7792_v36  ;;  %v7617_v11 = vld [vmem:[#allocation14 + $0x70] sm:$0xff]  ;;  %v7618_v12 = vld [vmem:[#allocation14 + $0x78] sm:$0xff] }
 0x6d0   : > { %9526 = vmatpush1.bf16.msra.mxu0 %v12703_v38  ;;  %9599 = vmatpush1.bf16.msra.mxu1 %v12705_v39  ;;  %v12799_v38 = vcombine.low %v7783_v3, %v7791_v18  ;;  %v12801_v39 = vcombine.low %v7784_v40, %v7792_v36  ;;  %v7625_v3 = vld [vmem:[#allocation14 + $0xb0] sm:$0xff]  ;;  %v7626_v40 = vld [vmem:[#allocation14 + $0xb8] sm:$0xff] }
 0x6d1   : > { %9527 = vmatprep.subr.bf16.mxu0 %v12720_v58  ;;  %9600 = vmatprep.subr.bf16.mxu1 %v12722_v41  ;;  %v12816_v58 = vcombine.high %v7799_v27, %v7807_v28  ;;  %v12818_v41 = vcombine.high %v7800_v60, %v7808_v35  ;;  %v7633_v18 = vld [vmem:[#allocation14 + $0xf0] sm:$0xff]  ;;  %v7634_v36 = vld [vmem:[#allocation14 + $0xf8] sm:$0xff] }
 0x6d2   : > { %9432 = vmatmul.mubr.bf16.gmra.mrb[44].mxu0 %v17020_v2  ;;  %9505 = vmatmul.mubr.bf16.gmra.mrb[44].mxu1 %v17020_v2 }
 0x6d3   : > { %9547 = vmatprep.mubr.bf16.mxu0 %v16909_v33  ;;  %9620 = vmatprep.mubr.bf16.mxu1 %v16909_v33 }
 0x6d4   : > { %9528 = vmatpush1.bf16.msra.mxu0 %v12719_v50  ;;  %9601 = vmatpush1.bf16.msra.mxu1 %v12721_v53  ;;  %v12815_v50 = vcombine.low %v7799_v27, %v7807_v28  ;;  %v12817_v53 = vcombine.low %v7800_v60, %v7808_v35  ;;  %v7641_v27 = vld [vmem:[#allocation14 + $0x130] sm:$0xff]  ;;  %v7642_v60 = vld [vmem:[#allocation14 + $0x138] sm:$0xff] }
 0x6d5   : > { %9529 = vmatprep.subr.bf16.mxu0 %v12736_v55  ;;  %9602 = vmatprep.subr.bf16.mxu1 %v12738_v51  ;;  %v12832_v55 = vcombine.high %v7815_v9, %v7823_v37  ;;  %v12834_v51 = vcombine.high %v7816_v52, %v7824_v31  ;;  %v7649_v28 = vld [vmem:[#allocation14 + $0x170] sm:$0xff]  ;;  %v7650_v35 = vld [vmem:[#allocation14 + $0x178] sm:$0xff] }
 0x6d8   : > { %9530 = vmatpush1.bf16.msra.mxu0 %v12735_v62  ;;  %9603 = vmatpush1.bf16.msra.mxu1 %v12737_v0  ;;  %v12831_v62 = vcombine.low %v7815_v9, %v7823_v37  ;;  %v12833_v0 = vcombine.low %v7816_v52, %v7824_v31  ;;  %v7657_v9 = vld [vmem:[#allocation14 + $0x1b0] sm:$0xff]  ;;  %v7658_v52 = vld [vmem:[#allocation14 + $0x1b8] sm:$0xff] }
 0x6d9   : > { %9531 = vmatprep.subr.bf16.mxu0 %v12752_v1  ;;  %9604 = vmatprep.subr.bf16.mxu1 %v12754_v32  ;;  %v12848_v1 = vcombine.high %v7831_v6, %v7839_v56  ;;  %v12850_v32 = vcombine.high %v7832_v43, %v7840_v23  ;;  %v7665_v37 = vld [vmem:[#allocation14 + $0x1f0] sm:$0xff]  ;;  %v7666_v31 = vld [vmem:[#allocation14 + $0x1f8] sm:$0xff] }
 0x6dc   : > { %9532 = vmatpush1.bf16.msra.mxu0 %v12751_v44  ;;  %9605 = vmatpush1.bf16.msra.mxu1 %v12753_v8  ;;  %v12847_v44 = vcombine.low %v7831_v6, %v7839_v56  ;;  %v12849_v8 = vcombine.low %v7832_v43, %v7840_v23  ;;  %v7673_v6 = vld [vmem:[#allocation14 + $0x230] sm:$0xff]  ;;  %v7674_v43 = vld [vmem:[#allocation14 + $0x238] sm:$0xff] }
 0x6dd   : > { %9533 = vmatprep.subr.bf16.mxu0 %v12768_v45  ;;  %9606 = vmatprep.subr.bf16.mxu1 %v12770_v26  ;;  %v12864_v45 = vcombine.high %v7847_v49, %v7855_v16  ;;  %v12866_v26 = vcombine.high %v7848_v4, %v7856_v7  ;;  %v7681_v56 = vld [vmem:[#allocation14 + $0x270] sm:$0xff]  ;;  %v7682_v23 = vld [vmem:[#allocation14 + $0x278] sm:$0xff] }
 0x6e0   : > { %9534 = vmatpush1.bf16.msra.mxu0 %v12767_v13  ;;  %9607 = vmatpush1.bf16.msra.mxu1 %v12769_v14  ;;  %v12863_v13 = vcombine.low %v7847_v49, %v7855_v16  ;;  %v12865_v14 = vcombine.low %v7848_v4, %v7856_v7  ;;  %v7689_v49 = vld [vmem:[#allocation14 + $0x2b0] sm:$0xff]  ;;  %v7690_v4 = vld [vmem:[#allocation14 + $0x2b8] sm:$0xff] }
 0x6e1   : > { %9535 = vmatprep.subr.bf16.mxu0 %v12784_v34  ;;  %9608 = vmatprep.subr.bf16.mxu1 %v12786_v30  ;;  %v12628_v34 = vcombine.high %v7609_v10, %v7617_v11  ;;  %v12630_v30 = vcombine.high %v7610_v29, %v7618_v12  ;;  %v7697_v16 = vld [vmem:[#allocation14 + $0x2f0] sm:$0xff]  ;;  %v7698_v7 = vld [vmem:[#allocation14 + $0x2f8] sm:$0xff] }
 0x6e4   : > { %9536 = vmatpush1.bf16.msra.mxu0 %v12783_v20  ;;  %9609 = vmatpush1.bf16.msra.mxu1 %v12785_v63  ;;  %v12627_v20 = vcombine.low %v7609_v10, %v7617_v11  ;;  %v12629_v63 = vcombine.low %v7610_v29, %v7618_v12  ;;  %v7705_v10 = vld [vmem:[#allocation14 + $0x330] sm:$0xff]  ;;  %v7706_v29 = vld [vmem:[#allocation14 + $0x338] sm:$0xff] }
 0x6e5   : > { %9537 = vmatprep.subr.bf16.mxu0 %v12800_v21  ;;  %9610 = vmatprep.subr.bf16.mxu1 %v12802_v42  ;;  %v12644_v21 = vcombine.high %v7625_v3, %v7633_v18  ;;  %v12646_v42 = vcombine.high %v7626_v40, %v7634_v36  ;;  %v7713_v11 = vld [vmem:[#allocation14 + $0x370] sm:$0xff]  ;;  %v7714_v12 = vld [vmem:[#allocation14 + $0x378] sm:$0xff] }
 0x6e8   : > { %9538 = vmatpush1.bf16.msra.mxu0 %v12799_v38  ;;  %9611 = vmatpush1.bf16.msra.mxu1 %v12801_v39  ;;  %v12643_v38 = vcombine.low %v7625_v3, %v7633_v18  ;;  %v12645_v39 = vcombine.low %v7626_v40, %v7634_v36  ;;  %v7721_v3 = vld [vmem:[#allocation14 + $0x3b0] sm:$0xff]  ;;  %v7722_v40 = vld [vmem:[#allocation14 + $0x3b8] sm:$0xff] }
 0x6e9   : > { %9539 = vmatprep.subr.bf16.mxu0 %v12816_v58  ;;  %9612 = vmatprep.subr.bf16.mxu1 %v12818_v41  ;;  %v12660_v58 = vcombine.high %v7641_v27, %v7649_v28  ;;  %v12662_v41 = vcombine.high %v7642_v60, %v7650_v35  ;;  %v7729_v18 = vld [vmem:[#allocation14 + $0x3f0] sm:$0xff]  ;;  %v7730_v36 = vld [vmem:[#allocation14 + $0x3f8] sm:$0xff] }
 0x6ec   : > { %9540 = vmatpush1.bf16.msra.mxu0 %v12815_v50  ;;  %9613 = vmatpush1.bf16.msra.mxu1 %v12817_v53  ;;  %v12659_v50 = vcombine.low %v7641_v27, %v7649_v28  ;;  %v12661_v53 = vcombine.low %v7642_v60, %v7650_v35  ;;  %v7737_v27 = vld [vmem:[#allocation14 + $0x430] sm:$0xff]  ;;  %v7738_v60 = vld [vmem:[#allocation14 + $0x438] sm:$0xff] }
 0x6ed   : > { %9541 = vmatprep.subr.bf16.mxu0 %v12832_v55  ;;  %9614 = vmatprep.subr.bf16.mxu1 %v12834_v51  ;;  %v12676_v55 = vcombine.high %v7657_v9, %v7665_v37  ;;  %v12678_v51 = vcombine.high %v7658_v52, %v7666_v31  ;;  %v7745_v28 = vld [vmem:[#allocation14 + $0x470] sm:$0xff]  ;;  %v7746_v35 = vld [vmem:[#allocation14 + $0x478] sm:$0xff] }
 0x6f0   : > { %9542 = vmatpush1.bf16.msra.mxu0 %v12831_v62  ;;  %9615 = vmatpush1.bf16.msra.mxu1 %v12833_v0  ;;  %v12675_v62 = vcombine.low %v7657_v9, %v7665_v37  ;;  %v12677_v0 = vcombine.low %v7658_v52, %v7666_v31  ;;  %v7753_v9 = vld [vmem:[#allocation14 + $0x4b0] sm:$0xff]  ;;  %v7754_v52 = vld [vmem:[#allocation14 + $0x4b8] sm:$0xff] }
 0x6f1   : > { %9543 = vmatprep.subr.bf16.mxu0 %v12848_v1  ;;  %9616 = vmatprep.subr.bf16.mxu1 %v12850_v32  ;;  %v12692_v1 = vcombine.high %v7673_v6, %v7681_v56  ;;  %v12694_v32 = vcombine.high %v7674_v43, %v7682_v23  ;;  %v7761_v37 = vld [vmem:[#allocation14 + $0x4f0] sm:$0xff]  ;;  %v7762_v31 = vld [vmem:[#allocation14 + $0x4f8] sm:$0xff] }
 0x6f4   : > { %9544 = vmatpush1.bf16.msra.mxu0 %v12847_v44  ;;  %9617 = vmatpush1.bf16.msra.mxu1 %v12849_v8  ;;  %v12691_v44 = vcombine.low %v7673_v6, %v7681_v56  ;;  %v12693_v8 = vcombine.low %v7674_v43, %v7682_v23  ;;  %v7777_v6 = vld [vmem:[#allocation14 + $0x570] sm:$0xff]  ;;  %v7770_v56 = vld [vmem:[#allocation14 + $0x538] sm:$0xff]  ;;  %v12771_v23 = vcombine.low %v7753_v9, %v7761_v37 }
 0x6f5   : > { %9545 = vmatprep.subr.bf16.mxu0 %v12864_v45  ;;  %9618 = vmatprep.subr.bf16.mxu1 %v12866_v26  ;;  %v12708_v45 = vcombine.high %v7689_v49, %v7697_v16  ;;  %v12710_v26 = vcombine.high %v7690_v4, %v7698_v7  ;;  %v7778_v43 = vld [vmem:[#allocation14 + $0x578] sm:$0xff] }
 0x6f8   : > { %9546 = vmatpush1.bf16.msra.mxu0 %v12863_v13  ;;  %9619 = vmatpush1.bf16.msra.mxu1 %v12865_v14  ;;  %v12707_v13 = vcombine.low %v7689_v49, %v7697_v16  ;;  %v12709_v14 = vcombine.low %v7690_v4, %v7698_v7  ;;  %v7793_v49 = vld [vmem:[#allocation14 + $0x5f0] sm:$0xff]  ;;  %v7786_v16 = vld [vmem:[#allocation14 + $0x5b8] sm:$0xff] }
 0x6f9   : > { %9661 = vmatprep.subr.bf16.mxu0 %v12628_v34  ;;  %9734 = vmatprep.subr.bf16.mxu1 %v12630_v30  ;;  %v12724_v34 = vcombine.high %v7705_v10, %v7713_v11  ;;  %v12726_v30 = vcombine.high %v7706_v29, %v7714_v12  ;;  %v7794_v4 = vld [vmem:[#allocation14 + $0x5f8] sm:$0xff] }
 0x6fb   : > { %9548 = vmatmul.mubr.bf16.vlgmr.msra.gmra.mrb[48].mxu0 %v16906_v5  ;;  %9621 = vmatmul.mubr.bf16.vlgmr.msra.gmra.mrb[48].mxu1 %v16906_v5 }
 0x6fc   : > { %9557 = vmatprep.mubr.bf16.mxu0 %v16947_v54  ;;  %9630 = vmatprep.mubr.bf16.mxu1 %v16947_v54 }
 0x6fd   : > { %9662 = vmatpush1.bf16.msra.mxu0 %v12627_v20  ;;  %9735 = vmatpush1.bf16.msra.mxu1 %v12629_v63  ;;  %v12723_v20 = vcombine.low %v7705_v10, %v7713_v11  ;;  %v12725_v63 = vcombine.low %v7706_v29, %v7714_v12  ;;  %v7809_v10 = vld [vmem:[#allocation14 + $0x670] sm:$0xff]  ;;  %v7802_v11 = vld [vmem:[#allocation14 + $0x638] sm:$0xff] }
 0x6fe   : > { %9663 = vmatprep.subr.bf16.mxu0 %v12644_v21  ;;  %9736 = vmatprep.subr.bf16.mxu1 %v12646_v42  ;;  %v12740_v21 = vcombine.high %v7721_v3, %v7729_v18  ;;  %v12742_v42 = vcombine.high %v7722_v40, %v7730_v36  ;;  %v7810_v29 = vld [vmem:[#allocation14 + $0x678] sm:$0xff] }
 0x701   : > { %9664 = vmatpush1.bf16.msra.mxu0 %v12643_v38  ;;  %9737 = vmatpush1.bf16.msra.mxu1 %v12645_v39  ;;  %v12739_v38 = vcombine.low %v7721_v3, %v7729_v18  ;;  %v12741_v39 = vcombine.low %v7722_v40, %v7730_v36  ;;  %v7825_v3 = vld [vmem:[#allocation14 + $0x6f0] sm:$0xff]  ;;  %v7818_v18 = vld [vmem:[#allocation14 + $0x6b8] sm:$0xff] }
 0x702   : > { %9665 = vmatprep.subr.bf16.mxu0 %v12660_v58  ;;  %9738 = vmatprep.subr.bf16.mxu1 %v12662_v41  ;;  %v12756_v58 = vcombine.high %v7737_v27, %v7745_v28  ;;  %v12758_v41 = vcombine.high %v7738_v60, %v7746_v35  ;;  %v7826_v40 = vld [vmem:[#allocation14 + $0x6f8] sm:$0xff] }
 0x703   : > { %9558 = vmatmul.mubr.bf16.gmra.mrb[52].mxu0 %v16944_v47  ;;  %9631 = vmatmul.mubr.bf16.gmra.mrb[52].mxu1 %v16944_v47 }
 0x704   : > { %9567 = vmatprep.mubr.bf16.mxu0 %v16995_v19  ;;  %9640 = vmatprep.mubr.bf16.mxu1 %v16995_v19 }
 0x705   : > { %9666 = vmatpush1.bf16.msra.mxu0 %v12659_v50  ;;  %9739 = vmatpush1.bf16.msra.mxu1 %v12661_v53  ;;  %v12755_v50 = vcombine.low %v7737_v27, %v7745_v28  ;;  %v12757_v53 = vcombine.low %v7738_v60, %v7746_v35  ;;  %v7841_v27 = vld [vmem:[#allocation14 + $0x770] sm:$0xff]  ;;  %v7834_v28 = vld [vmem:[#allocation14 + $0x738] sm:$0xff] }
 0x706   : > { %9667 = vmatprep.subr.bf16.mxu0 %v12676_v55  ;;  %9740 = vmatprep.subr.bf16.mxu1 %v12678_v51  ;;  %v12772_v55 = vcombine.high %v7753_v9, %v7761_v37  ;;  %v7769_v51 = vld [vmem:[#allocation14 + $0x530] sm:$0xff]  ;;  %v7842_v60 = vld [vmem:[#allocation14 + $0x778] sm:$0xff] }
 0x707   : > { %v12787_v7 = vcombine.low %v7769_v51, %v7777_v6  ;;  %v7857_v9 = vld [vmem:[#allocation14 + $0x7f0] sm:$0xff]  ;;  %v7850_v37 = vld [vmem:[#allocation14 + $0x7b8] sm:$0xff] }
 0x709   : > { %9668 = vmatpush1.bf16.msra.mxu0 %v12675_v62  ;;  %9741 = vmatpush1.bf16.msra.mxu1 %v12677_v0  ;;  %v12773_v62 = vcombine.low %v7754_v52, %v7762_v31  ;;  %v12788_v0 = vcombine.high %v7769_v51, %v7777_v6  ;;  %v17071_v6 = vld [vmem:[#allocation16] sm:$0xff] }
 0x70a   : > { %9669 = vmatprep.subr.bf16.mxu0 %v12692_v1  ;;  %9742 = vmatprep.subr.bf16.mxu1 %v12694_v32  ;;  %v12790_v1 = vcombine.high %v7770_v56, %v7778_v43  ;;  %v7785_v32 = vld [vmem:[#allocation14 + $0x5b0] sm:$0xff] }
 0x70b   : > { %9568 = vmatmul.mubr.bf16.gmra.mrb[56].mxu0 %v16992_v15  ;;  %9641 = vmatmul.mubr.bf16.gmra.mrb[56].mxu1 %v16992_v15  ;;  %v12803_v12 = vcombine.low %v7785_v32, %v7793_v49 }
 0x70c   : > { %9577 = vmatprep.mubr.bf16.mxu0 %v17023_v57  ;;  %9650 = vmatprep.mubr.bf16.mxu1 %v17023_v57 }
 0x70d   : > { %9670 = vmatpush1.bf16.msra.mxu0 %v12691_v44  ;;  %9743 = vmatpush1.bf16.msra.mxu1 %v12693_v8  ;;  %v12789_v44 = vcombine.low %v7770_v56, %v7778_v43  ;;  %v12804_v8 = vcombine.high %v7785_v32, %v7793_v49  ;;  %v17075_v56 = vrot.slane %v17071_v6, %v16509_v25 }
 0x70e   : > { %9671 = vmatprep.subr.bf16.mxu0 %v12708_v45  ;;  %9744 = vmatprep.subr.bf16.mxu1 %v12710_v26  ;;  %v12806_v45 = vcombine.high %v7786_v16, %v7794_v4  ;;  %v7801_v26 = vld [vmem:[#allocation14 + $0x630] sm:$0xff] }
 0x70f   : > { %v12819_v36 = vcombine.low %v7801_v26, %v7809_v10 }
 0x711   : > { %9672 = vmatpush1.bf16.msra.mxu0 %v12707_v13  ;;  %9745 = vmatpush1.bf16.msra.mxu1 %v12709_v14  ;;  %v12805_v13 = vcombine.low %v7786_v16, %v7794_v4  ;;  %v12820_v14 = vcombine.high %v7801_v26, %v7809_v10 }
 0x712   : > { %9673 = vmatprep.subr.bf16.mxu0 %v12724_v34  ;;  %9746 = vmatprep.subr.bf16.mxu1 %v12726_v30  ;;  %v12822_v34 = vcombine.high %v7802_v11, %v7810_v29  ;;  %v7817_v30 = vld [vmem:[#allocation14 + $0x6b0] sm:$0xff] }
 0x713   : > { %9578 = vmatmul.mubr.bf16.gmra.mrb[60].mxu0 %v17020_v2  ;;  %9651 = vmatmul.mubr.bf16.gmra.mrb[60].mxu1 %v17020_v2  ;;  %v12835_v35 = vcombine.low %v7817_v30, %v7825_v3 }
 0x714   : > { %9693 = vmatprep.mubr.bf16.mxu0 %v16909_v33  ;;  %9766 = vmatprep.mubr.bf16.mxu1 %v16909_v33  ;;  %v12774_v33 = vcombine.high %v7754_v52, %v7762_v31  ;;  %v7858_v52 = vld [vmem:[#allocation14 + $0x7f8] sm:$0xff] }
 0x715   : > { %9674 = vmatpush1.bf16.msra.mxu0 %v12723_v20  ;;  %9747 = vmatpush1.bf16.msra.mxu1 %v12725_v63  ;;  %v12821_v20 = vcombine.low %v7802_v11, %v7810_v29  ;;  %v12836_v63 = vcombine.high %v7817_v30, %v7825_v3  ;;  %v12869_v51 = vcombine.low %v7850_v37, %v7858_v52 }
 0x716   : > { %9675 = vmatprep.subr.bf16.mxu0 %v12740_v21  ;;  %9748 = vmatprep.subr.bf16.mxu1 %v12742_v42  ;;  %v12838_v21 = vcombine.high %v7818_v18, %v7826_v40  ;;  %v7833_v42 = vld [vmem:[#allocation14 + $0x730] sm:$0xff] }
 0x717   : > { %v12851_v31 = vcombine.low %v7833_v42, %v7841_v27 }
 0x719   : > { %9676 = vmatpush1.bf16.msra.mxu0 %v12739_v38  ;;  %9749 = vmatpush1.bf16.msra.mxu1 %v12741_v39  ;;  %v12837_v38 = vcombine.low %v7818_v18, %v7826_v40  ;;  %v12852_v39 = vcombine.high %v7833_v42, %v7841_v27 }
 0x71a   : > { %9677 = vmatprep.subr.bf16.mxu0 %v12756_v58  ;;  %9750 = vmatprep.subr.bf16.mxu1 %v12758_v41  ;;  %v12854_v58 = vcombine.high %v7834_v28, %v7842_v60  ;;  %v7849_v41 = vld [vmem:[#allocation14 + $0x7b0] sm:$0xff] }
 0x71d   : > { %9678 = vmatpush1.bf16.msra.mxu0 %v12755_v50  ;;  %9751 = vmatpush1.bf16.msra.mxu1 %v12757_v53  ;;  %v12853_v50 = vcombine.low %v7834_v28, %v7842_v60  ;;  %v12868_v53 = vcombine.high %v7849_v41, %v7857_v9 }
 0x71e   : > { %9679 = vmatprep.subr.bf16.mxu0 %v12772_v55  ;;  %9752 = vmatprep.subr.bf16.mxu1 %v12774_v33  ;;  %v12870_v55 = vcombine.high %v7850_v37, %v7858_v52  ;;  %v12867_v33 = vcombine.low %v7849_v41, %v7857_v9 }
 0x721   : > { %9680 = vmatpush1.bf16.msra.mxu0 %v12771_v23  ;;  %9753 = vmatpush1.bf16.msra.mxu1 %v12773_v62 }
 0x722   : > { %9681 = vmatprep.subr.bf16.mxu0 %v12788_v0  ;;  %9754 = vmatprep.subr.bf16.mxu1 %v12790_v1 }
 0x725   : > { %9682 = vmatpush1.bf16.msra.mxu0 %v12787_v7  ;;  %9755 = vmatpush1.bf16.msra.mxu1 %v12789_v44 }
 0x726   : > { %9683 = vmatprep.subr.bf16.mxu0 %v12804_v8  ;;  %9756 = vmatprep.subr.bf16.mxu1 %v12806_v45 }
 0x729   : > { %9684 = vmatpush1.bf16.msra.mxu0 %v12803_v12  ;;  %9757 = vmatpush1.bf16.msra.mxu1 %v12805_v13 }
 0x72a   : > { %9685 = vmatprep.subr.bf16.mxu0 %v12820_v14  ;;  %9758 = vmatprep.subr.bf16.mxu1 %v12822_v34 }
 0x72d   : > { %9686 = vmatpush1.bf16.msra.mxu0 %v12819_v36  ;;  %9759 = vmatpush1.bf16.msra.mxu1 %v12821_v20 }
 0x72e   : > { %9687 = vmatprep.subr.bf16.mxu0 %v12836_v63  ;;  %9760 = vmatprep.subr.bf16.mxu1 %v12838_v21 }
 0x731   : > { %9688 = vmatpush1.bf16.msra.mxu0 %v12835_v35  ;;  %9761 = vmatpush1.bf16.msra.mxu1 %v12837_v38 }
 0x732   : > { %9689 = vmatprep.subr.bf16.mxu0 %v12852_v39  ;;  %9762 = vmatprep.subr.bf16.mxu1 %v12854_v58 }
 0x735   : > { %9690 = vmatpush1.bf16.msra.mxu0 %v12851_v31  ;;  %9763 = vmatpush1.bf16.msra.mxu1 %v12853_v50 }
 0x736   : > { %9691 = vmatprep.subr.bf16.mxu0 %v12868_v53  ;;  %9764 = vmatprep.subr.bf16.mxu1 %v12870_v55 }
 0x739   : > { %9692 = vmatpush1.bf16.msra.mxu0 %v12867_v33  ;;  %9765 = vmatpush1.bf16.msra.mxu1 %v12869_v51 }
 0x73c   : > { %9694 = vmatmul.mubr.bf16.vlgmr.msra.gmra.mrb[64].mxu0 %v16906_v5  ;;  %9767 = vmatmul.mubr.bf16.vlgmr.msra.gmra.mrb[64].mxu1 %v16906_v5  ;;  %v17079_v5 = vrot.slane %v17071_v6, %v16581_v59 }
 0x73d   : > { %9703 = vmatprep.mubr.bf16.mxu0 %v16947_v54  ;;  %9776 = vmatprep.mubr.bf16.mxu1 %v16947_v54  ;;  %v17083_v54 = vrot.slane %v17071_v6, %v16506_v24 }
 0x744   : > { %9704 = vmatmul.mubr.bf16.gmra.mrb[68].mxu0 %v16944_v47  ;;  %9777 = vmatmul.mubr.bf16.gmra.mrb[68].mxu1 %v16944_v47  ;;  %v17087_v47 = vrot.slane %v17071_v6, %v16568_v46 }
 0x745   : > { %9713 = vmatprep.mubr.bf16.mxu0 %v16995_v19  ;;  %9786 = vmatprep.mubr.bf16.mxu1 %v16995_v19 }
 0x74c   : > { %9714 = vmatmul.mubr.bf16.gmra.mrb[72].mxu0 %v16992_v15  ;;  %9787 = vmatmul.mubr.bf16.gmra.mrb[72].mxu1 %v16992_v15 }
 0x74d   : > { %9723 = vmatprep.mubr.bf16.mxu0 %v17023_v57  ;;  %9796 = vmatprep.mubr.bf16.mxu1 %v17023_v57  ;;  %v9257_v19 = vpop.f32.mrb[16].mxu0  ;;  %v9330_v43 = vpop.f32.mrb[16].mxu1 }
 0x74e   : > { %v9258_v23 = vadd.f32 %v9257_v19, %v17075_v56  ;;  %v9331_v62 = vadd.f32 %v9330_v43, %v17079_v5  ;;  %v9259_v0 = vpop.f32.mrb[17].mxu0  ;;  %v9332_v1 = vpop.f32.mrb[17].mxu1 }
 0x74f   : > { %v9260_v32 = vadd.f32 %v9259_v0, %v17083_v54  ;;  %v9333_v49 = vadd.f32 %v9332_v1, %v17087_v47  ;;  %v9261_v16 = vpop.f32.mrb[18].mxu0  ;;  %v9334_v4 = vpop.f32.mrb[18].mxu1 }
 0x750   : > { %14802 = vtanh.f32 %v9258_v23  ;;  %v9262_v15 = vadd.f32 %v9261_v16, %v17075_v56  ;;  %v9263_v7 = vpop.f32.mrb[19].mxu0  ;;  %v9336_v44 = vpop.f32.mrb[19].mxu1  ;;  %v9335_v57 = vadd.f32 %v9334_v4, %v17079_v5 }
 0x751   : > { %14804 = vtanh.f32 %v9331_v62  ;;  %v9264_v8 = vadd.f32 %v9263_v7, %v17083_v54  ;;  %v9337_v45 = vadd.f32 %v9336_v44, %v17087_v47 }
 0x752   : > { %14806 = vtanh.f32 %v9260_v32 }
 0x753   : > { %14808 = vtanh.f32 %v9333_v49 }
 0x754   : > { %14810 = vtanh.f32 %v9262_v15  ;;  %9724 = vmatmul.mubr.bf16.gmra.mrb[76].mxu0 %v17020_v2  ;;  %9797 = vmatmul.mubr.bf16.gmra.mrb[76].mxu1 %v17020_v2 }
 0x755   : > { %14812 = vtanh.f32 %v9335_v57  ;;  %v9267_v26 = vpop.f32.mrb[20].mxu0  ;;  %v9340_v10 = vpop.f32.mrb[20].mxu1 }
 0x756   : > { %14814 = vtanh.f32 %v9264_v8  ;;  %v9268_v11 = vadd.f32 %v9267_v26, %v17075_v56  ;;  %v9341_v29 = vadd.f32 %v9340_v10, %v17079_v5  ;;  %v9269_v12 = vpop.f32.mrb[21].mxu0  ;;  %v9342_v13 = vpop.f32.mrb[21].mxu1 }
 0x757   : > { %14816 = vtanh.f32 %v9337_v45  ;;  %v9270_v14 = vadd.f32 %v9269_v12, %v17083_v54  ;;  %v9343_v34 = vadd.f32 %v9342_v13, %v17087_v47  ;;  %v9271_v30 = vpop.f32.mrb[22].mxu0  ;;  %v9344_v3 = vpop.f32.mrb[22].mxu1 }
 0x758   : > { %14818 = vtanh.f32 %v9268_v11  ;;  %v9272_v2 = vadd.f32 %v9271_v30, %v17075_v56  ;;  %v9273_v18 = vpop.f32.mrb[23].mxu0  ;;  %v9346_v40 = vpop.f32.mrb[23].mxu1  ;;  %v9345_v36 = vadd.f32 %v9344_v3, %v17079_v5 }
 0x759   : > { %14820 = vtanh.f32 %v9341_v29  ;;  %v9274_v63 = vadd.f32 %v9273_v18, %v17083_v54  ;;  %v9347_v42 = vadd.f32 %v9346_v40, %v17087_v47 }
 0x75a   : > { %v14803_v20 = vpop.eup %14802  ;;  %14822 = vtanh.f32 %v9270_v14 }
 0x75b   : > { %v14805_v21 = vpop.eup %14804  ;;  %14824 = vtanh.f32 %v9343_v34 }
 0x75c   : > { %v14807_v27 = vpop.eup %14806  ;;  %14826 = vtanh.f32 %v9272_v2 }
 0x75d   : > { %v14809_v28 = vpop.eup %14808  ;;  %14828 = vtanh.f32 %v9345_v36  ;;  %v9277_v60 = vpop.f32.mrb[24].mxu0 }
 0x75e   : > { %v9350_v35 = vpop.f32.mrb[24].mxu1  ;;  %v14811_v38 = vpop.eup %14810  ;;  %14830 = vtanh.f32 %v9274_v63  ;;  %v9278_v39 = vadd.f32 %v9277_v60, %v17075_v56 }
 0x75f   : > { %v9351_v58 = vadd.f32 %v9350_v35, %v17079_v5  ;;  %v9279_v41 = vpop.f32.mrb[25].mxu0  ;;  %v9352_v9 = vpop.f32.mrb[25].mxu1  ;;  %v9935_v52 = vpack.c.bf16 %v14811_v38, %v14803_v20  ;;  %14832 = vtanh.f32 %v9347_v42 }
 0x760   : > { %v14813_v37 = vpop.eup %14812  ;;  %v9280_v31 = vadd.f32 %v9279_v41, %v17083_v54  ;;  %v9353_v50 = vadd.f32 %v9352_v9, %v17087_v47  ;;  %v9281_v53 = vpop.f32.mrb[26].mxu0  ;;  %14834 = vtanh.f32 %v9278_v39 }
 0x761   : > { %v9354_v55 = vpop.f32.mrb[26].mxu1  ;;  %v14815_v33 = vpop.eup %14814  ;;  %v9937_v51 = vpack.c.bf16 %v14813_v37, %v14805_v21  ;;  %v9282_v19 = vadd.f32 %v9281_v53, %v17075_v56  ;;  %9999 = vst [vmem:[#allocation4] sm:$0xff] %v9935_v52  ;;  %14836 = vtanh.f32 %v9351_v58 }
 0x762   : > { %v9283_v43 = vpop.f32.mrb[27].mxu0  ;;  %v9356_v23 = vpop.f32.mrb[27].mxu1  ;;  %v9936_v0 = vpack.c.bf16 %v14815_v33, %v14807_v27  ;;  %v9355_v1 = vadd.f32 %v9354_v55, %v17079_v5  ;;  %14838 = vtanh.f32 %v9280_v31 }
 0x763   : > { %v14817_v62 = vpop.eup %14816  ;;  %10001 = vst [vmem:[#allocation4 + $0x10] sm:$0xff] %v9937_v51  ;;  %v9284_v16 = vadd.f32 %v9283_v43, %v17083_v54  ;;  %14840 = vtanh.f32 %v9353_v50  ;;  %v9357_v15 = vadd.f32 %v9356_v23, %v17087_v47 }
 0x764   : > { %v14819_v32 = vpop.eup %14818  ;;  %v9938_v49 = vpack.c.bf16 %v14817_v62, %v14809_v28  ;;  %10000 = vst [vmem:[#allocation4 + $0x8] sm:$0xff] %v9936_v0  ;;  %14842 = vtanh.f32 %v9282_v19 }
 0x765   : > { %v14821_v4 = vpop.eup %14820  ;;  %14844 = vtanh.f32 %v9355_v1  ;;  %v9287_v57 = vpop.f32.mrb[28].mxu0 }
 0x766   : > { %v14823_v7 = vpop.eup %14822  ;;  %10002 = vst [vmem:[#allocation4 + $0x18] sm:$0xff] %v9938_v49  ;;  %v9360_v8 = vpop.f32.mrb[28].mxu1  ;;  %14846 = vtanh.f32 %v9284_v16  ;;  %v9288_v26 = vadd.f32 %v9287_v57, %v17075_v56  ;;  %v17133_v49 = vrot.slane %v17071_v6, %v16675_v61  ;;  %v17137_v16 = vrot.slane %v17071_v6, %v16613_v22 }
 0x767   : > { %v14825_v44 = vpop.eup %14824  ;;  %v9361_v10 = vadd.f32 %v9360_v8, %v17079_v5  ;;  %v9289_v11 = vpop.f32.mrb[29].mxu0  ;;  %14848 = vtanh.f32 %v9357_v15 }
 0x768   : > { %v14827_v45 = vpop.eup %14826  ;;  %v9362_v29 = vpop.f32.mrb[29].mxu1  ;;  %v9290_v14 = vadd.f32 %v9289_v11, %v17083_v54  ;;  %14850 = vtanh.f32 %v9288_v26 }
 0x769   : > { %v14829_v12 = vpop.eup %14828  ;;  %v9951_v13 = vpack.c.bf16 %v14827_v45, %v14819_v32  ;;  %v9363_v34 = vadd.f32 %v9362_v29, %v17087_v47  ;;  %v9291_v30 = vpop.f32.mrb[30].mxu0  ;;  %14852 = vtanh.f32 %v9361_v10  ;;  %v17129_v32 = vrot.slane %v17071_v6, %v16627_v48 }
 0x76a   : > { %v9364_v3 = vpop.f32.mrb[30].mxu1  ;;  %v14831_v2 = vpop.eup %14830  ;;  %v9953_v18 = vpack.c.bf16 %v14829_v12, %v14821_v4  ;;  %v9292_v40 = vadd.f32 %v9291_v30, %v17075_v56  ;;  %14854 = vtanh.f32 %v9290_v14  ;;  %v17141_v4 = vrot.slane %v17071_v6, %v16661_v17 }
 0x76b   : > { %v9293_v36 = vpop.f32.mrb[31].mxu0  ;;  %v9366_v20 = vpop.f32.mrb[31].mxu1  ;;  %10015 = vst [vmem:[#allocation4 + $0x80] sm:$0xff] %v9951_v13  ;;  %v9952_v21 = vpack.c.bf16 %v14831_v2, %v14823_v7  ;;  %v9365_v42 = vadd.f32 %v9364_v3, %v17079_v5  ;;  %14856 = vtanh.f32 %v9363_v34 }
 0x76c   : > { %v14833_v63 = vpop.eup %14832  ;;  %10017 = vst [vmem:[#allocation4 + $0x90] sm:$0xff] %v9953_v18  ;;  %v9294_v60 = vadd.f32 %v9293_v36, %v17083_v54  ;;  %v9367_v38 = vadd.f32 %v9366_v20, %v17087_v47  ;;  %14858 = vtanh.f32 %v9292_v40 }
 0x76d   : > { %v14835_v27 = vpop.eup %14834  ;;  %v9954_v28 = vpack.c.bf16 %v14833_v63, %v14825_v44  ;;  %10016 = vst [vmem:[#allocation4 + $0x88] sm:$0xff] %v9952_v21  ;;  %14860 = vtanh.f32 %v9365_v42 }
 0x76e   : > { %v14837_v35 = vpop.eup %14836  ;;  %14862 = vtanh.f32 %v9294_v60 }
 0x76f   : > { %v14839_v56 = vpop.eup %14838  ;;  %10018 = vst [vmem:[#allocation4 + $0x98] sm:$0xff] %v9954_v28  ;;  %14864 = vtanh.f32 %v9367_v38 }
 0x770   : > { %v14841_v39 = vpop.eup %14840 }
 0x771   : > { %v14843_v58 = vpop.eup %14842 }
 0x772   : > { %v14845_v41 = vpop.eup %14844  ;;  %v9967_v5 = vpack.c.bf16 %v14843_v58, %v14835_v27 }
 0x773   : > { %v14847_v9 = vpop.eup %14846  ;;  %v9969_v37 = vpack.c.bf16 %v14845_v41, %v14837_v35 }
 0x774   : > { %v14849_v52 = vpop.eup %14848  ;;  %10031 = vst [vmem:[#allocation4 + $0x100] sm:$0xff] %v9967_v5  ;;  %v9968_v54 = vpack.c.bf16 %v14847_v9, %v14839_v56 }
 0x775   : > { %v14851_v31 = vpop.eup %14850  ;;  %10033 = vst [vmem:[#allocation4 + $0x110] sm:$0xff] %v9969_v37  ;;  %v9970_v50 = vpack.c.bf16 %v14849_v52, %v14841_v39 }
 0x776   : > { %v14853_v53 = vpop.eup %14852  ;;  %10032 = vst [vmem:[#allocation4 + $0x108] sm:$0xff] %v9968_v54 }
 0x777   : > { %v14855_v47 = vpop.eup %14854  ;;  %10034 = vst [vmem:[#allocation4 + $0x118] sm:$0xff] %v9970_v50 }
 0x778   : > { %v14857_v55 = vpop.eup %14856 }
 0x779   : > { %v14859_v33 = vpop.eup %14858 }
 0x77a   : > { %v14861_v51 = vpop.eup %14860  ;;  %v9983_v19 = vpack.c.bf16 %v14859_v33, %v14851_v31 }
 0x77b   : > { %v14863_v43 = vpop.eup %14862  ;;  %v9985_v23 = vpack.c.bf16 %v14861_v51, %v14853_v53 }
 0x77c   : > { %v14865_v62 = vpop.eup %14864  ;;  %10047 = vst [vmem:[#allocation4 + $0x180] sm:$0xff] %v9983_v19  ;;  %v9984_v0 = vpack.c.bf16 %v14863_v43, %v14855_v47 }
 0x77d   : > { %10049 = vst [vmem:[#allocation4 + $0x190] sm:$0xff] %v9985_v23  ;;  %v9986_v1 = vpack.c.bf16 %v14865_v62, %v14857_v55 }
 0x77e   : > { %10048 = vst [vmem:[#allocation4 + $0x188] sm:$0xff] %v9984_v0 }
 0x77f   : > { %10050 = vst [vmem:[#allocation4 + $0x198] sm:$0xff] %v9986_v1 }
 0x78d   : > { %v9403_v15 = vpop.f32.mrb[32].mxu0  ;;  %v9476_v7 = vpop.f32.mrb[32].mxu1 }
 0x78e   : > { %v9404_v44 = vadd.f32 %v9403_v15, %v17129_v32  ;;  %v9477_v57 = vadd.f32 %v9476_v7, %v17133_v49  ;;  %v9405_v8 = vpop.f32.mrb[33].mxu0  ;;  %v9478_v45 = vpop.f32.mrb[33].mxu1 }
 0x78f   : > { %v9406_v26 = vadd.f32 %v9405_v8, %v17137_v16  ;;  %v9479_v10 = vadd.f32 %v9478_v45, %v17141_v4  ;;  %v9407_v11 = vpop.f32.mrb[34].mxu0  ;;  %v9480_v29 = vpop.f32.mrb[34].mxu1 }
 0x790   : > { %14866 = vtanh.f32 %v9404_v44  ;;  %v9408_v12 = vadd.f32 %v9407_v11, %v17129_v32  ;;  %v9409_v13 = vpop.f32.mrb[35].mxu0  ;;  %v9482_v6 = vpop.f32.mrb[35].mxu1  ;;  %v9481_v14 = vadd.f32 %v9480_v29, %v17133_v49 }
 0x791   : > { %14868 = vtanh.f32 %v9477_v57  ;;  %v9410_v34 = vadd.f32 %v9409_v13, %v17137_v16  ;;  %v9483_v30 = vadd.f32 %v9482_v6, %v17141_v4 }
 0x792   : > { %14870 = vtanh.f32 %v9406_v26 }
 0x793   : > { %14872 = vtanh.f32 %v9479_v10 }
 0x794   : > { %14874 = vtanh.f32 %v9408_v12 }
 0x795   : > { %14876 = vtanh.f32 %v9481_v14  ;;  %v9413_v3 = vpop.f32.mrb[36].mxu0  ;;  %v9486_v2 = vpop.f32.mrb[36].mxu1 }
 0x796   : > { %14878 = vtanh.f32 %v9410_v34  ;;  %v9414_v18 = vadd.f32 %v9413_v3, %v17129_v32  ;;  %v9487_v40 = vadd.f32 %v9486_v2, %v17133_v49  ;;  %v9415_v36 = vpop.f32.mrb[37].mxu0  ;;  %v9488_v20 = vpop.f32.mrb[37].mxu1 }
 0x797   : > { %14880 = vtanh.f32 %v9483_v30  ;;  %v9416_v63 = vadd.f32 %v9415_v36, %v17137_v16  ;;  %v9489_v21 = vadd.f32 %v9488_v20, %v17141_v4  ;;  %v9417_v42 = vpop.f32.mrb[38].mxu0  ;;  %v9490_v27 = vpop.f32.mrb[38].mxu1 }
 0x798   : > { %14882 = vtanh.f32 %v9414_v18  ;;  %v9418_v28 = vadd.f32 %v9417_v42, %v17129_v32  ;;  %v9419_v60 = vpop.f32.mrb[39].mxu0  ;;  %v9492_v35 = vpop.f32.mrb[39].mxu1  ;;  %v9491_v38 = vadd.f32 %v9490_v27, %v17133_v49 }
 0x799   : > { %14884 = vtanh.f32 %v9487_v40  ;;  %v9420_v39 = vadd.f32 %v9419_v60, %v17137_v16  ;;  %v9493_v41 = vadd.f32 %v9492_v35, %v17141_v4 }
 0x79a   : > { %v14867_v56 = vpop.eup %14866  ;;  %14886 = vtanh.f32 %v9416_v63 }
 0x79b   : > { %v14869_v58 = vpop.eup %14868  ;;  %14888 = vtanh.f32 %v9489_v21 }
 0x79c   : > { %v14871_v5 = vpop.eup %14870  ;;  %14890 = vtanh.f32 %v9418_v28 }
 0x79d   : > { %v14873_v9 = vpop.eup %14872  ;;  %14892 = vtanh.f32 %v9491_v38  ;;  %v9423_v37 = vpop.f32.mrb[40].mxu0 }
 0x79e   : > { %v9496_v52 = vpop.f32.mrb[40].mxu1  ;;  %v14875_v54 = vpop.eup %14874  ;;  %14894 = vtanh.f32 %v9420_v39  ;;  %v9424_v31 = vadd.f32 %v9423_v37, %v17129_v32 }
 0x79f   : > { %v9497_v50 = vadd.f32 %v9496_v52, %v17133_v49  ;;  %v9425_v53 = vpop.f32.mrb[41].mxu0  ;;  %v9498_v47 = vpop.f32.mrb[41].mxu1  ;;  %v9939_v33 = vpack.c.bf16 %v14875_v54, %v14867_v56  ;;  %14896 = vtanh.f32 %v9493_v41 }
 0x7a0   : > { %v14877_v55 = vpop.eup %14876  ;;  %v9426_v51 = vadd.f32 %v9425_v53, %v17137_v16  ;;  %v9499_v19 = vadd.f32 %v9498_v47, %v17141_v4  ;;  %v9427_v43 = vpop.f32.mrb[42].mxu0  ;;  %14898 = vtanh.f32 %v9424_v31 }
 0x7a1   : > { %v9500_v23 = vpop.f32.mrb[42].mxu1  ;;  %v14879_v62 = vpop.eup %14878  ;;  %v9941_v0 = vpack.c.bf16 %v14877_v55, %v14869_v58  ;;  %v9428_v1 = vadd.f32 %v9427_v43, %v17129_v32  ;;  %10003 = vst [vmem:[#allocation4 + $0x20] sm:$0xff] %v9939_v33  ;;  %14900 = vtanh.f32 %v9497_v50 }
 0x7a2   : > { %v9429_v15 = vpop.f32.mrb[43].mxu0  ;;  %v9502_v7 = vpop.f32.mrb[43].mxu1  ;;  %v9940_v57 = vpack.c.bf16 %v14879_v62, %v14871_v5  ;;  %v9501_v8 = vadd.f32 %v9500_v23, %v17133_v49  ;;  %14902 = vtanh.f32 %v9426_v51 }
 0x7a3   : > { %v14881_v44 = vpop.eup %14880  ;;  %10005 = vst [vmem:[#allocation4 + $0x30] sm:$0xff] %v9941_v0  ;;  %v9430_v10 = vadd.f32 %v9429_v15, %v17137_v16  ;;  %14904 = vtanh.f32 %v9499_v19  ;;  %v9503_v29 = vadd.f32 %v9502_v7, %v17141_v4 }
 0x7a4   : > { %v14883_v45 = vpop.eup %14882  ;;  %v9942_v26 = vpack.c.bf16 %v14881_v44, %v14873_v9  ;;  %10004 = vst [vmem:[#allocation4 + $0x28] sm:$0xff] %v9940_v57  ;;  %14906 = vtanh.f32 %v9428_v1 }
 0x7a5   : > { %v14885_v11 = vpop.eup %14884  ;;  %14908 = vtanh.f32 %v9501_v8  ;;  %v9433_v6 = vpop.f32.mrb[44].mxu0  ;;  %v17175_v8 = vld [vmem:[#allocation16 + $0x8] sm:$0xff] }
 0x7a6   : > { %v14887_v12 = vpop.eup %14886  ;;  %10006 = vst [vmem:[#allocation4 + $0x38] sm:$0xff] %v9942_v26  ;;  %v9506_v14 = vpop.f32.mrb[44].mxu1  ;;  %14910 = vtanh.f32 %v9430_v10  ;;  %v9434_v30 = vadd.f32 %v9433_v6, %v17129_v32  ;;  %v17183_v26 = vrot.slane %v17175_v8, %v16581_v59  ;;  %v17187_v10 = vrot.slane %v17175_v8, %v16506_v24 }
 0x7a7   : > { %v14889_v13 = vpop.eup %14888  ;;  %v9507_v3 = vadd.f32 %v9506_v14, %v17133_v49  ;;  %v9435_v2 = vpop.f32.mrb[45].mxu0  ;;  %14912 = vtanh.f32 %v9503_v29 }
 0x7a8   : > { %v14891_v34 = vpop.eup %14890  ;;  %v9508_v18 = vpop.f32.mrb[45].mxu1  ;;  %v9436_v20 = vadd.f32 %v9435_v2, %v17137_v16  ;;  %14914 = vtanh.f32 %v9434_v30 }
 0x7a9   : > { %v14893_v40 = vpop.eup %14892  ;;  %v9955_v36 = vpack.c.bf16 %v14891_v34, %v14883_v45  ;;  %v9509_v63 = vadd.f32 %v9508_v18, %v17141_v4  ;;  %v9437_v21 = vpop.f32.mrb[46].mxu0  ;;  %14916 = vtanh.f32 %v9507_v3  ;;  %v17179_v45 = vrot.slane %v17175_v8, %v16509_v25 }
 0x7aa   : > { %v9510_v42 = vpop.f32.mrb[46].mxu1  ;;  %v14895_v27 = vpop.eup %14894  ;;  %v9957_v28 = vpack.c.bf16 %v14893_v40, %v14885_v11  ;;  %v9438_v60 = vadd.f32 %v9437_v21, %v17129_v32  ;;  %14918 = vtanh.f32 %v9436_v20  ;;  %v17191_v11 = vrot.slane %v17175_v8, %v16568_v46 }
 0x7ab   : > { %v9439_v35 = vpop.f32.mrb[47].mxu0  ;;  %v9512_v38 = vpop.f32.mrb[47].mxu1  ;;  %10019 = vst [vmem:[#allocation4 + $0xa0] sm:$0xff] %v9955_v36  ;;  %v9956_v39 = vpack.c.bf16 %v14895_v27, %v14887_v12  ;;  %v9511_v58 = vadd.f32 %v9510_v42, %v17133_v49  ;;  %14920 = vtanh.f32 %v9509_v63 }
 0x7ac   : > { %v14897_v56 = vpop.eup %14896  ;;  %10021 = vst [vmem:[#allocation4 + $0xb0] sm:$0xff] %v9957_v28  ;;  %v9440_v9 = vadd.f32 %v9439_v35, %v17137_v16  ;;  %v9513_v52 = vadd.f32 %v9512_v38, %v17141_v4  ;;  %14922 = vtanh.f32 %v9438_v60 }
 0x7ad   : > { %v14899_v41 = vpop.eup %14898  ;;  %v9958_v5 = vpack.c.bf16 %v14897_v56, %v14889_v13  ;;  %10020 = vst [vmem:[#allocation4 + $0xa8] sm:$0xff] %v9956_v39  ;;  %14924 = vtanh.f32 %v9511_v58 }
 0x7ae   : > { %v14901_v37 = vpop.eup %14900  ;;  %14926 = vtanh.f32 %v9440_v9 }
 0x7af   : > { %v14903_v32 = vpop.eup %14902  ;;  %10022 = vst [vmem:[#allocation4 + $0xb8] sm:$0xff] %v9958_v5  ;;  %14928 = vtanh.f32 %v9513_v52 }
 0x7b0   : > { %v14905_v54 = vpop.eup %14904 }
 0x7b1   : > { %v14907_v31 = vpop.eup %14906 }
 0x7b2   : > { %v14909_v50 = vpop.eup %14908  ;;  %v9971_v49 = vpack.c.bf16 %v14907_v31, %v14899_v41 }
 0x7b3   : > { %v14911_v53 = vpop.eup %14910  ;;  %v9973_v47 = vpack.c.bf16 %v14909_v50, %v14901_v37 }
 0x7b4   : > { %v14913_v55 = vpop.eup %14912  ;;  %10035 = vst [vmem:[#allocation4 + $0x120] sm:$0xff] %v9971_v49  ;;  %v9972_v16 = vpack.c.bf16 %v14911_v53, %v14903_v32 }
 0x7b5   : > { %v14915_v33 = vpop.eup %14914  ;;  %10037 = vst [vmem:[#allocation4 + $0x130] sm:$0xff] %v9973_v47  ;;  %v9974_v51 = vpack.c.bf16 %v14913_v55, %v14905_v54 }
 0x7b6   : > { %v14917_v19 = vpop.eup %14916  ;;  %10036 = vst [vmem:[#allocation4 + $0x128] sm:$0xff] %v9972_v16 }
 0x7b7   : > { %v14919_v4 = vpop.eup %14918  ;;  %10038 = vst [vmem:[#allocation4 + $0x138] sm:$0xff] %v9974_v51 }
 0x7b8   : > { %v14921_v43 = vpop.eup %14920 }
 0x7b9   : > { %v14923_v23 = vpop.eup %14922 }
 0x7ba   : > { %v14925_v62 = vpop.eup %14924  ;;  %v9987_v0 = vpack.c.bf16 %v14923_v23, %v14915_v33 }
 0x7bb   : > { %v14927_v1 = vpop.eup %14926  ;;  %v9989_v15 = vpack.c.bf16 %v14925_v62, %v14917_v19 }
 0x7bc   : > { %v14929_v7 = vpop.eup %14928  ;;  %10051 = vst [vmem:[#allocation4 + $0x1a0] sm:$0xff] %v9987_v0  ;;  %v9988_v44 = vpack.c.bf16 %v14927_v1, %v14919_v4 }
 0x7bd   : > { %10053 = vst [vmem:[#allocation4 + $0x1b0] sm:$0xff] %v9989_v15  ;;  %v9990_v57 = vpack.c.bf16 %v14929_v7, %v14921_v43 }
 0x7be   : > { %10052 = vst [vmem:[#allocation4 + $0x1a8] sm:$0xff] %v9988_v44 }
 0x7bf   : > { %10054 = vst [vmem:[#allocation4 + $0x1b8] sm:$0xff] %v9990_v57 }
 0x7ce   : > { %v9549_v29 = vpop.f32.mrb[48].mxu0  ;;  %v9622_v12 = vpop.f32.mrb[48].mxu1 }
 0x7cf   : > { %v9550_v13 = vadd.f32 %v9549_v29, %v17179_v45  ;;  %v9623_v6 = vadd.f32 %v9622_v12, %v17183_v26  ;;  %v9551_v25 = vpop.f32.mrb[49].mxu0  ;;  %v9624_v14 = vpop.f32.mrb[49].mxu1 }
 0x7d0   : > { %v9552_v34 = vadd.f32 %v9551_v25, %v17187_v10  ;;  %v9625_v59 = vadd.f32 %v9624_v14, %v17191_v11  ;;  %v9553_v30 = vpop.f32.mrb[50].mxu0  ;;  %v9626_v3 = vpop.f32.mrb[50].mxu1 }
 0x7d1   : > { %14930 = vtanh.f32 %v9550_v13  ;;  %v9554_v24 = vadd.f32 %v9553_v30, %v17179_v45  ;;  %v9555_v2 = vpop.f32.mrb[51].mxu0  ;;  %v9628_v46 = vpop.f32.mrb[51].mxu1  ;;  %v9627_v18 = vadd.f32 %v9626_v3, %v17183_v26 }
 0x7d2   : > { %14932 = vtanh.f32 %v9623_v6  ;;  %v9556_v40 = vadd.f32 %v9555_v2, %v17187_v10  ;;  %v9629_v36 = vadd.f32 %v9628_v46, %v17191_v11 }
 0x7d3   : > { %14934 = vtanh.f32 %v9552_v34 }
 0x7d4   : > { %14936 = vtanh.f32 %v9625_v59 }
 0x7d5   : > { %14938 = vtanh.f32 %v9554_v24 }
 0x7d6   : > { %14940 = vtanh.f32 %v9627_v18  ;;  %v9559_v20 = vpop.f32.mrb[52].mxu0  ;;  %v9632_v63 = vpop.f32.mrb[52].mxu1 }
 0x7d7   : > { %14942 = vtanh.f32 %v9556_v40  ;;  %v9560_v21 = vadd.f32 %v9559_v20, %v17179_v45  ;;  %v9633_v42 = vadd.f32 %v9632_v63, %v17183_v26  ;;  %v9561_v27 = vpop.f32.mrb[53].mxu0  ;;  %v9634_v28 = vpop.f32.mrb[53].mxu1 }
 0x7d8   : > { %14944 = vtanh.f32 %v9629_v36  ;;  %v9562_v60 = vadd.f32 %v9561_v27, %v17187_v10  ;;  %v9635_v35 = vadd.f32 %v9634_v28, %v17191_v11  ;;  %v9563_v38 = vpop.f32.mrb[54].mxu0  ;;  %v9636_v56 = vpop.f32.mrb[54].mxu1 }
 0x7d9   : > { %14946 = vtanh.f32 %v9560_v21  ;;  %v9564_v39 = vadd.f32 %v9563_v38, %v17179_v45  ;;  %v9565_v58 = vpop.f32.mrb[55].mxu0  ;;  %v9638_v41 = vpop.f32.mrb[55].mxu1  ;;  %v9637_v5 = vadd.f32 %v9636_v56, %v17183_v26 }
 0x7da   : > { %14948 = vtanh.f32 %v9633_v42  ;;  %v9566_v37 = vadd.f32 %v9565_v58, %v17187_v10  ;;  %v9639_v32 = vadd.f32 %v9638_v41, %v17191_v11 }
 0x7db   : > { %v14931_v9 = vpop.eup %14930  ;;  %14950 = vtanh.f32 %v9562_v60 }
 0x7dc   : > { %v14933_v52 = vpop.eup %14932  ;;  %14952 = vtanh.f32 %v9635_v35 }
 0x7dd   : > { %v14935_v54 = vpop.eup %14934  ;;  %14954 = vtanh.f32 %v9564_v39 }
 0x7de   : > { %v14937_v31 = vpop.eup %14936  ;;  %14956 = vtanh.f32 %v9637_v5  ;;  %v9569_v50 = vpop.f32.mrb[56].mxu0 }
 0x7df   : > { %v9642_v49 = vpop.f32.mrb[56].mxu1  ;;  %v14939_v53 = vpop.eup %14938  ;;  %14958 = vtanh.f32 %v9566_v37  ;;  %v9570_v47 = vadd.f32 %v9569_v50, %v17179_v45 }
 0x7e0   : > { %v9643_v55 = vadd.f32 %v9642_v49, %v17183_v26  ;;  %v9571_v16 = vpop.f32.mrb[57].mxu0  ;;  %v9644_v33 = vpop.f32.mrb[57].mxu1  ;;  %v9943_v19 = vpack.c.bf16 %v14939_v53, %v14931_v9  ;;  %14960 = vtanh.f32 %v9639_v32 }
 0x7e1   : > { %v14941_v51 = vpop.eup %14940  ;;  %v9572_v4 = vadd.f32 %v9571_v16, %v17187_v10  ;;  %v9645_v43 = vadd.f32 %v9644_v33, %v17191_v11  ;;  %v9573_v23 = vpop.f32.mrb[58].mxu0  ;;  %14962 = vtanh.f32 %v9570_v47 }
 0x7e2   : > { %v9646_v62 = vpop.f32.mrb[58].mxu1  ;;  %v14943_v0 = vpop.eup %14942  ;;  %v9945_v1 = vpack.c.bf16 %v14941_v51, %v14933_v52  ;;  %v9574_v15 = vadd.f32 %v9573_v23, %v17179_v45  ;;  %10007 = vst [vmem:[#allocation4 + $0x40] sm:$0xff] %v9943_v19  ;;  %14964 = vtanh.f32 %v9643_v55 }
 0x7e3   : > { %v9575_v7 = vpop.f32.mrb[59].mxu0  ;;  %v9648_v44 = vpop.f32.mrb[59].mxu1  ;;  %v9944_v29 = vpack.c.bf16 %v14943_v0, %v14935_v54  ;;  %v9647_v12 = vadd.f32 %v9646_v62, %v17183_v26  ;;  %14966 = vtanh.f32 %v9572_v4 }
 0x7e4   : > { %v14945_v57 = vpop.eup %14944  ;;  %10009 = vst [vmem:[#allocation4 + $0x50] sm:$0xff] %v9945_v1  ;;  %v9576_v25 = vadd.f32 %v9575_v7, %v17187_v10  ;;  %14968 = vtanh.f32 %v9645_v43  ;;  %v9649_v34 = vadd.f32 %v9648_v44, %v17191_v11  ;;  %v17227_v44 = vrot.slane %v17175_v8, %v16627_v48 }
 0x7e5   : > { %v14947_v13 = vpop.eup %14946  ;;  %v9946_v6 = vpack.c.bf16 %v14945_v57, %v14937_v31  ;;  %10008 = vst [vmem:[#allocation4 + $0x48] sm:$0xff] %v9944_v29  ;;  %14970 = vtanh.f32 %v9574_v15  ;;  %v17231_v57 = vrot.slane %v17175_v8, %v16675_v61  ;;  %v17235_v29 = vrot.slane %v17175_v8, %v16613_v22 }
 0x7e6   : > { %v14949_v14 = vpop.eup %14948  ;;  %14972 = vtanh.f32 %v9647_v12  ;;  %v9579_v3 = vpop.f32.mrb[60].mxu0  ;;  %v17239_v12 = vrot.slane %v17175_v8, %v16661_v17 }
 0x7e7   : > { %v14951_v59 = vpop.eup %14950  ;;  %10010 = vst [vmem:[#allocation4 + $0x58] sm:$0xff] %v9946_v6  ;;  %v9652_v24 = vpop.f32.mrb[60].mxu1  ;;  %14974 = vtanh.f32 %v9576_v25  ;;  %v9580_v46 = vadd.f32 %v9579_v3, %v17179_v45 }
 0x7e8   : > { %v14953_v30 = vpop.eup %14952  ;;  %v9653_v18 = vadd.f32 %v9652_v24, %v17183_v26  ;;  %v9581_v40 = vpop.f32.mrb[61].mxu0  ;;  %14976 = vtanh.f32 %v9649_v34 }
 0x7e9   : > { %v14955_v2 = vpop.eup %14954  ;;  %v9654_v36 = vpop.f32.mrb[61].mxu1  ;;  %v9582_v21 = vadd.f32 %v9581_v40, %v17187_v10  ;;  %14978 = vtanh.f32 %v9580_v46 }
 0x7ea   : > { %v14957_v20 = vpop.eup %14956  ;;  %v9959_v63 = vpack.c.bf16 %v14955_v2, %v14947_v13  ;;  %v9655_v42 = vadd.f32 %v9654_v36, %v17191_v11  ;;  %v9583_v27 = vpop.f32.mrb[62].mxu0  ;;  %14980 = vtanh.f32 %v9653_v18 }
 0x7eb   : > { %v9656_v28 = vpop.f32.mrb[62].mxu1  ;;  %v14959_v60 = vpop.eup %14958  ;;  %v9961_v35 = vpack.c.bf16 %v14957_v20, %v14949_v14  ;;  %v9584_v38 = vadd.f32 %v9583_v27, %v17179_v45  ;;  %14982 = vtanh.f32 %v9582_v21 }
 0x7ec   : > { %v9585_v56 = vpop.f32.mrb[63].mxu0  ;;  %v9658_v39 = vpop.f32.mrb[63].mxu1  ;;  %10023 = vst [vmem:[#allocation4 + $0xc0] sm:$0xff] %v9959_v63  ;;  %v9960_v41 = vpack.c.bf16 %v14959_v60, %v14951_v59  ;;  %v9657_v5 = vadd.f32 %v9656_v28, %v17183_v26  ;;  %14984 = vtanh.f32 %v9655_v42 }
 0x7ed   : > { %v14961_v58 = vpop.eup %14960  ;;  %10025 = vst [vmem:[#allocation4 + $0xd0] sm:$0xff] %v9961_v35  ;;  %v9586_v52 = vadd.f32 %v9585_v56, %v17187_v10  ;;  %v9659_v54 = vadd.f32 %v9658_v39, %v17191_v11  ;;  %14986 = vtanh.f32 %v9584_v38 }
 0x7ee   : > { %v14963_v9 = vpop.eup %14962  ;;  %v9962_v37 = vpack.c.bf16 %v14961_v58, %v14953_v30  ;;  %10024 = vst [vmem:[#allocation4 + $0xc8] sm:$0xff] %v9960_v41  ;;  %14988 = vtanh.f32 %v9657_v5 }
 0x7ef   : > { %v14965_v32 = vpop.eup %14964  ;;  %14990 = vtanh.f32 %v9586_v52 }
 0x7f0   : > { %v14967_v45 = vpop.eup %14966  ;;  %10026 = vst [vmem:[#allocation4 + $0xd8] sm:$0xff] %v9962_v37  ;;  %14992 = vtanh.f32 %v9659_v54 }
 0x7f1   : > { %v14969_v31 = vpop.eup %14968 }
 0x7f2   : > { %v14971_v50 = vpop.eup %14970 }
 0x7f3   : > { %v14973_v49 = vpop.eup %14972  ;;  %v9975_v26 = vpack.c.bf16 %v14971_v50, %v14963_v9 }
 0x7f4   : > { %v14975_v53 = vpop.eup %14974  ;;  %v9977_v47 = vpack.c.bf16 %v14973_v49, %v14965_v32 }
 0x7f5   : > { %v14977_v55 = vpop.eup %14976  ;;  %10039 = vst [vmem:[#allocation4 + $0x140] sm:$0xff] %v9975_v26  ;;  %v9976_v10 = vpack.c.bf16 %v14975_v53, %v14967_v45 }
 0x7f6   : > { %v14979_v16 = vpop.eup %14978  ;;  %10041 = vst [vmem:[#allocation4 + $0x150] sm:$0xff] %v9977_v47  ;;  %v9978_v33 = vpack.c.bf16 %v14977_v55, %v14969_v31 }
 0x7f7   : > { %v14981_v51 = vpop.eup %14980  ;;  %10040 = vst [vmem:[#allocation4 + $0x148] sm:$0xff] %v9976_v10 }
 0x7f8   : > { %v14983_v11 = vpop.eup %14982  ;;  %10042 = vst [vmem:[#allocation4 + $0x158] sm:$0xff] %v9978_v33 }
 0x7f9   : > { %v14985_v19 = vpop.eup %14984 }
 0x7fa   : > { %v14987_v4 = vpop.eup %14986 }
 0x7fb   : > { %v14989_v43 = vpop.eup %14988  ;;  %v9991_v23 = vpack.c.bf16 %v14987_v4, %v14979_v16 }
 0x7fc   : > { %v14991_v62 = vpop.eup %14990  ;;  %v9993_v0 = vpack.c.bf16 %v14989_v43, %v14981_v51 }
 0x7fd   : > { %v14993_v1 = vpop.eup %14992  ;;  %10055 = vst [vmem:[#allocation4 + $0x1c0] sm:$0xff] %v9991_v23  ;;  %v9992_v15 = vpack.c.bf16 %v14991_v62, %v14983_v11 }
 0x7fe   : > { %10057 = vst [vmem:[#allocation4 + $0x1d0] sm:$0xff] %v9993_v0  ;;  %v9994_v7 = vpack.c.bf16 %v14993_v1, %v14985_v19 }
 0x7ff   : > { %10056 = vst [vmem:[#allocation4 + $0x1c8] sm:$0xff] %v9992_v15 }
 0x800   : > { %10058 = vst [vmem:[#allocation4 + $0x1d8] sm:$0xff] %v9994_v7 }
 0x80f   : > { %v9695_v13 = vpop.f32.mrb[64].mxu0  ;;  %v9768_v6 = vpop.f32.mrb[64].mxu1 }
 0x810   : > { %v9696_v25 = vadd.f32 %v9695_v13, %v17227_v44  ;;  %v9769_v14 = vadd.f32 %v9768_v6, %v17231_v57  ;;  %v9697_v48 = vpop.f32.mrb[65].mxu0  ;;  %v9770_v34 = vpop.f32.mrb[65].mxu1 }
 0x811   : > { %v9698_v59 = vadd.f32 %v9697_v48, %v17235_v29  ;;  %v9771_v61 = vadd.f32 %v9770_v34, %v17239_v12  ;;  %v9699_v30 = vpop.f32.mrb[66].mxu0  ;;  %v9772_v3 = vpop.f32.mrb[66].mxu1 }
 0x812   : > { %14994 = vtanh.f32 %v9696_v25  ;;  %v9700_v22 = vadd.f32 %v9699_v30, %v17227_v44  ;;  %v9701_v24 = vpop.f32.mrb[67].mxu0  ;;  %v9774_v17 = vpop.f32.mrb[67].mxu1  ;;  %v9773_v8 = vadd.f32 %v9772_v3, %v17231_v57 }
 0x813   : > { %14996 = vtanh.f32 %v9769_v14  ;;  %v9702_v2 = vadd.f32 %v9701_v24, %v17235_v29  ;;  %v9775_v46 = vadd.f32 %v9774_v17, %v17239_v12 }
 0x814   : > { %14998 = vtanh.f32 %v9698_v59 }
 0x815   : > { %15000 = vtanh.f32 %v9771_v61 }
 0x816   : > { %15002 = vtanh.f32 %v9700_v22 }
 0x817   : > { %15004 = vtanh.f32 %v9773_v8  ;;  %v9705_v18 = vpop.f32.mrb[68].mxu0  ;;  %v9778_v40 = vpop.f32.mrb[68].mxu1 }
 0x818   : > { %15006 = vtanh.f32 %v9702_v2  ;;  %v9706_v36 = vadd.f32 %v9705_v18, %v17227_v44  ;;  %v9779_v20 = vadd.f32 %v9778_v40, %v17231_v57  ;;  %v9707_v63 = vpop.f32.mrb[69].mxu0  ;;  %v9780_v21 = vpop.f32.mrb[69].mxu1 }
 0x819   : > { %15008 = vtanh.f32 %v9775_v46  ;;  %v9708_v42 = vadd.f32 %v9707_v63, %v17235_v29  ;;  %v9781_v27 = vadd.f32 %v9780_v21, %v17239_v12  ;;  %v9709_v28 = vpop.f32.mrb[70].mxu0  ;;  %v9782_v60 = vpop.f32.mrb[70].mxu1 }
 0x81a   : > { %15010 = vtanh.f32 %v9706_v36  ;;  %v9710_v35 = vadd.f32 %v9709_v28, %v17227_v44  ;;  %v9711_v38 = vpop.f32.mrb[71].mxu0  ;;  %v9784_v56 = vpop.f32.mrb[71].mxu1  ;;  %v9783_v39 = vadd.f32 %v9782_v60, %v17231_v57 }
 0x81b   : > { %15012 = vtanh.f32 %v9779_v20  ;;  %v9712_v41 = vadd.f32 %v9711_v38, %v17235_v29  ;;  %v9785_v9 = vadd.f32 %v9784_v56, %v17239_v12 }
 0x81c   : > { %v14995_v58 = vpop.eup %14994  ;;  %15014 = vtanh.f32 %v9708_v42 }
 0x81d   : > { %v14997_v5 = vpop.eup %14996  ;;  %15016 = vtanh.f32 %v9781_v27 }
 0x81e   : > { %v14999_v37 = vpop.eup %14998  ;;  %15018 = vtanh.f32 %v9710_v35 }
 0x81f   : > { %v15001_v52 = vpop.eup %15000  ;;  %15020 = vtanh.f32 %v9783_v39  ;;  %v9715_v32 = vpop.f32.mrb[72].mxu0 }
 0x820   : > { %v9788_v54 = vpop.f32.mrb[72].mxu1  ;;  %v15003_v45 = vpop.eup %15002  ;;  %15022 = vtanh.f32 %v9712_v41  ;;  %v9716_v31 = vadd.f32 %v9715_v32, %v17227_v44 }
 0x821   : > { %v9789_v50 = vadd.f32 %v9788_v54, %v17231_v57  ;;  %v9717_v49 = vpop.f32.mrb[73].mxu0  ;;  %v9790_v26 = vpop.f32.mrb[73].mxu1  ;;  %v9947_v47 = vpack.c.bf16 %v15003_v45, %v14995_v58  ;;  %15024 = vtanh.f32 %v9785_v9 }
 0x822   : > { %v15005_v53 = vpop.eup %15004  ;;  %v9718_v55 = vadd.f32 %v9717_v49, %v17235_v29  ;;  %v9791_v10 = vadd.f32 %v9790_v26, %v17239_v12  ;;  %v9719_v16 = vpop.f32.mrb[74].mxu0  ;;  %15026 = vtanh.f32 %v9716_v31 }
 0x823   : > { %v9792_v33 = vpop.f32.mrb[74].mxu1  ;;  %v15007_v51 = vpop.eup %15006  ;;  %v9949_v11 = vpack.c.bf16 %v15005_v53, %v14997_v5  ;;  %v9720_v19 = vadd.f32 %v9719_v16, %v17227_v44  ;;  %10011 = vst [vmem:[#allocation4 + $0x60] sm:$0xff] %v9947_v47  ;;  %15028 = vtanh.f32 %v9789_v50 }
 0x824   : > { %v9721_v4 = vpop.f32.mrb[75].mxu0  ;;  %v9794_v43 = vpop.f32.mrb[75].mxu1  ;;  %v9948_v62 = vpack.c.bf16 %v15007_v51, %v14999_v37  ;;  %v9793_v0 = vadd.f32 %v9792_v33, %v17231_v57  ;;  %15030 = vtanh.f32 %v9718_v55 }
 0x825   : > { %v15009_v23 = vpop.eup %15008  ;;  %10013 = vst [vmem:[#allocation4 + $0x70] sm:$0xff] %v9949_v11  ;;  %v9722_v7 = vadd.f32 %v9721_v4, %v17235_v29  ;;  %15032 = vtanh.f32 %v9791_v10  ;;  %v9795_v6 = vadd.f32 %v9794_v43, %v17239_v12 }
 0x826   : > { %v15011_v1 = vpop.eup %15010  ;;  %v9950_v15 = vpack.c.bf16 %v15009_v23, %v15001_v52  ;;  %10012 = vst [vmem:[#allocation4 + $0x68] sm:$0xff] %v9948_v62  ;;  %15034 = vtanh.f32 %v9720_v19 }
 0x827   : > { %v15013_v13 = vpop.eup %15012  ;;  %15036 = vtanh.f32 %v9793_v0  ;;  %v9725_v48 = vpop.f32.mrb[76].mxu0 }
 0x828   : > { %v15015_v25 = vpop.eup %15014  ;;  %10014 = vst [vmem:[#allocation4 + $0x78] sm:$0xff] %v9950_v15  ;;  %v9798_v34 = vpop.f32.mrb[76].mxu1  ;;  %15038 = vtanh.f32 %v9722_v7  ;;  %v9726_v61 = vadd.f32 %v9725_v48, %v17227_v44 }
 0x829   : > { %v15017_v14 = vpop.eup %15016  ;;  %v9799_v30 = vadd.f32 %v9798_v34, %v17231_v57  ;;  %v9727_v3 = vpop.f32.mrb[77].mxu0  ;;  %15040 = vtanh.f32 %v9795_v6 }
 0x82a   : > { %v15019_v59 = vpop.eup %15018  ;;  %v9800_v22 = vpop.f32.mrb[77].mxu1  ;;  %v9728_v8 = vadd.f32 %v9727_v3, %v17235_v29  ;;  %15042 = vtanh.f32 %v9726_v61 }
 0x82b   : > { %v15021_v24 = vpop.eup %15020  ;;  %v9963_v17 = vpack.c.bf16 %v15019_v59, %v15011_v1  ;;  %v9801_v2 = vadd.f32 %v9800_v22, %v17239_v12  ;;  %v9729_v46 = vpop.f32.mrb[78].mxu0  ;;  %15044 = vtanh.f32 %v9799_v30 }
 0x82c   : > { %v9802_v18 = vpop.f32.mrb[78].mxu1  ;;  %v15023_v40 = vpop.eup %15022  ;;  %v9965_v36 = vpack.c.bf16 %v15021_v24, %v15013_v13  ;;  %v9730_v20 = vadd.f32 %v9729_v46, %v17227_v44  ;;  %15046 = vtanh.f32 %v9728_v8 }
 0x82d   : > { %v9731_v63 = vpop.f32.mrb[79].mxu0  ;;  %v9804_v21 = vpop.f32.mrb[79].mxu1  ;;  %10027 = vst [vmem:[#allocation4 + $0xe0] sm:$0xff] %v9963_v17  ;;  %v9964_v27 = vpack.c.bf16 %v15023_v40, %v15015_v25  ;;  %v9803_v28 = vadd.f32 %v9802_v18, %v17231_v57  ;;  %15048 = vtanh.f32 %v9801_v2 }
 0x82e   : > { %v15025_v42 = vpop.eup %15024  ;;  %10029 = vst [vmem:[#allocation4 + $0xf0] sm:$0xff] %v9965_v36  ;;  %v9732_v38 = vadd.f32 %v9731_v63, %v17235_v29  ;;  %v9805_v39 = vadd.f32 %v9804_v21, %v17239_v12  ;;  %15050 = vtanh.f32 %v9730_v20 }
 0x82f   : > { %v15027_v60 = vpop.eup %15026  ;;  %v9966_v35 = vpack.c.bf16 %v15025_v42, %v15017_v14  ;;  %10028 = vst [vmem:[#allocation4 + $0xe8] sm:$0xff] %v9964_v27  ;;  %15052 = vtanh.f32 %v9803_v28 }
 0x830   : > { %v15029_v56 = vpop.eup %15028  ;;  %15054 = vtanh.f32 %v9732_v38 }
 0x831   : > { %v15031_v44 = vpop.eup %15030  ;;  %10030 = vst [vmem:[#allocation4 + $0xf8] sm:$0xff] %v9966_v35  ;;  %15056 = vtanh.f32 %v9805_v39 }
 0x832   : > { %v15033_v58 = vpop.eup %15032 }
 0x833   : > { %v15035_v41 = vpop.eup %15034 }
 0x834   : > { %v15037_v5 = vpop.eup %15036  ;;  %v9979_v57 = vpack.c.bf16 %v15035_v41, %v15027_v60 }
 0x835   : > { %v15039_v9 = vpop.eup %15038  ;;  %v9981_v37 = vpack.c.bf16 %v15037_v5, %v15029_v56 }
 0x836   : > { %v15041_v52 = vpop.eup %15040  ;;  %10043 = vst [vmem:[#allocation4 + $0x160] sm:$0xff] %v9979_v57  ;;  %v9980_v29 = vpack.c.bf16 %v15039_v9, %v15031_v44 }
 0x837   : > { %v15043_v32 = vpop.eup %15042  ;;  %10045 = vst [vmem:[#allocation4 + $0x170] sm:$0xff] %v9981_v37  ;;  %v9982_v54 = vpack.c.bf16 %v15041_v52, %v15033_v58 }
 0x838   : > { %v15045_v45 = vpop.eup %15044  ;;  %10044 = vst [vmem:[#allocation4 + $0x168] sm:$0xff] %v9980_v29 }
 0x839   : > { %v15047_v12 = vpop.eup %15046  ;;  %10046 = vst [vmem:[#allocation4 + $0x178] sm:$0xff] %v9982_v54 }
 0x83a   : > { %v15049_v31 = vpop.eup %15048 }
 0x83b   : > { %v15051_v50 = vpop.eup %15050 }
 0x83c   : > { %v15053_v49 = vpop.eup %15052  ;;  %v9995_v26 = vpack.c.bf16 %v15051_v50, %v15043_v32 }
 0x83d   : > { %v15055_v53 = vpop.eup %15054  ;;  %v9997_v47 = vpack.c.bf16 %v15053_v49, %v15045_v45 }
 0x83e   : > { %v15057_v55 = vpop.eup %15056  ;;  %10059 = vst [vmem:[#allocation4 + $0x1e0] sm:$0xff] %v9995_v26  ;;  %v9996_v10 = vpack.c.bf16 %v15055_v53, %v15047_v12 }
 0x83f   : > { %10061 = vst [vmem:[#allocation4 + $0x1f0] sm:$0xff] %v9997_v47  ;;  %v9998_v16 = vpack.c.bf16 %v15057_v55, %v15049_v31 }
 0x840   : > { %10060 = vst [vmem:[#allocation4 + $0x1e8] sm:$0xff] %v9996_v10 }
 0x841   : > { %10062 = vst [vmem:[#allocation4 + $0x1f8] sm:$0xff] %v9998_v16 }
 0x842 PF: > { %s17651_s27 = sld [smem:[#allocation33_spill]] }
 0x848   : > { %p12871_p6 = scmp.lt.s32.totalorder %s17651_s27, 2 }
 0x849   : > { %v15060_v33 = vld [vmem:[%s16130_s16 + $0x40] sm:$0xff] (!%p12871_p6)   ;;  %v15064_v4 = vld [vmem:[%s16130_s16 + $0x48] sm:$0xff] (!%p12871_p6)   ;;  %v15068_v0 = vld [vmem:[%s16130_s16 + $0x50] sm:$0xff] (!%p12871_p6)  }
 0x84a   : > { %10066 = sbr.rel (%p12871_p6) target bundleno = 2497 (0x9c1), region = 108  ;;  %v15061_v51 = vld [vmem:[%s16130_s16 + $0xc0] sm:$0xff] (!%p12871_p6)   ;;  %13010 = vmatprep.subr.bf16.mxu0 (!%p12871_p6), %v15060_v33  ;;  %v15065_v43 = vld [vmem:[%s16130_s16 + $0xc8] sm:$0xff] (!%p12871_p6)   ;;  %v15069_v1 = vld [vmem:[%s16130_s16 + $0xd0] sm:$0xff] (!%p12871_p6)  }
 0x84b   : > { %v15062_v11 = vld [vmem:[%s16130_s16] sm:$0xff] (!%p12871_p6)   ;;  %13050 = vmatprep.subr.bf16.mxu1 (!%p12871_p6), %v15061_v51  ;;  %v15066_v23 = vld [vmem:[%s16130_s16 + $0x8] sm:$0xff] (!%p12871_p6)   ;;  %v15070_v15 = vld [vmem:[%s16130_s16 + $0x10] sm:$0xff] (!%p12871_p6)  }
 0x84c   : > { %v15063_v19 = vld [vmem:[%s16130_s16 + $0x80] sm:$0xff] (!%p12871_p6)   ;;  %13011 = vmatpush3.bf16.msra.mxu0 (!%p12871_p6), %v15062_v11  ;;  %v15067_v62 = vld [vmem:[%s16130_s16 + $0x88] sm:$0xff] (!%p12871_p6)   ;;  %v15071_v7 = vld [vmem:[%s16130_s16 + $0x90] sm:$0xff] (!%p12871_p6)  }
 0x84d   : > { %13051 = vmatpush3.bf16.msra.mxu1 (!%p12871_p6), %v15063_v19  ;;  %13012 = vmatprep.subr.bf16.mxu0 (!%p12871_p6), %v15064_v4  ;;  %v15072_v13 = vld [vmem:[%s16130_s16 + $0x58] sm:$0xff] (!%p12871_p6)   ;;  %v15076_v48 = vld [vmem:[%s16130_s16 + $0x60] sm:$0xff] (!%p12871_p6)   ;;  %v15080_v30 = vld [vmem:[%s16130_s16 + $0x68] sm:$0xff] (!%p12871_p6)  }
 0x84e   : > { %13052 = vmatprep.subr.bf16.mxu1 (!%p12871_p6), %v15065_v43  ;;  %v15073_v6 = vld [vmem:[%s16130_s16 + $0xd8] sm:$0xff] (!%p12871_p6)   ;;  %v15077_v34 = vld [vmem:[%s16130_s16 + $0xe0] sm:$0xff] (!%p12871_p6)   ;;  %v15081_v3 = vld [vmem:[%s16130_s16 + $0xe8] sm:$0xff] (!%p12871_p6)  }
 0x84f   : > { %v15074_v25 = vld [vmem:[%s16130_s16 + $0x18] sm:$0xff] (!%p12871_p6)   ;;  %v15078_v59 = vld [vmem:[%s16130_s16 + $0x20] sm:$0xff] (!%p12871_p6)   ;;  %v15082_v22 = vld [vmem:[%s16130_s16 + $0x28] sm:$0xff] (!%p12871_p6)  }
 0x850   : > { %13013 = vmatpush3.bf16.msra.mxu0 (!%p12871_p6), %v15066_v23  ;;  %v15075_v14 = vld [vmem:[%s16130_s16 + $0x98] sm:$0xff] (!%p12871_p6)   ;;  %v15079_v61 = vld [vmem:[%s16130_s16 + $0xa0] sm:$0xff] (!%p12871_p6)   ;;  %v15083_v24 = vld [vmem:[%s16130_s16 + $0xa8] sm:$0xff] (!%p12871_p6)  }
 0x851   : > { %13053 = vmatpush3.bf16.msra.mxu1 %v15067_v62  ;;  %13014 = vmatprep.subr.bf16.mxu0 %v15068_v0  ;;  %v15084_v17 = vld [vmem:[%s16130_s16 + $0x70] sm:$0xff]   ;;  %v15088_v18 = vld [vmem:[%s16130_s16 + $0x78] sm:$0xff]   ;;  %v10068_v63 = vld [vmem:[#allocation4 + $0x8] sm:$0xff] }
 0x852   : > { %13054 = vmatprep.subr.bf16.mxu1 %v15069_v1  ;;  %v15085_v8 = vld [vmem:[%s16130_s16 + $0xf0] sm:$0xff]   ;;  %v15089_v40 = vld [vmem:[%s16130_s16 + $0xf8] sm:$0xff]   ;;  %11194 = vmatprep.mubr.bf16.mxu0 %v10068_v63  ;;  %v15092_v28 = vld [vmem:[%s16130_s16 + $0x140] sm:$0xff]  }
 0x853   : > { %v15086_v2 = vld [vmem:[%s16130_s16 + $0x30] sm:$0xff]   ;;  %v15090_v36 = vld [vmem:[%s16130_s16 + $0x38] sm:$0xff]   ;;  %v15093_v60 = vld [vmem:[%s16130_s16 + $0x1c0] sm:$0xff]  }
 0x854   : > { %13015 = vmatpush3.bf16.msra.mxu0 %v15070_v15  ;;  %v15087_v46 = vld [vmem:[%s16130_s16 + $0xb0] sm:$0xff]   ;;  %v15091_v20 = vld [vmem:[%s16130_s16 + $0xb8] sm:$0xff]   ;;  %v15094_v35 = vld [vmem:[%s16130_s16 + $0x100] sm:$0xff]  }
 0x855   : > { %13055 = vmatpush3.bf16.msra.mxu1 %v15071_v7  ;;  %13016 = vmatprep.subr.bf16.mxu0 %v15072_v13  ;;  %v10070_v21 = vld [vmem:[#allocation4 + $0x18] sm:$0xff]  ;;  %v10067_v42 = vld [vmem:[#allocation4] sm:$0xff]  ;;  %v10069_v27 = vld [vmem:[#allocation4 + $0x10] sm:$0xff] }
 0x856   : > { %13056 = vmatprep.subr.bf16.mxu1 %v15073_v6  ;;  %11259 = vmatprep.mubr.bf16.mxu1 %v10070_v21  ;;  %v15095_v38 = vld [vmem:[%s16130_s16 + $0x180] sm:$0xff]   ;;  %v15096_v56 = vld [vmem:[%s16130_s16 + $0x148] sm:$0xff]   ;;  %v10086_v5 = vld [vmem:[#allocation4 + $0x98] sm:$0xff] }
 0x857   : > { %v15097_v39 = vld [vmem:[%s16130_s16 + $0x1c8] sm:$0xff]   ;;  %v10083_v57 = vld [vmem:[#allocation4 + $0x80] sm:$0xff]  ;;  %v15100_v37 = vld [vmem:[%s16130_s16 + $0x150] sm:$0xff]  }
 0x858   : > { %13017 = vmatpush3.bf16.msra.mxu0 %v15074_v25  ;;  %v15098_v44 = vld [vmem:[%s16130_s16 + $0x108] sm:$0xff]   ;;  %v15101_v52 = vld [vmem:[%s16130_s16 + $0x1d0] sm:$0xff]   ;;  %v15104_v54 = vld [vmem:[%s16130_s16 + $0x158] sm:$0xff]  }
 0x859   : > { %13057 = vmatpush3.bf16.msra.mxu1 %v15075_v14  ;;  %13018 = vmatprep.subr.bf16.mxu0 %v15076_v48  ;;  %v15099_v58 = vld [vmem:[%s16130_s16 + $0x188] sm:$0xff]   ;;  %v15102_v29 = vld [vmem:[%s16130_s16 + $0x110] sm:$0xff]   ;;  %v15105_v45 = vld [vmem:[%s16130_s16 + $0x1d8] sm:$0xff]  }
 0x85a   : > { %13058 = vmatprep.subr.bf16.mxu1 %v15077_v34  ;;  %v10084_v41 = vld [vmem:[#allocation4 + $0x88] sm:$0xff]  ;;  %v10085_v9 = vld [vmem:[#allocation4 + $0x90] sm:$0xff]  ;;  %v15106_v12 = vld [vmem:[%s16130_s16 + $0x118] sm:$0xff]  }
 0x85b   : > { %v15103_v32 = vld [vmem:[%s16130_s16 + $0x190] sm:$0xff]   ;;  %v15107_v31 = vld [vmem:[%s16130_s16 + $0x198] sm:$0xff]   ;;  %v10100_v50 = vld [vmem:[#allocation4 + $0x108] sm:$0xff] }
 0x85c   : > { %13019 = vmatpush3.bf16.msra.mxu0 %v15078_v59  ;;  %v10102_v49 = vld [vmem:[#allocation4 + $0x118] sm:$0xff]  ;;  %v10099_v26 = vld [vmem:[#allocation4 + $0x100] sm:$0xff]  ;;  %v10101_v53 = vld [vmem:[#allocation4 + $0x110] sm:$0xff] }
 0x85d   : > { %13059 = vmatpush3.bf16.msra.mxu1 %v15079_v61  ;;  %13020 = vmatprep.subr.bf16.mxu0 %v15080_v30  ;;  %v15108_v47 = vld [vmem:[%s16130_s16 + $0x160] sm:$0xff]   ;;  %v15112_v33 = vld [vmem:[%s16130_s16 + $0x168] sm:$0xff]   ;;  %v10118_v43 = vld [vmem:[#allocation4 + $0x198] sm:$0xff] }
 0x85e   : > { %13060 = vmatprep.subr.bf16.mxu1 %v15081_v3  ;;  %v15109_v55 = vld [vmem:[%s16130_s16 + $0x1e0] sm:$0xff]   ;;  %v15113_v51 = vld [vmem:[%s16130_s16 + $0x1e8] sm:$0xff]   ;;  %v15116_v0 = vld [vmem:[%s16130_s16 + $0x170] sm:$0xff]  }
 0x85f   : > { %v15110_v10 = vld [vmem:[%s16130_s16 + $0x120] sm:$0xff]   ;;  %v15114_v11 = vld [vmem:[%s16130_s16 + $0x128] sm:$0xff]   ;;  %v15117_v1 = vld [vmem:[%s16130_s16 + $0x1f0] sm:$0xff]  }
 0x860   : > { %13021 = vmatpush3.bf16.msra.mxu0 %v15082_v22  ;;  %v15111_v16 = vld [vmem:[%s16130_s16 + $0x1a0] sm:$0xff]   ;;  %v15115_v19 = vld [vmem:[%s16130_s16 + $0x1a8] sm:$0xff]   ;;  %v15118_v15 = vld [vmem:[%s16130_s16 + $0x130] sm:$0xff]  }
 0x861   : > { %13061 = vmatpush3.bf16.msra.mxu1 %v15083_v24  ;;  %13022 = vmatprep.subr.bf16.mxu0 %v15084_v17  ;;  %v10116_v4 = vld [vmem:[#allocation4 + $0x188] sm:$0xff]  ;;  %v10115_v23 = vld [vmem:[#allocation4 + $0x180] sm:$0xff]  ;;  %v10117_v62 = vld [vmem:[#allocation4 + $0x190] sm:$0xff] }
 0x862   : > { %13062 = vmatprep.subr.bf16.mxu1 %v15085_v8  ;;  %v15119_v7 = vld [vmem:[%s16130_s16 + $0x1b0] sm:$0xff]   ;;  %v15120_v13 = vld [vmem:[%s16130_s16 + $0x178] sm:$0xff]   ;;  %v10072_v48 = vld [vmem:[#allocation4 + $0x28] sm:$0xff] }
 0x863   : > { %v15121_v6 = vld [vmem:[%s16130_s16 + $0x1f8] sm:$0xff]   ;;  %v10073_v61 = vld [vmem:[#allocation4 + $0x30] sm:$0xff]  ;;  %v15124_v30 = vld [vmem:[%s16130_s16 + $0x240] sm:$0xff]  }
 0x864   : > { %13023 = vmatpush3.bf16.msra.mxu0 %v15086_v2  ;;  %v15122_v25 = vld [vmem:[%s16130_s16 + $0x138] sm:$0xff]   ;;  %v15125_v3 = vld [vmem:[%s16130_s16 + $0x2c0] sm:$0xff]   ;;  %v15128_v17 = vld [vmem:[%s16130_s16 + $0x248] sm:$0xff]  }
 0x865   : > { %13063 = vmatpush3.bf16.msra.mxu1 %v15087_v46  ;;  %13024 = vmatprep.subr.bf16.mxu0 %v15088_v18  ;;  %v15123_v14 = vld [vmem:[%s16130_s16 + $0x1b8] sm:$0xff]   ;;  %v15126_v22 = vld [vmem:[%s16130_s16 + $0x200] sm:$0xff]   ;;  %v15129_v8 = vld [vmem:[%s16130_s16 + $0x2c8] sm:$0xff]  }
 0x866   : > { %13064 = vmatprep.subr.bf16.mxu1 %v15089_v40  ;;  %v10074_v34 = vld [vmem:[#allocation4 + $0x38] sm:$0xff]  ;;  %v10071_v59 = vld [vmem:[#allocation4 + $0x20] sm:$0xff]  ;;  %v15130_v2 = vld [vmem:[%s16130_s16 + $0x208] sm:$0xff]  }
 0x867   : > { %v15127_v24 = vld [vmem:[%s16130_s16 + $0x280] sm:$0xff]   ;;  %v15131_v46 = vld [vmem:[%s16130_s16 + $0x288] sm:$0xff]   ;;  %v10090_v40 = vld [vmem:[#allocation4 + $0xb8] sm:$0xff] }
 0x868   : > { %13025 = vmatpush3.bf16.msra.mxu0 %v15090_v36  ;;  %v10088_v18 = vld [vmem:[#allocation4 + $0xa8] sm:$0xff]  ;;  %v10087_v36 = vld [vmem:[#allocation4 + $0xa0] sm:$0xff]  ;;  %v15132_v63 = vld [vmem:[%s16130_s16 + $0x250] sm:$0xff]  }
 0x869   : > { %13065 = vmatpush3.bf16.msra.mxu1 %v15091_v20  ;;  %13090 = vmatprep.subr.bf16.mxu0 %v15092_v28  ;;  %v10089_v20 = vld [vmem:[#allocation4 + $0xb0] sm:$0xff]  ;;  %v15136_v28 = vld [vmem:[%s16130_s16 + $0x258] sm:$0xff]  }
 0x86a   : > { %13130 = vmatprep.subr.bf16.mxu1 %v15093_v60  ;;  %v15133_v21 = vld [vmem:[%s16130_s16 + $0x2d0] sm:$0xff]   ;;  %v15137_v60 = vld [vmem:[%s16130_s16 + $0x2d8] sm:$0xff]  }
 0x86b   : > { %11195 = vmatmul.mubr.bf16.vlgmr.msra.gmra.mrb[0].mxu0 %v10067_v42  ;;  %v15134_v42 = vld [vmem:[%s16130_s16 + $0x210] sm:$0xff]  }
 0x86c   : > { %11260 = vmatmul.mubr.bf16.vlgmr.msra.gmra.mrb[0].mxu1 %v10069_v27  ;;  %13091 = vmatpush3.bf16.msra.mxu0 %v15094_v35  ;;  %v15135_v27 = vld [vmem:[%s16130_s16 + $0x290] sm:$0xff]   ;;  %v15138_v35 = vld [vmem:[%s16130_s16 + $0x218] sm:$0xff]  }
 0x86d   : > { %13131 = vmatpush3.bf16.msra.mxu1 %v15095_v38  ;;  %13092 = vmatprep.subr.bf16.mxu0 %v15096_v56  ;;  %v15139_v38 = vld [vmem:[%s16130_s16 + $0x298] sm:$0xff]   ;;  %v10104_v56 = vld [vmem:[#allocation4 + $0x128] sm:$0xff] }
 0x86e   : > { %13132 = vmatprep.subr.bf16.mxu1 %v15097_v39  ;;  %11202 = vmatprep.mubr.bf16.mxu0 %v10084_v41  ;;  %v10106_v39 = vld [vmem:[#allocation4 + $0x138] sm:$0xff]  ;;  %v15140_v41 = vld [vmem:[%s16130_s16 + $0x260] sm:$0xff]  }
 0x86f   : > { %11267 = vmatprep.mubr.bf16.mxu1 %v10086_v5  ;;  %v15141_v5 = vld [vmem:[%s16130_s16 + $0x2e0] sm:$0xff]  }
 0x870   : > { %13093 = vmatpush3.bf16.msra.mxu0 %v15098_v44  ;;  %v10103_v44 = vld [vmem:[#allocation4 + $0x120] sm:$0xff] }
 0x871   : > { %13133 = vmatpush3.bf16.msra.mxu1 %v15099_v58  ;;  %13094 = vmatprep.subr.bf16.mxu0 %v15100_v37  ;;  %v10105_v58 = vld [vmem:[#allocation4 + $0x130] sm:$0xff] }
 0x872   : > { %13134 = vmatprep.subr.bf16.mxu1 %v15101_v52  ;;  %v15144_v37 = vld [vmem:[%s16130_s16 + $0x268] sm:$0xff]  }
 0x873   : > { %11203 = vmatmul.mubr.bf16.gmra.mrb[4].mxu0 %v10083_v57  ;;  %v15142_v57 = vld [vmem:[%s16130_s16 + $0x220] sm:$0xff]   ;;  %v15145_v52 = vld [vmem:[%s16130_s16 + $0x2e8] sm:$0xff]  }
 0x874   : > { %11268 = vmatmul.mubr.bf16.gmra.mrb[4].mxu1 %v10085_v9  ;;  %13095 = vmatpush3.bf16.msra.mxu0 %v15102_v29  ;;  %v15143_v9 = vld [vmem:[%s16130_s16 + $0x2a0] sm:$0xff]   ;;  %v15146_v29 = vld [vmem:[%s16130_s16 + $0x228] sm:$0xff]  }
 0x875   : > { %13135 = vmatpush3.bf16.msra.mxu1 %v15103_v32  ;;  %13096 = vmatprep.subr.bf16.mxu0 %v15104_v54  ;;  %v15147_v32 = vld [vmem:[%s16130_s16 + $0x2a8] sm:$0xff]  }
 0x876   : > { %13136 = vmatprep.subr.bf16.mxu1 %v15105_v45  ;;  %11210 = vmatprep.mubr.bf16.mxu0 %v10100_v50  ;;  %v10120_v54 = vld [vmem:[#allocation4 + $0x1a8] sm:$0xff]  ;;  %v10122_v45 = vld [vmem:[#allocation4 + $0x1b8] sm:$0xff] }
 0x877   : > { %11275 = vmatprep.mubr.bf16.mxu1 %v10102_v49  ;;  %v15148_v50 = vld [vmem:[%s16130_s16 + $0x270] sm:$0xff]  }
 0x878   : > { %13097 = vmatpush3.bf16.msra.mxu0 %v15106_v12  ;;  %v10119_v12 = vld [vmem:[#allocation4 + $0x1a0] sm:$0xff]  ;;  %v15149_v49 = vld [vmem:[%s16130_s16 + $0x2f0] sm:$0xff]  }
 0x879   : > { %13137 = vmatpush3.bf16.msra.mxu1 %v15107_v31  ;;  %13098 = vmatprep.subr.bf16.mxu0 %v15108_v47  ;;  %v10121_v31 = vld [vmem:[#allocation4 + $0x1b0] sm:$0xff]  ;;  %v15152_v47 = vld [vmem:[%s16130_s16 + $0x278] sm:$0xff]  }
 0x87a   : > { %13138 = vmatprep.subr.bf16.mxu1 %v15109_v55  ;;  %v15153_v55 = vld [vmem:[%s16130_s16 + $0x2f8] sm:$0xff]  }
 0x87b   : > { %11211 = vmatmul.mubr.bf16.gmra.mrb[8].mxu0 %v10099_v26  ;;  %v15150_v26 = vld [vmem:[%s16130_s16 + $0x230] sm:$0xff]  }
 0x87c   : > { %11276 = vmatmul.mubr.bf16.gmra.mrb[8].mxu1 %v10101_v53  ;;  %13099 = vmatpush3.bf16.msra.mxu0 %v15110_v10  ;;  %v15151_v53 = vld [vmem:[%s16130_s16 + $0x2b0] sm:$0xff]   ;;  %v15154_v10 = vld [vmem:[%s16130_s16 + $0x238] sm:$0xff]  }
 0x87d   : > { %13139 = vmatpush3.bf16.msra.mxu1 %v15111_v16  ;;  %13100 = vmatprep.subr.bf16.mxu0 %v15112_v33  ;;  %v15155_v16 = vld [vmem:[%s16130_s16 + $0x2b8] sm:$0xff]   ;;  %v10076_v33 = vld [vmem:[#allocation4 + $0x48] sm:$0xff] }
 0x87e   : > { %13140 = vmatprep.subr.bf16.mxu1 %v15113_v51  ;;  %11218 = vmatprep.mubr.bf16.mxu0 %v10116_v4  ;;  %v10078_v51 = vld [vmem:[#allocation4 + $0x58] sm:$0xff]  ;;  %v15156_v4 = vld [vmem:[%s16130_s16 + $0x340] sm:$0xff]  }
 0x87f   : > { %11283 = vmatprep.mubr.bf16.mxu1 %v10118_v43  ;;  %v15157_v43 = vld [vmem:[%s16130_s16 + $0x3c0] sm:$0xff]  }
 0x880   : > { %13101 = vmatpush3.bf16.msra.mxu0 %v15114_v11  ;;  %v10075_v11 = vld [vmem:[#allocation4 + $0x40] sm:$0xff] }
 0x881   : > { %13141 = vmatpush3.bf16.msra.mxu1 %v15115_v19  ;;  %13102 = vmatprep.subr.bf16.mxu0 %v15116_v0  ;;  %v10077_v19 = vld [vmem:[#allocation4 + $0x50] sm:$0xff] }
 0x882   : > { %13142 = vmatprep.subr.bf16.mxu1 %v15117_v1  ;;  %v15160_v0 = vld [vmem:[%s16130_s16 + $0x348] sm:$0xff]  }
 0x883   : > { %11219 = vmatmul.mubr.bf16.gmra.mrb[12].mxu0 %v10115_v23  ;;  %v15158_v23 = vld [vmem:[%s16130_s16 + $0x300] sm:$0xff]   ;;  %v15161_v1 = vld [vmem:[%s16130_s16 + $0x3c8] sm:$0xff]  }
 0x884   : > { %11284 = vmatmul.mubr.bf16.gmra.mrb[12].mxu1 %v10117_v62  ;;  %13103 = vmatpush3.bf16.msra.mxu0 %v15118_v15  ;;  %v15159_v62 = vld [vmem:[%s16130_s16 + $0x380] sm:$0xff]   ;;  %v15162_v15 = vld [vmem:[%s16130_s16 + $0x308] sm:$0xff]  }
 0x885   : > { %13143 = vmatpush3.bf16.msra.mxu1 %v15119_v7  ;;  %13104 = vmatprep.subr.bf16.mxu0 %v15120_v13  ;;  %v15163_v7 = vld [vmem:[%s16130_s16 + $0x388] sm:$0xff]  }
 0x886   : > { %13144 = vmatprep.subr.bf16.mxu1 %v15121_v6  ;;  %11324 = vmatprep.mubr.bf16.mxu0 %v10072_v48  ;;  %v10092_v13 = vld [vmem:[#allocation4 + $0xc8] sm:$0xff]  ;;  %v10094_v6 = vld [vmem:[#allocation4 + $0xd8] sm:$0xff] }
 0x887   : > { %11389 = vmatprep.mubr.bf16.mxu1 %v10074_v34  ;;  %v15164_v48 = vld [vmem:[%s16130_s16 + $0x350] sm:$0xff]  }
 0x888   : > { %13105 = vmatpush3.bf16.msra.mxu0 %v15122_v25  ;;  %v10091_v25 = vld [vmem:[#allocation4 + $0xc0] sm:$0xff]  ;;  %v15165_v34 = vld [vmem:[%s16130_s16 + $0x3d0] sm:$0xff]  }
 0x889   : > { %13145 = vmatpush3.bf16.msra.mxu1 %v15123_v14  ;;  %13170 = vmatprep.subr.bf16.mxu0 %v15124_v30  ;;  %v10093_v14 = vld [vmem:[#allocation4 + $0xd0] sm:$0xff]  ;;  %v15168_v30 = vld [vmem:[%s16130_s16 + $0x358] sm:$0xff]  }
 0x88a   : > { %13210 = vmatprep.subr.bf16.mxu1 %v15125_v3  ;;  %v15169_v3 = vld [vmem:[%s16130_s16 + $0x3d8] sm:$0xff]  }
 0x88b   : > { %11325 = vmatmul.mubr.bf16.vlgmr.msra.gmra.mrb[16].mxu0 %v10071_v59  ;;  %v15166_v59 = vld [vmem:[%s16130_s16 + $0x310] sm:$0xff]  }
 0x88c   : > { %11390 = vmatmul.mubr.bf16.vlgmr.msra.gmra.mrb[16].mxu1 %v10073_v61  ;;  %13171 = vmatpush3.bf16.msra.mxu0 %v15126_v22  ;;  %v15167_v61 = vld [vmem:[%s16130_s16 + $0x390] sm:$0xff]   ;;  %v15170_v22 = vld [vmem:[%s16130_s16 + $0x318] sm:$0xff]  }
 0x88d   : > { %13211 = vmatpush3.bf16.msra.mxu1 %v15127_v24  ;;  %13172 = vmatprep.subr.bf16.mxu0 %v15128_v17  ;;  %v15171_v24 = vld [vmem:[%s16130_s16 + $0x398] sm:$0xff]   ;;  %v10108_v17 = vld [vmem:[#allocation4 + $0x148] sm:$0xff] }
 0x88e   : > { %13212 = vmatprep.subr.bf16.mxu1 %v15129_v8  ;;  %11332 = vmatprep.mubr.bf16.mxu0 %v10088_v18  ;;  %v10110_v8 = vld [vmem:[#allocation4 + $0x158] sm:$0xff]  ;;  %v15172_v18 = vld [vmem:[%s16130_s16 + $0x360] sm:$0xff]  }
 0x88f   : > { %11397 = vmatprep.mubr.bf16.mxu1 %v10090_v40  ;;  %v15173_v40 = vld [vmem:[%s16130_s16 + $0x3e0] sm:$0xff]  }
 0x890   : > { %13173 = vmatpush3.bf16.msra.mxu0 %v15130_v2  ;;  %v10107_v2 = vld [vmem:[#allocation4 + $0x140] sm:$0xff] }
 0x891   : > { %13213 = vmatpush3.bf16.msra.mxu1 %v15131_v46  ;;  %13174 = vmatprep.subr.bf16.mxu0 %v15132_v63  ;;  %v10109_v46 = vld [vmem:[#allocation4 + $0x150] sm:$0xff] }
 0x892   : > { %13214 = vmatprep.subr.bf16.mxu1 %v15133_v21  ;;  %v15176_v63 = vld [vmem:[%s16130_s16 + $0x368] sm:$0xff]  }
 0x893   : > { %11333 = vmatmul.mubr.bf16.gmra.mrb[20].mxu0 %v10087_v36  ;;  %v15174_v36 = vld [vmem:[%s16130_s16 + $0x320] sm:$0xff]   ;;  %v15177_v21 = vld [vmem:[%s16130_s16 + $0x3e8] sm:$0xff]  }
 0x894   : > { %11398 = vmatmul.mubr.bf16.gmra.mrb[20].mxu1 %v10089_v20  ;;  %13175 = vmatpush3.bf16.msra.mxu0 %v15134_v42  ;;  %v15175_v20 = vld [vmem:[%s16130_s16 + $0x3a0] sm:$0xff]   ;;  %v15178_v42 = vld [vmem:[%s16130_s16 + $0x328] sm:$0xff]  }
 0x895   : > { %13215 = vmatpush3.bf16.msra.mxu1 %v15135_v27  ;;  %13176 = vmatprep.subr.bf16.mxu0 %v15136_v28  ;;  %v15179_v27 = vld [vmem:[%s16130_s16 + $0x3a8] sm:$0xff]  }
 0x896   : > { %13216 = vmatprep.subr.bf16.mxu1 %v15137_v60  ;;  %11340 = vmatprep.mubr.bf16.mxu0 %v10104_v56  ;;  %v10124_v28 = vld [vmem:[#allocation4 + $0x1c8] sm:$0xff]  ;;  %v10126_v60 = vld [vmem:[#allocation4 + $0x1d8] sm:$0xff] }
 0x897   : > { %11405 = vmatprep.mubr.bf16.mxu1 %v10106_v39  ;;  %v15180_v56 = vld [vmem:[%s16130_s16 + $0x370] sm:$0xff]  }
 0x898   : > { %13177 = vmatpush3.bf16.msra.mxu0 %v15138_v35  ;;  %v10123_v35 = vld [vmem:[#allocation4 + $0x1c0] sm:$0xff]  ;;  %v15181_v39 = vld [vmem:[%s16130_s16 + $0x3f0] sm:$0xff]  }
 0x899   : > { %13217 = vmatpush3.bf16.msra.mxu1 %v15139_v38  ;;  %13178 = vmatprep.subr.bf16.mxu0 %v15140_v41  ;;  %v10125_v38 = vld [vmem:[#allocation4 + $0x1d0] sm:$0xff]  ;;  %v15184_v41 = vld [vmem:[%s16130_s16 + $0x378] sm:$0xff]  }
 0x89a   : > { %13218 = vmatprep.subr.bf16.mxu1 %v15141_v5  ;;  %v15185_v5 = vld [vmem:[%s16130_s16 + $0x3f8] sm:$0xff]  }
 0x89b   : > { %11341 = vmatmul.mubr.bf16.gmra.mrb[24].mxu0 %v10103_v44  ;;  %v15182_v44 = vld [vmem:[%s16130_s16 + $0x330] sm:$0xff]  }
 0x89c   : > { %11406 = vmatmul.mubr.bf16.gmra.mrb[24].mxu1 %v10105_v58  ;;  %13179 = vmatpush3.bf16.msra.mxu0 %v15142_v57  ;;  %v15183_v58 = vld [vmem:[%s16130_s16 + $0x3b0] sm:$0xff]   ;;  %v15186_v57 = vld [vmem:[%s16130_s16 + $0x338] sm:$0xff]  }
 0x89d   : > { %13219 = vmatpush3.bf16.msra.mxu1 %v15143_v9  ;;  %13180 = vmatprep.subr.bf16.mxu0 %v15144_v37  ;;  %v15187_v9 = vld [vmem:[%s16130_s16 + $0x3b8] sm:$0xff]   ;;  %v10080_v37 = vld [vmem:[#allocation4 + $0x68] sm:$0xff] }
 0x89e   : > { %13220 = vmatprep.subr.bf16.mxu1 %v15145_v52  ;;  %11348 = vmatprep.mubr.bf16.mxu0 %v10120_v54  ;;  %v10082_v52 = vld [vmem:[#allocation4 + $0x78] sm:$0xff]  ;;  %v10096_v54 = vld [vmem:[#allocation4 + $0xe8] sm:$0xff] }
 0x89f   : > { %11413 = vmatprep.mubr.bf16.mxu1 %v10122_v45  ;;  %v10098_v45 = vld [vmem:[#allocation4 + $0xf8] sm:$0xff] }
 0x8a0   : > { %13181 = vmatpush3.bf16.msra.mxu0 %v15146_v29  ;;  %v10079_v29 = vld [vmem:[#allocation4 + $0x60] sm:$0xff] }
 0x8a1   : > { %13221 = vmatpush3.bf16.msra.mxu1 %v15147_v32  ;;  %13182 = vmatprep.subr.bf16.mxu0 %v15148_v50  ;;  %v10081_v32 = vld [vmem:[#allocation4 + $0x70] sm:$0xff]  ;;  %v10112_v50 = vld [vmem:[#allocation4 + $0x168] sm:$0xff] }
 0x8a2   : > { %13222 = vmatprep.subr.bf16.mxu1 %v15149_v49  ;;  %v10114_v49 = vld [vmem:[#allocation4 + $0x178] sm:$0xff] }
 0x8a3   : > { %11349 = vmatmul.mubr.bf16.gmra.mrb[28].mxu0 %v10119_v12  ;;  %v10095_v12 = vld [vmem:[#allocation4 + $0xe0] sm:$0xff] }
 0x8a4   : > { %11414 = vmatmul.mubr.bf16.gmra.mrb[28].mxu1 %v10121_v31  ;;  %13183 = vmatpush3.bf16.msra.mxu0 %v15150_v26  ;;  %v10097_v31 = vld [vmem:[#allocation4 + $0xf0] sm:$0xff]  ;;  %v10111_v26 = vld [vmem:[#allocation4 + $0x160] sm:$0xff] }
 0x8a5   : > { %13223 = vmatpush3.bf16.msra.mxu1 %v15151_v53  ;;  %13184 = vmatprep.subr.bf16.mxu0 %v15152_v47  ;;  %v10113_v53 = vld [vmem:[#allocation4 + $0x170] sm:$0xff]  ;;  %v10128_v47 = vld [vmem:[#allocation4 + $0x1e8] sm:$0xff] }
 0x8a6   : > { %13224 = vmatprep.subr.bf16.mxu1 %v15153_v55  ;;  %11454 = vmatprep.mubr.bf16.mxu0 %v10076_v33  ;;  %v10130_v55 = vld [vmem:[#allocation4 + $0x1f8] sm:$0xff] }
 0x8a7   : > { %11519 = vmatprep.mubr.bf16.mxu1 %v10078_v51 }
 0x8a8   : > { %13185 = vmatpush3.bf16.msra.mxu0 %v15154_v10  ;;  %v10127_v10 = vld [vmem:[#allocation4 + $0x1e0] sm:$0xff] }
 0x8a9   : > { %13225 = vmatpush3.bf16.msra.mxu1 %v15155_v16  ;;  %13250 = vmatprep.subr.bf16.mxu0 %v15156_v4  ;;  %v10129_v16 = vld [vmem:[#allocation4 + $0x1f0] sm:$0xff] }
 0x8aa   : > { %13290 = vmatprep.subr.bf16.mxu1 %v15157_v43 }
 0x8ab   : > { %11455 = vmatmul.mubr.bf16.vlgmr.msra.gmra.mrb[32].mxu0 %v10075_v11  ;;  %v12872_v11 = vld [vmem:[%s562_s0] ss:$0 sm:$0xff] }
 0x8ac   : > { %11520 = vmatmul.mubr.bf16.vlgmr.msra.gmra.mrb[32].mxu1 %v10077_v19  ;;  %13251 = vmatpush3.bf16.msra.mxu0 %v15158_v23 }
 0x8ad   : > { %13291 = vmatpush3.bf16.msra.mxu1 %v15159_v62  ;;  %13252 = vmatprep.subr.bf16.mxu0 %v15160_v0 }
 0x8ae   : > { %13292 = vmatprep.subr.bf16.mxu1 %v15161_v1  ;;  %11462 = vmatprep.mubr.bf16.mxu0 %v10092_v13 }
 0x8af   : > { %11527 = vmatprep.mubr.bf16.mxu1 %v10094_v6 }
 0x8b0   : > { %13253 = vmatpush3.bf16.msra.mxu0 %v15162_v15 }
 0x8b1   : > { %13293 = vmatpush3.bf16.msra.mxu1 %v15163_v7  ;;  %13254 = vmatprep.subr.bf16.mxu0 %v15164_v48 }
 0x8b2   : > { %13294 = vmatprep.subr.bf16.mxu1 %v15165_v34 }
 0x8b3   : > { %11463 = vmatmul.mubr.bf16.gmra.mrb[36].mxu0 %v10091_v25 }
 0x8b4   : > { %11528 = vmatmul.mubr.bf16.gmra.mrb[36].mxu1 %v10093_v14  ;;  %13255 = vmatpush3.bf16.msra.mxu0 %v15166_v59 }
 0x8b5   : > { %13295 = vmatpush3.bf16.msra.mxu1 %v15167_v61  ;;  %13256 = vmatprep.subr.bf16.mxu0 %v15168_v30 }
 0x8b6   : > { %13296 = vmatprep.subr.bf16.mxu1 %v15169_v3  ;;  %11470 = vmatprep.mubr.bf16.mxu0 %v10108_v17 }
 0x8b7   : > { %11535 = vmatprep.mubr.bf16.mxu1 %v10110_v8 }
 0x8b8   : > { %13257 = vmatpush3.bf16.msra.mxu0 %v15170_v22 }
 0x8b9   : > { %13297 = vmatpush3.bf16.msra.mxu1 %v15171_v24  ;;  %13258 = vmatprep.subr.bf16.mxu0 %v15172_v18 }
 0x8ba   : > { %13298 = vmatprep.subr.bf16.mxu1 %v15173_v40 }
 0x8bb   : > { %11471 = vmatmul.mubr.bf16.gmra.mrb[40].mxu0 %v10107_v2 }
 0x8bc   : > { %11536 = vmatmul.mubr.bf16.gmra.mrb[40].mxu1 %v10109_v46  ;;  %13259 = vmatpush3.bf16.msra.mxu0 %v15174_v36 }
 0x8bd   : > { %13299 = vmatpush3.bf16.msra.mxu1 %v15175_v20  ;;  %13260 = vmatprep.subr.bf16.mxu0 %v15176_v63 }
 0x8be   : > { %13300 = vmatprep.subr.bf16.mxu1 %v15177_v21  ;;  %11478 = vmatprep.mubr.bf16.mxu0 %v10124_v28 }
 0x8bf   : > { %11543 = vmatprep.mubr.bf16.mxu1 %v10126_v60 }
 0x8c0   : > { %13261 = vmatpush3.bf16.msra.mxu0 %v15178_v42 }
 0x8c1   : > { %13301 = vmatpush3.bf16.msra.mxu1 %v15179_v27  ;;  %13262 = vmatprep.subr.bf16.mxu0 %v15180_v56 }
 0x8c2   : > { %13302 = vmatprep.subr.bf16.mxu1 %v15181_v39 }
 0x8c3   : > { %11479 = vmatmul.mubr.bf16.gmra.mrb[44].mxu0 %v10123_v35 }
 0x8c4   : > { %11544 = vmatmul.mubr.bf16.gmra.mrb[44].mxu1 %v10125_v38  ;;  %13263 = vmatpush3.bf16.msra.mxu0 %v15182_v44 }
 0x8c5   : > { %13303 = vmatpush3.bf16.msra.mxu1 %v15183_v58  ;;  %13264 = vmatprep.subr.bf16.mxu0 %v15184_v41 }
 0x8c6   : > { %13304 = vmatprep.subr.bf16.mxu1 %v15185_v5  ;;  %11584 = vmatprep.mubr.bf16.mxu0 %v10080_v37 }
 0x8c7   : > { %11649 = vmatprep.mubr.bf16.mxu1 %v10082_v52 }
 0x8c8   : > { %13265 = vmatpush3.bf16.msra.mxu0 %v15186_v57 }
 0x8c9   : > { %13305 = vmatpush3.bf16.msra.mxu1 %v15187_v9 }
 0x8cb   : > { %11585 = vmatmul.mubr.bf16.vlgmr.msra.gmra.mrb[48].mxu0 %v10079_v29 }
 0x8cc   : > { %11650 = vmatmul.mubr.bf16.vlgmr.msra.gmra.mrb[48].mxu1 %v10081_v32  ;;  %11592 = vmatprep.mubr.bf16.mxu0 %v10096_v54 }
 0x8cd   : > { %11657 = vmatprep.mubr.bf16.mxu1 %v10098_v45 }
 0x8d3   : > { %11593 = vmatmul.mubr.bf16.gmra.mrb[52].mxu0 %v10095_v12 }
 0x8d4   : > { %11658 = vmatmul.mubr.bf16.gmra.mrb[52].mxu1 %v10097_v31  ;;  %11600 = vmatprep.mubr.bf16.mxu0 %v10112_v50 }
 0x8d5   : > { %11665 = vmatprep.mubr.bf16.mxu1 %v10114_v49 }
 0x8db   : > { %11601 = vmatmul.mubr.bf16.gmra.mrb[56].mxu0 %v10111_v26 }
 0x8dc   : > { %11666 = vmatmul.mubr.bf16.gmra.mrb[56].mxu1 %v10113_v53  ;;  %11608 = vmatprep.mubr.bf16.mxu0 %v10128_v47 }
 0x8dd   : > { %11673 = vmatprep.mubr.bf16.mxu1 %v10130_v55 }
 0x8e3   : > { %11609 = vmatmul.mubr.bf16.gmra.mrb[60].mxu0 %v10127_v10 }
 0x8e4   : > { %11674 = vmatmul.mubr.bf16.gmra.mrb[60].mxu1 %v10129_v16 }
 0x93e   : > { %v13026_v33 = vpop.f32.mrb[0].mxu0 }
 0x93f   : > { %v13066_v51 = vpop.f32.mrb[0].mxu1  ;;  %v13027_v19 = vpop.f32.mrb[1].mxu0 }
 0x940   : > { %v13028_v4 = vadd.f32 %v13027_v19, %v13026_v33  ;;  %v13067_v43 = vpop.f32.mrb[1].mxu1  ;;  %v13029_v23 = vpop.f32.mrb[2].mxu0 }
 0x941   : > { %v13068_v62 = vadd.f32 %v13067_v43, %v13066_v51  ;;  %v13069_v0 = vpop.f32.mrb[2].mxu1  ;;  %v13030_v1 = vpop.f32.mrb[3].mxu0 }
 0x942   : > { %v11197_v15 = vadd.f32 %v13028_v4, %v12872_v11  ;;  %v13031_v7 = vadd.f32 %v13030_v1, %v13029_v23  ;;  %v13070_v13 = vpop.f32.mrb[3].mxu1 }
 0x943   : > { %v13071_v6 = vadd.f32 %v13070_v13, %v13069_v0 }
 0x944   : > { %v11262_v25 = vadd.f32 %v13068_v62, %v11197_v15  ;;  %v11200_v14 = vadd.f32 %v13031_v7, %v12872_v11 }
 0x946   : > { %v17404_v48 = vadd.f32 %v13071_v6, %v11200_v14  ;;  %v13032_v34 = vpop.f32.mrb[4].mxu0 }
 0x947   : > { %v13072_v59 = vpop.f32.mrb[4].mxu1  ;;  %v13033_v61 = vpop.f32.mrb[5].mxu0 }
 0x948   : > { %v13073_v30 = vpop.f32.mrb[5].mxu1  ;;  %v13034_v3 = vadd.f32 %v13033_v61, %v13032_v34  ;;  %v13035_v24 = vpop.f32.mrb[6].mxu0 }
 0x949   : > { %v13074_v22 = vadd.f32 %v13073_v30, %v13072_v59  ;;  %v13075_v17 = vpop.f32.mrb[6].mxu1  ;;  %v13036_v8 = vpop.f32.mrb[7].mxu0 }
 0x94a   : > { %v13076_v2 = vpop.f32.mrb[7].mxu1  ;;  %v11205_v46 = vadd.f32 %v13034_v3, %v12872_v11  ;;  %v13037_v18 = vadd.f32 %v13036_v8, %v13035_v24 }
 0x94b   : > { %v13077_v40 = vadd.f32 %v13076_v2, %v13075_v17 }
 0x94c   : > { %v11270_v36 = vadd.f32 %v13074_v22, %v11205_v46  ;;  %v11208_v20 = vadd.f32 %v13037_v18, %v12872_v11 }
 0x94e   : > { %v17406_v63 = vadd.f32 %v13077_v40, %v11208_v20  ;;  %v13038_v21 = vpop.f32.mrb[8].mxu0 }
 0x94f   : > { %v13078_v42 = vpop.f32.mrb[8].mxu1  ;;  %v13039_v27 = vpop.f32.mrb[9].mxu0 }
 0x950   : > { %v13079_v28 = vpop.f32.mrb[9].mxu1  ;;  %v13040_v60 = vadd.f32 %v13039_v27, %v13038_v21  ;;  %v13041_v38 = vpop.f32.mrb[10].mxu0 }
 0x951   : > { %v13080_v35 = vadd.f32 %v13079_v28, %v13078_v42  ;;  %v13081_v56 = vpop.f32.mrb[10].mxu1  ;;  %v13042_v39 = vpop.f32.mrb[11].mxu0 }
 0x952   : > { %v13082_v44 = vpop.f32.mrb[11].mxu1  ;;  %v11213_v58 = vadd.f32 %v13040_v60, %v12872_v11  ;;  %v13043_v41 = vadd.f32 %v13042_v39, %v13041_v38 }
 0x953   : > { %v13083_v5 = vadd.f32 %v13082_v44, %v13081_v56 }
 0x954   : > { %v11278_v57 = vadd.f32 %v13080_v35, %v11213_v58  ;;  %v11216_v9 = vadd.f32 %v13043_v41, %v12872_v11 }
 0x956   : > { %v17408_v37 = vadd.f32 %v13083_v5, %v11216_v9  ;;  %v13044_v52 = vpop.f32.mrb[12].mxu0 }
 0x957   : > { %v13084_v29 = vpop.f32.mrb[12].mxu1  ;;  %v13045_v32 = vpop.f32.mrb[13].mxu0 }
 0x958   : > { %v13046_v54 = vadd.f32 %v13045_v32, %v13044_v52  ;;  %v13085_v45 = vpop.f32.mrb[13].mxu1  ;;  %v13047_v12 = vpop.f32.mrb[14].mxu0 }
 0x959   : > { %v13086_v31 = vadd.f32 %v13085_v45, %v13084_v29  ;;  %v13087_v50 = vpop.f32.mrb[14].mxu1  ;;  %v13048_v49 = vpop.f32.mrb[15].mxu0 }
 0x95a   : > { %v11221_v26 = vadd.f32 %v13046_v54, %v12872_v11  ;;  %v13049_v53 = vadd.f32 %v13048_v49, %v13047_v12  ;;  %v13088_v47 = vpop.f32.mrb[15].mxu1 }
 0x95b   : > { %v13089_v55 = vadd.f32 %v13088_v47, %v13087_v50 }
 0x95c   : > { %v11286_v10 = vadd.f32 %v13086_v31, %v11221_v26  ;;  %v11224_v16 = vadd.f32 %v13049_v53, %v12872_v11 }
 0x95e   : > { %v17410_v33 = vadd.f32 %v13089_v55, %v11224_v16  ;;  %v13106_v51 = vpop.f32.mrb[16].mxu0 }
 0x95f   : > { %v13146_v19 = vpop.f32.mrb[16].mxu1  ;;  %v13107_v4 = vpop.f32.mrb[17].mxu0 }
 0x960   : > { %v13108_v43 = vadd.f32 %v13107_v4, %v13106_v51  ;;  %v13147_v23 = vpop.f32.mrb[17].mxu1  ;;  %v13109_v62 = vpop.f32.mrb[18].mxu0 }
 0x961   : > { %v13148_v0 = vadd.f32 %v13147_v23, %v13146_v19  ;;  %v13149_v1 = vpop.f32.mrb[18].mxu1  ;;  %v13110_v15 = vpop.f32.mrb[19].mxu0 }
 0x962   : > { %v11327_v7 = vadd.f32 %v13108_v43, %v11262_v25  ;;  %v13111_v13 = vadd.f32 %v13110_v15, %v13109_v62  ;;  %v13150_v6 = vpop.f32.mrb[19].mxu1 }
 0x963   : > { %v13151_v14 = vadd.f32 %v13150_v6, %v13149_v1 }
 0x964   : > { %v11392_v34 = vadd.f32 %v13148_v0, %v11327_v7  ;;  %v11330_v59 = vadd.f32 %v13111_v13, %v17404_v48 }
 0x966   : > { %v17413_v61 = vadd.f32 %v13151_v14, %v11330_v59  ;;  %v13112_v11 = vpop.f32.mrb[20].mxu0 }
 0x967   : > { %v13152_v30 = vpop.f32.mrb[20].mxu1  ;;  %v13113_v3 = vpop.f32.mrb[21].mxu0 }
 0x968   : > { %v13114_v22 = vadd.f32 %v13113_v3, %v13112_v11  ;;  %v13153_v24 = vpop.f32.mrb[21].mxu1  ;;  %v13115_v17 = vpop.f32.mrb[22].mxu0 }
 0x969   : > { %v13154_v8 = vadd.f32 %v13153_v24, %v13152_v30  ;;  %v13155_v2 = vpop.f32.mrb[22].mxu1  ;;  %v13116_v46 = vpop.f32.mrb[23].mxu0 }
 0x96a   : > { %v11335_v18 = vadd.f32 %v13114_v22, %v11270_v36  ;;  %v13117_v40 = vadd.f32 %v13116_v46, %v13115_v17  ;;  %v13156_v25 = vpop.f32.mrb[23].mxu1 }
 0x96b   : > { %v13157_v20 = vadd.f32 %v13156_v25, %v13155_v2 }
 0x96c   : > { %v11400_v21 = vadd.f32 %v13154_v8, %v11335_v18  ;;  %v11338_v42 = vadd.f32 %v13117_v40, %v17406_v63 }
 0x96e   : > { %v17416_v27 = vadd.f32 %v13157_v20, %v11338_v42  ;;  %v13118_v48 = vpop.f32.mrb[24].mxu0 }
 0x96f   : > { %v13158_v28 = vpop.f32.mrb[24].mxu1  ;;  %v13119_v60 = vpop.f32.mrb[25].mxu0 }
 0x970   : > { %v13120_v35 = vadd.f32 %v13119_v60, %v13118_v48  ;;  %v13159_v38 = vpop.f32.mrb[25].mxu1  ;;  %v13121_v56 = vpop.f32.mrb[26].mxu0 }
 0x971   : > { %v13160_v39 = vadd.f32 %v13159_v38, %v13158_v28  ;;  %v13161_v44 = vpop.f32.mrb[26].mxu1  ;;  %v13122_v58 = vpop.f32.mrb[27].mxu0 }
 0x972   : > { %v11343_v41 = vadd.f32 %v13120_v35, %v11278_v57  ;;  %v13123_v5 = vadd.f32 %v13122_v58, %v13121_v56  ;;  %v13162_v36 = vpop.f32.mrb[27].mxu1 }
 0x973   : > { %v13163_v9 = vadd.f32 %v13162_v36, %v13161_v44 }
 0x974   : > { %v11408_v52 = vadd.f32 %v13160_v39, %v11343_v41  ;;  %v11346_v29 = vadd.f32 %v13123_v5, %v17408_v37 }
 0x976   : > { %v17419_v32 = vadd.f32 %v13163_v9, %v11346_v29  ;;  %v13124_v63 = vpop.f32.mrb[28].mxu0 }
 0x977   : > { %v13164_v54 = vpop.f32.mrb[28].mxu1  ;;  %v13125_v45 = vpop.f32.mrb[29].mxu0 }
 0x978   : > { %v13165_v12 = vpop.f32.mrb[29].mxu1  ;;  %v13126_v31 = vadd.f32 %v13125_v45, %v13124_v63  ;;  %v13127_v49 = vpop.f32.mrb[30].mxu0 }
 0x979   : > { %v13166_v50 = vadd.f32 %v13165_v12, %v13164_v54  ;;  %v13167_v26 = vpop.f32.mrb[30].mxu1  ;;  %v13128_v53 = vpop.f32.mrb[31].mxu0 }
 0x97a   : > { %v13168_v47 = vpop.f32.mrb[31].mxu1  ;;  %v11351_v55 = vadd.f32 %v13126_v31, %v11286_v10  ;;  %v13129_v57 = vadd.f32 %v13128_v53, %v13127_v49 }
 0x97b   : > { %v13169_v16 = vadd.f32 %v13168_v47, %v13167_v26 }
 0x97c   : > { %v11416_v51 = vadd.f32 %v13166_v50, %v11351_v55  ;;  %v11354_v19 = vadd.f32 %v13129_v57, %v17410_v33 }
 0x97e   : > { %v17422_v4 = vadd.f32 %v13169_v16, %v11354_v19  ;;  %v13186_v37 = vpop.f32.mrb[32].mxu0 }
 0x97f   : > { %v13226_v43 = vpop.f32.mrb[32].mxu1  ;;  %v13187_v23 = vpop.f32.mrb[33].mxu0 }
 0x980   : > { %v13188_v62 = vadd.f32 %v13187_v23, %v13186_v37  ;;  %v13227_v0 = vpop.f32.mrb[33].mxu1  ;;  %v13189_v1 = vpop.f32.mrb[34].mxu0 }
 0x981   : > { %v13228_v15 = vadd.f32 %v13227_v0, %v13226_v43  ;;  %v13229_v7 = vpop.f32.mrb[34].mxu1  ;;  %v13190_v13 = vpop.f32.mrb[35].mxu0 }
 0x982   : > { %v11457_v6 = vadd.f32 %v13188_v62, %v11392_v34  ;;  %v13191_v14 = vadd.f32 %v13190_v13, %v13189_v1  ;;  %v13230_v59 = vpop.f32.mrb[35].mxu1 }
 0x983   : > { %v13231_v10 = vadd.f32 %v13230_v59, %v13229_v7 }
 0x984   : > { %v11522_v11 = vadd.f32 %v13228_v15, %v11457_v6  ;;  %v11460_v30 = vadd.f32 %v13191_v14, %v17413_v61 }
 0x986   : > { %v17425_v3 = vadd.f32 %v13231_v10, %v11460_v30  ;;  %v13192_v33 = vpop.f32.mrb[36].mxu0 }
 0x987   : > { %v13232_v22 = vpop.f32.mrb[36].mxu1  ;;  %v13193_v24 = vpop.f32.mrb[37].mxu0 }
 0x988   : > { %v13194_v17 = vadd.f32 %v13193_v24, %v13192_v33  ;;  %v13233_v8 = vpop.f32.mrb[37].mxu1  ;;  %v13195_v2 = vpop.f32.mrb[38].mxu0 }
 0x989   : > { %v13234_v46 = vadd.f32 %v13233_v8, %v13232_v22  ;;  %v13235_v18 = vpop.f32.mrb[38].mxu1  ;;  %v13196_v40 = vpop.f32.mrb[39].mxu0 }
 0x98a   : > { %v11465_v25 = vadd.f32 %v13194_v17, %v11400_v21  ;;  %v13197_v20 = vadd.f32 %v13196_v40, %v13195_v2  ;;  %v13236_v34 = vpop.f32.mrb[39].mxu1 }
 0x98b   : > { %v13237_v42 = vadd.f32 %v13236_v34, %v13235_v18 }
 0x98c   : > { %v11530_v48 = vadd.f32 %v13234_v46, %v11465_v25  ;;  %v11468_v28 = vadd.f32 %v13197_v20, %v17416_v27 }
 0x98e   : > { %v17428_v60 = vadd.f32 %v13237_v42, %v11468_v28  ;;  %v13198_v61 = vpop.f32.mrb[40].mxu0 }
 0x98f   : > { %v13238_v35 = vpop.f32.mrb[40].mxu1  ;;  %v13199_v38 = vpop.f32.mrb[41].mxu0 }
 0x990   : > { %v13239_v56 = vpop.f32.mrb[41].mxu1  ;;  %v13200_v39 = vadd.f32 %v13199_v38, %v13198_v61  ;;  %v13201_v58 = vpop.f32.mrb[42].mxu0 }
 0x991   : > { %v13240_v44 = vadd.f32 %v13239_v56, %v13238_v35  ;;  %v13241_v41 = vpop.f32.mrb[42].mxu1  ;;  %v13202_v5 = vpop.f32.mrb[43].mxu0 }
 0x992   : > { %v13242_v36 = vpop.f32.mrb[43].mxu1  ;;  %v11473_v9 = vadd.f32 %v13200_v39, %v11408_v52  ;;  %v13203_v21 = vadd.f32 %v13202_v5, %v13201_v58 }
 0x993   : > { %v13243_v29 = vadd.f32 %v13242_v36, %v13241_v41 }
 0x994   : > { %v17430_v63 = vadd.f32 %v13240_v44, %v11473_v9  ;;  %v11476_v54 = vadd.f32 %v13203_v21, %v17419_v32 }
 0x996   : > { %v17433_v27 = vadd.f32 %v13243_v29, %v11476_v54  ;;  %v13204_v45 = vpop.f32.mrb[44].mxu0 }
 0x997   : > { %v13244_v12 = vpop.f32.mrb[44].mxu1  ;;  %v13205_v31 = vpop.f32.mrb[45].mxu0 }
 0x998   : > { %v13245_v50 = vpop.f32.mrb[45].mxu1  ;;  %v13206_v49 = vadd.f32 %v13205_v31, %v13204_v45  ;;  %v13207_v53 = vpop.f32.mrb[46].mxu0 }
 0x999   : > { %v13246_v26 = vadd.f32 %v13245_v50, %v13244_v12  ;;  %v13247_v47 = vpop.f32.mrb[46].mxu1  ;;  %v13208_v55 = vpop.f32.mrb[47].mxu0 }
 0x99a   : > { %v13248_v57 = vpop.f32.mrb[47].mxu1  ;;  %v11481_v16 = vadd.f32 %v13206_v49, %v11416_v51  ;;  %v13209_v52 = vadd.f32 %v13208_v55, %v13207_v53 }
 0x99b   : > { %v13249_v19 = vadd.f32 %v13248_v57, %v13247_v47 }
 0x99c   : > { %v17435_v37 = vadd.f32 %v13246_v26, %v11481_v16  ;;  %v11484_v43 = vadd.f32 %v13209_v52, %v17422_v4 }
 0x99e   : > { %v17438_v32 = vadd.f32 %v13249_v19, %v11484_v43  ;;  %v13266_v23 = vpop.f32.mrb[48].mxu0 }
 0x99f   : > { %v13306_v62 = vpop.f32.mrb[48].mxu1  ;;  %v13267_v0 = vpop.f32.mrb[49].mxu0 }
 0x9a0   : > { %v13268_v1 = vadd.f32 %v13267_v0, %v13266_v23  ;;  %v13307_v15 = vpop.f32.mrb[49].mxu1  ;;  %v13269_v7 = vpop.f32.mrb[50].mxu0 }
 0x9a1   : > { %v13308_v13 = vadd.f32 %v13307_v15, %v13306_v62  ;;  %v13309_v6 = vpop.f32.mrb[50].mxu1  ;;  %v13270_v14 = vpop.f32.mrb[51].mxu0 }
 0x9a2   : > { %v11587_v51 = vadd.f32 %v13268_v1, %v11522_v11  ;;  %v13271_v59 = vadd.f32 %v13270_v14, %v13269_v7  ;;  %v13310_v10 = vpop.f32.mrb[51].mxu1 }
 0x9a3   : > { %v13311_v30 = vadd.f32 %v13310_v10, %v13309_v6 }
 0x9a4   : > { %v11652_v33 = vadd.f32 %v13308_v13, %v11587_v51  ;;  %v11590_v4 = vadd.f32 %v13271_v59, %v17425_v3 }
 0x9a6   : > { %11682 = vst [vmem:[%s16138_s4] sm:$0xff] %v11652_v33  ;;  %v11655_v22 = vadd.f32 %v13311_v30, %v11590_v4  ;;  %v13272_v24 = vpop.f32.mrb[52].mxu0 }
 0x9a7   : > { %v13312_v17 = vpop.f32.mrb[52].mxu1  ;;  %v13273_v8 = vpop.f32.mrb[53].mxu0 }
 0x9a8   : > { %11683 = vst [vmem:[%s16138_s4 + $0x8] sm:$0xff] %v11655_v22  ;;  %v13274_v2 = vadd.f32 %v13273_v8, %v13272_v24  ;;  %v13313_v46 = vpop.f32.mrb[53].mxu1  ;;  %v13275_v18 = vpop.f32.mrb[54].mxu0 }
 0x9a9   : > { %v13314_v40 = vadd.f32 %v13313_v46, %v13312_v17  ;;  %v13315_v25 = vpop.f32.mrb[54].mxu1  ;;  %v13276_v11 = vpop.f32.mrb[55].mxu0 }
 0x9aa   : > { %v11595_v20 = vadd.f32 %v13274_v2, %v11530_v48  ;;  %v13277_v34 = vadd.f32 %v13276_v11, %v13275_v18  ;;  %v13316_v42 = vpop.f32.mrb[55].mxu1 }
 0x9ab   : > { %v13317_v28 = vadd.f32 %v13316_v42, %v13315_v25 }
 0x9ac   : > { %v11660_v61 = vadd.f32 %v13314_v40, %v11595_v20  ;;  %v11598_v3 = vadd.f32 %v13277_v34, %v17428_v60 }
 0x9ae   : > { %11684 = vst [vmem:[%s16138_s4 + $0x10] sm:$0xff] %v11660_v61  ;;  %v11663_v35 = vadd.f32 %v13317_v28, %v11598_v3  ;;  %v13278_v38 = vpop.f32.mrb[56].mxu0 }
 0x9af   : > { %v13318_v56 = vpop.f32.mrb[56].mxu1  ;;  %v13279_v39 = vpop.f32.mrb[57].mxu0 }
 0x9b0   : > { %11685 = vst [vmem:[%s16138_s4 + $0x18] sm:$0xff] %v11663_v35  ;;  %v13280_v44 = vadd.f32 %v13279_v39, %v13278_v38  ;;  %v13319_v58 = vpop.f32.mrb[57].mxu1  ;;  %v13281_v41 = vpop.f32.mrb[58].mxu0 }
 0x9b1   : > { %v13320_v5 = vadd.f32 %v13319_v58, %v13318_v56  ;;  %v13321_v36 = vpop.f32.mrb[58].mxu1  ;;  %v13282_v48 = vpop.f32.mrb[59].mxu0 }
 0x9b2   : > { %v11603_v9 = vadd.f32 %v13280_v44, %v17430_v63  ;;  %v13283_v21 = vadd.f32 %v13282_v48, %v13281_v41  ;;  %v13322_v29 = vpop.f32.mrb[59].mxu1 }
 0x9b3   : > { %v13323_v54 = vadd.f32 %v13322_v29, %v13321_v36 }
 0x9b4   : > { %v11668_v60 = vadd.f32 %v13320_v5, %v11603_v9  ;;  %v11606_v45 = vadd.f32 %v13283_v21, %v17433_v27 }
 0x9b6   : > { %11686 = vst [vmem:[%s16138_s4 + $0x20] sm:$0xff] %v11668_v60  ;;  %v11671_v12 = vadd.f32 %v13323_v54, %v11606_v45  ;;  %v13284_v31 = vpop.f32.mrb[60].mxu0 }
 0x9b7   : > { %v13324_v50 = vpop.f32.mrb[60].mxu1  ;;  %v13285_v49 = vpop.f32.mrb[61].mxu0 }
 0x9b8   : > { %11687 = vst [vmem:[%s16138_s4 + $0x28] sm:$0xff] %v11671_v12  ;;  %v13286_v26 = vadd.f32 %v13285_v49, %v13284_v31  ;;  %v13325_v53 = vpop.f32.mrb[61].mxu1  ;;  %v13287_v47 = vpop.f32.mrb[62].mxu0 }
 0x9b9   : > { %v13326_v55 = vadd.f32 %v13325_v53, %v13324_v50  ;;  %v13327_v57 = vpop.f32.mrb[62].mxu1  ;;  %v13288_v63 = vpop.f32.mrb[63].mxu0 }
 0x9ba   : > { %v11611_v16 = vadd.f32 %v13286_v26, %v17435_v37  ;;  %v13289_v52 = vadd.f32 %v13288_v63, %v13287_v47  ;;  %v13328_v19 = vpop.f32.mrb[63].mxu1 }
 0x9bb   : > { %v13329_v43 = vadd.f32 %v13328_v19, %v13327_v57 }
 0x9bc   : > { %v11676_v27 = vadd.f32 %v13326_v55, %v11611_v16  ;;  %v11614_v23 = vadd.f32 %v13289_v52, %v17438_v32 }
 0x9be   : > { %11688 = vst [vmem:[%s16138_s4 + $0x30] sm:$0xff] %v11676_v27  ;;  %v11679_v62 = vadd.f32 %v13329_v43, %v11614_v23 }
 0x9c0   : > { %11689 = vst [vmem:[%s16138_s4 + $0x38] sm:$0xff] %v11679_v62 }
 0x9c1 PF: > { %s15625_s6 = smov [#allocation20]   ;;  %p17652_p1 = scmp.eq.s32.totalorder %s15733_s22, 3 }
 0x9c2   : > { %s11705_s25 = sshll.u32 %s15625_s6, 4  ;;  %s11706_s25 = int_to_ptr.vmem [resolvable:$true] %s11705_s25 }
 0x9c3   : > { %s15448_s14 = scalar_lea.vmem %s11706_s25, 4096  ;;  %p15455_p2 = scmp.lt.s32.totalorder %s11706_s25, %s11706_s25 }
 0x9c4   : > { %p15449_p13 = scmp.ne.s32.totalorder %s11706_s25, %s15448_s14  ;;  %p15456_p7 = scmp.lt.s32.totalorder %s15448_s14, %s15448_s14 }
 0x9c6   : > { %p15450_p10 = pnand %p15449_p13, %p17652_p1  ;;  %p15457_p0 = por %p15456_p7, %p15455_p2 }
 0x9c8   : > { %p15451_p4 = pneg %p15450_p10 }
 0x9ca   : > { %p15458_p5 = pnand %p15457_p0, %p15451_p4 }
 0x9cc   : > { %15461 = shalt.err (!%p15458_p5)
}
 0x9cd   : > { %s17653_s23 = sld [smem:[#allocation49_spill]]  ;;  %p17654_p3 = pmov %p17652_p1 }
 0x9d3   : > { %s15462_s29 = scalar_lea.hbm %s17653_s23, 4096 }
 0x9d4   : > { %p15463_p9 = scmp.ne.s32.totalorder %s17653_s23, %s15462_s29  ;;  %p15468_p12 = scmp.lt.u32.totalorder %s15462_s29, %s17653_s23 }
 0x9d6   : > { %p15464_p8 = pnand %p15463_p9, %p17654_p3 }
 0x9d8   : > { %p15465_p11 = pneg %p15464_p8 }
 0x9da   : > { %p15470_p6 = pnand %p15468_p12, %p15465_p11 }
 0x9dc   : > { %15473 = shalt.err (!%p15470_p6)
}
 0x9dd   : > { %s15626_s13 = smov 512   ;;  %s17655_s3 = sld [smem:[#allocation33_spill]] }
 0x9de   : > { %s17656_s7 = sld [smem:[#allocation38_spill]]  ;;  %s15627_s16 = smov 32  }
 0x9df   : > { %p17657_p13 = pmov %p17652_p1  ;;  %s11726_s24 = sshll.u32 %s16138_s4, 4  ;;  %s17474_s24 = int_to_ptr.vmem [resolvable:$true] %s11726_s24 }
 0x9e0   : > { %s17658_s14 = sld [smem:[#allocation50_spill]]  ;;  %s11691_s29 = scalar_lea.sflag [#allocation22], %s16127_s2 }
 0x9e1   : > { %13615 = dma.vmem_to_hbm [thread:$0]  (%p17657_p13), %s11706_s25, 4096, %s17653_s23, [#allocation7], %s15626_s13, %s15626_s13, %s15627_s16  }
 0x9e2   : > { %s15474_s8 = scalar_lea.vmem %s17474_s24, 1024  ;;  %s15628_s25 = smov [#allocation21]  }
 0x9e3   : > { %s13003_s12 = sadd.s32 4294967294, %s17655_s3  ;;  %p15475_p10 = scmp.ne.s32.totalorder %s17474_s24, %s15474_s8 }
 0x9e4   : > { %p11716_p1 = scmp.gt.s32.totalorder %s13003_s12, 0  ;;  %p17660_p4 = scmp.ne.s32.totalorder %s17656_s7, 0 }
 0x9e5   : > { %s15478_s4 = sshll.u32 %s15628_s25, 4  ;;  %s15479_s4 = int_to_ptr.vmem [resolvable:$false] %s15478_s4 }
 0x9e6   : > { %s17682_s12 = smov (!%p11716_p1, %s13003_s12), 0  ;;  %s17659_s11 = smov %s17658_s14 }
 0x9e7   : > { %s13004_s19 = sshll.u32 %s17682_s12, 7  ;;  %p15476_p2 = pnand %p15475_p10, %p17660_p4 }
 0x9e8   : > { %s17479_s20 = scalar_lea.hbm %s17658_s14, %s13004_s19  ;;  %s15480_s5 = scalar_lea.vmem %s15479_s4, 2048 }
 0x9e9   : > { %p15477_p7 = pneg %p15476_p2  ;;  %p15481_p0 = scmp.lt.s32.totalorder %s17474_s24, %s15479_s4 }
 0x9ea   : > { %p15482_p5 = scmp.lt.s32.totalorder %s15480_s5, %s15474_s8 }
 0x9ec   : > { %p15483_p9 = por %p15482_p5, %p15481_p0 }
 0x9ee   : > { %p15484_p3 = pnand %p15483_p9, %p15477_p7 }
 0x9f0   : > { %15487 = shalt.err (!%p15484_p3)
}
 0x9f1   : > { %s15488_s28 = scalar_lea.hbm %s17479_s20, 1024  ;;  %s15492_s3 = scalar_lea.hbm %s17659_s11, 2048 }
 0x9f2   : > { %p15489_p8 = scmp.ne.s32.totalorder %s17479_s20, %s15488_s28  ;;  %p15493_p6 = scmp.lt.u32.totalorder %s17479_s20, %s17659_s11 }
 0x9f3   : > { %p15494_p13 = scmp.lt.u32.totalorder %s15492_s3, %s15488_s28  ;;  %p15496_p10 = scmp.lt.u32.totalorder %s15488_s28, %s17479_s20 }
 0x9f4   : > { %p15490_p11 = pnand %p15489_p8, %p17660_p4 }
 0x9f5   : > { %p15495_p1 = por %p15494_p13, %p15493_p6 }
 0x9f6   : > { %p15491_p12 = pneg %p15490_p11 }
 0x9f7   : > { %p15497_p2 = por %p15496_p10, %p15495_p1 }
 0x9f9   : > { %p15498_p7 = pnand %p15497_p2, %p15491_p12 }
 0x9fb   : > { %15501 = shalt.err (!%p15498_p7)
}
 0x9fc   : > { %s15629_s0 = smov 128   ;;  %s15630_s12 = smov 256  }
 0x9fd   : > { %s15631_s19 = smov 8   ;;  %p17661_p0 = scmp.eq.s32.totalorder %s15733_s22, 3 }
 0x9fe   : > { %13616 = dma.vmem_to_hbm [thread:$0]  (%p17660_p4), %s17474_s24, 1024, %s17479_s20, %s11691_s29, %s15629_s0, %s15630_s12, %s15631_s19  }
 0x9ff   : > { %15563 = dma.done.wait (%p17661_p0), [#allocation7], 4096   ;;  %p17662_p5 = pmov %p17661_p0 }
 0xa01   : > { %15565 = vsyncadd (%p17662_p5), [#allocation7], 4294963200 }
 0xa02 PF: > { %s17663_s27 = sld [smem:[#allocation31_spill]]  ;;  %s17664_s6 = sld [smem:[#allocation39_spill]] }
 0xa03   : > { %p13666_p9 = scmp.ge.s32.totalorder %s15604_s21, 2 }
 0xa08   : > { %s11745_s14 = sand.u32 1, %s17663_s27   ;;  %p17665_p3 = scmp.ne.s32.totalorder %s17664_s6, 0 }
 0xa09   : > { %s11746_s8 = scalar_lea.sflag [#allocation22], %s11745_s14 }
 0xa0a   : > { %p13650_p8 = pnand %p13666_p9, %p17665_p3 }
 0xa0c   : > { %15567 = dma.done.wait (!%p13650_p8), %s11746_s8, 1024  }
 0xa0d   : > { %15569 = vsyncadd (!%p13650_p8), %s11746_s8, 4294966272  ;;  %s36_s21 = sadd.s32 1, %s15604_s21   ;;  %s17666_s13 = sld [smem:[#allocation32_spill]] }
 0xa0e   : > { %p33_p11 = scmp.ge.s32.totalorder %s36_s21, 6   ;;  %s17667_s2 = sld [smem:[#allocation40_spill]] }
 0xa0f   : > { %s17668_s19 = sld [smem:[#allocation34_spill]]  ;;  %s17669_s20 = sld [smem:[#allocation36_spill]] }
 0xa10   : > { %s17670_s14 = smov %s15580_s15  ;;  %s17672_s16 = smov %s15588_s17 }
 0xa11   : > { %s17673_s17 = smov %s15592_s18  ;;  %s17674_s18 = smov %s15987_s30 }
 0xa12   :  { %35 = sbr.rel (!%p33_p11) target bundleno = 26 (0x1a), region = 184 }
 0xa14   : > { %s17671_s15 = smov %s17667_s2 }
 0xa19   :  { %11751 = vsyncpa [#allocation6], 1 }
 0xa1a   :  { %11753 = vsyncpa [#allocation6 + $0x1], 1 }
 0xa1b   :  { %11754 = vsyncpa [#allocation9], 1 }
 0xa1c   :  { %11756 = vsyncpa [#allocation9 + $0x1], 1 }
 0xa1d   :  { %11757 = vsyncpa [#allocation12], 1 }
 0xa1e   :  { %11758 = vsyncpa [#allocation15], 1 }
 0xa1f   :  { %11759 = vsyncpa [#allocation18], 1 }
 0xa20   :  { %11761 = vsyncpa [#allocation18 + $0x1], 1 }
 0xa21   :  { %11762 = vsyncpa [#allocation7], 1 }
 0xa22   :  { %11764 = vsyncpa [#allocation7 + $0x1], 1 }
 0xa23   :  { %11765 = vsyncpa [#allocation22], 1 }
 0xa24   :  { %11767 = vsyncpa [#allocation22 + $0x1], 1 }

</bundles_post_ra>
